<compile_context>
chip_gen: v7x
topology: tpu7x:2x2x1
jax: 0.10.0
libtpu: 0.0.40
codegen_flags: <defaults>
</compile_context>

<pallas_src>
import math
import functools

import numpy as np
import jax
import jax.numpy as jnp
from jax.experimental import pallas as pl
from jax.experimental.pallas import tpu as pltpu

# ----- model config (small, shapes consistent with the module) -----
INPUT_SIZE = 4        # e.g. one-hot DNA
OUTPUT_SIZE = 2
MAX_LEN = 16
EMB = 32              # embedding_size
GROUP = 8             # group_size
N_LAYERS = 8          # max_n_layers
HID = int(EMB * 2.0)  # expansion_factor = 2.0  -> 64
QK = EMB // 4         # query_key_dim           -> 8
LN_EPS = 1e-5


# ---------------------------------------------------------------- helpers ----
def _erf(x):
    # Abramowitz & Stegun 7.1.26 polynomial approximation (|err| < 1.5e-7).
    # TODO(synk): Mosaic has no native erf lowering; approximation used instead.
    a1, a2, a3, a4, a5 = (0.254829592, -0.284496736, 1.421413741,
                          -1.453152027, 1.061405429)
    p = 0.3275911
    s = jnp.where(x < 0.0, -1.0, 1.0)
    ax = jnp.abs(x)
    t = pl.reciprocal(1.0 + p * ax, approx=True)        # divide -> EUP slot
    poly = ((((a5 * t + a4) * t + a3) * t + a2) * t + a1) * t
    return s * (1.0 - poly * jnp.exp(-ax * ax))


def _laplace_attn(x):
    mu = math.sqrt(0.5)
    std = math.sqrt(0.25 * math.pi)
    return 0.5 * (1.0 + _erf((x - mu) / (std * math.sqrt(2.0))))


def _silu(x):
    # sigmoid's divide goes through the EUP approximate reciprocal.
    return x * pl.reciprocal(1.0 + jnp.exp(-x), approx=True)


def _t5_bias_matrix(rel_emb, g, qk_dim, num_buckets=32, max_distance=128):
    # T5RelativePositionBias with causal=True, scale = qk_dim ** 0.5 (host glue).
    q_pos = jnp.arange(g)
    k_pos = jnp.arange(g)
    rel = k_pos[None, :] - q_pos[:, None]
    n = jnp.maximum(-rel, 0)
    max_exact = num_buckets // 2
    is_small = n < max_exact
    val_large = max_exact + (
        jnp.log(jnp.maximum(n, 1).astype(jnp.float32) / max_exact)
        / math.log(max_distance / max_exact) * (num_buckets - max_exact)
    ).astype(jnp.int32)
    val_large = jnp.minimum(val_large, num_buckets - 1)
    bucket = jnp.where(is_small, n, val_large)
    bias = rel_emb[bucket, 0]                       # (g, g)
    return (bias * (qk_dim ** 0.5)).astype(jnp.float32)


def _chunk_masks(CB, L, G):
    """Per-chunk (R, R) masks + (CB, R) mean-pool matrix, R = CB*L (host numpy).
    These are compile-time constants shared by every grid program, so they do
    NOT grow with the total batch size."""
    R = CB * L
    idx = np.arange(R)
    ri, ci = idx[:, None], idx[None, :]
    # quadratic attention: same group, causal within the group (diag kept)
    quad = (((ri // G) == (ci // G)) & (ci <= ri)).astype(np.float32)
    # causal linear attention: same sequence, strictly earlier group
    lin = (((ri // L) == (ci // L)) & ((ci // G) < (ri // G))).astype(np.float32)
    # mean over sequence per batch element in the chunk
    pool = ((idx[None, :] // L) == np.arange(CB)[:, None]).astype(np.float32) / float(L)
    return jnp.asarray(quad), jnp.asarray(lin), jnp.asarray(pool)


def _full_spec(shape):
    nd = len(shape)
    return pl.BlockSpec(shape, lambda c, _nd=nd: (0,) * _nd)


# ----------------------------------------------------------------- kernel ----
def fused_kernel(x_ref, we_ref, posb_ref, lng_ref, lnb_ref,
                 wvg_ref, bvg_ref, wqk_ref, bqk_ref, g4_ref, bt4_ref,
                 wo_ref, bo_ref, bias_ref, qmask_ref, lmask_ref, pool_ref,
                 wd_ref, bd_ref, o_ref, *, H, QKD, NL):
    f32 = jnp.float32
    nt = (((1,), (1,)), ((), ()))     # contract last dims: q @ k^T

    # loop-invariant 0/1 masks, loaded once
    qmask = qmask_ref[...]            # (R, R)
    lmask = lmask_ref[...]            # (R, R)

    # ---- embedding Linear + positional enc (embedding bias folded into posb) ----
    h = jnp.dot(x_ref[...], we_ref[...], preferred_element_type=f32) + posb_ref[...]

    # ---- FLASH layers: statically unrolled, activation stays resident ----
    for li in range(NL):
        # pre-norm LayerNorm
        mu = jnp.mean(h, axis=-1, keepdims=True)
        var = jnp.mean(jnp.square(h - mu), axis=-1, keepdims=True)
        xn = (h - mu) * jax.lax.rsqrt(var + LN_EPS)
        xn = xn * lng_ref[li] + lnb_ref[li]

        # to_hidden: one lane-dense 128-wide matmul -> [v | gate]
        vg = _silu(jnp.dot(xn, wvg_ref[li], preferred_element_type=f32)
                   + bvg_ref[li])                               # (R, 2H) = (R, 128)
        v = vg[:, :H]
        gate = vg[:, H:]

        # to_qk host-tiled 4x + all 4 OffsetScale heads in ONE multiply-add.
        # The 1/G attention scaling is already folded into g4/bt4 on the host.
        heads = (_silu(jnp.dot(xn, wqk_ref[li], preferred_element_type=f32)
                       + bqk_ref[li])
                 * g4_ref[li] + bt4_ref[li])                    # (R, 4*QKD)
        quad_q = heads[:, 0:QKD]
        lin_q = heads[:, QKD:2 * QKD]
        quad_k = heads[:, 2 * QKD:3 * QKD]
        lin_k = heads[:, 3 * QKD:4 * QKD]

        # quadratic (in-group, causal) attention
        sim = jax.lax.dot_general(quad_q, quad_k, nt, preferred_element_type=f32)
        attn = _laplace_attn(sim + bias_ref[li]) * qmask

        # causal linear attention — exact block-causal masked factorization of
        # lin_q @ cumsum_{earlier groups}(lin_k^T v / G)
        lin_attn = jax.lax.dot_general(lin_q, lin_k, nt,
                                       preferred_element_type=f32) * lmask

        # shared value matmul: quad_out + lin_out == (attn + lin_attn) @ v
        attn_out = jnp.dot(attn + lin_attn, v, preferred_element_type=f32)

        # gate, to_out projection, residual
        h = h + (jnp.dot(gate * attn_out, wo_ref[li],
                         preferred_element_type=f32) + bo_ref[li])

    # ---- mean over sequence (per batch row in the chunk) + decoder Linear ----
    pooled = jnp.dot(pool_ref[...], h, preferred_element_type=f32)       # (CB, E)
    o_ref[0] = (jnp.dot(pooled, wd_ref[...], preferred_element_type=f32)
                + bd_ref[...])


# ---------------------------------------------------------------- wrapper ----
def gb_flash_classifier(x, packed):
    """Full forward pass; grid over batch chunks (parallel on multi-TC chips)."""
    (w_e, posb, ln_g, ln_b, w_vg, b_vg, w_qk4, b_qk4, g4, bt4,
     w_o, b_o, bias_t, qmask, lmask, pool, w_d, b_d) = packed
    B, L, F = x.shape
    assert L == MAX_LEN and L % GROUP == 0   # module adds max_len pos-enc directly
    CB, R = pool.shape
    assert R == CB * L and qmask.shape == (R, R)

    n_chunks = -(-B // CB)
    B_pad = n_chunks * CB
    xf = x.astype(jnp.float32)
    if B_pad != B:
        xf = jnp.concatenate(
            [xf, jnp.zeros((B_pad - B, L, F), jnp.float32)], axis=0)
    x2 = xf.reshape(n_chunks * R, F)

    args = (x2, w_e, posb, ln_g, ln_b, w_vg, b_vg, w_qk4, b_qk4, g4, bt4,
            w_o, b_o, bias_t, qmask, lmask, pool, w_d, b_d)
    in_specs = [pl.BlockSpec((R, F), lambda c: (c, 0))]        # per-chunk tokens
    in_specs += [_full_spec(a.shape) for a in args[1:]]        # resident params

    kern = functools.partial(fused_kernel, H=HID, QKD=QK, NL=N_LAYERS)
    out3 = pl.pallas_call(
        kern,
        out_shape=jax.ShapeDtypeStruct((n_chunks, CB, OUTPUT_SIZE), jnp.float32),
        grid=(n_chunks,),
        in_specs=in_specs,
        out_specs=pl.BlockSpec((1, CB, OUTPUT_SIZE), lambda c: (c, 0, 0)),
        compiler_params=pltpu.CompilerParams(
            dimension_semantics=("parallel",)),
    )(*args)
    return out3.reshape(B_pad, OUTPUT_SIZE)[:B]


# ----------------------------------------------------------- param init ------
def _linear(key, fan_in, fan_out):
    k1, k2 = jax.random.split(key)
    bound = 1.0 / math.sqrt(fan_in)
    w = jax.random.uniform(k1, (fan_in, fan_out), jnp.float32, -bound, bound)
    b = jax.random.uniform(k2, (1, fan_out), jnp.float32, -bound, bound)
    return w, b


def init_model(key):
    keys = jax.random.split(key, 4 + N_LAYERS)
    w_e, b_e = _linear(keys[0], INPUT_SIZE, EMB)                 # embedding Linear
    pos_table = jax.random.normal(keys[1], (MAX_LEN, EMB), jnp.float32)  # nn.Embedding
    w_d, b_d = _linear(keys[2], EMB, OUTPUT_SIZE)                # decoder Linear
    layers = []
    for i in range(N_LAYERS):
        lk = jax.random.split(keys[4 + i], 5)
        ln_g = jnp.ones((1, EMB), jnp.float32)                   # LayerNorm
        ln_b = jnp.zeros((1, EMB), jnp.float32)
        w_h, b_h = _linear(lk[0], EMB, 2 * HID)                  # to_hidden
        w_qk, b_qk = _linear(lk[1], EMB, QK)                     # to_qk
        os_g = 0.02 * jax.random.normal(lk[2], (4, QK), jnp.float32)  # OffsetScale
        os_b = jnp.zeros((4, QK), jnp.float32)
        w_o, b_o = _linear(lk[3], HID, EMB)                      # to_out
        rel_emb = jax.random.normal(lk[4], (32, 1), jnp.float32)  # T5 rel bias emb
        bias_mat = _t5_bias_matrix(rel_emb, GROUP, QK)
        layers.append((ln_g, ln_b, w_h, b_h, w_qk, b_qk, os_g, os_b,
                       w_o, b_o, bias_mat))
    return (w_e, b_e, pos_table, w_d, b_d, layers)


def pack_params(params, B, L):
    """One-time host-side packing for the fused kernel: stack layers, tile the
    to_qk weight 4x (one OffsetScale FMA), fold embedding bias into the pos
    table and the 1/G attention scale into the OffsetScale params, and build
    per-CHUNK constant masks / bias / pool matrices."""
    w_e, b_e, pos_table, w_d, b_d, layers = params
    CB = max(1, min(B, 128 // L))          # sequences per grid program
    R = CB * L
    posb = jnp.tile(pos_table[:L], (CB, 1)) + b_e                       # (R, E)
    ln_g = jnp.stack([l[0] for l in layers])                            # (NL,1,E)
    ln_b = jnp.stack([l[1] for l in layers])                            # (NL,1,E)
    w_vg = jnp.stack([l[2] for l in layers])                            # (NL,E,2H)
    b_vg = jnp.stack([l[3] for l in layers])                            # (NL,1,2H)
    w_qk4 = jnp.stack([jnp.tile(l[4], (1, 4)) for l in layers])         # (NL,E,4QK)
    b_qk4 = jnp.stack([jnp.tile(l[5], (1, 4)) for l in layers])         # (NL,1,4QK)
    scale = GROUP ** -0.5            # folds the /G of both attention branches
    g4 = jnp.stack([l[6].reshape(1, 4 * QK) * scale for l in layers])   # (NL,1,4QK)
    bt4 = jnp.stack([l[7].reshape(1, 4 * QK) * scale for l in layers])  # (NL,1,4QK)
    w_o = jnp.stack([l[8] for l in layers])                             # (NL,H,E)
    b_o = jnp.stack([l[9] for l in layers])                             # (NL,1,E)
    bias_t = jnp.stack([jnp.tile(l[10], (R // GROUP, R // GROUP))
                        for l in layers])                               # (NL,R,R)
    qmask, lmask, pool = _chunk_masks(CB, L, GROUP)
    return (w_e, posb, ln_g, ln_b, w_vg, b_vg, w_qk4, b_qk4, g4, bt4,
            w_o, b_o, bias_t, qmask, lmask, pool, w_d, b_d)


if __name__ == "__main__":
    x = jax.random.normal(jax.random.PRNGKey(0),
                          (2, MAX_LEN, INPUT_SIZE), jnp.float32)
    raw_params = init_model(jax.random.PRNGKey(42))
    packed = pack_params(raw_params, x.shape[0], x.shape[1])
    out = jax.jit(lambda xx: gb_flash_classifier(xx, packed))(x)
    out = jax.block_until_ready(out)
    assert out.shape == (2, OUTPUT_SIZE)
    assert bool(jnp.all(jnp.isfinite(out)))
    print("KERNEL_OK")
</pallas_src>

<mosaic_0001>
module attributes {stable_mosaic.version = 11 : i64} {
  func.func @fused_kernel(%arg0: i32, %arg1: memref<32x4xf32, #tpu.memory_space<vmem>>, %arg2: memref<4x32xf32, #tpu.memory_space<vmem>>, %arg3: memref<32x32xf32, #tpu.memory_space<vmem>>, %arg4: memref<8x1x32xf32, #tpu.memory_space<vmem>>, %arg5: memref<8x1x32xf32, #tpu.memory_space<vmem>>, %arg6: memref<8x32x128xf32, #tpu.memory_space<vmem>>, %arg7: memref<8x1x128xf32, #tpu.memory_space<vmem>>, %arg8: memref<8x32x32xf32, #tpu.memory_space<vmem>>, %arg9: memref<8x1x32xf32, #tpu.memory_space<vmem>>, %arg10: memref<8x1x32xf32, #tpu.memory_space<vmem>>, %arg11: memref<8x1x32xf32, #tpu.memory_space<vmem>>, %arg12: memref<8x64x32xf32, #tpu.memory_space<vmem>>, %arg13: memref<8x1x32xf32, #tpu.memory_space<vmem>>, %arg14: memref<8x32x32xf32, #tpu.memory_space<vmem>>, %arg15: memref<32x32xf32, #tpu.memory_space<vmem>>, %arg16: memref<32x32xf32, #tpu.memory_space<vmem>>, %arg17: memref<2x32xf32, #tpu.memory_space<vmem>>, %arg18: memref<32x2xf32, #tpu.memory_space<vmem>>, %arg19: memref<1x2xf32, #tpu.memory_space<vmem>>, %arg20: memref<1x2x2xf32, #tpu.memory_space<vmem>>) attributes {dimension_semantics = [#tpu.dimension_semantics<parallel>], iteration_bounds = array<i64: 1>, scalar_prefetch = 0 : i64, scratch_operands = 0 : i64, tpu.core_type = #tpu.core_type<tc>, window_params = [{transform_indices = @transform_0, window_bounds = array<i64: 32, 4>}, {pipeline_mode = #tpu.pipeline_mode<synchronous>, transform_indices = @transform_1, window_bounds = array<i64: 4, 32>}, {pipeline_mode = #tpu.pipeline_mode<synchronous>, transform_indices = @transform_2, window_bounds = array<i64: 32, 32>}, {pipeline_mode = #tpu.pipeline_mode<synchronous>, transform_indices = @transform_3, window_bounds = array<i64: 8, 1, 32>}, {pipeline_mode = #tpu.pipeline_mode<synchronous>, transform_indices = @transform_4, window_bounds = array<i64: 8, 1, 32>}, {pipeline_mode = #tpu.pipeline_mode<synchronous>, transform_indices = @transform_5, window_bounds = array<i64: 8, 32, 128>}, {pipeline_mode = #tpu.pipeline_mode<synchronous>, transform_indices = @transform_6, window_bounds = array<i64: 8, 1, 128>}, {pipeline_mode = #tpu.pipeline_mode<synchronous>, transform_indices = @transform_7, window_bounds = array<i64: 8, 32, 32>}, {pipeline_mode = #tpu.pipeline_mode<synchronous>, transform_indices = @transform_8, window_bounds = array<i64: 8, 1, 32>}, {pipeline_mode = #tpu.pipeline_mode<synchronous>, transform_indices = @transform_9, window_bounds = array<i64: 8, 1, 32>}, {pipeline_mode = #tpu.pipeline_mode<synchronous>, transform_indices = @transform_10, window_bounds = array<i64: 8, 1, 32>}, {pipeline_mode = #tpu.pipeline_mode<synchronous>, transform_indices = @transform_11, window_bounds = array<i64: 8, 64, 32>}, {pipeline_mode = #tpu.pipeline_mode<synchronous>, transform_indices = @transform_12, window_bounds = array<i64: 8, 1, 32>}, {pipeline_mode = #tpu.pipeline_mode<synchronous>, transform_indices = @transform_13, window_bounds = array<i64: 8, 32, 32>}, {pipeline_mode = #tpu.pipeline_mode<synchronous>, transform_indices = @transform_14, window_bounds = array<i64: 32, 32>}, {pipeline_mode = #tpu.pipeline_mode<synchronous>, transform_indices = @transform_15, window_bounds = array<i64: 32, 32>}, {pipeline_mode = #tpu.pipeline_mode<synchronous>, transform_indices = @transform_16, window_bounds = array<i64: 2, 32>}, {pipeline_mode = #tpu.pipeline_mode<synchronous>, transform_indices = @transform_17, window_bounds = array<i64: 32, 2>}, {pipeline_mode = #tpu.pipeline_mode<synchronous>, transform_indices = @transform_18, window_bounds = array<i64: 1, 2>}, {transform_indices = @transform_19, window_bounds = array<i64: 1, 2, 2>}]} {
    %c0 = arith.constant 0 : index
    %c0_0 = arith.constant 0 : index
    %0 = vector.load %arg15[%c0, %c0_0] : memref<32x32xf32, #tpu.memory_space<vmem>>, vector<32x32xf32>
    %c0_1 = arith.constant 0 : index
    %c0_2 = arith.constant 0 : index
    %1 = vector.load %arg16[%c0_1, %c0_2] : memref<32x32xf32, #tpu.memory_space<vmem>>, vector<32x32xf32>
    %c0_3 = arith.constant 0 : index
    %c0_4 = arith.constant 0 : index
    %2 = vector.load %arg1[%c0_3, %c0_4] : memref<32x4xf32, #tpu.memory_space<vmem>>, vector<32x4xf32>
    %c0_5 = arith.constant 0 : index
    %c0_6 = arith.constant 0 : index
    %3 = vector.load %arg2[%c0_5, %c0_6] : memref<4x32xf32, #tpu.memory_space<vmem>>, vector<4x32xf32>
    %cst = arith.constant dense<0.000000e+00> : vector<32x32xf32>
    %4 = tpu.matmul %2, %3, %cst {dimension_numbers = #tpu.dot_dimension_numbers<[1], [0], [0], [1], [0, 0, 1, 1], [], []>} : vector<32x4xf32>, vector<4x32xf32>, vector<32x32xf32> -> vector<32x32xf32>
    %c0_7 = arith.constant 0 : index
    %c0_8 = arith.constant 0 : index
    %5 = vector.load %arg3[%c0_7, %c0_8] : memref<32x32xf32, #tpu.memory_space<vmem>>, vector<32x32xf32>
    %6 = arith.addf %4, %5 : vector<32x32xf32>
    %cst_9 = arith.constant dense<0.000000e+00> : vector<32xf32>
    %7 = vector.multi_reduction <add>, %6, %cst_9 [1] : vector<32x32xf32> to vector<32xf32>
    %8 = vector.shape_cast %7 : vector<32xf32> to vector<32x1xf32>
    %cst_10 = arith.constant 3.200000e+01 : f32
    %9 = vector.broadcast %cst_10 : f32 to vector<32x1xf32>
    %10 = arith.divf %8, %9 : vector<32x1xf32>
    %11 = vector.broadcast %10 : vector<32x1xf32> to vector<32x32xf32>
    %12 = arith.subf %6, %11 : vector<32x32xf32>
    %13 = arith.mulf %12, %12 : vector<32x32xf32>
    %cst_11 = arith.constant dense<0.000000e+00> : vector<32xf32>
    %14 = vector.multi_reduction <add>, %13, %cst_11 [1] : vector<32x32xf32> to vector<32xf32>
    %15 = vector.shape_cast %14 : vector<32xf32> to vector<32x1xf32>
    %cst_12 = arith.constant 3.200000e+01 : f32
    %16 = vector.broadcast %cst_12 : f32 to vector<32x1xf32>
    %17 = arith.divf %15, %16 : vector<32x1xf32>
    %18 = vector.broadcast %10 : vector<32x1xf32> to vector<32x32xf32>
    %19 = arith.subf %6, %18 : vector<32x32xf32>
    %cst_13 = arith.constant 9.99999974E-6 : f32
    %20 = vector.broadcast %cst_13 : f32 to vector<32x1xf32>
    %21 = arith.addf %17, %20 : vector<32x1xf32>
    %22 = math.rsqrt %21 : vector<32x1xf32>
    %23 = vector.broadcast %22 : vector<32x1xf32> to vector<32x32xf32>
    %24 = arith.mulf %19, %23 : vector<32x32xf32>
    %c0_14 = arith.constant 0 : index
    %c0_15 = arith.constant 0 : index
    %c0_16 = arith.constant 0 : index
    %25 = vector.load %arg4[%c0_14, %c0_15, %c0_16] : memref<8x1x32xf32, #tpu.memory_space<vmem>>, vector<1x1x32xf32>
    %26 = vector.shape_cast %25 : vector<1x1x32xf32> to vector<1x32xf32>
    %27 = vector.broadcast %26 : vector<1x32xf32> to vector<32x32xf32>
    %28 = arith.mulf %24, %27 : vector<32x32xf32>
    %c0_17 = arith.constant 0 : index
    %c0_18 = arith.constant 0 : index
    %c0_19 = arith.constant 0 : index
    %29 = vector.load %arg5[%c0_17, %c0_18, %c0_19] : memref<8x1x32xf32, #tpu.memory_space<vmem>>, vector<1x1x32xf32>
    %30 = vector.shape_cast %29 : vector<1x1x32xf32> to vector<1x32xf32>
    %31 = vector.broadcast %30 : vector<1x32xf32> to vector<32x32xf32>
    %32 = arith.addf %28, %31 : vector<32x32xf32>
    %c0_20 = arith.constant 0 : index
    %c0_21 = arith.constant 0 : index
    %c0_22 = arith.constant 0 : index
    %33 = vector.load %arg6[%c0_20, %c0_21, %c0_22] : memref<8x32x128xf32, #tpu.memory_space<vmem>>, vector<1x32x128xf32>
    %34 = vector.shape_cast %33 : vector<1x32x128xf32> to vector<32x128xf32>
    %cst_23 = arith.constant dense<0.000000e+00> : vector<32x128xf32>
    %35 = tpu.matmul %32, %34, %cst_23 {dimension_numbers = #tpu.dot_dimension_numbers<[1], [0], [0], [1], [0, 0, 1, 1], [], []>} : vector<32x32xf32>, vector<32x128xf32>, vector<32x128xf32> -> vector<32x128xf32>
    %c0_24 = arith.constant 0 : index
    %c0_25 = arith.constant 0 : index
    %c0_26 = arith.constant 0 : index
    %36 = vector.load %arg7[%c0_24, %c0_25, %c0_26] : memref<8x1x128xf32, #tpu.memory_space<vmem>>, vector<1x1x128xf32>
    %37 = vector.shape_cast %36 : vector<1x1x128xf32> to vector<1x128xf32>
    %38 = vector.broadcast %37 : vector<1x128xf32> to vector<32x128xf32>
    %39 = arith.addf %35, %38 : vector<32x128xf32>
    %cst_27 = arith.constant 0.000000e+00 : f32
    %40 = vector.broadcast %cst_27 : f32 to vector<32x128xf32>
    %41 = arith.subf %40, %39 : vector<32x128xf32>
    %42 = math.exp %41 : vector<32x128xf32>
    %cst_28 = arith.constant 1.000000e+00 : f32
    %43 = vector.broadcast %cst_28 : f32 to vector<32x128xf32>
    %44 = arith.addf %43, %42 : vector<32x128xf32>
    %45 = tpu.reciprocal %44 {approx = true} : vector<32x128xf32> -> vector<32x128xf32>
    %46 = arith.mulf %39, %45 : vector<32x128xf32>
    %47 = vector.extract_strided_slice %46 {offsets = [0, 0], sizes = [32, 64], strides = [1, 1]} : vector<32x128xf32> to vector<32x64xf32>
    %48 = vector.extract_strided_slice %46 {offsets = [0, 64], sizes = [32, 64], strides = [1, 1]} : vector<32x128xf32> to vector<32x64xf32>
    %c0_29 = arith.constant 0 : index
    %c0_30 = arith.constant 0 : index
    %c0_31 = arith.constant 0 : index
    %49 = vector.load %arg8[%c0_29, %c0_30, %c0_31] : memref<8x32x32xf32, #tpu.memory_space<vmem>>, vector<1x32x32xf32>
    %50 = vector.shape_cast %49 : vector<1x32x32xf32> to vector<32x32xf32>
    %cst_32 = arith.constant dense<0.000000e+00> : vector<32x32xf32>
    %51 = tpu.matmul %32, %50, %cst_32 {dimension_numbers = #tpu.dot_dimension_numbers<[1], [0], [0], [1], [0, 0, 1, 1], [], []>} : vector<32x32xf32>, vector<32x32xf32>, vector<32x32xf32> -> vector<32x32xf32>
    %c0_33 = arith.constant 0 : index
    %c0_34 = arith.constant 0 : index
    %c0_35 = arith.constant 0 : index
    %52 = vector.load %arg9[%c0_33, %c0_34, %c0_35] : memref<8x1x32xf32, #tpu.memory_space<vmem>>, vector<1x1x32xf32>
    %53 = vector.shape_cast %52 : vector<1x1x32xf32> to vector<1x32xf32>
    %54 = vector.broadcast %53 : vector<1x32xf32> to vector<32x32xf32>
    %55 = arith.addf %51, %54 : vector<32x32xf32>
    %cst_36 = arith.constant 0.000000e+00 : f32
    %56 = vector.broadcast %cst_36 : f32 to vector<32x32xf32>
    %57 = arith.subf %56, %55 : vector<32x32xf32>
    %58 = math.exp %57 : vector<32x32xf32>
    %cst_37 = arith.constant 1.000000e+00 : f32
    %59 = vector.broadcast %cst_37 : f32 to vector<32x32xf32>
    %60 = arith.addf %59, %58 : vector<32x32xf32>
    %61 = tpu.reciprocal %60 {approx = true} : vector<32x32xf32> -> vector<32x32xf32>
    %62 = arith.mulf %55, %61 : vector<32x32xf32>
    %c0_38 = arith.constant 0 : index
    %c0_39 = arith.constant 0 : index
    %c0_40 = arith.constant 0 : index
    %63 = vector.load %arg10[%c0_38, %c0_39, %c0_40] : memref<8x1x32xf32, #tpu.memory_space<vmem>>, vector<1x1x32xf32>
    %64 = vector.shape_cast %63 : vector<1x1x32xf32> to vector<1x32xf32>
    %65 = vector.broadcast %64 : vector<1x32xf32> to vector<32x32xf32>
    %66 = arith.mulf %62, %65 : vector<32x32xf32>
    %c0_41 = arith.constant 0 : index
    %c0_42 = arith.constant 0 : index
    %c0_43 = arith.constant 0 : index
    %67 = vector.load %arg11[%c0_41, %c0_42, %c0_43] : memref<8x1x32xf32, #tpu.memory_space<vmem>>, vector<1x1x32xf32>
    %68 = vector.shape_cast %67 : vector<1x1x32xf32> to vector<1x32xf32>
    %69 = vector.broadcast %68 : vector<1x32xf32> to vector<32x32xf32>
    %70 = arith.addf %66, %69 : vector<32x32xf32>
    %71 = vector.extract_strided_slice %70 {offsets = [0, 0], sizes = [32, 8], strides = [1, 1]} : vector<32x32xf32> to vector<32x8xf32>
    %72 = vector.extract_strided_slice %70 {offsets = [0, 8], sizes = [32, 8], strides = [1, 1]} : vector<32x32xf32> to vector<32x8xf32>
    %73 = vector.extract_strided_slice %70 {offsets = [0, 16], sizes = [32, 8], strides = [1, 1]} : vector<32x32xf32> to vector<32x8xf32>
    %74 = vector.extract_strided_slice %70 {offsets = [0, 24], sizes = [32, 8], strides = [1, 1]} : vector<32x32xf32> to vector<32x8xf32>
    %cst_44 = arith.constant dense<0.000000e+00> : vector<32x32xf32>
    %75 = tpu.matmul %71, %73, %cst_44 {dimension_numbers = #tpu.dot_dimension_numbers<[1], [1], [0], [0], [0, 0, 1, 0], [], []>} : vector<32x8xf32>, vector<32x8xf32>, vector<32x32xf32> -> vector<32x32xf32>
    %c0_45 = arith.constant 0 : index
    %c0_46 = arith.constant 0 : index
    %c0_47 = arith.constant 0 : index
    %76 = vector.load %arg14[%c0_45, %c0_46, %c0_47] : memref<8x32x32xf32, #tpu.memory_space<vmem>>, vector<1x32x32xf32>
    %77 = vector.shape_cast %76 : vector<1x32x32xf32> to vector<32x32xf32>
    %78 = arith.addf %75, %77 : vector<32x32xf32>
    %cst_48 = arith.constant 0.707106769 : f32
    %79 = vector.broadcast %cst_48 : f32 to vector<32x32xf32>
    %80 = arith.subf %78, %79 : vector<32x32xf32>
    %cst_49 = arith.constant 1.25331414 : f32
    %81 = vector.broadcast %cst_49 : f32 to vector<32x32xf32>
    %82 = arith.divf %80, %81 : vector<32x32xf32>
    %cst_50 = arith.constant 0.000000e+00 : f32
    %83 = vector.broadcast %cst_50 : f32 to vector<32x32xf32>
    %84 = arith.cmpf olt, %82, %83 : vector<32x32xf32>
    %cst_51 = arith.constant -1.000000e+00 : f32
    %cst_52 = arith.constant 1.000000e+00 : f32
    %85 = vector.broadcast %cst_51 : f32 to vector<32x32xf32>
    %86 = vector.broadcast %cst_52 : f32 to vector<32x32xf32>
    %87 = arith.select %84, %85, %86 : vector<32x32xi1>, vector<32x32xf32>
    %88 = math.absf %82 : vector<32x32xf32>
    %cst_53 = arith.constant 0.327591091 : f32
    %89 = vector.broadcast %cst_53 : f32 to vector<32x32xf32>
    %90 = arith.mulf %89, %88 : vector<32x32xf32>
    %cst_54 = arith.constant 1.000000e+00 : f32
    %91 = vector.broadcast %cst_54 : f32 to vector<32x32xf32>
    %92 = arith.addf %91, %90 : vector<32x32xf32>
    %93 = tpu.reciprocal %92 {approx = true} : vector<32x32xf32> -> vector<32x32xf32>
    %cst_55 = arith.constant 1.06140542 : f32
    %94 = vector.broadcast %cst_55 : f32 to vector<32x32xf32>
    %95 = arith.mulf %94, %93 : vector<32x32xf32>
    %cst_56 = arith.constant -1.45315206 : f32
    %96 = vector.broadcast %cst_56 : f32 to vector<32x32xf32>
    %97 = arith.addf %95, %96 : vector<32x32xf32>
    %98 = arith.mulf %97, %93 : vector<32x32xf32>
    %cst_57 = arith.constant 1.42141378 : f32
    %99 = vector.broadcast %cst_57 : f32 to vector<32x32xf32>
    %100 = arith.addf %98, %99 : vector<32x32xf32>
    %101 = arith.mulf %100, %93 : vector<32x32xf32>
    %cst_58 = arith.constant -0.284496725 : f32
    %102 = vector.broadcast %cst_58 : f32 to vector<32x32xf32>
    %103 = arith.addf %101, %102 : vector<32x32xf32>
    %104 = arith.mulf %103, %93 : vector<32x32xf32>
    %cst_59 = arith.constant 0.254829586 : f32
    %105 = vector.broadcast %cst_59 : f32 to vector<32x32xf32>
    %106 = arith.addf %104, %105 : vector<32x32xf32>
    %107 = arith.mulf %106, %93 : vector<32x32xf32>
    %cst_60 = arith.constant 0.000000e+00 : f32
    %108 = vector.broadcast %cst_60 : f32 to vector<32x32xf32>
    %109 = arith.subf %108, %88 : vector<32x32xf32>
    %110 = arith.mulf %109, %88 : vector<32x32xf32>
    %111 = math.exp %110 : vector<32x32xf32>
    %112 = arith.mulf %107, %111 : vector<32x32xf32>
    %cst_61 = arith.constant 1.000000e+00 : f32
    %113 = vector.broadcast %cst_61 : f32 to vector<32x32xf32>
    %114 = arith.subf %113, %112 : vector<32x32xf32>
    %115 = arith.mulf %87, %114 : vector<32x32xf32>
    %cst_62 = arith.constant 1.000000e+00 : f32
    %116 = vector.broadcast %cst_62 : f32 to vector<32x32xf32>
    %117 = arith.addf %116, %115 : vector<32x32xf32>
    %cst_63 = arith.constant 5.000000e-01 : f32
    %118 = vector.broadcast %cst_63 : f32 to vector<32x32xf32>
    %119 = arith.mulf %118, %117 : vector<32x32xf32>
    %120 = arith.mulf %119, %0 : vector<32x32xf32>
    %cst_64 = arith.constant dense<0.000000e+00> : vector<32x32xf32>
    %121 = tpu.matmul %72, %74, %cst_64 {dimension_numbers = #tpu.dot_dimension_numbers<[1], [1], [0], [0], [0, 0, 1, 0], [], []>} : vector<32x8xf32>, vector<32x8xf32>, vector<32x32xf32> -> vector<32x32xf32>
    %122 = arith.mulf %121, %1 : vector<32x32xf32>
    %123 = arith.addf %120, %122 : vector<32x32xf32>
    %cst_65 = arith.constant dense<0.000000e+00> : vector<32x64xf32>
    %124 = tpu.matmul %123, %47, %cst_65 {dimension_numbers = #tpu.dot_dimension_numbers<[1], [0], [0], [1], [0, 0, 1, 1], [], []>} : vector<32x32xf32>, vector<32x64xf32>, vector<32x64xf32> -> vector<32x64xf32>
    %125 = arith.mulf %48, %124 : vector<32x64xf32>
    %c0_66 = arith.constant 0 : index
    %c0_67 = arith.constant 0 : index
    %c0_68 = arith.constant 0 : index
    %126 = vector.load %arg12[%c0_66, %c0_67, %c0_68] : memref<8x64x32xf32, #tpu.memory_space<vmem>>, vector<1x64x32xf32>
    %127 = vector.shape_cast %126 : vector<1x64x32xf32> to vector<64x32xf32>
    %cst_69 = arith.constant dense<0.000000e+00> : vector<32x32xf32>
    %128 = tpu.matmul %125, %127, %cst_69 {dimension_numbers = #tpu.dot_dimension_numbers<[1], [0], [0], [1], [0, 0, 1, 1], [], []>} : vector<32x64xf32>, vector<64x32xf32>, vector<32x32xf32> -> vector<32x32xf32>
    %c0_70 = arith.constant 0 : index
    %c0_71 = arith.constant 0 : index
    %c0_72 = arith.constant 0 : index
    %129 = vector.load %arg13[%c0_70, %c0_71, %c0_72] : memref<8x1x32xf32, #tpu.memory_space<vmem>>, vector<1x1x32xf32>
    %130 = vector.shape_cast %129 : vector<1x1x32xf32> to vector<1x32xf32>
    %131 = vector.broadcast %130 : vector<1x32xf32> to vector<32x32xf32>
    %132 = arith.addf %128, %131 : vector<32x32xf32>
    %133 = arith.addf %6, %132 : vector<32x32xf32>
    %cst_73 = arith.constant dense<0.000000e+00> : vector<32xf32>
    %134 = vector.multi_reduction <add>, %133, %cst_73 [1] : vector<32x32xf32> to vector<32xf32>
    %135 = vector.shape_cast %134 : vector<32xf32> to vector<32x1xf32>
    %cst_74 = arith.constant 3.200000e+01 : f32
    %136 = vector.broadcast %cst_74 : f32 to vector<32x1xf32>
    %137 = arith.divf %135, %136 : vector<32x1xf32>
    %138 = vector.broadcast %137 : vector<32x1xf32> to vector<32x32xf32>
    %139 = arith.subf %133, %138 : vector<32x32xf32>
    %140 = arith.mulf %139, %139 : vector<32x32xf32>
    %cst_75 = arith.constant dense<0.000000e+00> : vector<32xf32>
    %141 = vector.multi_reduction <add>, %140, %cst_75 [1] : vector<32x32xf32> to vector<32xf32>
    %142 = vector.shape_cast %141 : vector<32xf32> to vector<32x1xf32>
    %cst_76 = arith.constant 3.200000e+01 : f32
    %143 = vector.broadcast %cst_76 : f32 to vector<32x1xf32>
    %144 = arith.divf %142, %143 : vector<32x1xf32>
    %145 = vector.broadcast %137 : vector<32x1xf32> to vector<32x32xf32>
    %146 = arith.subf %133, %145 : vector<32x32xf32>
    %cst_77 = arith.constant 9.99999974E-6 : f32
    %147 = vector.broadcast %cst_77 : f32 to vector<32x1xf32>
    %148 = arith.addf %144, %147 : vector<32x1xf32>
    %149 = math.rsqrt %148 : vector<32x1xf32>
    %150 = vector.broadcast %149 : vector<32x1xf32> to vector<32x32xf32>
    %151 = arith.mulf %146, %150 : vector<32x32xf32>
    %c1 = arith.constant 1 : index
    %c0_78 = arith.constant 0 : index
    %c0_79 = arith.constant 0 : index
    %152 = vector.load %arg4[%c1, %c0_78, %c0_79] : memref<8x1x32xf32, #tpu.memory_space<vmem>>, vector<1x1x32xf32>
    %153 = vector.shape_cast %152 : vector<1x1x32xf32> to vector<1x32xf32>
    %154 = vector.broadcast %153 : vector<1x32xf32> to vector<32x32xf32>
    %155 = arith.mulf %151, %154 : vector<32x32xf32>
    %c1_80 = arith.constant 1 : index
    %c0_81 = arith.constant 0 : index
    %c0_82 = arith.constant 0 : index
    %156 = vector.load %arg5[%c1_80, %c0_81, %c0_82] : memref<8x1x32xf32, #tpu.memory_space<vmem>>, vector<1x1x32xf32>
    %157 = vector.shape_cast %156 : vector<1x1x32xf32> to vector<1x32xf32>
    %158 = vector.broadcast %157 : vector<1x32xf32> to vector<32x32xf32>
    %159 = arith.addf %155, %158 : vector<32x32xf32>
    %c1_83 = arith.constant 1 : index
    %c0_84 = arith.constant 0 : index
    %c0_85 = arith.constant 0 : index
    %160 = vector.load %arg6[%c1_83, %c0_84, %c0_85] : memref<8x32x128xf32, #tpu.memory_space<vmem>>, vector<1x32x128xf32>
    %161 = vector.shape_cast %160 : vector<1x32x128xf32> to vector<32x128xf32>
    %cst_86 = arith.constant dense<0.000000e+00> : vector<32x128xf32>
    %162 = tpu.matmul %159, %161, %cst_86 {dimension_numbers = #tpu.dot_dimension_numbers<[1], [0], [0], [1], [0, 0, 1, 1], [], []>} : vector<32x32xf32>, vector<32x128xf32>, vector<32x128xf32> -> vector<32x128xf32>
    %c1_87 = arith.constant 1 : index
    %c0_88 = arith.constant 0 : index
    %c0_89 = arith.constant 0 : index
    %163 = vector.load %arg7[%c1_87, %c0_88, %c0_89] : memref<8x1x128xf32, #tpu.memory_space<vmem>>, vector<1x1x128xf32>
    %164 = vector.shape_cast %163 : vector<1x1x128xf32> to vector<1x128xf32>
    %165 = vector.broadcast %164 : vector<1x128xf32> to vector<32x128xf32>
    %166 = arith.addf %162, %165 : vector<32x128xf32>
    %cst_90 = arith.constant 0.000000e+00 : f32
    %167 = vector.broadcast %cst_90 : f32 to vector<32x128xf32>
    %168 = arith.subf %167, %166 : vector<32x128xf32>
    %169 = math.exp %168 : vector<32x128xf32>
    %cst_91 = arith.constant 1.000000e+00 : f32
    %170 = vector.broadcast %cst_91 : f32 to vector<32x128xf32>
    %171 = arith.addf %170, %169 : vector<32x128xf32>
    %172 = tpu.reciprocal %171 {approx = true} : vector<32x128xf32> -> vector<32x128xf32>
    %173 = arith.mulf %166, %172 : vector<32x128xf32>
    %174 = vector.extract_strided_slice %173 {offsets = [0, 0], sizes = [32, 64], strides = [1, 1]} : vector<32x128xf32> to vector<32x64xf32>
    %175 = vector.extract_strided_slice %173 {offsets = [0, 64], sizes = [32, 64], strides = [1, 1]} : vector<32x128xf32> to vector<32x64xf32>
    %c1_92 = arith.constant 1 : index
    %c0_93 = arith.constant 0 : index
    %c0_94 = arith.constant 0 : index
    %176 = vector.load %arg8[%c1_92, %c0_93, %c0_94] : memref<8x32x32xf32, #tpu.memory_space<vmem>>, vector<1x32x32xf32>
    %177 = vector.shape_cast %176 : vector<1x32x32xf32> to vector<32x32xf32>
    %cst_95 = arith.constant dense<0.000000e+00> : vector<32x32xf32>
    %178 = tpu.matmul %159, %177, %cst_95 {dimension_numbers = #tpu.dot_dimension_numbers<[1], [0], [0], [1], [0, 0, 1, 1], [], []>} : vector<32x32xf32>, vector<32x32xf32>, vector<32x32xf32> -> vector<32x32xf32>
    %c1_96 = arith.constant 1 : index
    %c0_97 = arith.constant 0 : index
    %c0_98 = arith.constant 0 : index
    %179 = vector.load %arg9[%c1_96, %c0_97, %c0_98] : memref<8x1x32xf32, #tpu.memory_space<vmem>>, vector<1x1x32xf32>
    %180 = vector.shape_cast %179 : vector<1x1x32xf32> to vector<1x32xf32>
    %181 = vector.broadcast %180 : vector<1x32xf32> to vector<32x32xf32>
    %182 = arith.addf %178, %181 : vector<32x32xf32>
    %cst_99 = arith.constant 0.000000e+00 : f32
    %183 = vector.broadcast %cst_99 : f32 to vector<32x32xf32>
    %184 = arith.subf %183, %182 : vector<32x32xf32>
    %185 = math.exp %184 : vector<32x32xf32>
    %cst_100 = arith.constant 1.000000e+00 : f32
    %186 = vector.broadcast %cst_100 : f32 to vector<32x32xf32>
    %187 = arith.addf %186, %185 : vector<32x32xf32>
    %188 = tpu.reciprocal %187 {approx = true} : vector<32x32xf32> -> vector<32x32xf32>
    %189 = arith.mulf %182, %188 : vector<32x32xf32>
    %c1_101 = arith.constant 1 : index
    %c0_102 = arith.constant 0 : index
    %c0_103 = arith.constant 0 : index
    %190 = vector.load %arg10[%c1_101, %c0_102, %c0_103] : memref<8x1x32xf32, #tpu.memory_space<vmem>>, vector<1x1x32xf32>
    %191 = vector.shape_cast %190 : vector<1x1x32xf32> to vector<1x32xf32>
    %192 = vector.broadcast %191 : vector<1x32xf32> to vector<32x32xf32>
    %193 = arith.mulf %189, %192 : vector<32x32xf32>
    %c1_104 = arith.constant 1 : index
    %c0_105 = arith.constant 0 : index
    %c0_106 = arith.constant 0 : index
    %194 = vector.load %arg11[%c1_104, %c0_105, %c0_106] : memref<8x1x32xf32, #tpu.memory_space<vmem>>, vector<1x1x32xf32>
    %195 = vector.shape_cast %194 : vector<1x1x32xf32> to vector<1x32xf32>
    %196 = vector.broadcast %195 : vector<1x32xf32> to vector<32x32xf32>
    %197 = arith.addf %193, %196 : vector<32x32xf32>
    %198 = vector.extract_strided_slice %197 {offsets = [0, 0], sizes = [32, 8], strides = [1, 1]} : vector<32x32xf32> to vector<32x8xf32>
    %199 = vector.extract_strided_slice %197 {offsets = [0, 8], sizes = [32, 8], strides = [1, 1]} : vector<32x32xf32> to vector<32x8xf32>
    %200 = vector.extract_strided_slice %197 {offsets = [0, 16], sizes = [32, 8], strides = [1, 1]} : vector<32x32xf32> to vector<32x8xf32>
    %201 = vector.extract_strided_slice %197 {offsets = [0, 24], sizes = [32, 8], strides = [1, 1]} : vector<32x32xf32> to vector<32x8xf32>
    %cst_107 = arith.constant dense<0.000000e+00> : vector<32x32xf32>
    %202 = tpu.matmul %198, %200, %cst_107 {dimension_numbers = #tpu.dot_dimension_numbers<[1], [1], [0], [0], [0, 0, 1, 0], [], []>} : vector<32x8xf32>, vector<32x8xf32>, vector<32x32xf32> -> vector<32x32xf32>
    %c1_108 = arith.constant 1 : index
    %c0_109 = arith.constant 0 : index
    %c0_110 = arith.constant 0 : index
    %203 = vector.load %arg14[%c1_108, %c0_109, %c0_110] : memref<8x32x32xf32, #tpu.memory_space<vmem>>, vector<1x32x32xf32>
    %204 = vector.shape_cast %203 : vector<1x32x32xf32> to vector<32x32xf32>
    %205 = arith.addf %202, %204 : vector<32x32xf32>
    %cst_111 = arith.constant 0.707106769 : f32
    %206 = vector.broadcast %cst_111 : f32 to vector<32x32xf32>
    %207 = arith.subf %205, %206 : vector<32x32xf32>
    %cst_112 = arith.constant 1.25331414 : f32
    %208 = vector.broadcast %cst_112 : f32 to vector<32x32xf32>
    %209 = arith.divf %207, %208 : vector<32x32xf32>
    %cst_113 = arith.constant 0.000000e+00 : f32
    %210 = vector.broadcast %cst_113 : f32 to vector<32x32xf32>
    %211 = arith.cmpf olt, %209, %210 : vector<32x32xf32>
    %cst_114 = arith.constant -1.000000e+00 : f32
    %cst_115 = arith.constant 1.000000e+00 : f32
    %212 = vector.broadcast %cst_114 : f32 to vector<32x32xf32>
    %213 = vector.broadcast %cst_115 : f32 to vector<32x32xf32>
    %214 = arith.select %211, %212, %213 : vector<32x32xi1>, vector<32x32xf32>
    %215 = math.absf %209 : vector<32x32xf32>
    %cst_116 = arith.constant 0.327591091 : f32
    %216 = vector.broadcast %cst_116 : f32 to vector<32x32xf32>
    %217 = arith.mulf %216, %215 : vector<32x32xf32>
    %cst_117 = arith.constant 1.000000e+00 : f32
    %218 = vector.broadcast %cst_117 : f32 to vector<32x32xf32>
    %219 = arith.addf %218, %217 : vector<32x32xf32>
    %220 = tpu.reciprocal %219 {approx = true} : vector<32x32xf32> -> vector<32x32xf32>
    %cst_118 = arith.constant 1.06140542 : f32
    %221 = vector.broadcast %cst_118 : f32 to vector<32x32xf32>
    %222 = arith.mulf %221, %220 : vector<32x32xf32>
    %cst_119 = arith.constant -1.45315206 : f32
    %223 = vector.broadcast %cst_119 : f32 to vector<32x32xf32>
    %224 = arith.addf %222, %223 : vector<32x32xf32>
    %225 = arith.mulf %224, %220 : vector<32x32xf32>
    %cst_120 = arith.constant 1.42141378 : f32
    %226 = vector.broadcast %cst_120 : f32 to vector<32x32xf32>
    %227 = arith.addf %225, %226 : vector<32x32xf32>
    %228 = arith.mulf %227, %220 : vector<32x32xf32>
    %cst_121 = arith.constant -0.284496725 : f32
    %229 = vector.broadcast %cst_121 : f32 to vector<32x32xf32>
    %230 = arith.addf %228, %229 : vector<32x32xf32>
    %231 = arith.mulf %230, %220 : vector<32x32xf32>
    %cst_122 = arith.constant 0.254829586 : f32
    %232 = vector.broadcast %cst_122 : f32 to vector<32x32xf32>
    %233 = arith.addf %231, %232 : vector<32x32xf32>
    %234 = arith.mulf %233, %220 : vector<32x32xf32>
    %cst_123 = arith.constant 0.000000e+00 : f32
    %235 = vector.broadcast %cst_123 : f32 to vector<32x32xf32>
    %236 = arith.subf %235, %215 : vector<32x32xf32>
    %237 = arith.mulf %236, %215 : vector<32x32xf32>
    %238 = math.exp %237 : vector<32x32xf32>
    %239 = arith.mulf %234, %238 : vector<32x32xf32>
    %cst_124 = arith.constant 1.000000e+00 : f32
    %240 = vector.broadcast %cst_124 : f32 to vector<32x32xf32>
    %241 = arith.subf %240, %239 : vector<32x32xf32>
    %242 = arith.mulf %214, %241 : vector<32x32xf32>
    %cst_125 = arith.constant 1.000000e+00 : f32
    %243 = vector.broadcast %cst_125 : f32 to vector<32x32xf32>
    %244 = arith.addf %243, %242 : vector<32x32xf32>
    %cst_126 = arith.constant 5.000000e-01 : f32
    %245 = vector.broadcast %cst_126 : f32 to vector<32x32xf32>
    %246 = arith.mulf %245, %244 : vector<32x32xf32>
    %247 = arith.mulf %246, %0 : vector<32x32xf32>
    %cst_127 = arith.constant dense<0.000000e+00> : vector<32x32xf32>
    %248 = tpu.matmul %199, %201, %cst_127 {dimension_numbers = #tpu.dot_dimension_numbers<[1], [1], [0], [0], [0, 0, 1, 0], [], []>} : vector<32x8xf32>, vector<32x8xf32>, vector<32x32xf32> -> vector<32x32xf32>
    %249 = arith.mulf %248, %1 : vector<32x32xf32>
    %250 = arith.addf %247, %249 : vector<32x32xf32>
    %cst_128 = arith.constant dense<0.000000e+00> : vector<32x64xf32>
    %251 = tpu.matmul %250, %174, %cst_128 {dimension_numbers = #tpu.dot_dimension_numbers<[1], [0], [0], [1], [0, 0, 1, 1], [], []>} : vector<32x32xf32>, vector<32x64xf32>, vector<32x64xf32> -> vector<32x64xf32>
    %252 = arith.mulf %175, %251 : vector<32x64xf32>
    %c1_129 = arith.constant 1 : index
    %c0_130 = arith.constant 0 : index
    %c0_131 = arith.constant 0 : index
    %253 = vector.load %arg12[%c1_129, %c0_130, %c0_131] : memref<8x64x32xf32, #tpu.memory_space<vmem>>, vector<1x64x32xf32>
    %254 = vector.shape_cast %253 : vector<1x64x32xf32> to vector<64x32xf32>
    %cst_132 = arith.constant dense<0.000000e+00> : vector<32x32xf32>
    %255 = tpu.matmul %252, %254, %cst_132 {dimension_numbers = #tpu.dot_dimension_numbers<[1], [0], [0], [1], [0, 0, 1, 1], [], []>} : vector<32x64xf32>, vector<64x32xf32>, vector<32x32xf32> -> vector<32x32xf32>
    %c1_133 = arith.constant 1 : index
    %c0_134 = arith.constant 0 : index
    %c0_135 = arith.constant 0 : index
    %256 = vector.load %arg13[%c1_133, %c0_134, %c0_135] : memref<8x1x32xf32, #tpu.memory_space<vmem>>, vector<1x1x32xf32>
    %257 = vector.shape_cast %256 : vector<1x1x32xf32> to vector<1x32xf32>
    %258 = vector.broadcast %257 : vector<1x32xf32> to vector<32x32xf32>
    %259 = arith.addf %255, %258 : vector<32x32xf32>
    %260 = arith.addf %133, %259 : vector<32x32xf32>
    %cst_136 = arith.constant dense<0.000000e+00> : vector<32xf32>
    %261 = vector.multi_reduction <add>, %260, %cst_136 [1] : vector<32x32xf32> to vector<32xf32>
    %262 = vector.shape_cast %261 : vector<32xf32> to vector<32x1xf32>
    %cst_137 = arith.constant 3.200000e+01 : f32
    %263 = vector.broadcast %cst_137 : f32 to vector<32x1xf32>
    %264 = arith.divf %262, %263 : vector<32x1xf32>
    %265 = vector.broadcast %264 : vector<32x1xf32> to vector<32x32xf32>
    %266 = arith.subf %260, %265 : vector<32x32xf32>
    %267 = arith.mulf %266, %266 : vector<32x32xf32>
    %cst_138 = arith.constant dense<0.000000e+00> : vector<32xf32>
    %268 = vector.multi_reduction <add>, %267, %cst_138 [1] : vector<32x32xf32> to vector<32xf32>
    %269 = vector.shape_cast %268 : vector<32xf32> to vector<32x1xf32>
    %cst_139 = arith.constant 3.200000e+01 : f32
    %270 = vector.broadcast %cst_139 : f32 to vector<32x1xf32>
    %271 = arith.divf %269, %270 : vector<32x1xf32>
    %272 = vector.broadcast %264 : vector<32x1xf32> to vector<32x32xf32>
    %273 = arith.subf %260, %272 : vector<32x32xf32>
    %cst_140 = arith.constant 9.99999974E-6 : f32
    %274 = vector.broadcast %cst_140 : f32 to vector<32x1xf32>
    %275 = arith.addf %271, %274 : vector<32x1xf32>
    %276 = math.rsqrt %275 : vector<32x1xf32>
    %277 = vector.broadcast %276 : vector<32x1xf32> to vector<32x32xf32>
    %278 = arith.mulf %273, %277 : vector<32x32xf32>
    %c2 = arith.constant 2 : index
    %c0_141 = arith.constant 0 : index
    %c0_142 = arith.constant 0 : index
    %279 = vector.load %arg4[%c2, %c0_141, %c0_142] : memref<8x1x32xf32, #tpu.memory_space<vmem>>, vector<1x1x32xf32>
    %280 = vector.shape_cast %279 : vector<1x1x32xf32> to vector<1x32xf32>
    %281 = vector.broadcast %280 : vector<1x32xf32> to vector<32x32xf32>
    %282 = arith.mulf %278, %281 : vector<32x32xf32>
    %c2_143 = arith.constant 2 : index
    %c0_144 = arith.constant 0 : index
    %c0_145 = arith.constant 0 : index
    %283 = vector.load %arg5[%c2_143, %c0_144, %c0_145] : memref<8x1x32xf32, #tpu.memory_space<vmem>>, vector<1x1x32xf32>
    %284 = vector.shape_cast %283 : vector<1x1x32xf32> to vector<1x32xf32>
    %285 = vector.broadcast %284 : vector<1x32xf32> to vector<32x32xf32>
    %286 = arith.addf %282, %285 : vector<32x32xf32>
    %c2_146 = arith.constant 2 : index
    %c0_147 = arith.constant 0 : index
    %c0_148 = arith.constant 0 : index
    %287 = vector.load %arg6[%c2_146, %c0_147, %c0_148] : memref<8x32x128xf32, #tpu.memory_space<vmem>>, vector<1x32x128xf32>
    %288 = vector.shape_cast %287 : vector<1x32x128xf32> to vector<32x128xf32>
    %cst_149 = arith.constant dense<0.000000e+00> : vector<32x128xf32>
    %289 = tpu.matmul %286, %288, %cst_149 {dimension_numbers = #tpu.dot_dimension_numbers<[1], [0], [0], [1], [0, 0, 1, 1], [], []>} : vector<32x32xf32>, vector<32x128xf32>, vector<32x128xf32> -> vector<32x128xf32>
    %c2_150 = arith.constant 2 : index
    %c0_151 = arith.constant 0 : index
    %c0_152 = arith.constant 0 : index
    %290 = vector.load %arg7[%c2_150, %c0_151, %c0_152] : memref<8x1x128xf32, #tpu.memory_space<vmem>>, vector<1x1x128xf32>
    %291 = vector.shape_cast %290 : vector<1x1x128xf32> to vector<1x128xf32>
    %292 = vector.broadcast %291 : vector<1x128xf32> to vector<32x128xf32>
    %293 = arith.addf %289, %292 : vector<32x128xf32>
    %cst_153 = arith.constant 0.000000e+00 : f32
    %294 = vector.broadcast %cst_153 : f32 to vector<32x128xf32>
    %295 = arith.subf %294, %293 : vector<32x128xf32>
    %296 = math.exp %295 : vector<32x128xf32>
    %cst_154 = arith.constant 1.000000e+00 : f32
    %297 = vector.broadcast %cst_154 : f32 to vector<32x128xf32>
    %298 = arith.addf %297, %296 : vector<32x128xf32>
    %299 = tpu.reciprocal %298 {approx = true} : vector<32x128xf32> -> vector<32x128xf32>
    %300 = arith.mulf %293, %299 : vector<32x128xf32>
    %301 = vector.extract_strided_slice %300 {offsets = [0, 0], sizes = [32, 64], strides = [1, 1]} : vector<32x128xf32> to vector<32x64xf32>
    %302 = vector.extract_strided_slice %300 {offsets = [0, 64], sizes = [32, 64], strides = [1, 1]} : vector<32x128xf32> to vector<32x64xf32>
    %c2_155 = arith.constant 2 : index
    %c0_156 = arith.constant 0 : index
    %c0_157 = arith.constant 0 : index
    %303 = vector.load %arg8[%c2_155, %c0_156, %c0_157] : memref<8x32x32xf32, #tpu.memory_space<vmem>>, vector<1x32x32xf32>
    %304 = vector.shape_cast %303 : vector<1x32x32xf32> to vector<32x32xf32>
    %cst_158 = arith.constant dense<0.000000e+00> : vector<32x32xf32>
    %305 = tpu.matmul %286, %304, %cst_158 {dimension_numbers = #tpu.dot_dimension_numbers<[1], [0], [0], [1], [0, 0, 1, 1], [], []>} : vector<32x32xf32>, vector<32x32xf32>, vector<32x32xf32> -> vector<32x32xf32>
    %c2_159 = arith.constant 2 : index
    %c0_160 = arith.constant 0 : index
    %c0_161 = arith.constant 0 : index
    %306 = vector.load %arg9[%c2_159, %c0_160, %c0_161] : memref<8x1x32xf32, #tpu.memory_space<vmem>>, vector<1x1x32xf32>
    %307 = vector.shape_cast %306 : vector<1x1x32xf32> to vector<1x32xf32>
    %308 = vector.broadcast %307 : vector<1x32xf32> to vector<32x32xf32>
    %309 = arith.addf %305, %308 : vector<32x32xf32>
    %cst_162 = arith.constant 0.000000e+00 : f32
    %310 = vector.broadcast %cst_162 : f32 to vector<32x32xf32>
    %311 = arith.subf %310, %309 : vector<32x32xf32>
    %312 = math.exp %311 : vector<32x32xf32>
    %cst_163 = arith.constant 1.000000e+00 : f32
    %313 = vector.broadcast %cst_163 : f32 to vector<32x32xf32>
    %314 = arith.addf %313, %312 : vector<32x32xf32>
    %315 = tpu.reciprocal %314 {approx = true} : vector<32x32xf32> -> vector<32x32xf32>
    %316 = arith.mulf %309, %315 : vector<32x32xf32>
    %c2_164 = arith.constant 2 : index
    %c0_165 = arith.constant 0 : index
    %c0_166 = arith.constant 0 : index
    %317 = vector.load %arg10[%c2_164, %c0_165, %c0_166] : memref<8x1x32xf32, #tpu.memory_space<vmem>>, vector<1x1x32xf32>
    %318 = vector.shape_cast %317 : vector<1x1x32xf32> to vector<1x32xf32>
    %319 = vector.broadcast %318 : vector<1x32xf32> to vector<32x32xf32>
    %320 = arith.mulf %316, %319 : vector<32x32xf32>
    %c2_167 = arith.constant 2 : index
    %c0_168 = arith.constant 0 : index
    %c0_169 = arith.constant 0 : index
    %321 = vector.load %arg11[%c2_167, %c0_168, %c0_169] : memref<8x1x32xf32, #tpu.memory_space<vmem>>, vector<1x1x32xf32>
    %322 = vector.shape_cast %321 : vector<1x1x32xf32> to vector<1x32xf32>
    %323 = vector.broadcast %322 : vector<1x32xf32> to vector<32x32xf32>
    %324 = arith.addf %320, %323 : vector<32x32xf32>
    %325 = vector.extract_strided_slice %324 {offsets = [0, 0], sizes = [32, 8], strides = [1, 1]} : vector<32x32xf32> to vector<32x8xf32>
    %326 = vector.extract_strided_slice %324 {offsets = [0, 8], sizes = [32, 8], strides = [1, 1]} : vector<32x32xf32> to vector<32x8xf32>
    %327 = vector.extract_strided_slice %324 {offsets = [0, 16], sizes = [32, 8], strides = [1, 1]} : vector<32x32xf32> to vector<32x8xf32>
    %328 = vector.extract_strided_slice %324 {offsets = [0, 24], sizes = [32, 8], strides = [1, 1]} : vector<32x32xf32> to vector<32x8xf32>
    %cst_170 = arith.constant dense<0.000000e+00> : vector<32x32xf32>
    %329 = tpu.matmul %325, %327, %cst_170 {dimension_numbers = #tpu.dot_dimension_numbers<[1], [1], [0], [0], [0, 0, 1, 0], [], []>} : vector<32x8xf32>, vector<32x8xf32>, vector<32x32xf32> -> vector<32x32xf32>
    %c2_171 = arith.constant 2 : index
    %c0_172 = arith.constant 0 : index
    %c0_173 = arith.constant 0 : index
    %330 = vector.load %arg14[%c2_171, %c0_172, %c0_173] : memref<8x32x32xf32, #tpu.memory_space<vmem>>, vector<1x32x32xf32>
    %331 = vector.shape_cast %330 : vector<1x32x32xf32> to vector<32x32xf32>
    %332 = arith.addf %329, %331 : vector<32x32xf32>
    %cst_174 = arith.constant 0.707106769 : f32
    %333 = vector.broadcast %cst_174 : f32 to vector<32x32xf32>
    %334 = arith.subf %332, %333 : vector<32x32xf32>
    %cst_175 = arith.constant 1.25331414 : f32
    %335 = vector.broadcast %cst_175 : f32 to vector<32x32xf32>
    %336 = arith.divf %334, %335 : vector<32x32xf32>
    %cst_176 = arith.constant 0.000000e+00 : f32
    %337 = vector.broadcast %cst_176 : f32 to vector<32x32xf32>
    %338 = arith.cmpf olt, %336, %337 : vector<32x32xf32>
    %cst_177 = arith.constant -1.000000e+00 : f32
    %cst_178 = arith.constant 1.000000e+00 : f32
    %339 = vector.broadcast %cst_177 : f32 to vector<32x32xf32>
    %340 = vector.broadcast %cst_178 : f32 to vector<32x32xf32>
    %341 = arith.select %338, %339, %340 : vector<32x32xi1>, vector<32x32xf32>
    %342 = math.absf %336 : vector<32x32xf32>
    %cst_179 = arith.constant 0.327591091 : f32
    %343 = vector.broadcast %cst_179 : f32 to vector<32x32xf32>
    %344 = arith.mulf %343, %342 : vector<32x32xf32>
    %cst_180 = arith.constant 1.000000e+00 : f32
    %345 = vector.broadcast %cst_180 : f32 to vector<32x32xf32>
    %346 = arith.addf %345, %344 : vector<32x32xf32>
    %347 = tpu.reciprocal %346 {approx = true} : vector<32x32xf32> -> vector<32x32xf32>
    %cst_181 = arith.constant 1.06140542 : f32
    %348 = vector.broadcast %cst_181 : f32 to vector<32x32xf32>
    %349 = arith.mulf %348, %347 : vector<32x32xf32>
    %cst_182 = arith.constant -1.45315206 : f32
    %350 = vector.broadcast %cst_182 : f32 to vector<32x32xf32>
    %351 = arith.addf %349, %350 : vector<32x32xf32>
    %352 = arith.mulf %351, %347 : vector<32x32xf32>
    %cst_183 = arith.constant 1.42141378 : f32
    %353 = vector.broadcast %cst_183 : f32 to vector<32x32xf32>
    %354 = arith.addf %352, %353 : vector<32x32xf32>
    %355 = arith.mulf %354, %347 : vector<32x32xf32>
    %cst_184 = arith.constant -0.284496725 : f32
    %356 = vector.broadcast %cst_184 : f32 to vector<32x32xf32>
    %357 = arith.addf %355, %356 : vector<32x32xf32>
    %358 = arith.mulf %357, %347 : vector<32x32xf32>
    %cst_185 = arith.constant 0.254829586 : f32
    %359 = vector.broadcast %cst_185 : f32 to vector<32x32xf32>
    %360 = arith.addf %358, %359 : vector<32x32xf32>
    %361 = arith.mulf %360, %347 : vector<32x32xf32>
    %cst_186 = arith.constant 0.000000e+00 : f32
    %362 = vector.broadcast %cst_186 : f32 to vector<32x32xf32>
    %363 = arith.subf %362, %342 : vector<32x32xf32>
    %364 = arith.mulf %363, %342 : vector<32x32xf32>
    %365 = math.exp %364 : vector<32x32xf32>
    %366 = arith.mulf %361, %365 : vector<32x32xf32>
    %cst_187 = arith.constant 1.000000e+00 : f32
    %367 = vector.broadcast %cst_187 : f32 to vector<32x32xf32>
    %368 = arith.subf %367, %366 : vector<32x32xf32>
    %369 = arith.mulf %341, %368 : vector<32x32xf32>
    %cst_188 = arith.constant 1.000000e+00 : f32
    %370 = vector.broadcast %cst_188 : f32 to vector<32x32xf32>
    %371 = arith.addf %370, %369 : vector<32x32xf32>
    %cst_189 = arith.constant 5.000000e-01 : f32
    %372 = vector.broadcast %cst_189 : f32 to vector<32x32xf32>
    %373 = arith.mulf %372, %371 : vector<32x32xf32>
    %374 = arith.mulf %373, %0 : vector<32x32xf32>
    %cst_190 = arith.constant dense<0.000000e+00> : vector<32x32xf32>
    %375 = tpu.matmul %326, %328, %cst_190 {dimension_numbers = #tpu.dot_dimension_numbers<[1], [1], [0], [0], [0, 0, 1, 0], [], []>} : vector<32x8xf32>, vector<32x8xf32>, vector<32x32xf32> -> vector<32x32xf32>
    %376 = arith.mulf %375, %1 : vector<32x32xf32>
    %377 = arith.addf %374, %376 : vector<32x32xf32>
    %cst_191 = arith.constant dense<0.000000e+00> : vector<32x64xf32>
    %378 = tpu.matmul %377, %301, %cst_191 {dimension_numbers = #tpu.dot_dimension_numbers<[1], [0], [0], [1], [0, 0, 1, 1], [], []>} : vector<32x32xf32>, vector<32x64xf32>, vector<32x64xf32> -> vector<32x64xf32>
    %379 = arith.mulf %302, %378 : vector<32x64xf32>
    %c2_192 = arith.constant 2 : index
    %c0_193 = arith.constant 0 : index
    %c0_194 = arith.constant 0 : index
    %380 = vector.load %arg12[%c2_192, %c0_193, %c0_194] : memref<8x64x32xf32, #tpu.memory_space<vmem>>, vector<1x64x32xf32>
    %381 = vector.shape_cast %380 : vector<1x64x32xf32> to vector<64x32xf32>
    %cst_195 = arith.constant dense<0.000000e+00> : vector<32x32xf32>
    %382 = tpu.matmul %379, %381, %cst_195 {dimension_numbers = #tpu.dot_dimension_numbers<[1], [0], [0], [1], [0, 0, 1, 1], [], []>} : vector<32x64xf32>, vector<64x32xf32>, vector<32x32xf32> -> vector<32x32xf32>
    %c2_196 = arith.constant 2 : index
    %c0_197 = arith.constant 0 : index
    %c0_198 = arith.constant 0 : index
    %383 = vector.load %arg13[%c2_196, %c0_197, %c0_198] : memref<8x1x32xf32, #tpu.memory_space<vmem>>, vector<1x1x32xf32>
    %384 = vector.shape_cast %383 : vector<1x1x32xf32> to vector<1x32xf32>
    %385 = vector.broadcast %384 : vector<1x32xf32> to vector<32x32xf32>
    %386 = arith.addf %382, %385 : vector<32x32xf32>
    %387 = arith.addf %260, %386 : vector<32x32xf32>
    %cst_199 = arith.constant dense<0.000000e+00> : vector<32xf32>
    %388 = vector.multi_reduction <add>, %387, %cst_199 [1] : vector<32x32xf32> to vector<32xf32>
    %389 = vector.shape_cast %388 : vector<32xf32> to vector<32x1xf32>
    %cst_200 = arith.constant 3.200000e+01 : f32
    %390 = vector.broadcast %cst_200 : f32 to vector<32x1xf32>
    %391 = arith.divf %389, %390 : vector<32x1xf32>
    %392 = vector.broadcast %391 : vector<32x1xf32> to vector<32x32xf32>
    %393 = arith.subf %387, %392 : vector<32x32xf32>
    %394 = arith.mulf %393, %393 : vector<32x32xf32>
    %cst_201 = arith.constant dense<0.000000e+00> : vector<32xf32>
    %395 = vector.multi_reduction <add>, %394, %cst_201 [1] : vector<32x32xf32> to vector<32xf32>
    %396 = vector.shape_cast %395 : vector<32xf32> to vector<32x1xf32>
    %cst_202 = arith.constant 3.200000e+01 : f32
    %397 = vector.broadcast %cst_202 : f32 to vector<32x1xf32>
    %398 = arith.divf %396, %397 : vector<32x1xf32>
    %399 = vector.broadcast %391 : vector<32x1xf32> to vector<32x32xf32>
    %400 = arith.subf %387, %399 : vector<32x32xf32>
    %cst_203 = arith.constant 9.99999974E-6 : f32
    %401 = vector.broadcast %cst_203 : f32 to vector<32x1xf32>
    %402 = arith.addf %398, %401 : vector<32x1xf32>
    %403 = math.rsqrt %402 : vector<32x1xf32>
    %404 = vector.broadcast %403 : vector<32x1xf32> to vector<32x32xf32>
    %405 = arith.mulf %400, %404 : vector<32x32xf32>
    %c3 = arith.constant 3 : index
    %c0_204 = arith.constant 0 : index
    %c0_205 = arith.constant 0 : index
    %406 = vector.load %arg4[%c3, %c0_204, %c0_205] : memref<8x1x32xf32, #tpu.memory_space<vmem>>, vector<1x1x32xf32>
    %407 = vector.shape_cast %406 : vector<1x1x32xf32> to vector<1x32xf32>
    %408 = vector.broadcast %407 : vector<1x32xf32> to vector<32x32xf32>
    %409 = arith.mulf %405, %408 : vector<32x32xf32>
    %c3_206 = arith.constant 3 : index
    %c0_207 = arith.constant 0 : index
    %c0_208 = arith.constant 0 : index
    %410 = vector.load %arg5[%c3_206, %c0_207, %c0_208] : memref<8x1x32xf32, #tpu.memory_space<vmem>>, vector<1x1x32xf32>
    %411 = vector.shape_cast %410 : vector<1x1x32xf32> to vector<1x32xf32>
    %412 = vector.broadcast %411 : vector<1x32xf32> to vector<32x32xf32>
    %413 = arith.addf %409, %412 : vector<32x32xf32>
    %c3_209 = arith.constant 3 : index
    %c0_210 = arith.constant 0 : index
    %c0_211 = arith.constant 0 : index
    %414 = vector.load %arg6[%c3_209, %c0_210, %c0_211] : memref<8x32x128xf32, #tpu.memory_space<vmem>>, vector<1x32x128xf32>
    %415 = vector.shape_cast %414 : vector<1x32x128xf32> to vector<32x128xf32>
    %cst_212 = arith.constant dense<0.000000e+00> : vector<32x128xf32>
    %416 = tpu.matmul %413, %415, %cst_212 {dimension_numbers = #tpu.dot_dimension_numbers<[1], [0], [0], [1], [0, 0, 1, 1], [], []>} : vector<32x32xf32>, vector<32x128xf32>, vector<32x128xf32> -> vector<32x128xf32>
    %c3_213 = arith.constant 3 : index
    %c0_214 = arith.constant 0 : index
    %c0_215 = arith.constant 0 : index
    %417 = vector.load %arg7[%c3_213, %c0_214, %c0_215] : memref<8x1x128xf32, #tpu.memory_space<vmem>>, vector<1x1x128xf32>
    %418 = vector.shape_cast %417 : vector<1x1x128xf32> to vector<1x128xf32>
    %419 = vector.broadcast %418 : vector<1x128xf32> to vector<32x128xf32>
    %420 = arith.addf %416, %419 : vector<32x128xf32>
    %cst_216 = arith.constant 0.000000e+00 : f32
    %421 = vector.broadcast %cst_216 : f32 to vector<32x128xf32>
    %422 = arith.subf %421, %420 : vector<32x128xf32>
    %423 = math.exp %422 : vector<32x128xf32>
    %cst_217 = arith.constant 1.000000e+00 : f32
    %424 = vector.broadcast %cst_217 : f32 to vector<32x128xf32>
    %425 = arith.addf %424, %423 : vector<32x128xf32>
    %426 = tpu.reciprocal %425 {approx = true} : vector<32x128xf32> -> vector<32x128xf32>
    %427 = arith.mulf %420, %426 : vector<32x128xf32>
    %428 = vector.extract_strided_slice %427 {offsets = [0, 0], sizes = [32, 64], strides = [1, 1]} : vector<32x128xf32> to vector<32x64xf32>
    %429 = vector.extract_strided_slice %427 {offsets = [0, 64], sizes = [32, 64], strides = [1, 1]} : vector<32x128xf32> to vector<32x64xf32>
    %c3_218 = arith.constant 3 : index
    %c0_219 = arith.constant 0 : index
    %c0_220 = arith.constant 0 : index
    %430 = vector.load %arg8[%c3_218, %c0_219, %c0_220] : memref<8x32x32xf32, #tpu.memory_space<vmem>>, vector<1x32x32xf32>
    %431 = vector.shape_cast %430 : vector<1x32x32xf32> to vector<32x32xf32>
    %cst_221 = arith.constant dense<0.000000e+00> : vector<32x32xf32>
    %432 = tpu.matmul %413, %431, %cst_221 {dimension_numbers = #tpu.dot_dimension_numbers<[1], [0], [0], [1], [0, 0, 1, 1], [], []>} : vector<32x32xf32>, vector<32x32xf32>, vector<32x32xf32> -> vector<32x32xf32>
    %c3_222 = arith.constant 3 : index
    %c0_223 = arith.constant 0 : index
    %c0_224 = arith.constant 0 : index
    %433 = vector.load %arg9[%c3_222, %c0_223, %c0_224] : memref<8x1x32xf32, #tpu.memory_space<vmem>>, vector<1x1x32xf32>
    %434 = vector.shape_cast %433 : vector<1x1x32xf32> to vector<1x32xf32>
    %435 = vector.broadcast %434 : vector<1x32xf32> to vector<32x32xf32>
    %436 = arith.addf %432, %435 : vector<32x32xf32>
    %cst_225 = arith.constant 0.000000e+00 : f32
    %437 = vector.broadcast %cst_225 : f32 to vector<32x32xf32>
    %438 = arith.subf %437, %436 : vector<32x32xf32>
    %439 = math.exp %438 : vector<32x32xf32>
    %cst_226 = arith.constant 1.000000e+00 : f32
    %440 = vector.broadcast %cst_226 : f32 to vector<32x32xf32>
    %441 = arith.addf %440, %439 : vector<32x32xf32>
    %442 = tpu.reciprocal %441 {approx = true} : vector<32x32xf32> -> vector<32x32xf32>
    %443 = arith.mulf %436, %442 : vector<32x32xf32>
    %c3_227 = arith.constant 3 : index
    %c0_228 = arith.constant 0 : index
    %c0_229 = arith.constant 0 : index
    %444 = vector.load %arg10[%c3_227, %c0_228, %c0_229] : memref<8x1x32xf32, #tpu.memory_space<vmem>>, vector<1x1x32xf32>
    %445 = vector.shape_cast %444 : vector<1x1x32xf32> to vector<1x32xf32>
    %446 = vector.broadcast %445 : vector<1x32xf32> to vector<32x32xf32>
    %447 = arith.mulf %443, %446 : vector<32x32xf32>
    %c3_230 = arith.constant 3 : index
    %c0_231 = arith.constant 0 : index
    %c0_232 = arith.constant 0 : index
    %448 = vector.load %arg11[%c3_230, %c0_231, %c0_232] : memref<8x1x32xf32, #tpu.memory_space<vmem>>, vector<1x1x32xf32>
    %449 = vector.shape_cast %448 : vector<1x1x32xf32> to vector<1x32xf32>
    %450 = vector.broadcast %449 : vector<1x32xf32> to vector<32x32xf32>
    %451 = arith.addf %447, %450 : vector<32x32xf32>
    %452 = vector.extract_strided_slice %451 {offsets = [0, 0], sizes = [32, 8], strides = [1, 1]} : vector<32x32xf32> to vector<32x8xf32>
    %453 = vector.extract_strided_slice %451 {offsets = [0, 8], sizes = [32, 8], strides = [1, 1]} : vector<32x32xf32> to vector<32x8xf32>
    %454 = vector.extract_strided_slice %451 {offsets = [0, 16], sizes = [32, 8], strides = [1, 1]} : vector<32x32xf32> to vector<32x8xf32>
    %455 = vector.extract_strided_slice %451 {offsets = [0, 24], sizes = [32, 8], strides = [1, 1]} : vector<32x32xf32> to vector<32x8xf32>
    %cst_233 = arith.constant dense<0.000000e+00> : vector<32x32xf32>
    %456 = tpu.matmul %452, %454, %cst_233 {dimension_numbers = #tpu.dot_dimension_numbers<[1], [1], [0], [0], [0, 0, 1, 0], [], []>} : vector<32x8xf32>, vector<32x8xf32>, vector<32x32xf32> -> vector<32x32xf32>
    %c3_234 = arith.constant 3 : index
    %c0_235 = arith.constant 0 : index
    %c0_236 = arith.constant 0 : index
    %457 = vector.load %arg14[%c3_234, %c0_235, %c0_236] : memref<8x32x32xf32, #tpu.memory_space<vmem>>, vector<1x32x32xf32>
    %458 = vector.shape_cast %457 : vector<1x32x32xf32> to vector<32x32xf32>
    %459 = arith.addf %456, %458 : vector<32x32xf32>
    %cst_237 = arith.constant 0.707106769 : f32
    %460 = vector.broadcast %cst_237 : f32 to vector<32x32xf32>
    %461 = arith.subf %459, %460 : vector<32x32xf32>
    %cst_238 = arith.constant 1.25331414 : f32
    %462 = vector.broadcast %cst_238 : f32 to vector<32x32xf32>
    %463 = arith.divf %461, %462 : vector<32x32xf32>
    %cst_239 = arith.constant 0.000000e+00 : f32
    %464 = vector.broadcast %cst_239 : f32 to vector<32x32xf32>
    %465 = arith.cmpf olt, %463, %464 : vector<32x32xf32>
    %cst_240 = arith.constant -1.000000e+00 : f32
    %cst_241 = arith.constant 1.000000e+00 : f32
    %466 = vector.broadcast %cst_240 : f32 to vector<32x32xf32>
    %467 = vector.broadcast %cst_241 : f32 to vector<32x32xf32>
    %468 = arith.select %465, %466, %467 : vector<32x32xi1>, vector<32x32xf32>
    %469 = math.absf %463 : vector<32x32xf32>
    %cst_242 = arith.constant 0.327591091 : f32
    %470 = vector.broadcast %cst_242 : f32 to vector<32x32xf32>
    %471 = arith.mulf %470, %469 : vector<32x32xf32>
    %cst_243 = arith.constant 1.000000e+00 : f32
    %472 = vector.broadcast %cst_243 : f32 to vector<32x32xf32>
    %473 = arith.addf %472, %471 : vector<32x32xf32>
    %474 = tpu.reciprocal %473 {approx = true} : vector<32x32xf32> -> vector<32x32xf32>
    %cst_244 = arith.constant 1.06140542 : f32
    %475 = vector.broadcast %cst_244 : f32 to vector<32x32xf32>
    %476 = arith.mulf %475, %474 : vector<32x32xf32>
    %cst_245 = arith.constant -1.45315206 : f32
    %477 = vector.broadcast %cst_245 : f32 to vector<32x32xf32>
    %478 = arith.addf %476, %477 : vector<32x32xf32>
    %479 = arith.mulf %478, %474 : vector<32x32xf32>
    %cst_246 = arith.constant 1.42141378 : f32
    %480 = vector.broadcast %cst_246 : f32 to vector<32x32xf32>
    %481 = arith.addf %479, %480 : vector<32x32xf32>
    %482 = arith.mulf %481, %474 : vector<32x32xf32>
    %cst_247 = arith.constant -0.284496725 : f32
    %483 = vector.broadcast %cst_247 : f32 to vector<32x32xf32>
    %484 = arith.addf %482, %483 : vector<32x32xf32>
    %485 = arith.mulf %484, %474 : vector<32x32xf32>
    %cst_248 = arith.constant 0.254829586 : f32
    %486 = vector.broadcast %cst_248 : f32 to vector<32x32xf32>
    %487 = arith.addf %485, %486 : vector<32x32xf32>
    %488 = arith.mulf %487, %474 : vector<32x32xf32>
    %cst_249 = arith.constant 0.000000e+00 : f32
    %489 = vector.broadcast %cst_249 : f32 to vector<32x32xf32>
    %490 = arith.subf %489, %469 : vector<32x32xf32>
    %491 = arith.mulf %490, %469 : vector<32x32xf32>
    %492 = math.exp %491 : vector<32x32xf32>
    %493 = arith.mulf %488, %492 : vector<32x32xf32>
    %cst_250 = arith.constant 1.000000e+00 : f32
    %494 = vector.broadcast %cst_250 : f32 to vector<32x32xf32>
    %495 = arith.subf %494, %493 : vector<32x32xf32>
    %496 = arith.mulf %468, %495 : vector<32x32xf32>
    %cst_251 = arith.constant 1.000000e+00 : f32
    %497 = vector.broadcast %cst_251 : f32 to vector<32x32xf32>
    %498 = arith.addf %497, %496 : vector<32x32xf32>
    %cst_252 = arith.constant 5.000000e-01 : f32
    %499 = vector.broadcast %cst_252 : f32 to vector<32x32xf32>
    %500 = arith.mulf %499, %498 : vector<32x32xf32>
    %501 = arith.mulf %500, %0 : vector<32x32xf32>
    %cst_253 = arith.constant dense<0.000000e+00> : vector<32x32xf32>
    %502 = tpu.matmul %453, %455, %cst_253 {dimension_numbers = #tpu.dot_dimension_numbers<[1], [1], [0], [0], [0, 0, 1, 0], [], []>} : vector<32x8xf32>, vector<32x8xf32>, vector<32x32xf32> -> vector<32x32xf32>
    %503 = arith.mulf %502, %1 : vector<32x32xf32>
    %504 = arith.addf %501, %503 : vector<32x32xf32>
    %cst_254 = arith.constant dense<0.000000e+00> : vector<32x64xf32>
    %505 = tpu.matmul %504, %428, %cst_254 {dimension_numbers = #tpu.dot_dimension_numbers<[1], [0], [0], [1], [0, 0, 1, 1], [], []>} : vector<32x32xf32>, vector<32x64xf32>, vector<32x64xf32> -> vector<32x64xf32>
    %506 = arith.mulf %429, %505 : vector<32x64xf32>
    %c3_255 = arith.constant 3 : index
    %c0_256 = arith.constant 0 : index
    %c0_257 = arith.constant 0 : index
    %507 = vector.load %arg12[%c3_255, %c0_256, %c0_257] : memref<8x64x32xf32, #tpu.memory_space<vmem>>, vector<1x64x32xf32>
    %508 = vector.shape_cast %507 : vector<1x64x32xf32> to vector<64x32xf32>
    %cst_258 = arith.constant dense<0.000000e+00> : vector<32x32xf32>
    %509 = tpu.matmul %506, %508, %cst_258 {dimension_numbers = #tpu.dot_dimension_numbers<[1], [0], [0], [1], [0, 0, 1, 1], [], []>} : vector<32x64xf32>, vector<64x32xf32>, vector<32x32xf32> -> vector<32x32xf32>
    %c3_259 = arith.constant 3 : index
    %c0_260 = arith.constant 0 : index
    %c0_261 = arith.constant 0 : index
    %510 = vector.load %arg13[%c3_259, %c0_260, %c0_261] : memref<8x1x32xf32, #tpu.memory_space<vmem>>, vector<1x1x32xf32>
    %511 = vector.shape_cast %510 : vector<1x1x32xf32> to vector<1x32xf32>
    %512 = vector.broadcast %511 : vector<1x32xf32> to vector<32x32xf32>
    %513 = arith.addf %509, %512 : vector<32x32xf32>
    %514 = arith.addf %387, %513 : vector<32x32xf32>
    %cst_262 = arith.constant dense<0.000000e+00> : vector<32xf32>
    %515 = vector.multi_reduction <add>, %514, %cst_262 [1] : vector<32x32xf32> to vector<32xf32>
    %516 = vector.shape_cast %515 : vector<32xf32> to vector<32x1xf32>
    %cst_263 = arith.constant 3.200000e+01 : f32
    %517 = vector.broadcast %cst_263 : f32 to vector<32x1xf32>
    %518 = arith.divf %516, %517 : vector<32x1xf32>
    %519 = vector.broadcast %518 : vector<32x1xf32> to vector<32x32xf32>
    %520 = arith.subf %514, %519 : vector<32x32xf32>
    %521 = arith.mulf %520, %520 : vector<32x32xf32>
    %cst_264 = arith.constant dense<0.000000e+00> : vector<32xf32>
    %522 = vector.multi_reduction <add>, %521, %cst_264 [1] : vector<32x32xf32> to vector<32xf32>
    %523 = vector.shape_cast %522 : vector<32xf32> to vector<32x1xf32>
    %cst_265 = arith.constant 3.200000e+01 : f32
    %524 = vector.broadcast %cst_265 : f32 to vector<32x1xf32>
    %525 = arith.divf %523, %524 : vector<32x1xf32>
    %526 = vector.broadcast %518 : vector<32x1xf32> to vector<32x32xf32>
    %527 = arith.subf %514, %526 : vector<32x32xf32>
    %cst_266 = arith.constant 9.99999974E-6 : f32
    %528 = vector.broadcast %cst_266 : f32 to vector<32x1xf32>
    %529 = arith.addf %525, %528 : vector<32x1xf32>
    %530 = math.rsqrt %529 : vector<32x1xf32>
    %531 = vector.broadcast %530 : vector<32x1xf32> to vector<32x32xf32>
    %532 = arith.mulf %527, %531 : vector<32x32xf32>
    %c4 = arith.constant 4 : index
    %c0_267 = arith.constant 0 : index
    %c0_268 = arith.constant 0 : index
    %533 = vector.load %arg4[%c4, %c0_267, %c0_268] : memref<8x1x32xf32, #tpu.memory_space<vmem>>, vector<1x1x32xf32>
    %534 = vector.shape_cast %533 : vector<1x1x32xf32> to vector<1x32xf32>
    %535 = vector.broadcast %534 : vector<1x32xf32> to vector<32x32xf32>
    %536 = arith.mulf %532, %535 : vector<32x32xf32>
    %c4_269 = arith.constant 4 : index
    %c0_270 = arith.constant 0 : index
    %c0_271 = arith.constant 0 : index
    %537 = vector.load %arg5[%c4_269, %c0_270, %c0_271] : memref<8x1x32xf32, #tpu.memory_space<vmem>>, vector<1x1x32xf32>
    %538 = vector.shape_cast %537 : vector<1x1x32xf32> to vector<1x32xf32>
    %539 = vector.broadcast %538 : vector<1x32xf32> to vector<32x32xf32>
    %540 = arith.addf %536, %539 : vector<32x32xf32>
    %c4_272 = arith.constant 4 : index
    %c0_273 = arith.constant 0 : index
    %c0_274 = arith.constant 0 : index
    %541 = vector.load %arg6[%c4_272, %c0_273, %c0_274] : memref<8x32x128xf32, #tpu.memory_space<vmem>>, vector<1x32x128xf32>
    %542 = vector.shape_cast %541 : vector<1x32x128xf32> to vector<32x128xf32>
    %cst_275 = arith.constant dense<0.000000e+00> : vector<32x128xf32>
    %543 = tpu.matmul %540, %542, %cst_275 {dimension_numbers = #tpu.dot_dimension_numbers<[1], [0], [0], [1], [0, 0, 1, 1], [], []>} : vector<32x32xf32>, vector<32x128xf32>, vector<32x128xf32> -> vector<32x128xf32>
    %c4_276 = arith.constant 4 : index
    %c0_277 = arith.constant 0 : index
    %c0_278 = arith.constant 0 : index
    %544 = vector.load %arg7[%c4_276, %c0_277, %c0_278] : memref<8x1x128xf32, #tpu.memory_space<vmem>>, vector<1x1x128xf32>
    %545 = vector.shape_cast %544 : vector<1x1x128xf32> to vector<1x128xf32>
    %546 = vector.broadcast %545 : vector<1x128xf32> to vector<32x128xf32>
    %547 = arith.addf %543, %546 : vector<32x128xf32>
    %cst_279 = arith.constant 0.000000e+00 : f32
    %548 = vector.broadcast %cst_279 : f32 to vector<32x128xf32>
    %549 = arith.subf %548, %547 : vector<32x128xf32>
    %550 = math.exp %549 : vector<32x128xf32>
    %cst_280 = arith.constant 1.000000e+00 : f32
    %551 = vector.broadcast %cst_280 : f32 to vector<32x128xf32>
    %552 = arith.addf %551, %550 : vector<32x128xf32>
    %553 = tpu.reciprocal %552 {approx = true} : vector<32x128xf32> -> vector<32x128xf32>
    %554 = arith.mulf %547, %553 : vector<32x128xf32>
    %555 = vector.extract_strided_slice %554 {offsets = [0, 0], sizes = [32, 64], strides = [1, 1]} : vector<32x128xf32> to vector<32x64xf32>
    %556 = vector.extract_strided_slice %554 {offsets = [0, 64], sizes = [32, 64], strides = [1, 1]} : vector<32x128xf32> to vector<32x64xf32>
    %c4_281 = arith.constant 4 : index
    %c0_282 = arith.constant 0 : index
    %c0_283 = arith.constant 0 : index
    %557 = vector.load %arg8[%c4_281, %c0_282, %c0_283] : memref<8x32x32xf32, #tpu.memory_space<vmem>>, vector<1x32x32xf32>
    %558 = vector.shape_cast %557 : vector<1x32x32xf32> to vector<32x32xf32>
    %cst_284 = arith.constant dense<0.000000e+00> : vector<32x32xf32>
    %559 = tpu.matmul %540, %558, %cst_284 {dimension_numbers = #tpu.dot_dimension_numbers<[1], [0], [0], [1], [0, 0, 1, 1], [], []>} : vector<32x32xf32>, vector<32x32xf32>, vector<32x32xf32> -> vector<32x32xf32>
    %c4_285 = arith.constant 4 : index
    %c0_286 = arith.constant 0 : index
    %c0_287 = arith.constant 0 : index
    %560 = vector.load %arg9[%c4_285, %c0_286, %c0_287] : memref<8x1x32xf32, #tpu.memory_space<vmem>>, vector<1x1x32xf32>
    %561 = vector.shape_cast %560 : vector<1x1x32xf32> to vector<1x32xf32>
    %562 = vector.broadcast %561 : vector<1x32xf32> to vector<32x32xf32>
    %563 = arith.addf %559, %562 : vector<32x32xf32>
    %cst_288 = arith.constant 0.000000e+00 : f32
    %564 = vector.broadcast %cst_288 : f32 to vector<32x32xf32>
    %565 = arith.subf %564, %563 : vector<32x32xf32>
    %566 = math.exp %565 : vector<32x32xf32>
    %cst_289 = arith.constant 1.000000e+00 : f32
    %567 = vector.broadcast %cst_289 : f32 to vector<32x32xf32>
    %568 = arith.addf %567, %566 : vector<32x32xf32>
    %569 = tpu.reciprocal %568 {approx = true} : vector<32x32xf32> -> vector<32x32xf32>
    %570 = arith.mulf %563, %569 : vector<32x32xf32>
    %c4_290 = arith.constant 4 : index
    %c0_291 = arith.constant 0 : index
    %c0_292 = arith.constant 0 : index
    %571 = vector.load %arg10[%c4_290, %c0_291, %c0_292] : memref<8x1x32xf32, #tpu.memory_space<vmem>>, vector<1x1x32xf32>
    %572 = vector.shape_cast %571 : vector<1x1x32xf32> to vector<1x32xf32>
    %573 = vector.broadcast %572 : vector<1x32xf32> to vector<32x32xf32>
    %574 = arith.mulf %570, %573 : vector<32x32xf32>
    %c4_293 = arith.constant 4 : index
    %c0_294 = arith.constant 0 : index
    %c0_295 = arith.constant 0 : index
    %575 = vector.load %arg11[%c4_293, %c0_294, %c0_295] : memref<8x1x32xf32, #tpu.memory_space<vmem>>, vector<1x1x32xf32>
    %576 = vector.shape_cast %575 : vector<1x1x32xf32> to vector<1x32xf32>
    %577 = vector.broadcast %576 : vector<1x32xf32> to vector<32x32xf32>
    %578 = arith.addf %574, %577 : vector<32x32xf32>
    %579 = vector.extract_strided_slice %578 {offsets = [0, 0], sizes = [32, 8], strides = [1, 1]} : vector<32x32xf32> to vector<32x8xf32>
    %580 = vector.extract_strided_slice %578 {offsets = [0, 8], sizes = [32, 8], strides = [1, 1]} : vector<32x32xf32> to vector<32x8xf32>
    %581 = vector.extract_strided_slice %578 {offsets = [0, 16], sizes = [32, 8], strides = [1, 1]} : vector<32x32xf32> to vector<32x8xf32>
    %582 = vector.extract_strided_slice %578 {offsets = [0, 24], sizes = [32, 8], strides = [1, 1]} : vector<32x32xf32> to vector<32x8xf32>
    %cst_296 = arith.constant dense<0.000000e+00> : vector<32x32xf32>
    %583 = tpu.matmul %579, %581, %cst_296 {dimension_numbers = #tpu.dot_dimension_numbers<[1], [1], [0], [0], [0, 0, 1, 0], [], []>} : vector<32x8xf32>, vector<32x8xf32>, vector<32x32xf32> -> vector<32x32xf32>
    %c4_297 = arith.constant 4 : index
    %c0_298 = arith.constant 0 : index
    %c0_299 = arith.constant 0 : index
    %584 = vector.load %arg14[%c4_297, %c0_298, %c0_299] : memref<8x32x32xf32, #tpu.memory_space<vmem>>, vector<1x32x32xf32>
    %585 = vector.shape_cast %584 : vector<1x32x32xf32> to vector<32x32xf32>
    %586 = arith.addf %583, %585 : vector<32x32xf32>
    %cst_300 = arith.constant 0.707106769 : f32
    %587 = vector.broadcast %cst_300 : f32 to vector<32x32xf32>
    %588 = arith.subf %586, %587 : vector<32x32xf32>
    %cst_301 = arith.constant 1.25331414 : f32
    %589 = vector.broadcast %cst_301 : f32 to vector<32x32xf32>
    %590 = arith.divf %588, %589 : vector<32x32xf32>
    %cst_302 = arith.constant 0.000000e+00 : f32
    %591 = vector.broadcast %cst_302 : f32 to vector<32x32xf32>
    %592 = arith.cmpf olt, %590, %591 : vector<32x32xf32>
    %cst_303 = arith.constant -1.000000e+00 : f32
    %cst_304 = arith.constant 1.000000e+00 : f32
    %593 = vector.broadcast %cst_303 : f32 to vector<32x32xf32>
    %594 = vector.broadcast %cst_304 : f32 to vector<32x32xf32>
    %595 = arith.select %592, %593, %594 : vector<32x32xi1>, vector<32x32xf32>
    %596 = math.absf %590 : vector<32x32xf32>
    %cst_305 = arith.constant 0.327591091 : f32
    %597 = vector.broadcast %cst_305 : f32 to vector<32x32xf32>
    %598 = arith.mulf %597, %596 : vector<32x32xf32>
    %cst_306 = arith.constant 1.000000e+00 : f32
    %599 = vector.broadcast %cst_306 : f32 to vector<32x32xf32>
    %600 = arith.addf %599, %598 : vector<32x32xf32>
    %601 = tpu.reciprocal %600 {approx = true} : vector<32x32xf32> -> vector<32x32xf32>
    %cst_307 = arith.constant 1.06140542 : f32
    %602 = vector.broadcast %cst_307 : f32 to vector<32x32xf32>
    %603 = arith.mulf %602, %601 : vector<32x32xf32>
    %cst_308 = arith.constant -1.45315206 : f32
    %604 = vector.broadcast %cst_308 : f32 to vector<32x32xf32>
    %605 = arith.addf %603, %604 : vector<32x32xf32>
    %606 = arith.mulf %605, %601 : vector<32x32xf32>
    %cst_309 = arith.constant 1.42141378 : f32
    %607 = vector.broadcast %cst_309 : f32 to vector<32x32xf32>
    %608 = arith.addf %606, %607 : vector<32x32xf32>
    %609 = arith.mulf %608, %601 : vector<32x32xf32>
    %cst_310 = arith.constant -0.284496725 : f32
    %610 = vector.broadcast %cst_310 : f32 to vector<32x32xf32>
    %611 = arith.addf %609, %610 : vector<32x32xf32>
    %612 = arith.mulf %611, %601 : vector<32x32xf32>
    %cst_311 = arith.constant 0.254829586 : f32
    %613 = vector.broadcast %cst_311 : f32 to vector<32x32xf32>
    %614 = arith.addf %612, %613 : vector<32x32xf32>
    %615 = arith.mulf %614, %601 : vector<32x32xf32>
    %cst_312 = arith.constant 0.000000e+00 : f32
    %616 = vector.broadcast %cst_312 : f32 to vector<32x32xf32>
    %617 = arith.subf %616, %596 : vector<32x32xf32>
    %618 = arith.mulf %617, %596 : vector<32x32xf32>
    %619 = math.exp %618 : vector<32x32xf32>
    %620 = arith.mulf %615, %619 : vector<32x32xf32>
    %cst_313 = arith.constant 1.000000e+00 : f32
    %621 = vector.broadcast %cst_313 : f32 to vector<32x32xf32>
    %622 = arith.subf %621, %620 : vector<32x32xf32>
    %623 = arith.mulf %595, %622 : vector<32x32xf32>
    %cst_314 = arith.constant 1.000000e+00 : f32
    %624 = vector.broadcast %cst_314 : f32 to vector<32x32xf32>
    %625 = arith.addf %624, %623 : vector<32x32xf32>
    %cst_315 = arith.constant 5.000000e-01 : f32
    %626 = vector.broadcast %cst_315 : f32 to vector<32x32xf32>
    %627 = arith.mulf %626, %625 : vector<32x32xf32>
    %628 = arith.mulf %627, %0 : vector<32x32xf32>
    %cst_316 = arith.constant dense<0.000000e+00> : vector<32x32xf32>
    %629 = tpu.matmul %580, %582, %cst_316 {dimension_numbers = #tpu.dot_dimension_numbers<[1], [1], [0], [0], [0, 0, 1, 0], [], []>} : vector<32x8xf32>, vector<32x8xf32>, vector<32x32xf32> -> vector<32x32xf32>
    %630 = arith.mulf %629, %1 : vector<32x32xf32>
    %631 = arith.addf %628, %630 : vector<32x32xf32>
    %cst_317 = arith.constant dense<0.000000e+00> : vector<32x64xf32>
    %632 = tpu.matmul %631, %555, %cst_317 {dimension_numbers = #tpu.dot_dimension_numbers<[1], [0], [0], [1], [0, 0, 1, 1], [], []>} : vector<32x32xf32>, vector<32x64xf32>, vector<32x64xf32> -> vector<32x64xf32>
    %633 = arith.mulf %556, %632 : vector<32x64xf32>
    %c4_318 = arith.constant 4 : index
    %c0_319 = arith.constant 0 : index
    %c0_320 = arith.constant 0 : index
    %634 = vector.load %arg12[%c4_318, %c0_319, %c0_320] : memref<8x64x32xf32, #tpu.memory_space<vmem>>, vector<1x64x32xf32>
    %635 = vector.shape_cast %634 : vector<1x64x32xf32> to vector<64x32xf32>
    %cst_321 = arith.constant dense<0.000000e+00> : vector<32x32xf32>
    %636 = tpu.matmul %633, %635, %cst_321 {dimension_numbers = #tpu.dot_dimension_numbers<[1], [0], [0], [1], [0, 0, 1, 1], [], []>} : vector<32x64xf32>, vector<64x32xf32>, vector<32x32xf32> -> vector<32x32xf32>
    %c4_322 = arith.constant 4 : index
    %c0_323 = arith.constant 0 : index
    %c0_324 = arith.constant 0 : index
    %637 = vector.load %arg13[%c4_322, %c0_323, %c0_324] : memref<8x1x32xf32, #tpu.memory_space<vmem>>, vector<1x1x32xf32>
    %638 = vector.shape_cast %637 : vector<1x1x32xf32> to vector<1x32xf32>
    %639 = vector.broadcast %638 : vector<1x32xf32> to vector<32x32xf32>
    %640 = arith.addf %636, %639 : vector<32x32xf32>
    %641 = arith.addf %514, %640 : vector<32x32xf32>
    %cst_325 = arith.constant dense<0.000000e+00> : vector<32xf32>
    %642 = vector.multi_reduction <add>, %641, %cst_325 [1] : vector<32x32xf32> to vector<32xf32>
    %643 = vector.shape_cast %642 : vector<32xf32> to vector<32x1xf32>
    %cst_326 = arith.constant 3.200000e+01 : f32
    %644 = vector.broadcast %cst_326 : f32 to vector<32x1xf32>
    %645 = arith.divf %643, %644 : vector<32x1xf32>
    %646 = vector.broadcast %645 : vector<32x1xf32> to vector<32x32xf32>
    %647 = arith.subf %641, %646 : vector<32x32xf32>
    %648 = arith.mulf %647, %647 : vector<32x32xf32>
    %cst_327 = arith.constant dense<0.000000e+00> : vector<32xf32>
    %649 = vector.multi_reduction <add>, %648, %cst_327 [1] : vector<32x32xf32> to vector<32xf32>
    %650 = vector.shape_cast %649 : vector<32xf32> to vector<32x1xf32>
    %cst_328 = arith.constant 3.200000e+01 : f32
    %651 = vector.broadcast %cst_328 : f32 to vector<32x1xf32>
    %652 = arith.divf %650, %651 : vector<32x1xf32>
    %653 = vector.broadcast %645 : vector<32x1xf32> to vector<32x32xf32>
    %654 = arith.subf %641, %653 : vector<32x32xf32>
    %cst_329 = arith.constant 9.99999974E-6 : f32
    %655 = vector.broadcast %cst_329 : f32 to vector<32x1xf32>
    %656 = arith.addf %652, %655 : vector<32x1xf32>
    %657 = math.rsqrt %656 : vector<32x1xf32>
    %658 = vector.broadcast %657 : vector<32x1xf32> to vector<32x32xf32>
    %659 = arith.mulf %654, %658 : vector<32x32xf32>
    %c5 = arith.constant 5 : index
    %c0_330 = arith.constant 0 : index
    %c0_331 = arith.constant 0 : index
    %660 = vector.load %arg4[%c5, %c0_330, %c0_331] : memref<8x1x32xf32, #tpu.memory_space<vmem>>, vector<1x1x32xf32>
    %661 = vector.shape_cast %660 : vector<1x1x32xf32> to vector<1x32xf32>
    %662 = vector.broadcast %661 : vector<1x32xf32> to vector<32x32xf32>
    %663 = arith.mulf %659, %662 : vector<32x32xf32>
    %c5_332 = arith.constant 5 : index
    %c0_333 = arith.constant 0 : index
    %c0_334 = arith.constant 0 : index
    %664 = vector.load %arg5[%c5_332, %c0_333, %c0_334] : memref<8x1x32xf32, #tpu.memory_space<vmem>>, vector<1x1x32xf32>
    %665 = vector.shape_cast %664 : vector<1x1x32xf32> to vector<1x32xf32>
    %666 = vector.broadcast %665 : vector<1x32xf32> to vector<32x32xf32>
    %667 = arith.addf %663, %666 : vector<32x32xf32>
    %c5_335 = arith.constant 5 : index
    %c0_336 = arith.constant 0 : index
    %c0_337 = arith.constant 0 : index
    %668 = vector.load %arg6[%c5_335, %c0_336, %c0_337] : memref<8x32x128xf32, #tpu.memory_space<vmem>>, vector<1x32x128xf32>
    %669 = vector.shape_cast %668 : vector<1x32x128xf32> to vector<32x128xf32>
    %cst_338 = arith.constant dense<0.000000e+00> : vector<32x128xf32>
    %670 = tpu.matmul %667, %669, %cst_338 {dimension_numbers = #tpu.dot_dimension_numbers<[1], [0], [0], [1], [0, 0, 1, 1], [], []>} : vector<32x32xf32>, vector<32x128xf32>, vector<32x128xf32> -> vector<32x128xf32>
    %c5_339 = arith.constant 5 : index
    %c0_340 = arith.constant 0 : index
    %c0_341 = arith.constant 0 : index
    %671 = vector.load %arg7[%c5_339, %c0_340, %c0_341] : memref<8x1x128xf32, #tpu.memory_space<vmem>>, vector<1x1x128xf32>
    %672 = vector.shape_cast %671 : vector<1x1x128xf32> to vector<1x128xf32>
    %673 = vector.broadcast %672 : vector<1x128xf32> to vector<32x128xf32>
    %674 = arith.addf %670, %673 : vector<32x128xf32>
    %cst_342 = arith.constant 0.000000e+00 : f32
    %675 = vector.broadcast %cst_342 : f32 to vector<32x128xf32>
    %676 = arith.subf %675, %674 : vector<32x128xf32>
    %677 = math.exp %676 : vector<32x128xf32>
    %cst_343 = arith.constant 1.000000e+00 : f32
    %678 = vector.broadcast %cst_343 : f32 to vector<32x128xf32>
    %679 = arith.addf %678, %677 : vector<32x128xf32>
    %680 = tpu.reciprocal %679 {approx = true} : vector<32x128xf32> -> vector<32x128xf32>
    %681 = arith.mulf %674, %680 : vector<32x128xf32>
    %682 = vector.extract_strided_slice %681 {offsets = [0, 0], sizes = [32, 64], strides = [1, 1]} : vector<32x128xf32> to vector<32x64xf32>
    %683 = vector.extract_strided_slice %681 {offsets = [0, 64], sizes = [32, 64], strides = [1, 1]} : vector<32x128xf32> to vector<32x64xf32>
    %c5_344 = arith.constant 5 : index
    %c0_345 = arith.constant 0 : index
    %c0_346 = arith.constant 0 : index
    %684 = vector.load %arg8[%c5_344, %c0_345, %c0_346] : memref<8x32x32xf32, #tpu.memory_space<vmem>>, vector<1x32x32xf32>
    %685 = vector.shape_cast %684 : vector<1x32x32xf32> to vector<32x32xf32>
    %cst_347 = arith.constant dense<0.000000e+00> : vector<32x32xf32>
    %686 = tpu.matmul %667, %685, %cst_347 {dimension_numbers = #tpu.dot_dimension_numbers<[1], [0], [0], [1], [0, 0, 1, 1], [], []>} : vector<32x32xf32>, vector<32x32xf32>, vector<32x32xf32> -> vector<32x32xf32>
    %c5_348 = arith.constant 5 : index
    %c0_349 = arith.constant 0 : index
    %c0_350 = arith.constant 0 : index
    %687 = vector.load %arg9[%c5_348, %c0_349, %c0_350] : memref<8x1x32xf32, #tpu.memory_space<vmem>>, vector<1x1x32xf32>
    %688 = vector.shape_cast %687 : vector<1x1x32xf32> to vector<1x32xf32>
    %689 = vector.broadcast %688 : vector<1x32xf32> to vector<32x32xf32>
    %690 = arith.addf %686, %689 : vector<32x32xf32>
    %cst_351 = arith.constant 0.000000e+00 : f32
    %691 = vector.broadcast %cst_351 : f32 to vector<32x32xf32>
    %692 = arith.subf %691, %690 : vector<32x32xf32>
    %693 = math.exp %692 : vector<32x32xf32>
    %cst_352 = arith.constant 1.000000e+00 : f32
    %694 = vector.broadcast %cst_352 : f32 to vector<32x32xf32>
    %695 = arith.addf %694, %693 : vector<32x32xf32>
    %696 = tpu.reciprocal %695 {approx = true} : vector<32x32xf32> -> vector<32x32xf32>
    %697 = arith.mulf %690, %696 : vector<32x32xf32>
    %c5_353 = arith.constant 5 : index
    %c0_354 = arith.constant 0 : index
    %c0_355 = arith.constant 0 : index
    %698 = vector.load %arg10[%c5_353, %c0_354, %c0_355] : memref<8x1x32xf32, #tpu.memory_space<vmem>>, vector<1x1x32xf32>
    %699 = vector.shape_cast %698 : vector<1x1x32xf32> to vector<1x32xf32>
    %700 = vector.broadcast %699 : vector<1x32xf32> to vector<32x32xf32>
    %701 = arith.mulf %697, %700 : vector<32x32xf32>
    %c5_356 = arith.constant 5 : index
    %c0_357 = arith.constant 0 : index
    %c0_358 = arith.constant 0 : index
    %702 = vector.load %arg11[%c5_356, %c0_357, %c0_358] : memref<8x1x32xf32, #tpu.memory_space<vmem>>, vector<1x1x32xf32>
    %703 = vector.shape_cast %702 : vector<1x1x32xf32> to vector<1x32xf32>
    %704 = vector.broadcast %703 : vector<1x32xf32> to vector<32x32xf32>
    %705 = arith.addf %701, %704 : vector<32x32xf32>
    %706 = vector.extract_strided_slice %705 {offsets = [0, 0], sizes = [32, 8], strides = [1, 1]} : vector<32x32xf32> to vector<32x8xf32>
    %707 = vector.extract_strided_slice %705 {offsets = [0, 8], sizes = [32, 8], strides = [1, 1]} : vector<32x32xf32> to vector<32x8xf32>
    %708 = vector.extract_strided_slice %705 {offsets = [0, 16], sizes = [32, 8], strides = [1, 1]} : vector<32x32xf32> to vector<32x8xf32>
    %709 = vector.extract_strided_slice %705 {offsets = [0, 24], sizes = [32, 8], strides = [1, 1]} : vector<32x32xf32> to vector<32x8xf32>
    %cst_359 = arith.constant dense<0.000000e+00> : vector<32x32xf32>
    %710 = tpu.matmul %706, %708, %cst_359 {dimension_numbers = #tpu.dot_dimension_numbers<[1], [1], [0], [0], [0, 0, 1, 0], [], []>} : vector<32x8xf32>, vector<32x8xf32>, vector<32x32xf32> -> vector<32x32xf32>
    %c5_360 = arith.constant 5 : index
    %c0_361 = arith.constant 0 : index
    %c0_362 = arith.constant 0 : index
    %711 = vector.load %arg14[%c5_360, %c0_361, %c0_362] : memref<8x32x32xf32, #tpu.memory_space<vmem>>, vector<1x32x32xf32>
    %712 = vector.shape_cast %711 : vector<1x32x32xf32> to vector<32x32xf32>
    %713 = arith.addf %710, %712 : vector<32x32xf32>
    %cst_363 = arith.constant 0.707106769 : f32
    %714 = vector.broadcast %cst_363 : f32 to vector<32x32xf32>
    %715 = arith.subf %713, %714 : vector<32x32xf32>
    %cst_364 = arith.constant 1.25331414 : f32
    %716 = vector.broadcast %cst_364 : f32 to vector<32x32xf32>
    %717 = arith.divf %715, %716 : vector<32x32xf32>
    %cst_365 = arith.constant 0.000000e+00 : f32
    %718 = vector.broadcast %cst_365 : f32 to vector<32x32xf32>
    %719 = arith.cmpf olt, %717, %718 : vector<32x32xf32>
    %cst_366 = arith.constant -1.000000e+00 : f32
    %cst_367 = arith.constant 1.000000e+00 : f32
    %720 = vector.broadcast %cst_366 : f32 to vector<32x32xf32>
    %721 = vector.broadcast %cst_367 : f32 to vector<32x32xf32>
    %722 = arith.select %719, %720, %721 : vector<32x32xi1>, vector<32x32xf32>
    %723 = math.absf %717 : vector<32x32xf32>
    %cst_368 = arith.constant 0.327591091 : f32
    %724 = vector.broadcast %cst_368 : f32 to vector<32x32xf32>
    %725 = arith.mulf %724, %723 : vector<32x32xf32>
    %cst_369 = arith.constant 1.000000e+00 : f32
    %726 = vector.broadcast %cst_369 : f32 to vector<32x32xf32>
    %727 = arith.addf %726, %725 : vector<32x32xf32>
    %728 = tpu.reciprocal %727 {approx = true} : vector<32x32xf32> -> vector<32x32xf32>
    %cst_370 = arith.constant 1.06140542 : f32
    %729 = vector.broadcast %cst_370 : f32 to vector<32x32xf32>
    %730 = arith.mulf %729, %728 : vector<32x32xf32>
    %cst_371 = arith.constant -1.45315206 : f32
    %731 = vector.broadcast %cst_371 : f32 to vector<32x32xf32>
    %732 = arith.addf %730, %731 : vector<32x32xf32>
    %733 = arith.mulf %732, %728 : vector<32x32xf32>
    %cst_372 = arith.constant 1.42141378 : f32
    %734 = vector.broadcast %cst_372 : f32 to vector<32x32xf32>
    %735 = arith.addf %733, %734 : vector<32x32xf32>
    %736 = arith.mulf %735, %728 : vector<32x32xf32>
    %cst_373 = arith.constant -0.284496725 : f32
    %737 = vector.broadcast %cst_373 : f32 to vector<32x32xf32>
    %738 = arith.addf %736, %737 : vector<32x32xf32>
    %739 = arith.mulf %738, %728 : vector<32x32xf32>
    %cst_374 = arith.constant 0.254829586 : f32
    %740 = vector.broadcast %cst_374 : f32 to vector<32x32xf32>
    %741 = arith.addf %739, %740 : vector<32x32xf32>
    %742 = arith.mulf %741, %728 : vector<32x32xf32>
    %cst_375 = arith.constant 0.000000e+00 : f32
    %743 = vector.broadcast %cst_375 : f32 to vector<32x32xf32>
    %744 = arith.subf %743, %723 : vector<32x32xf32>
    %745 = arith.mulf %744, %723 : vector<32x32xf32>
    %746 = math.exp %745 : vector<32x32xf32>
    %747 = arith.mulf %742, %746 : vector<32x32xf32>
    %cst_376 = arith.constant 1.000000e+00 : f32
    %748 = vector.broadcast %cst_376 : f32 to vector<32x32xf32>
    %749 = arith.subf %748, %747 : vector<32x32xf32>
    %750 = arith.mulf %722, %749 : vector<32x32xf32>
    %cst_377 = arith.constant 1.000000e+00 : f32
    %751 = vector.broadcast %cst_377 : f32 to vector<32x32xf32>
    %752 = arith.addf %751, %750 : vector<32x32xf32>
    %cst_378 = arith.constant 5.000000e-01 : f32
    %753 = vector.broadcast %cst_378 : f32 to vector<32x32xf32>
    %754 = arith.mulf %753, %752 : vector<32x32xf32>
    %755 = arith.mulf %754, %0 : vector<32x32xf32>
    %cst_379 = arith.constant dense<0.000000e+00> : vector<32x32xf32>
    %756 = tpu.matmul %707, %709, %cst_379 {dimension_numbers = #tpu.dot_dimension_numbers<[1], [1], [0], [0], [0, 0, 1, 0], [], []>} : vector<32x8xf32>, vector<32x8xf32>, vector<32x32xf32> -> vector<32x32xf32>
    %757 = arith.mulf %756, %1 : vector<32x32xf32>
    %758 = arith.addf %755, %757 : vector<32x32xf32>
    %cst_380 = arith.constant dense<0.000000e+00> : vector<32x64xf32>
    %759 = tpu.matmul %758, %682, %cst_380 {dimension_numbers = #tpu.dot_dimension_numbers<[1], [0], [0], [1], [0, 0, 1, 1], [], []>} : vector<32x32xf32>, vector<32x64xf32>, vector<32x64xf32> -> vector<32x64xf32>
    %760 = arith.mulf %683, %759 : vector<32x64xf32>
    %c5_381 = arith.constant 5 : index
    %c0_382 = arith.constant 0 : index
    %c0_383 = arith.constant 0 : index
    %761 = vector.load %arg12[%c5_381, %c0_382, %c0_383] : memref<8x64x32xf32, #tpu.memory_space<vmem>>, vector<1x64x32xf32>
    %762 = vector.shape_cast %761 : vector<1x64x32xf32> to vector<64x32xf32>
    %cst_384 = arith.constant dense<0.000000e+00> : vector<32x32xf32>
    %763 = tpu.matmul %760, %762, %cst_384 {dimension_numbers = #tpu.dot_dimension_numbers<[1], [0], [0], [1], [0, 0, 1, 1], [], []>} : vector<32x64xf32>, vector<64x32xf32>, vector<32x32xf32> -> vector<32x32xf32>
    %c5_385 = arith.constant 5 : index
    %c0_386 = arith.constant 0 : index
    %c0_387 = arith.constant 0 : index
    %764 = vector.load %arg13[%c5_385, %c0_386, %c0_387] : memref<8x1x32xf32, #tpu.memory_space<vmem>>, vector<1x1x32xf32>
    %765 = vector.shape_cast %764 : vector<1x1x32xf32> to vector<1x32xf32>
    %766 = vector.broadcast %765 : vector<1x32xf32> to vector<32x32xf32>
    %767 = arith.addf %763, %766 : vector<32x32xf32>
    %768 = arith.addf %641, %767 : vector<32x32xf32>
    %cst_388 = arith.constant dense<0.000000e+00> : vector<32xf32>
    %769 = vector.multi_reduction <add>, %768, %cst_388 [1] : vector<32x32xf32> to vector<32xf32>
    %770 = vector.shape_cast %769 : vector<32xf32> to vector<32x1xf32>
    %cst_389 = arith.constant 3.200000e+01 : f32
    %771 = vector.broadcast %cst_389 : f32 to vector<32x1xf32>
    %772 = arith.divf %770, %771 : vector<32x1xf32>
    %773 = vector.broadcast %772 : vector<32x1xf32> to vector<32x32xf32>
    %774 = arith.subf %768, %773 : vector<32x32xf32>
    %775 = arith.mulf %774, %774 : vector<32x32xf32>
    %cst_390 = arith.constant dense<0.000000e+00> : vector<32xf32>
    %776 = vector.multi_reduction <add>, %775, %cst_390 [1] : vector<32x32xf32> to vector<32xf32>
    %777 = vector.shape_cast %776 : vector<32xf32> to vector<32x1xf32>
    %cst_391 = arith.constant 3.200000e+01 : f32
    %778 = vector.broadcast %cst_391 : f32 to vector<32x1xf32>
    %779 = arith.divf %777, %778 : vector<32x1xf32>
    %780 = vector.broadcast %772 : vector<32x1xf32> to vector<32x32xf32>
    %781 = arith.subf %768, %780 : vector<32x32xf32>
    %cst_392 = arith.constant 9.99999974E-6 : f32
    %782 = vector.broadcast %cst_392 : f32 to vector<32x1xf32>
    %783 = arith.addf %779, %782 : vector<32x1xf32>
    %784 = math.rsqrt %783 : vector<32x1xf32>
    %785 = vector.broadcast %784 : vector<32x1xf32> to vector<32x32xf32>
    %786 = arith.mulf %781, %785 : vector<32x32xf32>
    %c6 = arith.constant 6 : index
    %c0_393 = arith.constant 0 : index
    %c0_394 = arith.constant 0 : index
    %787 = vector.load %arg4[%c6, %c0_393, %c0_394] : memref<8x1x32xf32, #tpu.memory_space<vmem>>, vector<1x1x32xf32>
    %788 = vector.shape_cast %787 : vector<1x1x32xf32> to vector<1x32xf32>
    %789 = vector.broadcast %788 : vector<1x32xf32> to vector<32x32xf32>
    %790 = arith.mulf %786, %789 : vector<32x32xf32>
    %c6_395 = arith.constant 6 : index
    %c0_396 = arith.constant 0 : index
    %c0_397 = arith.constant 0 : index
    %791 = vector.load %arg5[%c6_395, %c0_396, %c0_397] : memref<8x1x32xf32, #tpu.memory_space<vmem>>, vector<1x1x32xf32>
    %792 = vector.shape_cast %791 : vector<1x1x32xf32> to vector<1x32xf32>
    %793 = vector.broadcast %792 : vector<1x32xf32> to vector<32x32xf32>
    %794 = arith.addf %790, %793 : vector<32x32xf32>
    %c6_398 = arith.constant 6 : index
    %c0_399 = arith.constant 0 : index
    %c0_400 = arith.constant 0 : index
    %795 = vector.load %arg6[%c6_398, %c0_399, %c0_400] : memref<8x32x128xf32, #tpu.memory_space<vmem>>, vector<1x32x128xf32>
    %796 = vector.shape_cast %795 : vector<1x32x128xf32> to vector<32x128xf32>
    %cst_401 = arith.constant dense<0.000000e+00> : vector<32x128xf32>
    %797 = tpu.matmul %794, %796, %cst_401 {dimension_numbers = #tpu.dot_dimension_numbers<[1], [0], [0], [1], [0, 0, 1, 1], [], []>} : vector<32x32xf32>, vector<32x128xf32>, vector<32x128xf32> -> vector<32x128xf32>
    %c6_402 = arith.constant 6 : index
    %c0_403 = arith.constant 0 : index
    %c0_404 = arith.constant 0 : index
    %798 = vector.load %arg7[%c6_402, %c0_403, %c0_404] : memref<8x1x128xf32, #tpu.memory_space<vmem>>, vector<1x1x128xf32>
    %799 = vector.shape_cast %798 : vector<1x1x128xf32> to vector<1x128xf32>
    %800 = vector.broadcast %799 : vector<1x128xf32> to vector<32x128xf32>
    %801 = arith.addf %797, %800 : vector<32x128xf32>
    %cst_405 = arith.constant 0.000000e+00 : f32
    %802 = vector.broadcast %cst_405 : f32 to vector<32x128xf32>
    %803 = arith.subf %802, %801 : vector<32x128xf32>
    %804 = math.exp %803 : vector<32x128xf32>
    %cst_406 = arith.constant 1.000000e+00 : f32
    %805 = vector.broadcast %cst_406 : f32 to vector<32x128xf32>
    %806 = arith.addf %805, %804 : vector<32x128xf32>
    %807 = tpu.reciprocal %806 {approx = true} : vector<32x128xf32> -> vector<32x128xf32>
    %808 = arith.mulf %801, %807 : vector<32x128xf32>
    %809 = vector.extract_strided_slice %808 {offsets = [0, 0], sizes = [32, 64], strides = [1, 1]} : vector<32x128xf32> to vector<32x64xf32>
    %810 = vector.extract_strided_slice %808 {offsets = [0, 64], sizes = [32, 64], strides = [1, 1]} : vector<32x128xf32> to vector<32x64xf32>
    %c6_407 = arith.constant 6 : index
    %c0_408 = arith.constant 0 : index
    %c0_409 = arith.constant 0 : index
    %811 = vector.load %arg8[%c6_407, %c0_408, %c0_409] : memref<8x32x32xf32, #tpu.memory_space<vmem>>, vector<1x32x32xf32>
    %812 = vector.shape_cast %811 : vector<1x32x32xf32> to vector<32x32xf32>
    %cst_410 = arith.constant dense<0.000000e+00> : vector<32x32xf32>
    %813 = tpu.matmul %794, %812, %cst_410 {dimension_numbers = #tpu.dot_dimension_numbers<[1], [0], [0], [1], [0, 0, 1, 1], [], []>} : vector<32x32xf32>, vector<32x32xf32>, vector<32x32xf32> -> vector<32x32xf32>
    %c6_411 = arith.constant 6 : index
    %c0_412 = arith.constant 0 : index
    %c0_413 = arith.constant 0 : index
    %814 = vector.load %arg9[%c6_411, %c0_412, %c0_413] : memref<8x1x32xf32, #tpu.memory_space<vmem>>, vector<1x1x32xf32>
    %815 = vector.shape_cast %814 : vector<1x1x32xf32> to vector<1x32xf32>
    %816 = vector.broadcast %815 : vector<1x32xf32> to vector<32x32xf32>
    %817 = arith.addf %813, %816 : vector<32x32xf32>
    %cst_414 = arith.constant 0.000000e+00 : f32
    %818 = vector.broadcast %cst_414 : f32 to vector<32x32xf32>
    %819 = arith.subf %818, %817 : vector<32x32xf32>
    %820 = math.exp %819 : vector<32x32xf32>
    %cst_415 = arith.constant 1.000000e+00 : f32
    %821 = vector.broadcast %cst_415 : f32 to vector<32x32xf32>
    %822 = arith.addf %821, %820 : vector<32x32xf32>
    %823 = tpu.reciprocal %822 {approx = true} : vector<32x32xf32> -> vector<32x32xf32>
    %824 = arith.mulf %817, %823 : vector<32x32xf32>
    %c6_416 = arith.constant 6 : index
    %c0_417 = arith.constant 0 : index
    %c0_418 = arith.constant 0 : index
    %825 = vector.load %arg10[%c6_416, %c0_417, %c0_418] : memref<8x1x32xf32, #tpu.memory_space<vmem>>, vector<1x1x32xf32>
    %826 = vector.shape_cast %825 : vector<1x1x32xf32> to vector<1x32xf32>
    %827 = vector.broadcast %826 : vector<1x32xf32> to vector<32x32xf32>
    %828 = arith.mulf %824, %827 : vector<32x32xf32>
    %c6_419 = arith.constant 6 : index
    %c0_420 = arith.constant 0 : index
    %c0_421 = arith.constant 0 : index
    %829 = vector.load %arg11[%c6_419, %c0_420, %c0_421] : memref<8x1x32xf32, #tpu.memory_space<vmem>>, vector<1x1x32xf32>
    %830 = vector.shape_cast %829 : vector<1x1x32xf32> to vector<1x32xf32>
    %831 = vector.broadcast %830 : vector<1x32xf32> to vector<32x32xf32>
    %832 = arith.addf %828, %831 : vector<32x32xf32>
    %833 = vector.extract_strided_slice %832 {offsets = [0, 0], sizes = [32, 8], strides = [1, 1]} : vector<32x32xf32> to vector<32x8xf32>
    %834 = vector.extract_strided_slice %832 {offsets = [0, 8], sizes = [32, 8], strides = [1, 1]} : vector<32x32xf32> to vector<32x8xf32>
    %835 = vector.extract_strided_slice %832 {offsets = [0, 16], sizes = [32, 8], strides = [1, 1]} : vector<32x32xf32> to vector<32x8xf32>
    %836 = vector.extract_strided_slice %832 {offsets = [0, 24], sizes = [32, 8], strides = [1, 1]} : vector<32x32xf32> to vector<32x8xf32>
    %cst_422 = arith.constant dense<0.000000e+00> : vector<32x32xf32>
    %837 = tpu.matmul %833, %835, %cst_422 {dimension_numbers = #tpu.dot_dimension_numbers<[1], [1], [0], [0], [0, 0, 1, 0], [], []>} : vector<32x8xf32>, vector<32x8xf32>, vector<32x32xf32> -> vector<32x32xf32>
    %c6_423 = arith.constant 6 : index
    %c0_424 = arith.constant 0 : index
    %c0_425 = arith.constant 0 : index
    %838 = vector.load %arg14[%c6_423, %c0_424, %c0_425] : memref<8x32x32xf32, #tpu.memory_space<vmem>>, vector<1x32x32xf32>
    %839 = vector.shape_cast %838 : vector<1x32x32xf32> to vector<32x32xf32>
    %840 = arith.addf %837, %839 : vector<32x32xf32>
    %cst_426 = arith.constant 0.707106769 : f32
    %841 = vector.broadcast %cst_426 : f32 to vector<32x32xf32>
    %842 = arith.subf %840, %841 : vector<32x32xf32>
    %cst_427 = arith.constant 1.25331414 : f32
    %843 = vector.broadcast %cst_427 : f32 to vector<32x32xf32>
    %844 = arith.divf %842, %843 : vector<32x32xf32>
    %cst_428 = arith.constant 0.000000e+00 : f32
    %845 = vector.broadcast %cst_428 : f32 to vector<32x32xf32>
    %846 = arith.cmpf olt, %844, %845 : vector<32x32xf32>
    %cst_429 = arith.constant -1.000000e+00 : f32
    %cst_430 = arith.constant 1.000000e+00 : f32
    %847 = vector.broadcast %cst_429 : f32 to vector<32x32xf32>
    %848 = vector.broadcast %cst_430 : f32 to vector<32x32xf32>
    %849 = arith.select %846, %847, %848 : vector<32x32xi1>, vector<32x32xf32>
    %850 = math.absf %844 : vector<32x32xf32>
    %cst_431 = arith.constant 0.327591091 : f32
    %851 = vector.broadcast %cst_431 : f32 to vector<32x32xf32>
    %852 = arith.mulf %851, %850 : vector<32x32xf32>
    %cst_432 = arith.constant 1.000000e+00 : f32
    %853 = vector.broadcast %cst_432 : f32 to vector<32x32xf32>
    %854 = arith.addf %853, %852 : vector<32x32xf32>
    %855 = tpu.reciprocal %854 {approx = true} : vector<32x32xf32> -> vector<32x32xf32>
    %cst_433 = arith.constant 1.06140542 : f32
    %856 = vector.broadcast %cst_433 : f32 to vector<32x32xf32>
    %857 = arith.mulf %856, %855 : vector<32x32xf32>
    %cst_434 = arith.constant -1.45315206 : f32
    %858 = vector.broadcast %cst_434 : f32 to vector<32x32xf32>
    %859 = arith.addf %857, %858 : vector<32x32xf32>
    %860 = arith.mulf %859, %855 : vector<32x32xf32>
    %cst_435 = arith.constant 1.42141378 : f32
    %861 = vector.broadcast %cst_435 : f32 to vector<32x32xf32>
    %862 = arith.addf %860, %861 : vector<32x32xf32>
    %863 = arith.mulf %862, %855 : vector<32x32xf32>
    %cst_436 = arith.constant -0.284496725 : f32
    %864 = vector.broadcast %cst_436 : f32 to vector<32x32xf32>
    %865 = arith.addf %863, %864 : vector<32x32xf32>
    %866 = arith.mulf %865, %855 : vector<32x32xf32>
    %cst_437 = arith.constant 0.254829586 : f32
    %867 = vector.broadcast %cst_437 : f32 to vector<32x32xf32>
    %868 = arith.addf %866, %867 : vector<32x32xf32>
    %869 = arith.mulf %868, %855 : vector<32x32xf32>
    %cst_438 = arith.constant 0.000000e+00 : f32
    %870 = vector.broadcast %cst_438 : f32 to vector<32x32xf32>
    %871 = arith.subf %870, %850 : vector<32x32xf32>
    %872 = arith.mulf %871, %850 : vector<32x32xf32>
    %873 = math.exp %872 : vector<32x32xf32>
    %874 = arith.mulf %869, %873 : vector<32x32xf32>
    %cst_439 = arith.constant 1.000000e+00 : f32
    %875 = vector.broadcast %cst_439 : f32 to vector<32x32xf32>
    %876 = arith.subf %875, %874 : vector<32x32xf32>
    %877 = arith.mulf %849, %876 : vector<32x32xf32>
    %cst_440 = arith.constant 1.000000e+00 : f32
    %878 = vector.broadcast %cst_440 : f32 to vector<32x32xf32>
    %879 = arith.addf %878, %877 : vector<32x32xf32>
    %cst_441 = arith.constant 5.000000e-01 : f32
    %880 = vector.broadcast %cst_441 : f32 to vector<32x32xf32>
    %881 = arith.mulf %880, %879 : vector<32x32xf32>
    %882 = arith.mulf %881, %0 : vector<32x32xf32>
    %cst_442 = arith.constant dense<0.000000e+00> : vector<32x32xf32>
    %883 = tpu.matmul %834, %836, %cst_442 {dimension_numbers = #tpu.dot_dimension_numbers<[1], [1], [0], [0], [0, 0, 1, 0], [], []>} : vector<32x8xf32>, vector<32x8xf32>, vector<32x32xf32> -> vector<32x32xf32>
    %884 = arith.mulf %883, %1 : vector<32x32xf32>
    %885 = arith.addf %882, %884 : vector<32x32xf32>
    %cst_443 = arith.constant dense<0.000000e+00> : vector<32x64xf32>
    %886 = tpu.matmul %885, %809, %cst_443 {dimension_numbers = #tpu.dot_dimension_numbers<[1], [0], [0], [1], [0, 0, 1, 1], [], []>} : vector<32x32xf32>, vector<32x64xf32>, vector<32x64xf32> -> vector<32x64xf32>
    %887 = arith.mulf %810, %886 : vector<32x64xf32>
    %c6_444 = arith.constant 6 : index
    %c0_445 = arith.constant 0 : index
    %c0_446 = arith.constant 0 : index
    %888 = vector.load %arg12[%c6_444, %c0_445, %c0_446] : memref<8x64x32xf32, #tpu.memory_space<vmem>>, vector<1x64x32xf32>
    %889 = vector.shape_cast %888 : vector<1x64x32xf32> to vector<64x32xf32>
    %cst_447 = arith.constant dense<0.000000e+00> : vector<32x32xf32>
    %890 = tpu.matmul %887, %889, %cst_447 {dimension_numbers = #tpu.dot_dimension_numbers<[1], [0], [0], [1], [0, 0, 1, 1], [], []>} : vector<32x64xf32>, vector<64x32xf32>, vector<32x32xf32> -> vector<32x32xf32>
    %c6_448 = arith.constant 6 : index
    %c0_449 = arith.constant 0 : index
    %c0_450 = arith.constant 0 : index
    %891 = vector.load %arg13[%c6_448, %c0_449, %c0_450] : memref<8x1x32xf32, #tpu.memory_space<vmem>>, vector<1x1x32xf32>
    %892 = vector.shape_cast %891 : vector<1x1x32xf32> to vector<1x32xf32>
    %893 = vector.broadcast %892 : vector<1x32xf32> to vector<32x32xf32>
    %894 = arith.addf %890, %893 : vector<32x32xf32>
    %895 = arith.addf %768, %894 : vector<32x32xf32>
    %cst_451 = arith.constant dense<0.000000e+00> : vector<32xf32>
    %896 = vector.multi_reduction <add>, %895, %cst_451 [1] : vector<32x32xf32> to vector<32xf32>
    %897 = vector.shape_cast %896 : vector<32xf32> to vector<32x1xf32>
    %cst_452 = arith.constant 3.200000e+01 : f32
    %898 = vector.broadcast %cst_452 : f32 to vector<32x1xf32>
    %899 = arith.divf %897, %898 : vector<32x1xf32>
    %900 = vector.broadcast %899 : vector<32x1xf32> to vector<32x32xf32>
    %901 = arith.subf %895, %900 : vector<32x32xf32>
    %902 = arith.mulf %901, %901 : vector<32x32xf32>
    %cst_453 = arith.constant dense<0.000000e+00> : vector<32xf32>
    %903 = vector.multi_reduction <add>, %902, %cst_453 [1] : vector<32x32xf32> to vector<32xf32>
    %904 = vector.shape_cast %903 : vector<32xf32> to vector<32x1xf32>
    %cst_454 = arith.constant 3.200000e+01 : f32
    %905 = vector.broadcast %cst_454 : f32 to vector<32x1xf32>
    %906 = arith.divf %904, %905 : vector<32x1xf32>
    %907 = vector.broadcast %899 : vector<32x1xf32> to vector<32x32xf32>
    %908 = arith.subf %895, %907 : vector<32x32xf32>
    %cst_455 = arith.constant 9.99999974E-6 : f32
    %909 = vector.broadcast %cst_455 : f32 to vector<32x1xf32>
    %910 = arith.addf %906, %909 : vector<32x1xf32>
    %911 = math.rsqrt %910 : vector<32x1xf32>
    %912 = vector.broadcast %911 : vector<32x1xf32> to vector<32x32xf32>
    %913 = arith.mulf %908, %912 : vector<32x32xf32>
    %c7 = arith.constant 7 : index
    %c0_456 = arith.constant 0 : index
    %c0_457 = arith.constant 0 : index
    %914 = vector.load %arg4[%c7, %c0_456, %c0_457] : memref<8x1x32xf32, #tpu.memory_space<vmem>>, vector<1x1x32xf32>
    %915 = vector.shape_cast %914 : vector<1x1x32xf32> to vector<1x32xf32>
    %916 = vector.broadcast %915 : vector<1x32xf32> to vector<32x32xf32>
    %917 = arith.mulf %913, %916 : vector<32x32xf32>
    %c7_458 = arith.constant 7 : index
    %c0_459 = arith.constant 0 : index
    %c0_460 = arith.constant 0 : index
    %918 = vector.load %arg5[%c7_458, %c0_459, %c0_460] : memref<8x1x32xf32, #tpu.memory_space<vmem>>, vector<1x1x32xf32>
    %919 = vector.shape_cast %918 : vector<1x1x32xf32> to vector<1x32xf32>
    %920 = vector.broadcast %919 : vector<1x32xf32> to vector<32x32xf32>
    %921 = arith.addf %917, %920 : vector<32x32xf32>
    %c7_461 = arith.constant 7 : index
    %c0_462 = arith.constant 0 : index
    %c0_463 = arith.constant 0 : index
    %922 = vector.load %arg6[%c7_461, %c0_462, %c0_463] : memref<8x32x128xf32, #tpu.memory_space<vmem>>, vector<1x32x128xf32>
    %923 = vector.shape_cast %922 : vector<1x32x128xf32> to vector<32x128xf32>
    %cst_464 = arith.constant dense<0.000000e+00> : vector<32x128xf32>
    %924 = tpu.matmul %921, %923, %cst_464 {dimension_numbers = #tpu.dot_dimension_numbers<[1], [0], [0], [1], [0, 0, 1, 1], [], []>} : vector<32x32xf32>, vector<32x128xf32>, vector<32x128xf32> -> vector<32x128xf32>
    %c7_465 = arith.constant 7 : index
    %c0_466 = arith.constant 0 : index
    %c0_467 = arith.constant 0 : index
    %925 = vector.load %arg7[%c7_465, %c0_466, %c0_467] : memref<8x1x128xf32, #tpu.memory_space<vmem>>, vector<1x1x128xf32>
    %926 = vector.shape_cast %925 : vector<1x1x128xf32> to vector<1x128xf32>
    %927 = vector.broadcast %926 : vector<1x128xf32> to vector<32x128xf32>
    %928 = arith.addf %924, %927 : vector<32x128xf32>
    %cst_468 = arith.constant 0.000000e+00 : f32
    %929 = vector.broadcast %cst_468 : f32 to vector<32x128xf32>
    %930 = arith.subf %929, %928 : vector<32x128xf32>
    %931 = math.exp %930 : vector<32x128xf32>
    %cst_469 = arith.constant 1.000000e+00 : f32
    %932 = vector.broadcast %cst_469 : f32 to vector<32x128xf32>
    %933 = arith.addf %932, %931 : vector<32x128xf32>
    %934 = tpu.reciprocal %933 {approx = true} : vector<32x128xf32> -> vector<32x128xf32>
    %935 = arith.mulf %928, %934 : vector<32x128xf32>
    %936 = vector.extract_strided_slice %935 {offsets = [0, 0], sizes = [32, 64], strides = [1, 1]} : vector<32x128xf32> to vector<32x64xf32>
    %937 = vector.extract_strided_slice %935 {offsets = [0, 64], sizes = [32, 64], strides = [1, 1]} : vector<32x128xf32> to vector<32x64xf32>
    %c7_470 = arith.constant 7 : index
    %c0_471 = arith.constant 0 : index
    %c0_472 = arith.constant 0 : index
    %938 = vector.load %arg8[%c7_470, %c0_471, %c0_472] : memref<8x32x32xf32, #tpu.memory_space<vmem>>, vector<1x32x32xf32>
    %939 = vector.shape_cast %938 : vector<1x32x32xf32> to vector<32x32xf32>
    %cst_473 = arith.constant dense<0.000000e+00> : vector<32x32xf32>
    %940 = tpu.matmul %921, %939, %cst_473 {dimension_numbers = #tpu.dot_dimension_numbers<[1], [0], [0], [1], [0, 0, 1, 1], [], []>} : vector<32x32xf32>, vector<32x32xf32>, vector<32x32xf32> -> vector<32x32xf32>
    %c7_474 = arith.constant 7 : index
    %c0_475 = arith.constant 0 : index
    %c0_476 = arith.constant 0 : index
    %941 = vector.load %arg9[%c7_474, %c0_475, %c0_476] : memref<8x1x32xf32, #tpu.memory_space<vmem>>, vector<1x1x32xf32>
    %942 = vector.shape_cast %941 : vector<1x1x32xf32> to vector<1x32xf32>
    %943 = vector.broadcast %942 : vector<1x32xf32> to vector<32x32xf32>
    %944 = arith.addf %940, %943 : vector<32x32xf32>
    %cst_477 = arith.constant 0.000000e+00 : f32
    %945 = vector.broadcast %cst_477 : f32 to vector<32x32xf32>
    %946 = arith.subf %945, %944 : vector<32x32xf32>
    %947 = math.exp %946 : vector<32x32xf32>
    %cst_478 = arith.constant 1.000000e+00 : f32
    %948 = vector.broadcast %cst_478 : f32 to vector<32x32xf32>
    %949 = arith.addf %948, %947 : vector<32x32xf32>
    %950 = tpu.reciprocal %949 {approx = true} : vector<32x32xf32> -> vector<32x32xf32>
    %951 = arith.mulf %944, %950 : vector<32x32xf32>
    %c7_479 = arith.constant 7 : index
    %c0_480 = arith.constant 0 : index
    %c0_481 = arith.constant 0 : index
    %952 = vector.load %arg10[%c7_479, %c0_480, %c0_481] : memref<8x1x32xf32, #tpu.memory_space<vmem>>, vector<1x1x32xf32>
    %953 = vector.shape_cast %952 : vector<1x1x32xf32> to vector<1x32xf32>
    %954 = vector.broadcast %953 : vector<1x32xf32> to vector<32x32xf32>
    %955 = arith.mulf %951, %954 : vector<32x32xf32>
    %c7_482 = arith.constant 7 : index
    %c0_483 = arith.constant 0 : index
    %c0_484 = arith.constant 0 : index
    %956 = vector.load %arg11[%c7_482, %c0_483, %c0_484] : memref<8x1x32xf32, #tpu.memory_space<vmem>>, vector<1x1x32xf32>
    %957 = vector.shape_cast %956 : vector<1x1x32xf32> to vector<1x32xf32>
    %958 = vector.broadcast %957 : vector<1x32xf32> to vector<32x32xf32>
    %959 = arith.addf %955, %958 : vector<32x32xf32>
    %960 = vector.extract_strided_slice %959 {offsets = [0, 0], sizes = [32, 8], strides = [1, 1]} : vector<32x32xf32> to vector<32x8xf32>
    %961 = vector.extract_strided_slice %959 {offsets = [0, 8], sizes = [32, 8], strides = [1, 1]} : vector<32x32xf32> to vector<32x8xf32>
    %962 = vector.extract_strided_slice %959 {offsets = [0, 16], sizes = [32, 8], strides = [1, 1]} : vector<32x32xf32> to vector<32x8xf32>
    %963 = vector.extract_strided_slice %959 {offsets = [0, 24], sizes = [32, 8], strides = [1, 1]} : vector<32x32xf32> to vector<32x8xf32>
    %cst_485 = arith.constant dense<0.000000e+00> : vector<32x32xf32>
    %964 = tpu.matmul %960, %962, %cst_485 {dimension_numbers = #tpu.dot_dimension_numbers<[1], [1], [0], [0], [0, 0, 1, 0], [], []>} : vector<32x8xf32>, vector<32x8xf32>, vector<32x32xf32> -> vector<32x32xf32>
    %c7_486 = arith.constant 7 : index
    %c0_487 = arith.constant 0 : index
    %c0_488 = arith.constant 0 : index
    %965 = vector.load %arg14[%c7_486, %c0_487, %c0_488] : memref<8x32x32xf32, #tpu.memory_space<vmem>>, vector<1x32x32xf32>
    %966 = vector.shape_cast %965 : vector<1x32x32xf32> to vector<32x32xf32>
    %967 = arith.addf %964, %966 : vector<32x32xf32>
    %cst_489 = arith.constant 0.707106769 : f32
    %968 = vector.broadcast %cst_489 : f32 to vector<32x32xf32>
    %969 = arith.subf %967, %968 : vector<32x32xf32>
    %cst_490 = arith.constant 1.25331414 : f32
    %970 = vector.broadcast %cst_490 : f32 to vector<32x32xf32>
    %971 = arith.divf %969, %970 : vector<32x32xf32>
    %cst_491 = arith.constant 0.000000e+00 : f32
    %972 = vector.broadcast %cst_491 : f32 to vector<32x32xf32>
    %973 = arith.cmpf olt, %971, %972 : vector<32x32xf32>
    %cst_492 = arith.constant -1.000000e+00 : f32
    %cst_493 = arith.constant 1.000000e+00 : f32
    %974 = vector.broadcast %cst_492 : f32 to vector<32x32xf32>
    %975 = vector.broadcast %cst_493 : f32 to vector<32x32xf32>
    %976 = arith.select %973, %974, %975 : vector<32x32xi1>, vector<32x32xf32>
    %977 = math.absf %971 : vector<32x32xf32>
    %cst_494 = arith.constant 0.327591091 : f32
    %978 = vector.broadcast %cst_494 : f32 to vector<32x32xf32>
    %979 = arith.mulf %978, %977 : vector<32x32xf32>
    %cst_495 = arith.constant 1.000000e+00 : f32
    %980 = vector.broadcast %cst_495 : f32 to vector<32x32xf32>
    %981 = arith.addf %980, %979 : vector<32x32xf32>
    %982 = tpu.reciprocal %981 {approx = true} : vector<32x32xf32> -> vector<32x32xf32>
    %cst_496 = arith.constant 1.06140542 : f32
    %983 = vector.broadcast %cst_496 : f32 to vector<32x32xf32>
    %984 = arith.mulf %983, %982 : vector<32x32xf32>
    %cst_497 = arith.constant -1.45315206 : f32
    %985 = vector.broadcast %cst_497 : f32 to vector<32x32xf32>
    %986 = arith.addf %984, %985 : vector<32x32xf32>
    %987 = arith.mulf %986, %982 : vector<32x32xf32>
    %cst_498 = arith.constant 1.42141378 : f32
    %988 = vector.broadcast %cst_498 : f32 to vector<32x32xf32>
    %989 = arith.addf %987, %988 : vector<32x32xf32>
    %990 = arith.mulf %989, %982 : vector<32x32xf32>
    %cst_499 = arith.constant -0.284496725 : f32
    %991 = vector.broadcast %cst_499 : f32 to vector<32x32xf32>
    %992 = arith.addf %990, %991 : vector<32x32xf32>
    %993 = arith.mulf %992, %982 : vector<32x32xf32>
    %cst_500 = arith.constant 0.254829586 : f32
    %994 = vector.broadcast %cst_500 : f32 to vector<32x32xf32>
    %995 = arith.addf %993, %994 : vector<32x32xf32>
    %996 = arith.mulf %995, %982 : vector<32x32xf32>
    %cst_501 = arith.constant 0.000000e+00 : f32
    %997 = vector.broadcast %cst_501 : f32 to vector<32x32xf32>
    %998 = arith.subf %997, %977 : vector<32x32xf32>
    %999 = arith.mulf %998, %977 : vector<32x32xf32>
    %1000 = math.exp %999 : vector<32x32xf32>
    %1001 = arith.mulf %996, %1000 : vector<32x32xf32>
    %cst_502 = arith.constant 1.000000e+00 : f32
    %1002 = vector.broadcast %cst_502 : f32 to vector<32x32xf32>
    %1003 = arith.subf %1002, %1001 : vector<32x32xf32>
    %1004 = arith.mulf %976, %1003 : vector<32x32xf32>
    %cst_503 = arith.constant 1.000000e+00 : f32
    %1005 = vector.broadcast %cst_503 : f32 to vector<32x32xf32>
    %1006 = arith.addf %1005, %1004 : vector<32x32xf32>
    %cst_504 = arith.constant 5.000000e-01 : f32
    %1007 = vector.broadcast %cst_504 : f32 to vector<32x32xf32>
    %1008 = arith.mulf %1007, %1006 : vector<32x32xf32>
    %1009 = arith.mulf %1008, %0 : vector<32x32xf32>
    %cst_505 = arith.constant dense<0.000000e+00> : vector<32x32xf32>
    %1010 = tpu.matmul %961, %963, %cst_505 {dimension_numbers = #tpu.dot_dimension_numbers<[1], [1], [0], [0], [0, 0, 1, 0], [], []>} : vector<32x8xf32>, vector<32x8xf32>, vector<32x32xf32> -> vector<32x32xf32>
    %1011 = arith.mulf %1010, %1 : vector<32x32xf32>
    %1012 = arith.addf %1009, %1011 : vector<32x32xf32>
    %cst_506 = arith.constant dense<0.000000e+00> : vector<32x64xf32>
    %1013 = tpu.matmul %1012, %936, %cst_506 {dimension_numbers = #tpu.dot_dimension_numbers<[1], [0], [0], [1], [0, 0, 1, 1], [], []>} : vector<32x32xf32>, vector<32x64xf32>, vector<32x64xf32> -> vector<32x64xf32>
    %1014 = arith.mulf %937, %1013 : vector<32x64xf32>
    %c7_507 = arith.constant 7 : index
    %c0_508 = arith.constant 0 : index
    %c0_509 = arith.constant 0 : index
    %1015 = vector.load %arg12[%c7_507, %c0_508, %c0_509] : memref<8x64x32xf32, #tpu.memory_space<vmem>>, vector<1x64x32xf32>
    %1016 = vector.shape_cast %1015 : vector<1x64x32xf32> to vector<64x32xf32>
    %cst_510 = arith.constant dense<0.000000e+00> : vector<32x32xf32>
    %1017 = tpu.matmul %1014, %1016, %cst_510 {dimension_numbers = #tpu.dot_dimension_numbers<[1], [0], [0], [1], [0, 0, 1, 1], [], []>} : vector<32x64xf32>, vector<64x32xf32>, vector<32x32xf32> -> vector<32x32xf32>
    %c7_511 = arith.constant 7 : index
    %c0_512 = arith.constant 0 : index
    %c0_513 = arith.constant 0 : index
    %1018 = vector.load %arg13[%c7_511, %c0_512, %c0_513] : memref<8x1x32xf32, #tpu.memory_space<vmem>>, vector<1x1x32xf32>
    %1019 = vector.shape_cast %1018 : vector<1x1x32xf32> to vector<1x32xf32>
    %1020 = vector.broadcast %1019 : vector<1x32xf32> to vector<32x32xf32>
    %1021 = arith.addf %1017, %1020 : vector<32x32xf32>
    %1022 = arith.addf %895, %1021 : vector<32x32xf32>
    %c0_514 = arith.constant 0 : index
    %c0_515 = arith.constant 0 : index
    %1023 = vector.load %arg17[%c0_514, %c0_515] : memref<2x32xf32, #tpu.memory_space<vmem>>, vector<2x32xf32>
    %cst_516 = arith.constant dense<0.000000e+00> : vector<2x32xf32>
    %1024 = tpu.matmul %1023, %1022, %cst_516 {dimension_numbers = #tpu.dot_dimension_numbers<[1], [0], [0], [1], [0, 0, 1, 1], [], []>} : vector<2x32xf32>, vector<32x32xf32>, vector<2x32xf32> -> vector<2x32xf32>
    %c0_517 = arith.constant 0 : index
    %c0_518 = arith.constant 0 : index
    %1025 = vector.load %arg18[%c0_517, %c0_518] : memref<32x2xf32, #tpu.memory_space<vmem>>, vector<32x2xf32>
    %cst_519 = arith.constant dense<0.000000e+00> : vector<2x2xf32>
    %1026 = tpu.matmul %1024, %1025, %cst_519 {dimension_numbers = #tpu.dot_dimension_numbers<[1], [0], [0], [1], [0, 0, 1, 1], [], []>} : vector<2x32xf32>, vector<32x2xf32>, vector<2x2xf32> -> vector<2x2xf32>
    %c0_520 = arith.constant 0 : index
    %c0_521 = arith.constant 0 : index
    %1027 = vector.load %arg19[%c0_520, %c0_521] : memref<1x2xf32, #tpu.memory_space<vmem>>, vector<1x2xf32>
    %1028 = vector.broadcast %1027 : vector<1x2xf32> to vector<2x2xf32>
    %1029 = arith.addf %1026, %1028 : vector<2x2xf32>
    %c0_522 = arith.constant 0 : index
    %c0_523 = arith.constant 0 : index
    %c0_524 = arith.constant 0 : index
    %1030 = vector.load %arg20[%c0_522, %c0_523, %c0_524] : memref<1x2x2xf32, #tpu.memory_space<vmem>>, vector<1x2x2xf32>
    %1031 = vector.shape_cast %1030 : vector<1x2x2xf32> to vector<2x2xf32>
    %1032 = vector.shape_cast %1029 : vector<2x2xf32> to vector<1x2x2xf32>
    tpu.vector_store %arg20[%c0_522, %c0_523, %c0_524], %1032 {strides = array<i32>} : memref<1x2x2xf32, #tpu.memory_space<vmem>>, vector<1x2x2xf32>,
    return
  }
  func.func @transform_0(%arg0: i32) -> (i32, i32) {
    %c0_i32 = arith.constant 0 : i32
    %c0_i32_0 = arith.constant 0 : i32
    return %arg0, %c0_i32 : i32, i32
  }
  func.func @transform_1(%arg0: i32) -> (i32, i32) {
    %c0_i32 = arith.constant 0 : i32
    %c0_i32_0 = arith.constant 0 : i32
    %c0_i32_1 = arith.constant 0 : i32
    return %c0_i32, %c0_i32_0 : i32, i32
  }
  func.func @transform_2(%arg0: i32) -> (i32, i32) {
    %c0_i32 = arith.constant 0 : i32
    %c0_i32_0 = arith.constant 0 : i32
    %c0_i32_1 = arith.constant 0 : i32
    return %c0_i32, %c0_i32_0 : i32, i32
  }
  func.func @transform_3(%arg0: i32) -> (i32, i32, i32) {
    %c0_i32 = arith.constant 0 : i32
    %c0_i32_0 = arith.constant 0 : i32
    %c0_i32_1 = arith.constant 0 : i32
    %c0_i32_2 = arith.constant 0 : i32
    return %c0_i32, %c0_i32_0, %c0_i32_1 : i32, i32, i32
  }
  func.func @transform_4(%arg0: i32) -> (i32, i32, i32) {
    %c0_i32 = arith.constant 0 : i32
    %c0_i32_0 = arith.constant 0 : i32
    %c0_i32_1 = arith.constant 0 : i32
    %c0_i32_2 = arith.constant 0 : i32
    return %c0_i32, %c0_i32_0, %c0_i32_1 : i32, i32, i32
  }
  func.func @transform_5(%arg0: i32) -> (i32, i32, i32) {
    %c0_i32 = arith.constant 0 : i32
    %c0_i32_0 = arith.constant 0 : i32
    %c0_i32_1 = arith.constant 0 : i32
    %c0_i32_2 = arith.constant 0 : i32
    return %c0_i32, %c0_i32_0, %c0_i32_1 : i32, i32, i32
  }
  func.func @transform_6(%arg0: i32) -> (i32, i32, i32) {
    %c0_i32 = arith.constant 0 : i32
    %c0_i32_0 = arith.constant 0 : i32
    %c0_i32_1 = arith.constant 0 : i32
    %c0_i32_2 = arith.constant 0 : i32
    return %c0_i32, %c0_i32_0, %c0_i32_1 : i32, i32, i32
  }
  func.func @transform_7(%arg0: i32) -> (i32, i32, i32) {
    %c0_i32 = arith.constant 0 : i32
    %c0_i32_0 = arith.constant 0 : i32
    %c0_i32_1 = arith.constant 0 : i32
    %c0_i32_2 = arith.constant 0 : i32
    return %c0_i32, %c0_i32_0, %c0_i32_1 : i32, i32, i32
  }
  func.func @transform_8(%arg0: i32) -> (i32, i32, i32) {
    %c0_i32 = arith.constant 0 : i32
    %c0_i32_0 = arith.constant 0 : i32
    %c0_i32_1 = arith.constant 0 : i32
    %c0_i32_2 = arith.constant 0 : i32
    return %c0_i32, %c0_i32_0, %c0_i32_1 : i32, i32, i32
  }
  func.func @transform_9(%arg0: i32) -> (i32, i32, i32) {
    %c0_i32 = arith.constant 0 : i32
    %c0_i32_0 = arith.constant 0 : i32
    %c0_i32_1 = arith.constant 0 : i32
    %c0_i32_2 = arith.constant 0 : i32
    return %c0_i32, %c0_i32_0, %c0_i32_1 : i32, i32, i32
  }
  func.func @transform_10(%arg0: i32) -> (i32, i32, i32) {
    %c0_i32 = arith.constant 0 : i32
    %c0_i32_0 = arith.constant 0 : i32
    %c0_i32_1 = arith.constant 0 : i32
    %c0_i32_2 = arith.constant 0 : i32
    return %c0_i32, %c0_i32_0, %c0_i32_1 : i32, i32, i32
  }
  func.func @transform_11(%arg0: i32) -> (i32, i32, i32) {
    %c0_i32 = arith.constant 0 : i32
    %c0_i32_0 = arith.constant 0 : i32
    %c0_i32_1 = arith.constant 0 : i32
    %c0_i32_2 = arith.constant 0 : i32
    return %c0_i32, %c0_i32_0, %c0_i32_1 : i32, i32, i32
  }
  func.func @transform_12(%arg0: i32) -> (i32, i32, i32) {
    %c0_i32 = arith.constant 0 : i32
    %c0_i32_0 = arith.constant 0 : i32
    %c0_i32_1 = arith.constant 0 : i32
    %c0_i32_2 = arith.constant 0 : i32
    return %c0_i32, %c0_i32_0, %c0_i32_1 : i32, i32, i32
  }
  func.func @transform_13(%arg0: i32) -> (i32, i32, i32) {
    %c0_i32 = arith.constant 0 : i32
    %c0_i32_0 = arith.constant 0 : i32
    %c0_i32_1 = arith.constant 0 : i32
    %c0_i32_2 = arith.constant 0 : i32
    return %c0_i32, %c0_i32_0, %c0_i32_1 : i32, i32, i32
  }
  func.func @transform_14(%arg0: i32) -> (i32, i32) {
    %c0_i32 = arith.constant 0 : i32
    %c0_i32_0 = arith.constant 0 : i32
    %c0_i32_1 = arith.constant 0 : i32
    return %c0_i32, %c0_i32_0 : i32, i32
  }
  func.func @transform_15(%arg0: i32) -> (i32, i32) {
    %c0_i32 = arith.constant 0 : i32
    %c0_i32_0 = arith.constant 0 : i32
    %c0_i32_1 = arith.constant 0 : i32
    return %c0_i32, %c0_i32_0 : i32, i32
  }
  func.func @transform_16(%arg0: i32) -> (i32, i32) {
    %c0_i32 = arith.constant 0 : i32
    %c0_i32_0 = arith.constant 0 : i32
    %c0_i32_1 = arith.constant 0 : i32
    return %c0_i32, %c0_i32_0 : i32, i32
  }
  func.func @transform_17(%arg0: i32) -> (i32, i32) {
    %c0_i32 = arith.constant 0 : i32
    %c0_i32_0 = arith.constant 0 : i32
    %c0_i32_1 = arith.constant 0 : i32
    return %c0_i32, %c0_i32_0 : i32, i32
  }
  func.func @transform_18(%arg0: i32) -> (i32, i32) {
    %c0_i32 = arith.constant 0 : i32
    %c0_i32_0 = arith.constant 0 : i32
    %c0_i32_1 = arith.constant 0 : i32
    return %c0_i32, %c0_i32_0 : i32, i32
  }
  func.func @transform_19(%arg0: i32) -> (i32, i32, i32) {
    %c0_i32 = arith.constant 0 : i32
    %c0_i32_0 = arith.constant 0 : i32
    %c0_i32_1 = arith.constant 0 : i32
    return %arg0, %c0_i32, %c0_i32_0 : i32, i32, i32
  }
}

</mosaic_0001>

<bundles_post_ra>
// kernel: _lambda_.1
= control target key start
LH: loop header
LB: loop body
LE: loop exit
PB: predicated region body
PF: predicated region fallthrough
CT: control target
= control target key end

     0   :  { %s13013_s0 = inlined_call_operand.vmem [shape: f32[32,4], index: 0, kind: input, shape index: {}]   ;;  %s13014_s1 = inlined_call_operand.hbm [shape: f32[4,32], index: 1, kind: input, shape index: {}]   ;;  %s13015_s2 = inlined_call_operand.hbm [shape: f32[32,32], index: 2, kind: input, shape index: {}]   ;;  %s13016_s3 = inlined_call_operand.vmem [shape: f32[8,1,32], index: 3, kind: input, shape index: {}]   ;;  %s13017_s4 = inlined_call_operand.vmem [shape: f32[8,1,32], index: 4, kind: input, shape index: {}, may-alias: {4,10}]   ;;  %s13018_s5 = inlined_call_operand.hbm [shape: f32[8,32,128], index: 5, kind: input, shape index: {}]   ;;  %s13019_s6 = inlined_call_operand.hbm [shape: f32[8,1,128], index: 6, kind: input, shape index: {}]   ;;  %s13020_s7 = inlined_call_operand.hbm [shape: f32[8,32,32], index: 7, kind: input, shape index: {}]   ;;  %s13021_s8 = inlined_call_operand.hbm [shape: f32[8,1,32], index: 8, kind: input, shape index: {}]   ;;  %s13022_s9 = inlined_call_operand.hbm [shape: f32[8,1,32], index: 9, kind: input, shape index: {}]   ;;  %s13023_s10 = inlined_call_operand.vmem [shape: f32[8,1,32], index: 10, kind: input, shape index: {}, may-alias: {4,10}]   ;;  %s13024_s11 = inlined_call_operand.hbm [shape: f32[8,64,32], index: 11, kind: input, shape index: {}]   ;;  %s13025_s12 = inlined_call_operand.hbm [shape: f32[8,1,32], index: 12, kind: input, shape index: {}]   ;;  %s13026_s13 = inlined_call_operand.hbm [shape: f32[8,32,32], index: 13, kind: input, shape index: {}]   ;;  %s13027_s14 = inlined_call_operand.vmem [shape: f32[32,32], index: 14, kind: input, shape index: {}]   ;;  %s13028_s15 = inlined_call_operand.vmem [shape: f32[32,32], index: 15, kind: input, shape index: {}]   ;;  %s13029_s16 = inlined_call_operand.vmem [shape: f32[2,32], index: 16, kind: input, shape index: {}]   ;;  %s13030_s17 = inlined_call_operand.vmem [shape: f32[32,2], index: 17, kind: input, shape index: {}]   ;;  %s13031_s18 = inlined_call_operand.vmem [shape: f32[1,2], index: 18, kind: input, shape index: {}]   ;;  %s13032_s19 = inlined_call_operand.hbm [shape: f32[1,2,2], index: 19, kind: output, shape index: {}]  }
   0x1   :  { %13044 = sst [smem:[#allocation27_spill]] %s13013_s0 }
   0x2   :  { %13045 = sst [smem:[#allocation28_spill]] %s13014_s1 }
   0x3   :  { %13046 = sst [smem:[#allocation29_spill]] %s13015_s2 }
   0x4   :  { %13047 = sst [smem:[#allocation30_spill]] %s13016_s3 }
   0x5   :  { %13048 = sst [smem:[#allocation31_spill]] %s13032_s19 }
   0x6   :  { %24 = vsyncpa [#allocation3], 0 }
   0x7   :  { %25 = vsyncpa [#allocation6], 0 }
   0x8   :  { %26 = vsyncpa [#allocation9], 0 }
   0x9   :  { %27 = vsyncpa [#allocation12], 0 }
   0xa   :  { %28 = vsyncpa [#allocation15], 0 }
   0xb   :  { %29 = vsyncpa [#allocation18], 0 }
   0xc   :  { %30 = vsyncpa [#allocation4], 0  ;;  %s11095_s0 = smov [#allocation5]   ;;  %s13049_s1 = sld [smem:[#allocation29_spill]] }
   0xd   :  { %s48_s30 = sshll.u32 %s11095_s0, 4  ;;  %s49_s30 = int_to_ptr.vmem [resolvable:$true] %s48_s30 }
  0x12   :  { %s10839_s22 = scalar_lea.hbm %s13049_s1, 512 }
  0x13   :  { %p10840_p0 = scmp.ne.s32.totalorder %s13049_s1, %s10839_s22  ;;  %p10843_p1 = scmp.lt.u32.totalorder %s10839_s22, %s13049_s1 }
  0x15   :  { %p10845_p2 = pnand %p10843_p1, %p10840_p0 }
  0x17   :  { %10848 = shalt.err (!%p10845_p2)
}
  0x18   :  { %s10849_s3 = scalar_lea.vmem %s49_s30, 512  ;;  %p10854_p4 = scmp.lt.s32.totalorder %s49_s30, %s49_s30 }
  0x19   :  { %p10850_p3 = scmp.ne.s32.totalorder %s49_s30, %s10849_s3  ;;  %p10855_p5 = scmp.lt.s32.totalorder %s10849_s3, %s10849_s3 }
  0x1b   :  { %p10856_p6 = por %p10855_p5, %p10854_p4 }
  0x1d   :  { %p10857_p7 = pnand %p10856_p6, %p10850_p3 }
  0x1f   :  { %10860 = shalt.err (!%p10857_p7)
}
  0x20   :  { %s13038_s26 = smov 128   ;;  %s13040_s27 = smov 8  }
  0x21   :  { %54 = dma.hbm_to_vmem [thread:$0]  %s13049_s1, 512, %s49_s30, [#allocation6], %s13038_s26, %s13038_s26, %s13040_s27  }
  0x22   :  { %s11098_s0 = smov [#allocation8]   ;;  %s10861_s2 = scalar_lea.hbm %s13019_s6, 128 }
  0x23   :  { %s76_s20 = sshll.u32 %s11098_s0, 4  ;;  %p10862_p8 = scmp.ne.s32.totalorder %s13019_s6, %s10861_s2  ;;  %s77_s20 = int_to_ptr.vmem [resolvable:$true] %s76_s20 }
  0x24   :  { %p10865_p9 = scmp.lt.u32.totalorder %s10861_s2, %s13019_s6 }
  0x26   :  { %p10867_p10 = pnand %p10865_p9, %p10862_p8 }
  0x28   :  { %10870 = shalt.err (!%p10867_p10)
}
  0x29   :  { %s10871_s19 = scalar_lea.vmem %s77_s20, 128  ;;  %p10876_p12 = scmp.lt.s32.totalorder %s77_s20, %s77_s20 }
  0x2a   :  { %p10872_p11 = scmp.ne.s32.totalorder %s77_s20, %s10871_s19  ;;  %p10877_p13 = scmp.lt.s32.totalorder %s10871_s19, %s10871_s19 }
  0x2c   :  { %p10878_p0 = por %p10877_p13, %p10876_p12 }
  0x2e   :  { %p10879_p1 = pnand %p10878_p0, %p10872_p11 }
  0x30   :  { %10882 = shalt.err (!%p10879_p1)
}
  0x31   :  { %s13042_s30 = smov 16   ;;  %s11100_s1 = smov 1  }
  0x32   :  { %82 = dma.hbm_to_vmem [thread:$0]  %s13019_s6, 128, %s77_s20, [#allocation9], %s13042_s30, %s13042_s30, %s11100_s1  }
  0x33   :  { %s11101_s0 = smov [#allocation11]   ;;  %s11102_s22 = smov [#allocation14]  }
  0x34   :  { %s100_s21 = sshll.u32 %s11101_s0, 4  ;;  %s126_s2 = sshll.u32 %s11102_s22, 4  ;;  %s101_s21 = int_to_ptr.vmem [resolvable:$true] %s100_s21  ;;  %s11248_s2 = int_to_ptr.vmem [resolvable:$true] %s126_s2 }
  0x35   :  { %s10883_s24 = scalar_lea.hbm %s13021_s8, 128 }
  0x36   :  { %p10884_p2 = scmp.ne.s32.totalorder %s13021_s8, %s10883_s24  ;;  %p10887_p3 = scmp.lt.u32.totalorder %s10883_s24, %s13021_s8 }
  0x38   :  { %p10889_p4 = pnand %p10887_p3, %p10884_p2 }
  0x3a   :  { %10892 = shalt.err (!%p10889_p4)
}
  0x3b   :  { %s10893_s6 = scalar_lea.vmem %s101_s21, 128  ;;  %p10898_p6 = scmp.lt.s32.totalorder %s101_s21, %s101_s21 }
  0x3c   :  { %p10894_p5 = scmp.ne.s32.totalorder %s101_s21, %s10893_s6  ;;  %p10899_p7 = scmp.lt.s32.totalorder %s10893_s6, %s10893_s6 }
  0x3e   :  { %p10900_p8 = por %p10899_p7, %p10898_p6 }
  0x40   :  { %p10901_p9 = pnand %p10900_p8, %p10894_p5 }
  0x42   :  { %10904 = shalt.err (!%p10901_p9)
}
  0x43   :  { %106 = dma.hbm_to_vmem [thread:$0]  %s13021_s8, 128, %s101_s21, [#allocation12], %s13042_s30, %s13042_s30, %s11100_s1  }
  0x44   :  { %s10905_s26 = scalar_lea.hbm %s13024_s11, 8192 }
  0x45   :  { %p10906_p10 = scmp.ne.s32.totalorder %s13024_s11, %s10905_s26  ;;  %p10909_p11 = scmp.lt.u32.totalorder %s10905_s26, %s13024_s11 }
  0x47   :  { %p10911_p12 = pnand %p10909_p11, %p10906_p10 }
  0x49   :  { %10914 = shalt.err (!%p10911_p12)
}
  0x4a   :  { %s10915_s24 = scalar_lea.vmem %s11248_s2, 8192  ;;  %p10920_p0 = scmp.lt.s32.totalorder %s11248_s2, %s11248_s2 }
  0x4b   :  { %p10916_p13 = scmp.ne.s32.totalorder %s11248_s2, %s10915_s24  ;;  %p10921_p1 = scmp.lt.s32.totalorder %s10915_s24, %s10915_s24 }
  0x4d   :  { %p10922_p2 = por %p10921_p1, %p10920_p0 }
  0x4f   :  { %p10923_p3 = pnand %p10922_p2, %p10916_p13 }
  0x51   :  { %10926 = shalt.err (!%p10923_p3)
}
  0x52   :  { %s13050_s8 = smov 8   ;;  %s13051_s21 = smov 128  }
  0x53   :  { %132 = dma.hbm_to_vmem [thread:$0]  %s13024_s11, 8192, %s11248_s2, [#allocation15], %s13051_s21, %s13051_s21, %s13050_s8  }
  0x54   :  { %s11103_s6 = smov [#allocation2]   ;;  %s11104_s28 = smov [#allocation7]  }
  0x55   :  { %s39_s20 = sshll.u32 %s11103_s6, 4  ;;  %s64_s29 = sshll.u32 %s11104_s28, 4  ;;  %s40_s20 = int_to_ptr.vmem [resolvable:$true] %s39_s20  ;;  %s11285_s29 = int_to_ptr.vmem [resolvable:$true] %s64_s29 }
  0x56   :  { %s13052_s27 = sld [smem:[#allocation28_spill]] }
  0x5c   :  { %s10927_s22 = scalar_lea.hbm %s13052_s27, 64 }
  0x5d   :  { %p10928_p4 = scmp.ne.s32.totalorder %s13052_s27, %s10927_s22  ;;  %p10931_p5 = scmp.lt.u32.totalorder %s10927_s22, %s13052_s27 }
  0x5f   :  { %p10933_p6 = pnand %p10931_p5, %p10928_p4 }
  0x61   :  { %10936 = shalt.err (!%p10933_p6)
}
  0x62   :  { %s10937_s11 = scalar_lea.vmem %s40_s20, 64  ;;  %p10942_p8 = scmp.lt.s32.totalorder %s40_s20, %s40_s20 }
  0x63   :  { %p10938_p7 = scmp.ne.s32.totalorder %s40_s20, %s10937_s11  ;;  %p10943_p9 = scmp.lt.s32.totalorder %s10937_s11, %s10937_s11 }
  0x65   :  { %p10944_p10 = por %p10943_p9, %p10942_p8 }
  0x67   :  { %p10945_p11 = pnand %p10944_p10, %p10938_p7 }
  0x69   :  { %10948 = shalt.err (!%p10945_p11)
}
  0x6a   :  { %42 = dma.hbm_to_vmem [thread:$0]  %s13052_s27, 64, %s40_s20, [#allocation3]  }
  0x6b   :  { %s10949_s28 = scalar_lea.hbm %s13018_s5, 4096 }
  0x6c   :  { %p10950_p12 = scmp.ne.s32.totalorder %s13018_s5, %s10949_s28  ;;  %p10953_p13 = scmp.lt.u32.totalorder %s10949_s28, %s13018_s5 }
  0x6e   :  { %p10955_p0 = pnand %p10953_p13, %p10950_p12 }
  0x70   :  { %10958 = shalt.err (!%p10955_p0)
}
  0x71   :  { %s10959_s19 = scalar_lea.vmem %s11285_s29, 4096  ;;  %p10964_p2 = scmp.lt.s32.totalorder %s11285_s29, %s11285_s29 }
  0x72   :  { %p10960_p1 = scmp.ne.s32.totalorder %s11285_s29, %s10959_s19  ;;  %p10965_p3 = scmp.lt.s32.totalorder %s10959_s19, %s10959_s19 }
  0x74   :  { %p10966_p4 = por %p10965_p3, %p10964_p2 }
  0x76   :  { %p10967_p5 = pnand %p10966_p4, %p10960_p1 }
  0x78   :  { %10970 = shalt.err (!%p10967_p5)
}
  0x79   :  { %70 = dma.hbm_to_vmem [thread:$0]  %s13018_s5, 4096, %s11285_s29, [#allocation6], %s13051_s21, %s13051_s21, %s13050_s8  }
  0x7a   :  { %s11105_s23 = smov [#allocation10]   ;;  %s11106_s11 = smov [#allocation13]  }
  0x7b   :  { %s88_s24 = sshll.u32 %s11105_s23, 4  ;;  %s112_s2 = sshll.u32 %s11106_s11, 4  ;;  %s89_s24 = int_to_ptr.vmem [resolvable:$true] %s88_s24  ;;  %s11319_s2 = int_to_ptr.vmem [resolvable:$true] %s112_s2 }
  0x7c   :  { %s10971_s6 = scalar_lea.hbm %s13020_s7, 4096 }
  0x7d   :  { %p10972_p6 = scmp.ne.s32.totalorder %s13020_s7, %s10971_s6  ;;  %p10975_p7 = scmp.lt.u32.totalorder %s10971_s6, %s13020_s7 }
  0x7f   :  { %p10977_p8 = pnand %p10975_p7, %p10972_p6 }
  0x81   :  { %10980 = shalt.err (!%p10977_p8)
}
  0x82   :  { %s10981_s5 = scalar_lea.vmem %s89_s24, 4096  ;;  %p10986_p10 = scmp.lt.s32.totalorder %s89_s24, %s89_s24 }
  0x83   :  { %p10982_p9 = scmp.ne.s32.totalorder %s89_s24, %s10981_s5  ;;  %p10987_p11 = scmp.lt.s32.totalorder %s10981_s5, %s10981_s5 }
  0x85   :  { %p10988_p12 = por %p10987_p11, %p10986_p10 }
  0x87   :  { %p10989_p13 = pnand %p10988_p12, %p10982_p9 }
  0x89   :  { %10992 = shalt.err (!%p10989_p13)
}
  0x8a   :  { %94 = dma.hbm_to_vmem [thread:$0]  %s13020_s7, 4096, %s89_s24, [#allocation9], %s13051_s21, %s13051_s21, %s13050_s8  }
  0x8b   :  { %s10993_s27 = scalar_lea.hbm %s13022_s9, 128 }
  0x8c   :  { %p10994_p0 = scmp.ne.s32.totalorder %s13022_s9, %s10993_s27  ;;  %p10997_p1 = scmp.lt.u32.totalorder %s10993_s27, %s13022_s9 }
  0x8e   :  { %p10999_p2 = pnand %p10997_p1, %p10994_p0 }
  0x90   :  { %11002 = shalt.err (!%p10999_p2)
}
  0x91   :  { %s11003_s6 = scalar_lea.vmem %s11319_s2, 128  ;;  %p11008_p4 = scmp.lt.s32.totalorder %s11319_s2, %s11319_s2 }
  0x92   :  { %p11004_p3 = scmp.ne.s32.totalorder %s11319_s2, %s11003_s6  ;;  %p11009_p5 = scmp.lt.s32.totalorder %s11003_s6, %s11003_s6 }
  0x94   :  { %p11010_p6 = por %p11009_p5, %p11008_p4 }
  0x96   :  { %p11011_p7 = pnand %p11010_p6, %p11004_p3 }
  0x98   :  { %11014 = shalt.err (!%p11011_p7)
}
  0x99   :  { %s13053_s7 = smov 16   ;;  %s11107_s0 = smov [#allocation16]  }
  0x9a   :  { %118 = dma.hbm_to_vmem [thread:$0]  %s13022_s9, 128, %s11319_s2, [#allocation12], %s13053_s7, %s13053_s7, %s11100_s1  }
  0x9b   :  { %s138_s30 = sshll.u32 %s11107_s0, 4  ;;  %s11108_s26 = smov [#allocation17]   ;;  %s139_s30 = int_to_ptr.vmem [resolvable:$true] %s138_s30 }
  0x9c   :  { %s150_s5 = sshll.u32 %s11108_s26, 4  ;;  %s11015_s19 = scalar_lea.hbm %s13025_s12, 128  ;;  %s11356_s5 = int_to_ptr.vmem [resolvable:$true] %s150_s5 }
  0x9d   :  { %p11016_p8 = scmp.ne.s32.totalorder %s13025_s12, %s11015_s19  ;;  %p11019_p9 = scmp.lt.u32.totalorder %s11015_s19, %s13025_s12 }
  0x9f   :  { %p11021_p10 = pnand %p11019_p9, %p11016_p8 }
  0xa1   :  { %11024 = shalt.err (!%p11021_p10)
}
  0xa2   :  { %s11025_s9 = scalar_lea.vmem %s139_s30, 128  ;;  %p11030_p12 = scmp.lt.s32.totalorder %s139_s30, %s139_s30 }
  0xa3   :  { %p11026_p11 = scmp.ne.s32.totalorder %s139_s30, %s11025_s9  ;;  %p11031_p13 = scmp.lt.s32.totalorder %s11025_s9, %s11025_s9 }
  0xa5   :  { %p11032_p0 = por %p11031_p13, %p11030_p12 }
  0xa7   :  { %p11033_p1 = pnand %p11032_p0, %p11026_p11 }
  0xa9   :  { %11036 = shalt.err (!%p11033_p1)
}
  0xaa   :  { %144 = dma.hbm_to_vmem [thread:$0]  %s13025_s12, 128, %s139_s30, [#allocation15], %s13053_s7, %s13053_s7, %s11100_s1  }
  0xab   :  { %s11037_s24 = scalar_lea.hbm %s13026_s13, 4096 }
  0xac   :  { %p11038_p2 = scmp.ne.s32.totalorder %s13026_s13, %s11037_s24  ;;  %p11041_p3 = scmp.lt.u32.totalorder %s11037_s24, %s13026_s13 }
  0xae   :  { %p11043_p4 = pnand %p11041_p3, %p11038_p2 }
  0xb0   :  { %11046 = shalt.err (!%p11043_p4)
}
  0xb1   :  { %s11047_s22 = scalar_lea.vmem %s11356_s5, 4096  ;;  %p11052_p6 = scmp.lt.s32.totalorder %s11356_s5, %s11356_s5 }
  0xb2   :  { %p11048_p5 = scmp.ne.s32.totalorder %s11356_s5, %s11047_s22  ;;  %p11053_p7 = scmp.lt.s32.totalorder %s11047_s22, %s11047_s22 }
  0xb4   :  { %p11054_p8 = por %p11053_p7, %p11052_p6 }
  0xb6   :  { %p11055_p9 = pnand %p11054_p8, %p11048_p5 }
  0xb8   :  { %11058 = shalt.err (!%p11055_p9)
}
  0xb9   :  { %156 = dma.hbm_to_vmem [thread:$0]  %s13026_s13, 4096, %s11356_s5, [#allocation18], %s13051_s21, %s13051_s21, %s13050_s8  }
  0xba   :  { %11081 = dma.done.wait [#allocation3], 64  }
  0xbb   :  { %11082 = vsyncadd [#allocation3], 4294967232 }
  0xbc   :  { %11083 = dma.done.wait [#allocation6], 4608  }
  0xbd   :  { %11084 = vsyncadd [#allocation6], 4294962688 }
  0xbe   :  { %11085 = dma.done.wait [#allocation9], 4224  }
  0xbf   :  { %11086 = vsyncadd [#allocation9], 4294963072 }
  0xc0   :  { %11087 = dma.done.wait [#allocation12], 256  }
  0xc1   :  { %11088 = vsyncadd [#allocation12], 4294967040 }
  0xc2   :  { %11089 = dma.done.wait [#allocation15], 8320  }
  0xc3   :  { %11090 = vsyncadd [#allocation15], 4294958976 }
  0xc4   :  { %11091 = dma.done.wait [#allocation18], 4096  }
  0xc5   :  { %11092 = vsyncadd [#allocation18], 4294963200  ;;  %vm227_vm0 = vcmask 1043456   ;;  %vm214_vm1 = vcmask 31744   ;;  %v209_v0 = vld [vmem:[#allocation2] sm:$0xf] }
  0xc6   :  { %s13054_s19 = sld [smem:[#allocation27_spill]]  ;;  %8894 = vmatprep.subr.msk.mxu0 %vm227_vm0, %v209_v0  ;;  %v210_v5 = vld [vmem:[#allocation5] sm:$0xff]  ;;  %v211_v7 = vld [vmem:[#allocation5 + $0x8] sm:$0xff]  ;;  %vm316_vm2 = vcmask 261120   ;;  %v213_v10 = vld [vmem:[#allocation5 + $0x18] sm:$0xff]  ;;  %s13055_s9 = sld [smem:[#allocation30_spill]] }
  0xc7   :  { %8895 = vmatpush3.msk.msra.mxu0 %vm227_vm0, %v209_v0  ;;  %v212_v11 = vld [vmem:[#allocation5 + $0x10] sm:$0xff]  ;;  %v392_v41 = vld [vmem:[#allocation7] sm:$0xff]  ;;  %v393_v42 = vld [vmem:[#allocation7 + $0x8] sm:$0xff]  ;;  %vm682_vm3 = vcmask 64512   ;;  %s11109_s24 = smov 112   ;;  %s11110_s28 = smov 120  }
  0xc8   :  { %v524_v43 = vld [vmem:[#allocation10] sm:$0xff]  ;;  %v9660_v44 = vpack.c.bf16 %v393_v42, %v392_v41  ;;  %v525_v45 = vld [vmem:[#allocation10 + $0x8] sm:$0xff]  ;;  %v395_v47 = vld [vmem:[#allocation7 + $0x18] sm:$0xff]  ;;  %s11111_s0 = smov 104   ;;  %s11113_s2 = smov 64   ;;  %vm1162_vm9 = vcmask 523264  }
  0xc9   :  { %v394_v46 = vld [vmem:[#allocation7 + $0x10] sm:$0xff]  ;;  %v9668_v48 = vpack.c.bf16 %v525_v45, %v524_v43  ;;  %v526_v50 = vld [vmem:[#allocation10 + $0x10] sm:$0xff]  ;;  %v527_v51 = vld [vmem:[#allocation10 + $0x18] sm:$0xff]  ;;  %s11117_s27 = smov [#allocation19]  }
  0xca   :  { %v9664_v49 = vpack.c.bf16 %v395_v47, %v394_v46  ;;  %9661 = vmatprep.subr.bf16.mxu1 %v9660_v44  ;;  %v9672_v52 = vpack.c.bf16 %v527_v51, %v526_v50  ;;  %vm11481_vm4 = vmpackc.low %vm682_vm3, %vm682_vm3  ;;  %s8076_s23 = sshll.u32 %s11117_s27, 4  ;;  %s8077_s23 = int_to_ptr.vmem [resolvable:$true] %s8076_s23 }
  0xcb   :  { %9669 = vmatprep.subr.bf16.mxu0 %v9668_v48  ;;  %9663 = vmatpush3.bf16.msra.mxu1 %v9660_v44  ;;  %p11064_p11 = scmp.lt.s32.totalorder %s8077_s23, %s8077_s23 }
  0xcc   :  { %v205_v1 = vld [vmem:[%s13054_s19] sm:$0xff]  ;;  %v206_v2 = vld [vmem:[%s13054_s19 + $0x8] sm:$0xff]  ;;  %v207_v3 = vld [vmem:[%s13054_s19 + $0x10] sm:$0xff]  ;;  %9665 = vmatprep.subr.bf16.mxu1 %v9664_v49 }
  0xcd   :  { %8896 = vmatprep.mubr.msk.f32.mxu0 %vm214_vm1, %v205_v1  ;;  %v208_v4 = vld [vmem:[%s13054_s19 + $0x18] sm:$0xff] }
  0xce   :  { %8897 = vmatmul.mubr.msk.f32.vlgmr.msra.gmra.mrb[0].mxu0 %vm214_vm1, %v206_v2  ;;  %v8095_v2 = vld [vmem:[%s13055_s9] ss:$0 sm:$0xff] }
  0xcf   :  { %8899 = vmatprep.mubr.msk.f32.mxu0 %vm214_vm1, %v207_v3  ;;  %9671 = vmatpush3.bf16.msra.mxu0 %v9668_v48 }
  0xd0   :  { %9667 = vmatpush3.bf16.msra.mxu1 %v9664_v49  ;;  %9673 = vmatprep.subr.bf16.mxu0 %v9672_v52 }
  0xd2   :  { %8900 = vmatmul.mubr.msk.f32.gmra.mrb[2].mxu0 %vm214_vm1, %v208_v4  ;;  %v8096_v4 = vld [vmem:[%s13017_s4] ss:$0 sm:$0xff] }
  0xd3   :  { %9675 = vmatpush3.bf16.msra.mxu0 %v9672_v52 }
 0x1a1   :  { %v8898_v6 = vpop.f32.mrb[0].mxu0 }
 0x1a2   :  { %v297_v8 = vpop.f32.mrb[1].mxu0  ;;  %v11407_v12 = vadd.f32 %v8898_v6, %v211_v7 }
 0x1a3   :  { %v11405_v9 = vadd.f32 %v297_v8, %v210_v5 }
 0x1a4   :  { %v320_v19 = vsel %vm316_vm2, %v11407_v12, 0.0 }
 0x1a5   :  { %v8901_v13 = vpop.f32.mrb[2].mxu0  ;;  %v317_v14 = vsel %vm316_vm2, %v11405_v9, 0.0 }
 0x1a6   :  { %v307_v15 = vpop.f32.mrb[3].mxu0  ;;  %318 = vadd.xlane.f32.xlu0 %v317_v14  ;;  %v11411_v16 = vadd.f32 %v8901_v13, %v213_v10 }
 0x1a7   :  { %v11413_v17 = vadd.f32 %v307_v15, %v212_v11 }
 0x1a8   :  { %v326_v20 = vsel %vm316_vm2, %v11411_v16, 0.0 }
 0x1a9   :  { %v323_v18 = vsel %vm316_vm2, %v11413_v17, 0.0 }
 0x1aa   :  { %324 = vadd.xlane.f32.xlu1 %v323_v18  ;;  %321 = vadd.xlane.f32.xlu0 %v320_v19 }
 0x1ae   :  { %327 = vadd.xlane.f32.xlu1 %v326_v20 }
 0x233   :  { %v319_v21 = vpop.xlane.xlu0 %318 }
 0x234   :  { %v330_v22 = vmul.f32 0.03125, %v319_v21 }
 0x236   :  { %v334_v23 = vsub.f32 %v11405_v9, %v330_v22 }
 0x237   :  { %v325_v24 = vpop.xlane.xlu1 %324  ;;  %v322_v25 = vpop.xlane.xlu0 %321 }
 0x238   :  { %v332_v26 = vmul.f32 0.03125, %v325_v24  ;;  %v331_v27 = vmul.f32 0.03125, %v322_v25  ;;  %v338_v28 = vmul.f32 %v334_v23, %v334_v23 }
 0x23a   :  { %v336_v29 = vsub.f32 %v11413_v17, %v332_v26  ;;  %v335_v30 = vsub.f32 %v11407_v12, %v331_v27  ;;  %v342_v31 = vsel %vm316_vm2, %v338_v28, 0.0 }
 0x23b   :  { %v328_v32 = vpop.xlane.xlu1 %327  ;;  %343 = vadd.xlane.f32.xlu0 %v342_v31 }
 0x23c   :  { %v333_v33 = vmul.f32 0.03125, %v328_v32  ;;  %v340_v34 = vmul.f32 %v336_v29, %v336_v29  ;;  %v339_v35 = vmul.f32 %v335_v30, %v335_v30 }
 0x23e   :  { %v337_v36 = vsub.f32 %v11411_v16, %v333_v33  ;;  %v348_v37 = vsel %vm316_vm2, %v340_v34, 0.0  ;;  %v345_v38 = vsel %vm316_vm2, %v339_v35, 0.0 }
 0x23f   :  { %349 = vadd.xlane.f32.xlu0 %v348_v37  ;;  %346 = vadd.xlane.f32.xlu1 %v345_v38 }
 0x240   :  { %v341_v39 = vmul.f32 %v337_v36, %v337_v36 }
 0x242   :  { %v351_v40 = vsel %vm316_vm2, %v341_v39, 0.0 }
 0x243   :  { %352 = vadd.xlane.f32.xlu1 %v351_v40 }
 0x2c8   :  { %v344_v53 = vpop.xlane.xlu0 %343 }
 0x2c9   :  { %v354_v54 = vmul.f32 0.03125, %v344_v53  ;;  %v8107_v53 = vld [vmem:[#allocation13] ss:$0 sm:$0xff] }
 0x2cb   :  { %v358_v55 = vadd.f32 1e-05, %v354_v54 }
 0x2cc   :  { %v347_v56 = vpop.xlane.xlu1 %346  ;;  %v350_v57 = vpop.xlane.xlu0 %349 }
 0x2cd   :  { %10367 = vrsqrt.f32 %v358_v55  ;;  %v355_v58 = vmul.f32 0.03125, %v347_v56  ;;  %v356_v59 = vmul.f32 0.03125, %v350_v57  ;;  %v8108_v56 = vld [vmem:[%s13023_s10] ss:$0 sm:$0xff] }
 0x2cf   :  { %v359_v60 = vadd.f32 1e-05, %v355_v58  ;;  %v360_v61 = vadd.f32 1e-05, %v356_v59 }
 0x2d0   :  { %v353_v62 = vpop.xlane.xlu1 %352 }
 0x2d1   :  { %10369 = vrsqrt.f32 %v359_v60  ;;  %v357_v63 = vmul.f32 0.03125, %v353_v62 }
 0x2d2   :  { %10371 = vrsqrt.f32 %v360_v61 }
 0x2d3   :  { %v361_v0 = vadd.f32 1e-05, %v357_v63 }
 0x2d5   :  { %10373 = vrsqrt.f32 %v361_v0 }
 0x2d7   :  { %v10368_v1 = vpop.eup %10367 }
 0x2d8   :  { %v366_v3 = vmul.f32 %v10368_v1, %v334_v23  ;;  %v8102_v23 = vld [vmem:[#allocation11] ss:$0 sm:$0xff] }
 0x2da   :  { %v377_v5 = vmul.f32 %v8095_v2, %v366_v3 }
 0x2db   :  { %v10370_v6 = vpop.eup %10369 }
 0x2dc   :  { %v10372_v7 = vpop.eup %10371  ;;  %v388_v8 = vadd.f32 %v8096_v4, %v377_v5  ;;  %v367_v10 = vmul.f32 %v10370_v6, %v335_v30 }
 0x2dd   :  { %v368_v11 = vmul.f32 %v10372_v7, %v336_v29 }
 0x2de   :  { %8910 = vmatprep.mubr.msk.f32.mxu1 %vm316_vm2, %v388_v8  ;;  %8924 = vmatprep.mubr.msk.f32.mxu0 %vm316_vm2, %v388_v8  ;;  %v378_v13 = vmul.f32 %v8095_v2, %v367_v10  ;;  %v8097_v8 = vld [vmem:[#allocation8] ss:$0 sm:$0xff] }
 0x2df   :  { %v10374_v14 = vpop.eup %10373  ;;  %v379_v15 = vmul.f32 %v8095_v2, %v368_v11 }
 0x2e0   :  { %v389_v18 = vadd.f32 %v8096_v4, %v378_v13  ;;  %v369_v19 = vmul.f32 %v10374_v14, %v337_v36 }
 0x2e1   :  { %v390_v20 = vadd.f32 %v8096_v4, %v379_v15 }
 0x2e2   :  { %8911 = vmatmul.mubr.msk.f32.vlgmr.msra.gmra.mrb[0].mxu1 %vm316_vm2, %v389_v18  ;;  %8925 = vmatmul.mubr.msk.f32.vlgmr.msra.gmra.mrb[4].mxu0 %vm316_vm2, %v389_v18  ;;  %v380_v21 = vmul.f32 %v8095_v2, %v369_v19 }
 0x2e3   :  { %8913 = vmatprep.mubr.msk.f32.mxu1 %vm316_vm2, %v390_v20  ;;  %8927 = vmatprep.mubr.msk.f32.mxu0 %vm316_vm2, %v390_v20 }
 0x2e4   :  { %v391_v22 = vadd.f32 %v8096_v4, %v380_v21 }
 0x2e6   :  { %8914 = vmatmul.mubr.msk.f32.gmra.mrb[2].mxu1 %vm316_vm2, %v391_v22  ;;  %8928 = vmatmul.mubr.msk.f32.gmra.mrb[6].mxu0 %vm316_vm2, %v391_v22 }
 0x3b5   :  { %v11443_v24 = vpop.f32.mrb[0].mxu1  ;;  %v8926_v25 = vpop.f32.mrb[4].mxu0 }
 0x3b6   :  { %v607_v26 = vadd.f32 %v8926_v25, %v8102_v23  ;;  %v11445_v27 = vpop.f32.mrb[1].mxu1  ;;  %v601_v28 = vpop.f32.mrb[5].mxu0  ;;  %v487_v10 = vadd.f32 %v11443_v24, %v8097_v8 }
 0x3b7   :  { %v602_v29 = vadd.f32 %v8102_v23, %v601_v28  ;;  %v482_v11 = vadd.f32 %v8097_v8, %v11445_v27 }
 0x3b8   :  { %v621_v30 = vsub.f32 0.0, %v607_v26  ;;  %v501_v13 = vsub.f32 0.0, %v487_v10 }
 0x3b9   :  { %v620_v31 = vsub.f32 0.0, %v602_v29  ;;  %v11447_v32 = vpop.f32.mrb[2].mxu1  ;;  %v8929_v33 = vpop.f32.mrb[6].mxu0  ;;  %v500_v14 = vsub.f32 0.0, %v482_v11 }
 0x3ba   :  { %v626_v34 = vmul.f32 1.442695, %v621_v30  ;;  %v617_v35 = vadd.f32 %v8929_v33, %v8102_v23  ;;  %v11449_v36 = vpop.f32.mrb[3].mxu1  ;;  %v611_v37 = vpop.f32.mrb[7].mxu0  ;;  %v506_v15 = vmul.f32 1.442695, %v501_v13  ;;  %v497_v19 = vadd.f32 %v11447_v32, %v8097_v8 }
 0x3bb   :  { %v624_v38 = vmul.f32 1.442695, %v620_v31  ;;  %v612_v39 = vadd.f32 %v8102_v23, %v611_v37  ;;  %v504_v18 = vmul.f32 1.442695, %v500_v14  ;;  %v492_v20 = vadd.f32 %v8097_v8, %v11449_v36 }
 0x3bc   :  { %v623_v40 = vsub.f32 0.0, %v617_v35  ;;  %10375 = vpow2.f32 %v626_v34  ;;  %v503_v21 = vsub.f32 0.0, %v497_v19 }
 0x3bd   :  { %v622_v41 = vsub.f32 0.0, %v612_v39  ;;  %10377 = vpow2.f32 %v624_v38  ;;  %v502_v22 = vsub.f32 0.0, %v492_v20 }
 0x3be   :  { %v630_v42 = vmul.f32 1.442695, %v623_v40  ;;  %v510_v23 = vmul.f32 1.442695, %v503_v21 }
 0x3bf   :  { %v628_v43 = vmul.f32 1.442695, %v622_v41  ;;  %v508_v25 = vmul.f32 1.442695, %v502_v22 }
 0x3c0   :  { %10379 = vpow2.f32 %v630_v42 }
 0x3c1   :  { %10381 = vpow2.f32 %v628_v43 }
 0x3c6   :  { %v10376_v44 = vpop.eup %10375 }
 0x3c7   :  { %v633_v45 = vadd.f32 1.0, %v10376_v44  ;;  %v10378_v46 = vpop.eup %10377 }
 0x3c8   :  { %v632_v47 = vadd.f32 1.0, %v10378_v46 }
 0x3c9   :  { %10383 = vrcp.f32 %v633_v45 }
 0x3ca   :  { %v10380_v48 = vpop.eup %10379  ;;  %10385 = vrcp.f32 %v632_v47 }
 0x3cb   :  { %v635_v49 = vadd.f32 1.0, %v10380_v48  ;;  %v10382_v50 = vpop.eup %10381 }
 0x3cc   :  { %v634_v51 = vadd.f32 1.0, %v10382_v50 }
 0x3cd   :  { %10387 = vrcp.f32 %v635_v49 }
 0x3ce   :  { %10389 = vrcp.f32 %v634_v51 }
 0x3cf   :  { %10391 = vpow2.f32 %v506_v15 }
 0x3d0   :  { %10393 = vpow2.f32 %v504_v18 }
 0x3d1   :  { %10395 = vpow2.f32 %v510_v23 }
 0x3d2   :  { %10397 = vpow2.f32 %v508_v25 }
 0x3d3   :  { %v10384_v52 = vpop.eup %10383 }
 0x3d4   :  { %v641_v54 = vmul.f32 %v10384_v52, %v607_v26  ;;  %v10386_v55 = vpop.eup %10385 }
 0x3d5   :  { %v640_v58 = vmul.f32 %v10386_v55, %v602_v29 }
 0x3d6   :  { %v652_v57 = vmul.f32 %v8107_v53, %v641_v54 }
 0x3d7   :  { %v10388_v59 = vpop.eup %10387  ;;  %v651_v61 = vmul.f32 %v8107_v53, %v640_v58 }
 0x3d8   :  { %v11454_v60 = vadd.f32 %v8108_v56, %v652_v57  ;;  %v643_v62 = vmul.f32 %v10388_v59, %v617_v35  ;;  %v10390_v63 = vpop.eup %10389 }
 0x3d9   :  { %v662_v0 = vadd.f32 %v8108_v56, %v651_v61  ;;  %v642_v2 = vmul.f32 %v10390_v63, %v612_v39  ;;  %v10392_v26 = vpop.eup %10391 }
 0x3da   :  { %v654_v1 = vmul.f32 %v8107_v53, %v643_v62  ;;  %v10394_v24 = vpop.eup %10393  ;;  %v513_v28 = vadd.f32 1.0, %v10392_v26 }
 0x3db   :  { %v653_v4 = vmul.f32 %v8107_v53, %v642_v2  ;;  %8938 = vmatprep.mubr.msk.f32.mxu1 %vm682_vm3, %v662_v0  ;;  %v10207_v5 = vpack.i.bf16 %v11454_v60, %v662_v0  ;;  %v512_v27 = vadd.f32 1.0, %v10394_v24  ;;  %v10396_v29 = vpop.eup %10395 }
 0x3dc   :  { %v11456_v3 = vadd.f32 %v8108_v56, %v654_v1  ;;  %10399 = vrcp.f32 %v513_v28  ;;  %v10398_v30 = vpop.eup %10397  ;;  %v515_v31 = vadd.f32 1.0, %v10396_v29  ;;  %v666_v1 = vld [vmem:[#allocation17] sm:$0xff] }
 0x3dd   :  { %v11460_v6 = vadd.f32 %v8108_v56, %v653_v4  ;;  %10208 = vrot.lane.b32.xlu0 %v10207_v5, %s11109_s24  ;;  %10401 = vrcp.f32 %v512_v27  ;;  %v514_v33 = vadd.f32 1.0, %v10398_v30 }
 0x3de   :  { %10403 = vrcp.f32 %v515_v31 }
 0x3df   :  { %v10212_v7 = vpack.i.bf16 %v11456_v3, %v11460_v6  ;;  %10405 = vrcp.f32 %v514_v33 }
 0x3e1   :  { %893 = vrot.lane.b32.xlu0 %v662_v0, %s11110_s28  ;;  %10213 = vrot.lane.b32.xlu1 %v10212_v7, %s11109_s24  ;;  %v667_v0 = vld [vmem:[#allocation17 + $0x8] sm:$0xff] }
 0x3e5   :  { %897 = vrot.lane.b32.xlu0 %v11460_v6, %s11110_s28  ;;  %10218 = vrot.lane.b32.xlu1 %v10207_v5, %s11111_s0 }
 0x3e6   :  { %v10400_v40 = vpop.eup %10399 }
 0x3e7   :  { %v10402_v43 = vpop.eup %10401  ;;  %v11490_v46 = vmul.f32 %v10400_v40, %v487_v10  ;;  %v668_v10 = vld [vmem:[#allocation17 + $0x10] sm:$0xff] }
 0x3e8   :  { %v11492_v47 = vmul.f32 %v10402_v43, %v482_v11  ;;  %v10404_v55 = vpop.eup %10403 }
 0x3e9   :  { %10223 = vrot.lane.b32.xlu1 %v10212_v7, %s11111_s0  ;;  %v10406_v56 = vpop.eup %10405  ;;  %v11506_v58 = vmul.f32 %v10404_v55, %v497_v19  ;;  %v669_v7 = vld [vmem:[#allocation17 + $0x18] sm:$0xff] }
 0x3ea   :  { %v9700_v54 = vpack.c.bf16 %v11490_v46, %v11492_v47  ;;  %v11508_v59 = vmul.f32 %v10406_v56, %v492_v20 }
 0x3ec   :  { %v9704_v61 = vpack.c.bf16 %v11506_v58, %v11508_v59 }
 0x3ed   :  { %895 = vrot.lane.b32.xlu1 %v11454_v60, %s11110_s28 }
 0x3f1   :  { %899 = vrot.lane.b32.xlu1 %v11456_v3, %s11110_s28 }
 0x44f   :  { %v10209_v32 = vpop.permute.xlu0 %10208 }
 0x450   :  { %v10211_v34 = vunpack.i.h.bf16 %v10209_v32  ;;  %v10210_v35 = vunpack.i.l.bf16 %v10209_v32 }
 0x452   :  { %v9676_v37 = vpack.c.bf16 %v10211_v34, %v10210_v35 }
 0x453   :  { %v10214_v38 = vpop.permute.xlu1 %10213  ;;  %v894_v39 = vpop.permute.xlu0 %893 }
 0x454   :  { %v10216_v41 = vunpack.i.h.bf16 %v10214_v38  ;;  %v10215_v42 = vunpack.i.l.bf16 %v10214_v38  ;;  %9678 = vmatprep.subr.msk.bf16.mxu1 %vm11481_vm4, %v9676_v37  ;;  %8952 = vmatprep.mubr.msk.f32.mxu0 %vm682_vm3, %v894_v39 }
 0x455   :  { %9681 = vmatpush3.bf16.xpose.msk.msra.mxu1 %vm11481_vm4, %v9676_v37 }
 0x456   :  { %v9682_v44 = vpack.c.bf16 %v10216_v41, %v10215_v42 }
 0x457   :  { %v10219_v45 = vpop.permute.xlu1 %10218  ;;  %v898_v63 = vpop.permute.xlu0 %897 }
 0x458   :  { %v10221_v48 = vunpack.i.h.bf16 %v10219_v45  ;;  %v10220_v49 = vunpack.i.l.bf16 %v10219_v45  ;;  %9684 = vmatprep.subr.msk.bf16.mxu1 %vm11481_vm4, %v9682_v44 }
 0x45a   :  { %v9688_v50 = vpack.c.bf16 %v10221_v48, %v10220_v49 }
 0x45b   :  { %v10224_v51 = vpop.permute.xlu1 %10223 }
 0x45c   :  { %v10226_v52 = vunpack.i.h.bf16 %v10224_v51  ;;  %v10225_v53 = vunpack.i.l.bf16 %v10224_v51  ;;  %9690 = vmatprep.subr.msk.bf16.mxu0 %vm11481_vm4, %v9688_v50 }
 0x45d   :  { %9687 = vmatpush3.bf16.xpose.msk.msra.mxu1 %vm11481_vm4, %v9682_v44  ;;  %9693 = vmatpush3.bf16.xpose.msk.msra.mxu0 %vm11481_vm4, %v9688_v50 }
 0x45e   :  { %v9694_v57 = vpack.c.bf16 %v10226_v52, %v10225_v53  ;;  %9701 = vmatprep.subr.bf16.mxu1 %v9700_v54 }
 0x45f   :  { %v896_v62 = vpop.permute.xlu1 %895 }
 0x460   :  { %9696 = vmatprep.subr.msk.bf16.mxu0 %vm11481_vm4, %v9694_v57 }
 0x464   :  { %8939 = vmatmul.mubr.msk.f32.vlgmr.msra.gmra.mrb[4].mxu1 %vm682_vm3, %v11454_v60  ;;  %v900_v60 = vpop.permute.xlu1 %899 }
 0x465   :  { %8941 = vmatprep.mubr.msk.f32.mxu1 %vm682_vm3, %v11460_v6  ;;  %9699 = vmatpush3.bf16.xpose.msk.msra.mxu0 %vm11481_vm4, %v9694_v57 }
 0x466   :  { %9703 = vmatpush3.bf16.msra.mxu1 %v9700_v54 }
 0x467   :  { %9705 = vmatprep.subr.bf16.mxu1 %v9704_v61 }
 0x468   :  { %8942 = vmatmul.mubr.msk.f32.gmra.mrb[6].mxu1 %vm682_vm3, %v11456_v3 }
 0x46a   :  { %9707 = vmatpush3.bf16.msra.mxu1 %v9704_v61 }
 0x46c   :  { %8953 = vmatmul.mubr.msk.f32.vlgmr.msra.gmra.mrb[8].mxu0 %vm682_vm3, %v896_v62 }
 0x46d   :  { %8955 = vmatprep.mubr.msk.f32.mxu0 %vm682_vm3, %v898_v63 }
 0x470   :  { %8956 = vmatmul.mubr.msk.f32.gmra.mrb[10].mxu0 %vm682_vm3, %v900_v60 }
 0x537   :  { %v8940_v2 = vpop.f32.mrb[4].mxu1 }
 0x538   :  { %v771_v4 = vadd.f32 %v8940_v2, %v667_v0  ;;  %v765_v5 = vpop.f32.mrb[5].mxu1 }
 0x539   :  { %v766_v6 = vadd.f32 %v765_v5, %v666_v1 }
 0x53a   :  { %v8118_v8 = vadd.f32 -0.70710677, %v771_v4 }
 0x53b   :  { %v8117_v3 = vadd.f32 -0.70710677, %v766_v6  ;;  %v8943_v11 = vpop.f32.mrb[6].mxu1 }
 0x53c   :  { %v11523_v13 = vmul.f32 0.7978846, %v8118_v8  ;;  %v781_v14 = vadd.f32 %v8943_v11, %v669_v7  ;;  %v775_v15 = vpop.f32.mrb[7].mxu1 }
 0x53d   :  { %v11525_v18 = vmul.f32 0.7978846, %v8117_v3  ;;  %v776_v19 = vadd.f32 %v775_v15, %v668_v10 }
 0x53e   :  { %v802_v20 = vand.u32 2147483647, %v11523_v13  ;;  %v8120_v21 = vadd.f32 -0.70710677, %v781_v14  ;;  %vm794_vm5 = vcmp.lt.f32.partialorder %v11523_v13, 0.0 }
 0x53f   :  { %v801_v22 = vand.u32 2147483647, %v11525_v18  ;;  %v8119_v23 = vadd.f32 -0.70710677, %v776_v19  ;;  %v11533_v27 = vpop.f32.mrb[8].mxu0  ;;  %vm793_vm6 = vcmp.lt.f32.partialorder %v11525_v18, 0.0 }
 0x540   :  { %v806_v25 = vmul.f32 0.3275911, %v802_v20  ;;  %v11529_v26 = vmul.f32 0.7978846, %v8120_v21  ;;  %v11536_v31 = vpop.f32.mrb[9].mxu0  ;;  %v854_v41 = vsub.f32 0.0, %v802_v20 }
 0x541   :  { %v805_v24 = vmul.f32 0.3275911, %v801_v22  ;;  %v11531_v28 = vmul.f32 0.7978846, %v8119_v23  ;;  %v853_v42 = vsub.f32 0.0, %v801_v22 }
 0x542   :  { %v810_v29 = vadd.f32 1.0, %v806_v25  ;;  %v804_v30 = vand.u32 2147483647, %v11529_v26  ;;  %v858_v44 = vmul.f32 %v854_v41, %v802_v20  ;;  %vm796_vm7 = vcmp.lt.f32.partialorder %v11529_v26, 0.0  ;;  %v11558_v26 = vld [vmem:[%s13028_s15 + $0x8] sm:$0xff] }
 0x543   :  { %v809_v32 = vadd.f32 1.0, %v805_v24  ;;  %v11538_v33 = vpop.f32.mrb[10].mxu0  ;;  %v803_v37 = vand.u32 2147483647, %v11531_v28  ;;  %v857_v50 = vmul.f32 %v853_v42, %v801_v22  ;;  %vm795_vm8 = vcmp.lt.f32.partialorder %v11531_v28, 0.0  ;;  %v11568_v28 = vld [vmem:[%s13028_s15] sm:$0xff] }
 0x544   :  { %10407 = vrcp.f32 %v810_v29  ;;  %v808_v34 = vmul.f32 0.3275911, %v804_v30  ;;  %v11540_v35 = vpop.f32.mrb[11].mxu0  ;;  %v856_v45 = vsub.f32 0.0, %v804_v30  ;;  %v863_v55 = vmul.f32 1.442695, %v858_v44 }
 0x545   :  { %10409 = vrcp.f32 %v809_v32  ;;  %v807_v39 = vmul.f32 0.3275911, %v803_v37  ;;  %v855_v53 = vsub.f32 0.0, %v803_v37  ;;  %v861_v62 = vmul.f32 1.442695, %v857_v50 }
 0x546   :  { %v812_v38 = vadd.f32 1.0, %v808_v34  ;;  %v860_v57 = vmul.f32 %v856_v45, %v804_v30 }
 0x547   :  { %v811_v40 = vadd.f32 1.0, %v807_v39  ;;  %v859_v4 = vmul.f32 %v855_v53, %v803_v37 }
 0x548   :  { %10411 = vrcp.f32 %v812_v38  ;;  %v867_v6 = vmul.f32 1.442695, %v860_v57 }
 0x549   :  { %10413 = vrcp.f32 %v811_v40  ;;  %v865_v19 = vmul.f32 1.442695, %v859_v4 }
 0x54a   :  { %10415 = vpow2.f32 %v863_v55  ;;  %v11112_v55 = vmov 1.0  }
 0x54b   :  { %10417 = vpow2.f32 %v861_v62 }
 0x54c   :  { %10419 = vpow2.f32 %v867_v6 }
 0x54d   :  { %10421 = vpow2.f32 %v865_v19 }
 0x54e   :  { %v10408_v43 = vpop.eup %10407 }
 0x54f   :  { %v10410_v48 = vpop.eup %10409  ;;  %v818_v49 = vmul.f32 1.0614054, %v10408_v43 }
 0x550   :  { %v817_v51 = vmul.f32 1.0614054, %v10410_v48 }
 0x551   :  { %v822_v52 = vadd.f32 -1.4531521, %v818_v49 }
 0x552   :  { %v10412_v54 = vpop.eup %10411  ;;  %v821_v56 = vadd.f32 -1.4531521, %v817_v51 }
 0x553   :  { %v826_v61 = vmul.f32 %v10408_v43, %v822_v52  ;;  %v820_v63 = vmul.f32 1.0614054, %v10412_v54  ;;  %v10414_v0 = vpop.eup %10413 }
 0x554   :  { %v825_v60 = vmul.f32 %v10410_v48, %v821_v56  ;;  %v819_v7 = vmul.f32 1.0614054, %v10414_v0  ;;  %v10416_v39 = vpop.eup %10415  ;;  %v798_v56 = vsel %vm794_vm5, -1.0, %v11112_v55 }
 0x555   :  { %v830_v1 = vadd.f32 1.4214138, %v826_v61  ;;  %v824_v2 = vadd.f32 -1.4531521, %v820_v63  ;;  %v10418_v42 = vpop.eup %10417 }
 0x556   :  { %v829_v5 = vadd.f32 1.4214138, %v825_v60  ;;  %v823_v11 = vadd.f32 -1.4531521, %v819_v7  ;;  %v10420_v53 = vpop.eup %10419  ;;  %v11563_v7 = vld [vmem:[%s13027_s14] sm:$0xff] }
 0x557   :  { %v834_v8 = vmul.f32 %v10408_v43, %v830_v1  ;;  %v828_v10 = vmul.f32 %v10412_v54, %v824_v2  ;;  %v10422_v60 = vpop.eup %10421 }
 0x558   :  { %v833_v3 = vmul.f32 %v10410_v48, %v829_v5  ;;  %v827_v21 = vmul.f32 %v10414_v0, %v823_v11  ;;  %v11553_v5 = vld [vmem:[%s13027_s14 + $0x8] sm:$0xff]  ;;  %v799_v11 = vsel %vm795_vm8, -1.0, %v11112_v55 }
 0x559   :  { %v838_v14 = vadd.f32 -0.28449672, %v834_v8  ;;  %v832_v15 = vadd.f32 1.4214138, %v828_v10 }
 0x55a   :  { %v837_v20 = vadd.f32 -0.28449672, %v833_v3  ;;  %v831_v24 = vadd.f32 1.4214138, %v827_v21  ;;  %v1010_v21 = vmul.f32 %v11536_v31, %v11568_v28  ;;  %v11593_v31 = vld [vmem:[%s13027_s14 + $0x10] sm:$0xff] }
 0x55b   :  { %v842_v22 = vmul.f32 %v10408_v43, %v838_v14  ;;  %v836_v23 = vmul.f32 %v10412_v54, %v832_v15  ;;  %v1011_v15 = vmul.f32 %v11533_v27, %v11558_v26 }
 0x55c   :  { %v841_v25 = vmul.f32 %v10410_v48, %v837_v20  ;;  %v835_v34 = vmul.f32 %v10414_v0, %v831_v24 }
 0x55d   :  { %v846_v29 = vadd.f32 0.2548296, %v842_v22  ;;  %v840_v30 = vadd.f32 -0.28449672, %v836_v23  ;;  %v11580_v22 = vld [vmem:[%s13027_s14 + $0x18] sm:$0xff] }
 0x55e   :  { %v845_v32 = vadd.f32 0.2548296, %v841_v25  ;;  %v839_v41 = vadd.f32 -0.28449672, %v835_v34  ;;  %v11585_v23 = vld [vmem:[%s13028_s15 + $0x18] sm:$0xff]  ;;  %v11598_v34 = vld [vmem:[%s13028_s15 + $0x10] sm:$0xff] }
 0x55f   :  { %v850_v37 = vmul.f32 %v10408_v43, %v846_v29  ;;  %v844_v38 = vmul.f32 %v10412_v54, %v840_v30 }
 0x560   :  { %v849_v40 = vmul.f32 %v10410_v48, %v845_v32  ;;  %v843_v50 = vmul.f32 %v10414_v0, %v839_v41  ;;  %v797_v48 = vsel %vm793_vm6, -1.0, %v11112_v55  ;;  %v1013_v32 = vmul.f32 %v11538_v33, %v11585_v23  ;;  %v1135_v41 = vld [vmem:[#allocation14] sm:$0xff] }
 0x561   :  { %v870_v44 = vmul.f32 %v10416_v39, %v850_v37  ;;  %v848_v45 = vadd.f32 0.2548296, %v844_v38  ;;  %v1012_v33 = vmul.f32 %v11540_v35, %v11598_v34 }
 0x562   :  { %v869_v49 = vmul.f32 %v10418_v42, %v849_v40  ;;  %v847_v57 = vadd.f32 0.2548296, %v843_v50  ;;  %v1136_v42 = vld [vmem:[#allocation14 + $0x8] sm:$0xff] }
 0x563   :  { %v874_v51 = vsub.f32 1.0, %v870_v44  ;;  %v852_v52 = vmul.f32 %v10412_v54, %v848_v45  ;;  %v800_v54 = vsel %vm796_vm7, -1.0, %v11112_v55  ;;  %v1137_v44 = vld [vmem:[#allocation14 + $0x10] sm:$0xff]  ;;  %v9708_v45 = vpack.c.bf16 %v1136_v42, %v1135_v41 }
 0x564   :  { %v873_v43 = vsub.f32 1.0, %v869_v49  ;;  %v851_v63 = vmul.f32 %v10414_v0, %v847_v57  ;;  %v1138_v49 = vld [vmem:[#allocation14 + $0x18] sm:$0xff] }
 0x565   :  { %v878_v61 = vmul.f32 %v874_v51, %v798_v56  ;;  %v872_v13 = vmul.f32 %v10420_v53, %v852_v52  ;;  %v9712_v50 = vpack.c.bf16 %v1138_v49, %v1137_v44  ;;  %v1139_v51 = vld [vmem:[#allocation14 + $0x20] sm:$0xff]  ;;  %v1140_v52 = vld [vmem:[#allocation14 + $0x28] sm:$0xff]  ;;  %9709 = vmatprep.subr.bf16.mxu0 %v9708_v45  ;;  %v1142_v57 = vld [vmem:[#allocation14 + $0x38] sm:$0xff] }
 0x566   :  { %v877_v62 = vmul.f32 %v873_v43, %v797_v48  ;;  %v871_v4 = vmul.f32 %v10422_v60, %v851_v63  ;;  %9711 = vmatpush3.bf16.msra.mxu0 %v9708_v45  ;;  %v9716_v35 = vpack.c.bf16 %v1140_v52, %v1139_v51  ;;  %v1141_v43 = vld [vmem:[#allocation14 + $0x30] sm:$0xff] }
 0x567   :  { %v882_v18 = vadd.f32 1.0, %v878_v61  ;;  %v876_v1 = vsub.f32 1.0, %v872_v13  ;;  %9713 = vmatprep.subr.bf16.mxu0 %v9712_v50  ;;  %v9720_v48 = vpack.c.bf16 %v1142_v57, %v1141_v43  ;;  %v1337_v43 = vld [vmem:[#allocation7 + $0x20] sm:$0xff]  ;;  %v1338_v57 = vld [vmem:[#allocation7 + $0x28] sm:$0xff] }
 0x568   :  { %v881_v2 = vadd.f32 1.0, %v877_v62  ;;  %v875_v8 = vsub.f32 1.0, %v871_v4 }
 0x569   :  { %v880_v0 = vmul.f32 %v876_v1, %v800_v54  ;;  %v886_v6 = vmul.f32 0.5, %v882_v18 }
 0x56a   :  { %v885_v10 = vmul.f32 0.5, %v881_v2  ;;  %v879_v19 = vmul.f32 %v875_v8, %v799_v11  ;;  %9715 = vmatpush3.bf16.msra.mxu0 %v9712_v50 }
 0x56b   :  { %v884_v3 = vadd.f32 1.0, %v880_v0  ;;  %v890_v14 = vmul.f32 %v886_v6, %v11553_v5  ;;  %9717 = vmatprep.subr.bf16.mxu0 %v9716_v35 }
 0x56c   :  { %v889_v20 = vmul.f32 %v885_v10, %v11563_v7  ;;  %v883_v29 = vadd.f32 1.0, %v879_v19 }
 0x56d   :  { %v1015_v25 = vadd.f32 %v1011_v15, %v890_v14  ;;  %v888_v24 = vmul.f32 0.5, %v884_v3 }
 0x56e   :  { %v1014_v27 = vadd.f32 %v1010_v21, %v889_v20  ;;  %v887_v37 = vmul.f32 0.5, %v883_v29  ;;  %9719 = vmatpush3.bf16.msra.mxu0 %v9716_v35 }
 0x56f   :  { %v892_v30 = vmul.f32 %v888_v24, %v11580_v22  ;;  %9721 = vmatprep.subr.bf16.mxu0 %v9720_v48 }
 0x570   :  { %8966 = vmatprep.mubr.msk.f32.mxu1 %vm316_vm2, %v1014_v27  ;;  %v891_v39 = vmul.f32 %v887_v37, %v11593_v31 }
 0x571   :  { %v1017_v38 = vadd.f32 %v1013_v32, %v892_v30  ;;  %8967 = vmatmul.mubr.msk.f32.vlgmr.msra.gmra.mrb[8].mxu1 %vm316_vm2, %v1015_v25 }
 0x572   :  { %v1016_v40 = vadd.f32 %v1012_v33, %v891_v39  ;;  %9723 = vmatpush3.bf16.msra.mxu0 %v9720_v48  ;;  %v9724_v48 = vpack.c.bf16 %v1338_v57, %v1337_v43 }
 0x574   :  { %8969 = vmatprep.mubr.msk.f32.mxu1 %vm316_vm2, %v1016_v40  ;;  %9725 = vmatprep.subr.bf16.mxu1 %v9724_v48 }
 0x575   :  { %8970 = vmatmul.mubr.msk.f32.gmra.mrb[10].mxu1 %vm316_vm2, %v1017_v38 }
 0x576   :  { %9727 = vmatpush3.bf16.msra.mxu1 %v9724_v48 }
 0x644   :  { %v8968_v53 = vpop.f32.mrb[8].mxu1 }
 0x645   :  { %1121 = vrot.lane.b32.xlu1 %v8968_v53, %s11113_s2  ;;  %v1096_v56 = vpop.f32.mrb[9].mxu1 }
 0x646   :  { %1119 = vrot.lane.b32.xlu0 %v1096_v56, %s11113_s2 }
 0x648   :  { %v8971_v61 = vpop.f32.mrb[10].mxu1 }
 0x649   :  { %1125 = vrot.lane.b32.xlu1 %v8971_v61, %s11113_s2  ;;  %v1106_v13 = vpop.f32.mrb[11].mxu1  ;;  %v1339_v61 = vld [vmem:[#allocation7 + $0x30] sm:$0xff] }
 0x64a   :  { %1123 = vrot.lane.b32.xlu0 %v1106_v13, %s11113_s2  ;;  %v1340_v13 = vld [vmem:[#allocation7 + $0x38] sm:$0xff] }
 0x6b7   :  { %v1122_v62 = vpop.permute.xlu1 %1121 }
 0x6b8   :  { %v1132_v63 = vmul.f32 %v1122_v62, %v11490_v46  ;;  %v1120_v60 = vpop.permute.xlu0 %1119  ;;  %v9728_v62 = vpack.c.bf16 %v1340_v13, %v1339_v61 }
 0x6b9   :  { %v1131_v18 = vmul.f32 %v1120_v60, %v11492_v47  ;;  %v1472_v60 = vld [vmem:[#allocation10 + $0x28] sm:$0xff] }
 0x6ba   :  { %1156 = vrot.lane.b32.xlu1 %v1132_v63, %s11113_s2  ;;  %9729 = vmatprep.subr.bf16.mxu1 %v9728_v62  ;;  %v1471_v63 = vld [vmem:[#allocation10 + $0x20] sm:$0xff] }
 0x6bb   :  { %1154 = vrot.lane.b32.xlu0 %v1131_v18, %s11113_s2  ;;  %v1126_v1 = vpop.permute.xlu1 %1125  ;;  %9731 = vmatpush3.bf16.msra.mxu1 %v9728_v62  ;;  %v9732_v18 = vpack.c.bf16 %v1472_v60, %v1471_v63 }
 0x6bc   :  { %v1134_v2 = vmul.f32 %v1126_v1, %v11506_v58  ;;  %v1124_v54 = vpop.permute.xlu0 %1123  ;;  %v8133_v58 = vld [vmem:[#allocation16] ss:$0 sm:$0xff] }
 0x6bd   :  { %v1133_v4 = vmul.f32 %v1124_v54, %v11508_v59  ;;  %9733 = vmatprep.subr.bf16.mxu1 %v9732_v18 }
 0x6be   :  { %1160 = vrot.lane.b32.xlu1 %v1134_v2, %s11113_s2 }
 0x6bf   :  { %1158 = vrot.lane.b32.xlu0 %v1133_v4, %s11113_s2 }
 0x72c   :  { %v1157_v46 = vpop.permute.xlu1 %1156 }
 0x72d   :  { %v1155_v0 = vpop.permute.xlu0 %1154 }
 0x72e   :  { %8988 = vmatprep.mubr.msk.f32.mxu0 %vm1162_vm9, %v1155_v0 }
 0x72f   :  { %8989 = vmatmul.mubr.msk.f32.vlgmr.msra.gmra.mrb[12].mxu0 %vm1162_vm9, %v1157_v46 }
 0x730   :  { %v1161_v6 = vpop.permute.xlu1 %1160 }
 0x731   :  { %v1159_v47 = vpop.permute.xlu0 %1158 }
 0x732   :  { %8991 = vmatprep.mubr.msk.f32.mxu0 %vm1162_vm9, %v1159_v47 }
 0x733   :  { %8992 = vmatmul.mubr.msk.f32.gmra.mrb[14].mxu0 %vm1162_vm9, %v1161_v6 }
 0x802   :  { %v8990_v8 = vpop.f32.mrb[12].mxu0 }
 0x803   :  { %v1243_v59 = vadd.f32 %v8990_v8, %v8133_v58  ;;  %v1237_v10 = vpop.f32.mrb[13].mxu0 }
 0x804   :  { %v1238_v3 = vadd.f32 %v8133_v58, %v1237_v10 }
 0x805   :  { %v11624_v11 = vadd.f32 %v1243_v59, %v11407_v12 }
 0x806   :  { %v11627_v14 = vadd.f32 %v1238_v3, %v11405_v9  ;;  %v8993_v19 = vpop.f32.mrb[14].mxu0 }
 0x807   :  { %v1263_v15 = vsel %vm316_vm2, %v11624_v11, 0.0  ;;  %v1247_v21 = vpop.f32.mrb[15].mxu0  ;;  %v1253_v25 = vadd.f32 %v8993_v19, %v8133_v58 }
 0x808   :  { %1264 = vadd.xlane.f32.xlu1 %v1263_v15  ;;  %v1260_v20 = vsel %vm316_vm2, %v11627_v14, 0.0  ;;  %v1248_v24 = vadd.f32 %v8133_v58, %v1247_v21  ;;  %v8139_v15 = vld [vmem:[%s13055_s9 + $0x1] ss:$0 sm:$0xff] }
 0x809   :  { %1261 = vadd.xlane.f32.xlu0 %v1260_v20  ;;  %v11637_v12 = vadd.f32 %v1253_v25, %v11411_v16 }
 0x80a   :  { %v11634_v29 = vadd.f32 %v1248_v24, %v11413_v17  ;;  %v8141_v24 = vld [vmem:[%s13017_s4 + $0x1] ss:$0 sm:$0xff] }
 0x80b   :  { %v1269_v27 = vsel %vm316_vm2, %v11637_v12, 0.0 }
 0x80c   :  { %v1266_v9 = vsel %vm316_vm2, %v11634_v29, 0.0 }
 0x80d   :  { %1267 = vadd.xlane.f32.xlu0 %v1266_v9 }
 0x811   :  { %1270 = vadd.xlane.f32.xlu0 %v1269_v27  ;;  %v1473_v27 = vld [vmem:[#allocation10 + $0x30] sm:$0xff] }
 0x895   :  { %v1265_v30 = vpop.xlane.xlu1 %1264 }
 0x896   :  { %v1273_v32 = vmul.f32 0.03125, %v1265_v30  ;;  %v1262_v37 = vpop.xlane.xlu0 %1261  ;;  %v1474_v30 = vld [vmem:[#allocation10 + $0x38] sm:$0xff] }
 0x897   :  { %v1272_v38 = vmul.f32 0.03125, %v1262_v37 }
 0x898   :  { %v1277_v39 = vsub.f32 %v11624_v11, %v1273_v32 }
 0x899   :  { %v1276_v17 = vsub.f32 %v11627_v14, %v1272_v38 }
 0x89a   :  { %v1281_v33 = vmul.f32 %v1277_v39, %v1277_v39  ;;  %v1268_v16 = vpop.xlane.xlu0 %1267 }
 0x89b   :  { %v1280_v40 = vmul.f32 %v1276_v17, %v1276_v17  ;;  %v1274_v42 = vmul.f32 0.03125, %v1268_v16 }
 0x89c   :  { %v1287_v41 = vsel %vm316_vm2, %v1281_v33, 0.0  ;;  %v9736_v33 = vpack.c.bf16 %v1474_v30, %v1473_v27 }
 0x89d   :  { %1288 = vadd.xlane.f32.xlu1 %v1287_v41  ;;  %v1284_v44 = vsel %vm316_vm2, %v1280_v40, 0.0  ;;  %v1278_v45 = vsub.f32 %v11634_v29, %v1274_v42 }
 0x89e   :  { %1285 = vadd.xlane.f32.xlu0 %v1284_v44  ;;  %v1271_v49 = vpop.xlane.xlu0 %1270 }
 0x89f   :  { %v1275_v50 = vmul.f32 0.03125, %v1271_v49  ;;  %v1282_v51 = vmul.f32 %v1278_v45, %v1278_v45 }
 0x8a1   :  { %v1279_v52 = vsub.f32 %v11637_v12, %v1275_v50  ;;  %v1290_v53 = vsel %vm316_vm2, %v1282_v51, 0.0 }
 0x8a2   :  { %1291 = vadd.xlane.f32.xlu0 %v1290_v53 }
 0x8a3   :  { %v1283_v56 = vmul.f32 %v1279_v52, %v1279_v52 }
 0x8a5   :  { %v1293_v35 = vsel %vm316_vm2, %v1283_v56, 0.0 }
 0x8a6   :  { %1294 = vadd.xlane.f32.xlu1 %v1293_v35 }
 0x92a   :  { %v1289_v1 = vpop.xlane.xlu1 %1288 }
 0x92b   :  { %v1297_v2 = vmul.f32 0.03125, %v1289_v1  ;;  %v1286_v54 = vpop.xlane.xlu0 %1285 }
 0x92c   :  { %v1296_v4 = vmul.f32 0.03125, %v1286_v54 }
 0x92d   :  { %v1301_v0 = vadd.f32 1e-05, %v1297_v2 }
 0x92e   :  { %v1300_v46 = vadd.f32 1e-05, %v1296_v4 }
 0x92f   :  { %10423 = vrsqrt.f32 %v1301_v0  ;;  %v1292_v47 = vpop.xlane.xlu0 %1291 }
 0x930   :  { %10425 = vrsqrt.f32 %v1300_v46  ;;  %v1298_v6 = vmul.f32 0.03125, %v1292_v47 }
 0x932   :  { %v1302_v58 = vadd.f32 1e-05, %v1298_v6 }
 0x933   :  { %v1295_v8 = vpop.xlane.xlu1 %1294 }
 0x934   :  { %10427 = vrsqrt.f32 %v1302_v58  ;;  %v1299_v59 = vmul.f32 0.03125, %v1295_v8 }
 0x936   :  { %v1303_v10 = vadd.f32 1e-05, %v1299_v59 }
 0x938   :  { %10429 = vrsqrt.f32 %v1303_v10 }
 0x939   :  { %v10424_v3 = vpop.eup %10423 }
 0x93a   :  { %v10426_v19 = vpop.eup %10425  ;;  %v1309_v20 = vmul.f32 %v10424_v3, %v1277_v39 }
 0x93b   :  { %v1308_v21 = vmul.f32 %v10426_v19, %v1276_v17 }
 0x93c   :  { %v1321_v25 = vmul.f32 %v8139_v15, %v1309_v20 }
 0x93d   :  { %v1320_v9 = vmul.f32 %v8139_v15, %v1308_v21 }
 0x93e   :  { %v10428_v37 = vpop.eup %10427  ;;  %v1333_v38 = vadd.f32 %v8141_v24, %v1321_v25  ;;  %v8154_v25 = vld [vmem:[%s13023_s10 + $0x1] ss:$0 sm:$0xff] }
 0x93f   :  { %v1332_v32 = vadd.f32 %v8141_v24, %v1320_v9  ;;  %v1310_v40 = vmul.f32 %v10428_v37, %v1278_v45 }
 0x941   :  { %9002 = vmatprep.mubr.msk.f32.mxu1 %vm316_vm2, %v1332_v32  ;;  %v1322_v39 = vmul.f32 %v8139_v15, %v1310_v40 }
 0x942   :  { %9003 = vmatmul.mubr.msk.f32.vlgmr.msra.gmra.mrb[12].mxu1 %vm316_vm2, %v1333_v38  ;;  %v10430_v17 = vpop.eup %10429 }
 0x943   :  { %9735 = vmatpush3.bf16.msra.mxu1 %v9732_v18  ;;  %v1334_v16 = vadd.f32 %v8141_v24, %v1322_v39  ;;  %v1311_v41 = vmul.f32 %v10430_v17, %v1279_v52  ;;  %v8147_v52 = vld [vmem:[#allocation11 + $0x1] ss:$0 sm:$0xff] }
 0x944   :  { %9737 = vmatprep.subr.bf16.mxu1 %v9736_v33 }
 0x945   :  { %9005 = vmatprep.mubr.msk.f32.mxu1 %vm316_vm2, %v1334_v16  ;;  %v1323_v42 = vmul.f32 %v8139_v15, %v1311_v41  ;;  %v8152_v15 = vld [vmem:[#allocation13 + $0x1] ss:$0 sm:$0xff] }
 0x947   :  { %9739 = vmatpush3.bf16.msra.mxu1 %v9736_v33  ;;  %v1335_v44 = vadd.f32 %v8141_v24, %v1323_v42 }
 0x949   :  { %9006 = vmatmul.mubr.msk.f32.gmra.mrb[14].mxu1 %vm316_vm2, %v1335_v44 }
 0x94a   :  { %9016 = vmatprep.mubr.msk.f32.mxu1 %vm316_vm2, %v1332_v32 }
 0x94d   :  { %9017 = vmatmul.mubr.msk.f32.vlgmr.msra.gmra.mrb[16].mxu1 %vm316_vm2, %v1333_v38 }
 0x94e   :  { %9019 = vmatprep.mubr.msk.f32.mxu1 %vm316_vm2, %v1334_v16 }
 0x951   :  { %9020 = vmatmul.mubr.msk.f32.gmra.mrb[18].mxu1 %vm316_vm2, %v1335_v44  ;;  %v8142_v44 = vld [vmem:[#allocation8 + $0x1] ss:$0 sm:$0xff] }
 0xa15   :  { %v11665_v45 = vpop.f32.mrb[12].mxu1 }
 0xa16   :  { %v11667_v49 = vpop.f32.mrb[13].mxu1 }
 0xa1c   :  { %v11669_v50 = vpop.f32.mrb[14].mxu1 }
 0xa1d   :  { %v11671_v51 = vpop.f32.mrb[15].mxu1 }
 0xa20   :  { %v9018_v53 = vpop.f32.mrb[16].mxu1 }
 0xa21   :  { %v1555_v56 = vadd.f32 %v9018_v53, %v8147_v52  ;;  %v1549_v35 = vpop.f32.mrb[17].mxu1  ;;  %v1428_v53 = vadd.f32 %v8142_v44, %v11667_v49 }
 0xa22   :  { %v1550_v43 = vadd.f32 %v8147_v52, %v1549_v35 }
 0xa23   :  { %v1569_v57 = vsub.f32 0.0, %v1555_v56  ;;  %v1446_v35 = vsub.f32 0.0, %v1428_v53 }
 0xa24   :  { %v1568_v61 = vsub.f32 0.0, %v1550_v43  ;;  %v9021_v48 = vpop.f32.mrb[18].mxu1 }
 0xa25   :  { %v1574_v13 = vmul.f32 1.442695, %v1569_v57  ;;  %v1565_v62 = vadd.f32 %v9021_v48, %v8147_v52  ;;  %v1559_v63 = vpop.f32.mrb[19].mxu1  ;;  %v1443_v57 = vadd.f32 %v11669_v50, %v8142_v44  ;;  %v1438_v48 = vadd.f32 %v8142_v44, %v11671_v51 }
 0xa26   :  { %v1572_v60 = vmul.f32 1.442695, %v1568_v61  ;;  %v1560_v18 = vadd.f32 %v8147_v52, %v1559_v63  ;;  %v1433_v52 = vadd.f32 %v11665_v45, %v8142_v44  ;;  %v1450_v61 = vmul.f32 1.442695, %v1446_v35  ;;  %v1617_v35 = vld [vmem:[#allocation17 + $0x20] sm:$0xff] }
 0xa27   :  { %v1571_v1 = vsub.f32 0.0, %v1565_v62  ;;  %10431 = vpow2.f32 %v1574_v13  ;;  %v1449_v13 = vsub.f32 0.0, %v1443_v57 }
 0xa28   :  { %v1570_v2 = vsub.f32 0.0, %v1560_v18  ;;  %10433 = vpow2.f32 %v1572_v60 }
 0xa29   :  { %v1578_v54 = vmul.f32 1.442695, %v1571_v1  ;;  %v1456_v63 = vmul.f32 1.442695, %v1449_v13 }
 0xa2a   :  { %v1576_v4 = vmul.f32 1.442695, %v1570_v2 }
 0xa2b   :  { %10435 = vpow2.f32 %v1578_v54 }
 0xa2c   :  { %10437 = vpow2.f32 %v1576_v4 }
 0xa31   :  { %v10432_v0 = vpop.eup %10431 }
 0xa32   :  { %v10434_v46 = vpop.eup %10433  ;;  %v1581_v47 = vadd.f32 1.0, %v10432_v0 }
 0xa33   :  { %v1580_v58 = vadd.f32 1.0, %v10434_v46 }
 0xa34   :  { %10439 = vrcp.f32 %v1581_v47 }
 0xa35   :  { %v10436_v6 = vpop.eup %10435  ;;  %10441 = vrcp.f32 %v1580_v58 }
 0xa36   :  { %v10438_v8 = vpop.eup %10437  ;;  %v1583_v59 = vadd.f32 1.0, %v10436_v6 }
 0xa37   :  { %v1582_v10 = vadd.f32 1.0, %v10438_v8 }
 0xa38   :  { %10443 = vrcp.f32 %v1583_v59 }
 0xa39   :  { %10445 = vrcp.f32 %v1582_v10 }
 0xa3e   :  { %v10440_v3 = vpop.eup %10439 }
 0xa3f   :  { %v10442_v19 = vpop.eup %10441  ;;  %v1589_v20 = vmul.f32 %v10440_v3, %v1555_v56  ;;  %v1447_v56 = vsub.f32 0.0, %v1433_v52 }
 0xa40   :  { %v1588_v24 = vmul.f32 %v10442_v19, %v1550_v43 }
 0xa41   :  { %v1601_v27 = vmul.f32 %v8152_v15, %v1589_v20  ;;  %v1452_v43 = vmul.f32 1.442695, %v1447_v56 }
 0xa42   :  { %v10444_v21 = vpop.eup %10443  ;;  %v1600_v32 = vmul.f32 %v8152_v15, %v1588_v24 }
 0xa43   :  { %v10446_v9 = vpop.eup %10445  ;;  %v1591_v30 = vmul.f32 %v10444_v21, %v1565_v62  ;;  %v11676_v38 = vadd.f32 %v8154_v25, %v1601_v27  ;;  %10447 = vpow2.f32 %v1452_v43  ;;  %v1448_v62 = vsub.f32 0.0, %v1438_v48 }
 0xa44   :  { %v1590_v37 = vmul.f32 %v10446_v9, %v1560_v18  ;;  %v1612_v40 = vadd.f32 %v8154_v25, %v1600_v32  ;;  %10449 = vpow2.f32 %v1450_v61 }
 0xa45   :  { %v1603_v33 = vmul.f32 %v8152_v15, %v1591_v30  ;;  %v1454_v60 = vmul.f32 1.442695, %v1448_v62  ;;  %10451 = vpow2.f32 %v1456_v63  ;;  %v1619_v62 = vld [vmem:[#allocation17 + $0x30] sm:$0xff] }
 0xa46   :  { %v1602_v39 = vmul.f32 %v8152_v15, %v1590_v37  ;;  %9030 = vmatprep.mubr.msk.f32.mxu0 %vm682_vm3, %v1612_v40  ;;  %v10227_v41 = vpack.i.bf16 %v11676_v38, %v1612_v40 }
 0xa47   :  { %v11678_v17 = vadd.f32 %v8154_v25, %v1603_v33  ;;  %10453 = vpow2.f32 %v1454_v60 }
 0xa48   :  { %v11680_v16 = vadd.f32 %v8154_v25, %v1602_v39  ;;  %10228 = vrot.lane.b32.xlu0 %v10227_v41, %s11109_s24 }
 0xa4a   :  { %v10232_v42 = vpack.i.bf16 %v11678_v17, %v11680_v16 }
 0xa4c   :  { %10233 = vrot.lane.b32.xlu1 %v10232_v42, %s11109_s24  ;;  %1842 = vrot.lane.b32.xlu0 %v1612_v40, %s11110_s28 }
 0xa4d   :  { %v10448_v18 = vpop.eup %10447 }
 0xa4e   :  { %v10450_v45 = vpop.eup %10449  ;;  %v1459_v1 = vadd.f32 1.0, %v10448_v18 }
 0xa4f   :  { %v1458_v49 = vadd.f32 1.0, %v10450_v45  ;;  %v10452_v2 = vpop.eup %10451 }
 0xa50   :  { %10238 = vrot.lane.b32.xlu1 %v10227_v41, %s11111_s0  ;;  %1846 = vrot.lane.b32.xlu0 %v11680_v16, %s11110_s28  ;;  %10455 = vrcp.f32 %v1459_v1  ;;  %v1461_v50 = vadd.f32 1.0, %v10452_v2 }
 0xa51   :  { %10457 = vrcp.f32 %v1458_v49  ;;  %v10454_v54 = vpop.eup %10453 }
 0xa52   :  { %v1460_v4 = vadd.f32 1.0, %v10454_v54  ;;  %10459 = vrcp.f32 %v1461_v50 }
 0xa54   :  { %10243 = vrot.lane.b32.xlu1 %v10232_v42, %s11111_s0  ;;  %10461 = vrcp.f32 %v1460_v4 }
 0xa58   :  { %1844 = vrot.lane.b32.xlu1 %v11676_v38, %s11110_s28 }
 0xa5a   :  { %v10456_v10 = vpop.eup %10455 }
 0xa5b   :  { %v10458_v15 = vpop.eup %10457  ;;  %v11708_v25 = vmul.f32 %v10456_v10, %v1433_v52 }
 0xa5c   :  { %1848 = vrot.lane.b32.xlu1 %v11678_v17, %s11110_s28  ;;  %v11710_v24 = vmul.f32 %v10458_v15, %v1428_v53  ;;  %v10460_v37 = vpop.eup %10459 }
 0xa5d   :  { %v11722_v41 = vmul.f32 %v10460_v37, %v1443_v57 }
 0xa5e   :  { %v9764_v40 = vpack.c.bf16 %v11708_v25, %v11710_v24  ;;  %v10462_v39 = vpop.eup %10461 }
 0xa5f   :  { %v11724_v42 = vmul.f32 %v10462_v39, %v1438_v48  ;;  %v1620_v48 = vld [vmem:[#allocation17 + $0x38] sm:$0xff] }
 0xa61   :  { %v9768_v44 = vpack.c.bf16 %v11722_v41, %v11724_v42 }
 0xaba   :  { %v10229_v0 = vpop.permute.xlu0 %10228 }
 0xabb   :  { %v10231_v51 = vunpack.i.h.bf16 %v10229_v0  ;;  %v10230_v46 = vunpack.i.l.bf16 %v10229_v0 }
 0xabd   :  { %v9740_v6 = vpack.c.bf16 %v10231_v51, %v10230_v46 }
 0xabe   :  { %v10234_v47 = vpop.permute.xlu1 %10233  ;;  %v1843_v59 = vpop.permute.xlu0 %1842 }
 0xabf   :  { %v10236_v58 = vunpack.i.h.bf16 %v10234_v47  ;;  %v10235_v8 = vunpack.i.l.bf16 %v10234_v47  ;;  %9742 = vmatprep.subr.msk.bf16.mxu0 %vm11481_vm4, %v9740_v6  ;;  %9044 = vmatprep.mubr.msk.f32.mxu1 %vm682_vm3, %v1843_v59 }
 0xac0   :  { %9745 = vmatpush3.bf16.xpose.msk.msra.mxu0 %vm11481_vm4, %v9740_v6 }
 0xac1   :  { %v9746_v3 = vpack.c.bf16 %v10236_v58, %v10235_v8 }
 0xac2   :  { %v10239_v19 = vpop.permute.xlu1 %10238  ;;  %v1847_v53 = vpop.permute.xlu0 %1846 }
 0xac3   :  { %v10241_v20 = vunpack.i.h.bf16 %v10239_v19  ;;  %v10240_v21 = vunpack.i.l.bf16 %v10239_v19  ;;  %9748 = vmatprep.subr.msk.bf16.mxu0 %vm11481_vm4, %v9746_v3 }
 0xac5   :  { %v9752_v9 = vpack.c.bf16 %v10241_v20, %v10240_v21 }
 0xac6   :  { %v10244_v27 = vpop.permute.xlu1 %10243 }
 0xac7   :  { %v10246_v30 = vunpack.i.h.bf16 %v10244_v27  ;;  %v10245_v32 = vunpack.i.l.bf16 %v10244_v27  ;;  %9754 = vmatprep.subr.msk.bf16.mxu1 %vm11481_vm4, %v9752_v9 }
 0xac8   :  { %9757 = vmatpush3.bf16.xpose.msk.msra.mxu1 %vm11481_vm4, %v9752_v9  ;;  %9751 = vmatpush3.bf16.xpose.msk.msra.mxu0 %vm11481_vm4, %v9746_v3 }
 0xac9   :  { %v9758_v33 = vpack.c.bf16 %v10246_v30, %v10245_v32  ;;  %9765 = vmatprep.subr.bf16.mxu0 %v9764_v40 }
 0xaca   :  { %v1845_v52 = vpop.permute.xlu1 %1844 }
 0xacb   :  { %9760 = vmatprep.subr.msk.bf16.mxu1 %vm11481_vm4, %v9758_v33 }
 0xace   :  { %v1849_v56 = vpop.permute.xlu1 %1848 }
 0xacf   :  { %9031 = vmatmul.mubr.msk.f32.vlgmr.msra.gmra.mrb[16].mxu0 %vm682_vm3, %v11676_v38  ;;  %v1618_v38 = vld [vmem:[#allocation17 + $0x28] sm:$0xff] }
 0xad0   :  { %9763 = vmatpush3.bf16.xpose.msk.msra.mxu1 %vm11481_vm4, %v9758_v33  ;;  %9033 = vmatprep.mubr.msk.f32.mxu0 %vm682_vm3, %v11680_v16 }
 0xad1   :  { %9767 = vmatpush3.bf16.msra.mxu0 %v9764_v40 }
 0xad2   :  { %9769 = vmatprep.subr.bf16.mxu0 %v9768_v44 }
 0xad3   :  { %9034 = vmatmul.mubr.msk.f32.gmra.mrb[18].mxu0 %vm682_vm3, %v11678_v17 }
 0xad5   :  { %9771 = vmatpush3.bf16.msra.mxu0 %v9768_v44 }
 0xad7   :  { %9045 = vmatmul.mubr.msk.f32.vlgmr.msra.gmra.mrb[20].mxu1 %vm682_vm3, %v1845_v52 }
 0xad8   :  { %9047 = vmatprep.mubr.msk.f32.mxu1 %vm682_vm3, %v1847_v53 }
 0xadb   :  { %9048 = vmatmul.mubr.msk.f32.gmra.mrb[22].mxu1 %vm682_vm3, %v1849_v56 }
 0xba2   :  { %v9032_v43 = vpop.f32.mrb[16].mxu0 }
 0xba3   :  { %v1721_v57 = vadd.f32 %v9032_v43, %v1618_v38  ;;  %v1715_v16 = vpop.f32.mrb[17].mxu0 }
 0xba4   :  { %v1716_v61 = vadd.f32 %v1715_v16, %v1617_v35 }
 0xba5   :  { %v8164_v13 = vadd.f32 -0.70710677, %v1721_v57 }
 0xba6   :  { %v8163_v63 = vadd.f32 -0.70710677, %v1716_v61  ;;  %v9035_v17 = vpop.f32.mrb[18].mxu0 }
 0xba7   :  { %v11739_v60 = vmul.f32 0.7978846, %v8164_v13  ;;  %v1731_v18 = vadd.f32 %v9035_v17, %v1620_v48  ;;  %v1725_v45 = vpop.f32.mrb[19].mxu0 }
 0xba8   :  { %v11741_v1 = vmul.f32 0.7978846, %v8163_v63  ;;  %v1726_v49 = vadd.f32 %v1725_v45, %v1619_v62 }
 0xba9   :  { %v1751_v54 = vand.u32 2147483647, %v11739_v60  ;;  %v8166_v50 = vadd.f32 -0.70710677, %v1731_v18  ;;  %vm1743_vm10 = vcmp.lt.f32.partialorder %v11739_v60, 0.0 }
 0xbaa   :  { %v11743_v2 = vpop.f32.mrb[20].mxu1  ;;  %v1750_v0 = vand.u32 2147483647, %v11741_v1  ;;  %v8165_v51 = vadd.f32 -0.70710677, %v1726_v49  ;;  %vm1742_vm11 = vcmp.lt.f32.partialorder %v11741_v1, 0.0 }
 0xbab   :  { %v11746_v4 = vpop.f32.mrb[21].mxu1  ;;  %v1755_v46 = vmul.f32 0.3275911, %v1751_v54  ;;  %v11749_v47 = vmul.f32 0.7978846, %v8166_v50  ;;  %v1803_v30 = vsub.f32 0.0, %v1751_v54 }
 0xbac   :  { %v1754_v6 = vmul.f32 0.3275911, %v1750_v0  ;;  %v11751_v58 = vmul.f32 0.7978846, %v8165_v51  ;;  %v1802_v32 = vsub.f32 0.0, %v1750_v0 }
 0xbad   :  { %v1759_v59 = vadd.f32 1.0, %v1755_v46  ;;  %v1753_v10 = vand.u32 2147483647, %v11749_v47  ;;  %v1807_v33 = vmul.f32 %v1803_v30, %v1751_v54  ;;  %vm1745_vm12 = vcmp.lt.f32.partialorder %v11749_v47, 0.0 }
 0xbae   :  { %v11753_v8 = vpop.f32.mrb[22].mxu1  ;;  %v1758_v15 = vadd.f32 1.0, %v1754_v6  ;;  %v1752_v20 = vand.u32 2147483647, %v11751_v58  ;;  %v1806_v52 = vmul.f32 %v1802_v32, %v1750_v0  ;;  %vm1744_vm13 = vcmp.lt.f32.partialorder %v11751_v58, 0.0 }
 0xbaf   :  { %v11756_v3 = vpop.f32.mrb[23].mxu1  ;;  %10463 = vrcp.f32 %v1759_v59  ;;  %v1757_v19 = vmul.f32 0.3275911, %v1753_v10  ;;  %v1805_v40 = vsub.f32 0.0, %v1753_v10  ;;  %v1812_v43 = vmul.f32 1.442695, %v1807_v33 }
 0xbb0   :  { %10465 = vrcp.f32 %v1758_v15  ;;  %v1756_v9 = vmul.f32 0.3275911, %v1752_v20  ;;  %v1804_v38 = vsub.f32 0.0, %v1752_v20  ;;  %v1810_v48 = vmul.f32 1.442695, %v1806_v52 }
 0xbb1   :  { %v1761_v21 = vadd.f32 1.0, %v1757_v19  ;;  %v1809_v16 = vmul.f32 %v1805_v40, %v1753_v10 }
 0xbb2   :  { %v1760_v27 = vadd.f32 1.0, %v1756_v9  ;;  %v1808_v45 = vmul.f32 %v1804_v38, %v1752_v20 }
 0xbb3   :  { %10467 = vrcp.f32 %v1761_v21  ;;  %v1816_v54 = vmul.f32 1.442695, %v1809_v16 }
 0xbb4   :  { %10469 = vrcp.f32 %v1760_v27  ;;  %v1814_v10 = vmul.f32 1.442695, %v1808_v45  ;;  %v1747_v45 = vsel %vm1743_vm10, -1.0, %v11112_v55 }
 0xbb5   :  { %10471 = vpow2.f32 %v1812_v43 }
 0xbb6   :  { %10473 = vpow2.f32 %v1810_v48 }
 0xbb7   :  { %10475 = vpow2.f32 %v1816_v54 }
 0xbb8   :  { %10477 = vpow2.f32 %v1814_v10 }
 0xbb9   :  { %v10464_v37 = vpop.eup %10463 }
 0xbba   :  { %v10466_v39 = vpop.eup %10465  ;;  %v1767_v44 = vmul.f32 1.0614054, %v10464_v37 }
 0xbbb   :  { %v1766_v53 = vmul.f32 1.0614054, %v10466_v39 }
 0xbbc   :  { %v1771_v56 = vadd.f32 -1.4531521, %v1767_v44 }
 0xbbd   :  { %v10468_v35 = vpop.eup %10467  ;;  %v1770_v57 = vadd.f32 -1.4531521, %v1766_v53 }
 0xbbe   :  { %v1775_v61 = vmul.f32 %v10464_v37, %v1771_v56  ;;  %v1769_v13 = vmul.f32 1.0614054, %v10468_v35  ;;  %v10470_v63 = vpop.eup %10469 }
 0xbbf   :  { %v1774_v62 = vmul.f32 %v10466_v39, %v1770_v57  ;;  %v1768_v50 = vmul.f32 1.0614054, %v10470_v63  ;;  %v10472_v56 = vpop.eup %10471 }
 0xbc0   :  { %v1779_v17 = vadd.f32 1.4214138, %v1775_v61  ;;  %v1773_v18 = vadd.f32 -1.4531521, %v1769_v13  ;;  %v10474_v57 = vpop.eup %10473 }
 0xbc1   :  { %v1778_v49 = vadd.f32 1.4214138, %v1774_v62  ;;  %v1772_v6 = vadd.f32 -1.4531521, %v1768_v50 }
 0xbc2   :  { %v1783_v0 = vmul.f32 %v10464_v37, %v1779_v17  ;;  %v1777_v51 = vmul.f32 %v10468_v35, %v1773_v18  ;;  %v10476_v18 = vpop.eup %10475 }
 0xbc3   :  { %v1782_v46 = vmul.f32 %v10466_v39, %v1778_v49  ;;  %v1776_v21 = vmul.f32 %v10470_v63, %v1772_v6 }
 0xbc4   :  { %v1787_v59 = vadd.f32 -0.28449672, %v1783_v0  ;;  %v1781_v15 = vadd.f32 1.4214138, %v1777_v51  ;;  %v10478_v51 = vpop.eup %10477 }
 0xbc5   :  { %v1786_v19 = vadd.f32 -0.28449672, %v1782_v46  ;;  %v1780_v32 = vadd.f32 1.4214138, %v1776_v21 }
 0xbc6   :  { %v1791_v9 = vmul.f32 %v10464_v37, %v1787_v59  ;;  %v1785_v27 = vmul.f32 %v10468_v35, %v1781_v15  ;;  %v1749_v59 = vsel %vm1745_vm12, -1.0, %v11112_v55 }
 0xbc7   :  { %v1790_v30 = vmul.f32 %v10466_v39, %v1786_v19  ;;  %v1784_v44 = vmul.f32 %v10470_v63, %v1780_v32 }
 0xbc8   :  { %v1795_v20 = vadd.f32 0.2548296, %v1791_v9  ;;  %v1789_v33 = vadd.f32 -0.28449672, %v1785_v27  ;;  %v1748_v27 = vsel %vm1744_vm13, -1.0, %v11112_v55 }
 0xbc9   :  { %v1794_v40 = vadd.f32 0.2548296, %v1790_v30  ;;  %v1788_v43 = vadd.f32 -0.28449672, %v1784_v44 }
 0xbca   :  { %v1799_v52 = vmul.f32 %v10464_v37, %v1795_v20  ;;  %v1793_v53 = vmul.f32 %v10468_v35, %v1789_v33  ;;  %v1959_v20 = vmul.f32 %v11746_v4, %v11568_v28  ;;  %v2087_v4 = vld [vmem:[#allocation14 + $0x50] sm:$0xff] }
 0xbcb   :  { %v1798_v38 = vmul.f32 %v10466_v39, %v1794_v40  ;;  %v1792_v13 = vmul.f32 %v10470_v63, %v1788_v43  ;;  %v1746_v39 = vsel %vm1742_vm11, -1.0, %v11112_v55  ;;  %v2089_v43 = vld [vmem:[#allocation14 + $0x60] sm:$0xff] }
 0xbcc   :  { %v1819_v16 = vmul.f32 %v10472_v56, %v1799_v52  ;;  %v1797_v61 = vadd.f32 0.2548296, %v1793_v53  ;;  %v1962_v53 = vmul.f32 %v11753_v8, %v11585_v23  ;;  %v2088_v8 = vld [vmem:[#allocation14 + $0x58] sm:$0xff] }
 0xbcd   :  { %v1818_v48 = vmul.f32 %v10474_v57, %v1798_v38  ;;  %v1796_v37 = vadd.f32 0.2548296, %v1792_v13  ;;  %v9776_v38 = vpack.c.bf16 %v2088_v8, %v2087_v4  ;;  %v2090_v57 = vld [vmem:[#allocation14 + $0x68] sm:$0xff]  ;;  %v2288_v8 = vld [vmem:[#allocation7 + $0x48] sm:$0xff] }
 0xbce   :  { %v1823_v62 = vsub.f32 1.0, %v1819_v16  ;;  %v1801_v17 = vmul.f32 %v10468_v35, %v1797_v61  ;;  %v2092_v61 = vld [vmem:[#allocation14 + $0x78] sm:$0xff] }
 0xbcf   :  { %v1822_v49 = vsub.f32 1.0, %v1818_v48  ;;  %v1800_v0 = vmul.f32 %v10470_v63, %v1796_v37  ;;  %v1960_v63 = vmul.f32 %v11743_v2, %v11558_v26  ;;  %v2086_v2 = vld [vmem:[#allocation14 + $0x48] sm:$0xff] }
 0xbd0   :  { %v1827_v54 = vmul.f32 %v1823_v62, %v1747_v45  ;;  %v1821_v50 = vmul.f32 %v10476_v18, %v1801_v17 }
 0xbd1   :  { %v1826_v60 = vmul.f32 %v1822_v49, %v1746_v39  ;;  %v1820_v35 = vmul.f32 %v10478_v51, %v1800_v0 }
 0xbd2   :  { %v1831_v46 = vadd.f32 1.0, %v1827_v54  ;;  %v1825_v1 = vsub.f32 1.0, %v1821_v50 }
 0xbd3   :  { %v1830_v6 = vadd.f32 1.0, %v1826_v60  ;;  %v1824_v19 = vsub.f32 1.0, %v1820_v35 }
 0xbd4   :  { %v1829_v15 = vmul.f32 %v1825_v1, %v1749_v59  ;;  %v1835_v10 = vmul.f32 0.5, %v1831_v46 }
 0xbd5   :  { %v1834_v21 = vmul.f32 0.5, %v1830_v6  ;;  %v1828_v30 = vmul.f32 %v1824_v19, %v1748_v27 }
 0xbd6   :  { %v1833_v9 = vadd.f32 1.0, %v1829_v15  ;;  %v1839_v47 = vmul.f32 %v1835_v10, %v11553_v5 }
 0xbd7   :  { %v1838_v32 = vmul.f32 %v1834_v21, %v11563_v7  ;;  %v1832_v40 = vadd.f32 1.0, %v1828_v30  ;;  %v1961_v7 = vmul.f32 %v11756_v3, %v11598_v34  ;;  %v9780_v34 = vpack.c.bf16 %v2090_v57, %v2089_v43  ;;  %v2091_v3 = vld [vmem:[#allocation14 + $0x70] sm:$0xff]  ;;  %v2289_v43 = vld [vmem:[#allocation7 + $0x50] sm:$0xff]  ;;  %v2290_v57 = vld [vmem:[#allocation7 + $0x58] sm:$0xff] }
 0xbd8   :  { %v1964_v58 = vadd.f32 %v1960_v63, %v1839_v47  ;;  %v1837_v33 = vmul.f32 0.5, %v1833_v9  ;;  %v9784_v13 = vpack.c.bf16 %v2092_v61, %v2091_v3 }
 0xbd9   :  { %v1963_v44 = vadd.f32 %v1959_v20, %v1838_v32  ;;  %v1836_v56 = vmul.f32 0.5, %v1832_v40 }
 0xbda   :  { %v1841_v52 = vmul.f32 %v1837_v33, %v11580_v22  ;;  %v2085_v22 = vld [vmem:[#allocation14 + $0x40] sm:$0xff] }
 0xbdb   :  { %9058 = vmatprep.mubr.msk.f32.mxu0 %vm316_vm2, %v1963_v44  ;;  %v1840_v26 = vmul.f32 %v1836_v56, %v11593_v31  ;;  %v9772_v23 = vpack.c.bf16 %v2086_v2, %v2085_v22 }
 0xbdc   :  { %v1966_v5 = vadd.f32 %v1962_v53, %v1841_v52  ;;  %9059 = vmatmul.mubr.msk.f32.vlgmr.msra.gmra.mrb[20].mxu0 %vm316_vm2, %v1964_v58 }
 0xbdd   :  { %v1965_v28 = vadd.f32 %v1961_v7, %v1840_v26  ;;  %9773 = vmatprep.subr.bf16.mxu1 %v9772_v23 }
 0xbde   :  { %9775 = vmatpush3.bf16.msra.mxu1 %v9772_v23  ;;  %v2287_v23 = vld [vmem:[#allocation7 + $0x40] sm:$0xff] }
 0xbdf   :  { %9061 = vmatprep.mubr.msk.f32.mxu0 %vm316_vm2, %v1965_v28  ;;  %9777 = vmatprep.subr.bf16.mxu1 %v9776_v38 }
 0xbe0   :  { %9062 = vmatmul.mubr.msk.f32.gmra.mrb[22].mxu0 %vm316_vm2, %v1966_v5 }
 0xbe2   :  { %9779 = vmatpush3.bf16.msra.mxu1 %v9776_v38  ;;  %v9788_v38 = vpack.c.bf16 %v2288_v8, %v2287_v23 }
 0xbe3   :  { %9781 = vmatprep.subr.bf16.mxu1 %v9780_v34 }
 0xbe4   :  { %9789 = vmatprep.subr.bf16.mxu0 %v9788_v38 }
 0xbe5   :  { %9791 = vmatpush3.bf16.msra.mxu0 %v9788_v38 }
 0xbe6   :  { %9783 = vmatpush3.bf16.msra.mxu1 %v9780_v34  ;;  %v2422_v34 = vld [vmem:[#allocation10 + $0x48] sm:$0xff] }
 0xbe7   :  { %9785 = vmatprep.subr.bf16.mxu1 %v9784_v13 }
 0xbea   :  { %9787 = vmatpush3.bf16.msra.mxu1 %v9784_v13 }
 0xcaf   :  { %v9060_v16 = vpop.f32.mrb[20].mxu0 }
 0xcb0   :  { %2070 = vrot.lane.b32.xlu1 %v9060_v16, %s11113_s2  ;;  %v2045_v31 = vpop.f32.mrb[21].mxu0  ;;  %v9792_v16 = vpack.c.bf16 %v2290_v57, %v2289_v43 }
 0xcb1   :  { %2068 = vrot.lane.b32.xlu0 %v2045_v31, %s11113_s2  ;;  %v2421_v31 = vld [vmem:[#allocation10 + $0x40] sm:$0xff] }
 0xcb2   :  { %9793 = vmatprep.subr.bf16.mxu0 %v9792_v16  ;;  %v9796_v3 = vpack.c.bf16 %v2422_v34, %v2421_v31 }
 0xcb3   :  { %v9063_v48 = vpop.f32.mrb[22].mxu0  ;;  %9795 = vmatpush3.bf16.msra.mxu0 %v9792_v16 }
 0xcb4   :  { %2074 = vrot.lane.b32.xlu1 %v9063_v48, %s11113_s2  ;;  %v2055_v62 = vpop.f32.mrb[23].mxu0  ;;  %9797 = vmatprep.subr.bf16.mxu0 %v9796_v3 }
 0xcb5   :  { %2072 = vrot.lane.b32.xlu0 %v2055_v62, %s11113_s2 }
 0xd22   :  { %v2071_v17 = vpop.permute.xlu1 %2070 }
 0xd23   :  { %v2081_v18 = vmul.f32 %v2071_v17, %v11708_v25  ;;  %v2069_v45 = vpop.permute.xlu0 %2068 }
 0xd24   :  { %v2080_v49 = vmul.f32 %v2069_v45, %v11710_v24 }
 0xd25   :  { %2107 = vrot.lane.b32.xlu1 %v2081_v18, %s11113_s2 }
 0xd26   :  { %2105 = vrot.lane.b32.xlu0 %v2080_v49, %s11113_s2  ;;  %v2075_v37 = vpop.permute.xlu1 %2074 }
 0xd27   :  { %v2083_v54 = vmul.f32 %v2075_v37, %v11722_v41  ;;  %v2073_v39 = vpop.permute.xlu0 %2072  ;;  %v8179_v41 = vld [vmem:[#allocation16 + $0x1] ss:$0 sm:$0xff] }
 0xd28   :  { %v2082_v50 = vmul.f32 %v2073_v39, %v11724_v42 }
 0xd29   :  { %2111 = vrot.lane.b32.xlu1 %v2083_v54, %s11113_s2 }
 0xd2a   :  { %2109 = vrot.lane.b32.xlu0 %v2082_v50, %s11113_s2 }
 0xd97   :  { %v2108_v0 = vpop.permute.xlu1 %2107 }
 0xd98   :  { %v2106_v60 = vpop.permute.xlu0 %2105 }
 0xd99   :  { %9080 = vmatprep.mubr.msk.f32.mxu1 %vm1162_vm9, %v2106_v60 }
 0xd9a   :  { %9081 = vmatmul.mubr.msk.f32.vlgmr.msra.gmra.mrb[24].mxu1 %vm1162_vm9, %v2108_v0  ;;  %v8185_v0 = vld [vmem:[%s13055_s9 + $0x2] ss:$0 sm:$0xff] }
 0xd9b   :  { %v2112_v24 = vpop.permute.xlu1 %2111 }
 0xd9c   :  { %v2110_v25 = vpop.permute.xlu0 %2109 }
 0xd9d   :  { %9083 = vmatprep.mubr.msk.f32.mxu1 %vm1162_vm9, %v2110_v25 }
 0xd9e   :  { %9084 = vmatmul.mubr.msk.f32.gmra.mrb[26].mxu1 %vm1162_vm9, %v2112_v24 }
 0xe6d   :  { %v9082_v51 = vpop.f32.mrb[24].mxu1 }
 0xe6e   :  { %v2193_v46 = vadd.f32 %v9082_v51, %v8179_v41  ;;  %v2187_v42 = vpop.f32.mrb[25].mxu1 }
 0xe6f   :  { %v2188_v1 = vadd.f32 %v8179_v41, %v2187_v42 }
 0xe70   :  { %v11800_v6 = vadd.f32 %v2193_v46, %v11624_v11  ;;  %v8187_v46 = vld [vmem:[%s13017_s4 + $0x2] ss:$0 sm:$0xff] }
 0xe71   :  { %v11803_v59 = vadd.f32 %v2188_v1, %v11627_v14  ;;  %v9085_v15 = vpop.f32.mrb[26].mxu1  ;;  %v2423_v1 = vld [vmem:[#allocation10 + $0x50] sm:$0xff] }
 0xe72   :  { %v2213_v35 = vsel %vm316_vm2, %v11800_v6, 0.0  ;;  %v2197_v19 = vpop.f32.mrb[27].mxu1  ;;  %v2203_v21 = vadd.f32 %v9085_v15, %v8179_v41 }
 0xe73   :  { %2214 = vadd.xlane.f32.xlu1 %v2213_v35  ;;  %v2210_v10 = vsel %vm316_vm2, %v11803_v59, 0.0  ;;  %v2198_v9 = vadd.f32 %v8179_v41, %v2197_v19  ;;  %v2424_v35 = vld [vmem:[#allocation10 + $0x58] sm:$0xff] }
 0xe74   :  { %2211 = vadd.xlane.f32.xlu0 %v2210_v10  ;;  %v11813_v11 = vadd.f32 %v2203_v21, %v11637_v12  ;;  %v9800_v21 = vpack.c.bf16 %v2424_v35, %v2423_v1 }
 0xe75   :  { %v11810_v27 = vadd.f32 %v2198_v9, %v11634_v29 }
 0xe76   :  { %v2219_v47 = vsel %vm316_vm2, %v11813_v11, 0.0 }
 0xe77   :  { %v2216_v14 = vsel %vm316_vm2, %v11810_v27, 0.0 }
 0xe78   :  { %2217 = vadd.xlane.f32.xlu0 %v2216_v14 }
 0xe7c   :  { %2220 = vadd.xlane.f32.xlu0 %v2219_v47 }
 0xf00   :  { %v2215_v63 = vpop.xlane.xlu1 %2214 }
 0xf01   :  { %v2223_v30 = vmul.f32 0.03125, %v2215_v63  ;;  %v2212_v32 = vpop.xlane.xlu0 %2211 }
 0xf02   :  { %v2222_v20 = vmul.f32 0.03125, %v2212_v32 }
 0xf03   :  { %v2227_v58 = vsub.f32 %v11800_v6, %v2223_v30 }
 0xf04   :  { %v2226_v29 = vsub.f32 %v11803_v59, %v2222_v20 }
 0xf05   :  { %v2231_v33 = vmul.f32 %v2227_v58, %v2227_v58  ;;  %v2218_v12 = vpop.xlane.xlu0 %2217 }
 0xf06   :  { %v2230_v40 = vmul.f32 %v2226_v29, %v2226_v29  ;;  %v2224_v52 = vmul.f32 0.03125, %v2218_v12  ;;  %v8193_v12 = vld [vmem:[#allocation11 + $0x2] ss:$0 sm:$0xff] }
 0xf07   :  { %v2237_v44 = vsel %vm316_vm2, %v2231_v33, 0.0 }
 0xf08   :  { %2238 = vadd.xlane.f32.xlu1 %v2237_v44  ;;  %v2234_v53 = vsel %vm316_vm2, %v2230_v40, 0.0  ;;  %v2228_v56 = vsub.f32 %v11810_v27, %v2224_v52 }
 0xf09   :  { %2235 = vadd.xlane.f32.xlu0 %v2234_v53  ;;  %v2221_v5 = vpop.xlane.xlu0 %2220 }
 0xf0a   :  { %v2225_v26 = vmul.f32 0.03125, %v2221_v5  ;;  %v2232_v7 = vmul.f32 %v2228_v56, %v2228_v56 }
 0xf0c   :  { %v2229_v28 = vsub.f32 %v11813_v11, %v2225_v26  ;;  %v2240_v22 = vsel %vm316_vm2, %v2232_v7, 0.0 }
 0xf0d   :  { %2241 = vadd.xlane.f32.xlu0 %v2240_v22 }
 0xf0e   :  { %v2233_v2 = vmul.f32 %v2229_v28, %v2229_v28 }
 0xf10   :  { %v2243_v4 = vsel %vm316_vm2, %v2233_v2, 0.0 }
 0xf11   :  { %2244 = vadd.xlane.f32.xlu1 %v2243_v4 }
 0xf95   :  { %v2239_v61 = vpop.xlane.xlu1 %2238 }
 0xf96   :  { %v2247_v48 = vmul.f32 0.03125, %v2239_v61  ;;  %v2236_v13 = vpop.xlane.xlu0 %2235 }
 0xf97   :  { %v2246_v62 = vmul.f32 0.03125, %v2236_v13 }
 0xf98   :  { %v2251_v17 = vadd.f32 1e-05, %v2247_v48 }
 0xf99   :  { %v2250_v18 = vadd.f32 1e-05, %v2246_v62 }
 0xf9a   :  { %10479 = vrsqrt.f32 %v2251_v17  ;;  %v2242_v45 = vpop.xlane.xlu0 %2241 }
 0xf9b   :  { %10481 = vrsqrt.f32 %v2250_v18  ;;  %v2248_v49 = vmul.f32 0.03125, %v2242_v45  ;;  %v8198_v18 = vld [vmem:[#allocation13 + $0x2] ss:$0 sm:$0xff] }
 0xf9d   :  { %v2252_v37 = vadd.f32 1e-05, %v2248_v49 }
 0xf9e   :  { %v2245_v54 = vpop.xlane.xlu1 %2244 }
 0xf9f   :  { %10483 = vrsqrt.f32 %v2252_v37  ;;  %v2249_v39 = vmul.f32 0.03125, %v2245_v54  ;;  %v8200_v54 = vld [vmem:[%s13023_s10 + $0x2] ss:$0 sm:$0xff] }
 0xfa1   :  { %v2253_v50 = vadd.f32 1e-05, %v2249_v39 }
 0xfa3   :  { %10485 = vrsqrt.f32 %v2253_v50 }
 0xfa4   :  { %v10480_v60 = vpop.eup %10479 }
 0xfa5   :  { %v10482_v25 = vpop.eup %10481  ;;  %v2259_v24 = vmul.f32 %v10480_v60, %v2227_v58 }
 0xfa6   :  { %v2258_v41 = vmul.f32 %v10482_v25, %v2226_v29 }
 0xfa7   :  { %v2271_v51 = vmul.f32 %v8185_v0, %v2259_v24 }
 0xfa8   :  { %v2270_v42 = vmul.f32 %v8185_v0, %v2258_v41 }
 0xfa9   :  { %v10484_v10 = vpop.eup %10483  ;;  %v2283_v19 = vadd.f32 %v8187_v46, %v2271_v51 }
 0xfaa   :  { %v2282_v15 = vadd.f32 %v8187_v46, %v2270_v42  ;;  %v2260_v9 = vmul.f32 %v10484_v10, %v2228_v56 }
 0xfac   :  { %9094 = vmatprep.mubr.msk.f32.mxu0 %vm316_vm2, %v2282_v15  ;;  %v2272_v14 = vmul.f32 %v8185_v0, %v2260_v9 }
 0xfad   :  { %9095 = vmatmul.mubr.msk.f32.vlgmr.msra.gmra.mrb[24].mxu0 %vm316_vm2, %v2283_v19  ;;  %v10486_v47 = vpop.eup %10485 }
 0xfae   :  { %9799 = vmatpush3.bf16.msra.mxu0 %v9796_v3  ;;  %v2284_v63 = vadd.f32 %v8187_v46, %v2272_v14  ;;  %v2261_v30 = vmul.f32 %v10486_v47, %v2229_v28 }
 0xfaf   :  { %9801 = vmatprep.subr.bf16.mxu0 %v9800_v21 }
 0xfb0   :  { %9097 = vmatprep.mubr.msk.f32.mxu0 %vm316_vm2, %v2284_v63  ;;  %v2273_v32 = vmul.f32 %v8185_v0, %v2261_v30 }
 0xfb2   :  { %9803 = vmatpush3.bf16.msra.mxu0 %v9800_v21  ;;  %v2285_v20 = vadd.f32 %v8187_v46, %v2273_v32 }
 0xfb4   :  { %9098 = vmatmul.mubr.msk.f32.gmra.mrb[26].mxu0 %vm316_vm2, %v2285_v20 }
 0xfb5   :  { %9108 = vmatprep.mubr.msk.f32.mxu0 %vm316_vm2, %v2282_v15 }
 0xfb8   :  { %9109 = vmatmul.mubr.msk.f32.vlgmr.msra.gmra.mrb[28].mxu0 %vm316_vm2, %v2283_v19  ;;  %v8188_v19 = vld [vmem:[#allocation8 + $0x2] ss:$0 sm:$0xff] }
 0xfb9   :  { %9111 = vmatprep.mubr.msk.f32.mxu0 %vm316_vm2, %v2284_v63 }
 0xfbc   :  { %9112 = vmatmul.mubr.msk.f32.gmra.mrb[30].mxu0 %vm316_vm2, %v2285_v20 }
0x1080   :  { %v11841_v58 = vpop.f32.mrb[24].mxu0 }
0x1081   :  { %v11843_v29 = vpop.f32.mrb[25].mxu0  ;;  %v2383_v21 = vadd.f32 %v11841_v58, %v8188_v19 }
0x1082   :  { %v2378_v9 = vadd.f32 %v8188_v19, %v11843_v29 }
0x1083   :  { %v2397_v14 = vsub.f32 0.0, %v2383_v21 }
0x1084   :  { %v2396_v47 = vsub.f32 0.0, %v2378_v9 }
0x1085   :  { %v2402_v63 = vmul.f32 1.442695, %v2397_v14 }
0x1086   :  { %v2400_v32 = vmul.f32 1.442695, %v2396_v47 }
0x1087   :  { %v11845_v33 = vpop.f32.mrb[26].mxu0 }
0x1088   :  { %v11847_v40 = vpop.f32.mrb[27].mxu0  ;;  %v2393_v30 = vadd.f32 %v11845_v33, %v8188_v19 }
0x1089   :  { %v2388_v20 = vadd.f32 %v8188_v19, %v11847_v40  ;;  %v2570_v19 = vld [vmem:[#allocation17 + $0x58] sm:$0xff] }
0x108b   :  { %v9110_v44 = vpop.f32.mrb[28].mxu0 }
0x108c   :  { %v2505_v52 = vadd.f32 %v9110_v44, %v8193_v12  ;;  %v2499_v53 = vpop.f32.mrb[29].mxu0  ;;  %v2398_v44 = vsub.f32 0.0, %v2388_v20 }
0x108d   :  { %v2500_v56 = vadd.f32 %v8193_v12, %v2499_v53 }
0x108e   :  { %v2519_v5 = vsub.f32 0.0, %v2505_v52  ;;  %v2404_v53 = vmul.f32 1.442695, %v2398_v44 }
0x108f   :  { %v2518_v26 = vsub.f32 0.0, %v2500_v56  ;;  %v9113_v7 = vpop.f32.mrb[30].mxu0 }
0x1090   :  { %v2524_v28 = vmul.f32 1.442695, %v2519_v5  ;;  %v2515_v22 = vadd.f32 %v9113_v7, %v8193_v12  ;;  %v2509_v2 = vpop.f32.mrb[31].mxu0 }
0x1091   :  { %v2522_v4 = vmul.f32 1.442695, %v2518_v26  ;;  %v2510_v23 = vadd.f32 %v8193_v12, %v2509_v2  ;;  %v2399_v12 = vsub.f32 0.0, %v2393_v30 }
0x1092   :  { %v2521_v8 = vsub.f32 0.0, %v2515_v22  ;;  %10487 = vpow2.f32 %v2524_v28 }
0x1093   :  { %v2520_v38 = vsub.f32 0.0, %v2510_v23  ;;  %10489 = vpow2.f32 %v2522_v4 }
0x1094   :  { %v2528_v43 = vmul.f32 1.442695, %v2521_v8 }
0x1095   :  { %v2526_v57 = vmul.f32 1.442695, %v2520_v38 }
0x1096   :  { %10491 = vpow2.f32 %v2528_v43 }
0x1097   :  { %10493 = vpow2.f32 %v2526_v57 }
0x109c   :  { %v10488_v16 = vpop.eup %10487 }
0x109d   :  { %v10490_v31 = vpop.eup %10489  ;;  %v2531_v34 = vadd.f32 1.0, %v10488_v16 }
0x109e   :  { %v2530_v61 = vadd.f32 1.0, %v10490_v31 }
0x109f   :  { %10495 = vrcp.f32 %v2531_v34 }
0x10a0   :  { %v10492_v3 = vpop.eup %10491  ;;  %10497 = vrcp.f32 %v2530_v61 }
0x10a1   :  { %v10494_v48 = vpop.eup %10493  ;;  %v2533_v13 = vadd.f32 1.0, %v10492_v3 }
0x10a2   :  { %v2532_v62 = vadd.f32 1.0, %v10494_v48 }
0x10a3   :  { %10499 = vrcp.f32 %v2533_v13 }
0x10a4   :  { %10501 = vrcp.f32 %v2532_v62 }
0x10a5   :  { %10503 = vpow2.f32 %v2402_v63 }
0x10a6   :  { %10505 = vpow2.f32 %v2400_v32 }
0x10a9   :  { %v10496_v17 = vpop.eup %10495 }
0x10aa   :  { %v10498_v45 = vpop.eup %10497  ;;  %v2539_v49 = vmul.f32 %v10496_v17, %v2505_v52  ;;  %v2406_v52 = vmul.f32 1.442695, %v2399_v12 }
0x10ab   :  { %v2538_v39 = vmul.f32 %v10498_v45, %v2500_v56 }
0x10ac   :  { %v2551_v60 = vmul.f32 %v8198_v18, %v2539_v49  ;;  %10507 = vpow2.f32 %v2406_v52 }
0x10ad   :  { %v10500_v37 = vpop.eup %10499  ;;  %v2550_v25 = vmul.f32 %v8198_v18, %v2538_v39  ;;  %10509 = vpow2.f32 %v2404_v53 }
0x10ae   :  { %v10502_v50 = vpop.eup %10501  ;;  %v2541_v0 = vmul.f32 %v10500_v37, %v2515_v22  ;;  %v11852_v41 = vadd.f32 %v8200_v54, %v2551_v60 }
0x10af   :  { %v2540_v24 = vmul.f32 %v10502_v50, %v2510_v23  ;;  %v2562_v46 = vadd.f32 %v8200_v54, %v2550_v25  ;;  %v10504_v56 = vpop.eup %10503 }
0x10b0   :  { %v2553_v51 = vmul.f32 %v8198_v18, %v2541_v0  ;;  %v10506_v58 = vpop.eup %10505  ;;  %v2409_v5 = vadd.f32 1.0, %v10504_v56 }
0x10b1   :  { %v2552_v42 = vmul.f32 %v8198_v18, %v2540_v24  ;;  %9122 = vmatprep.mubr.msk.f32.mxu1 %vm682_vm3, %v2562_v46  ;;  %v10247_v15 = vpack.i.bf16 %v11852_v41, %v2562_v46  ;;  %v2408_v29 = vadd.f32 1.0, %v10506_v58 }
0x10b2   :  { %v11854_v1 = vadd.f32 %v8200_v54, %v2553_v51  ;;  %10511 = vrcp.f32 %v2409_v5 }
0x10b3   :  { %v11856_v35 = vadd.f32 %v8200_v54, %v2552_v42  ;;  %10248 = vrot.lane.b32.xlu0 %v10247_v15, %s11109_s24  ;;  %10513 = vrcp.f32 %v2408_v29 }
0x10b5   :  { %v10252_v10 = vpack.i.bf16 %v11854_v1, %v11856_v35 }
0x10b6   :  { %v10508_v26 = vpop.eup %10507 }
0x10b7   :  { %10253 = vrot.lane.b32.xlu1 %v10252_v10, %s11109_s24  ;;  %2792 = vrot.lane.b32.xlu0 %v2562_v46, %s11110_s28  ;;  %v10510_v7 = vpop.eup %10509  ;;  %v2411_v33 = vadd.f32 1.0, %v10508_v26  ;;  %v2567_v46 = vld [vmem:[#allocation17 + $0x40] sm:$0xff] }
0x10b8   :  { %v2410_v28 = vadd.f32 1.0, %v10510_v7 }
0x10b9   :  { %10515 = vrcp.f32 %v2411_v33 }
0x10ba   :  { %10517 = vrcp.f32 %v2410_v28 }
0x10bb   :  { %10258 = vrot.lane.b32.xlu1 %v10247_v15, %s11111_s0  ;;  %2796 = vrot.lane.b32.xlu0 %v11856_v35, %s11110_s28 }
0x10bc   :  { %v10512_v57 = vpop.eup %10511 }
0x10bd   :  { %v10514_v31 = vpop.eup %10513  ;;  %v11884_v48 = vmul.f32 %v10512_v57, %v2383_v21 }
0x10be   :  { %v11886_v13 = vmul.f32 %v10514_v31, %v2378_v9  ;;  %v2569_v9 = vld [vmem:[#allocation17 + $0x50] sm:$0xff] }
0x10bf   :  { %10263 = vrot.lane.b32.xlu1 %v10252_v10, %s11111_s0 }
0x10c0   :  { %v9828_v54 = vpack.c.bf16 %v11884_v48, %v11886_v13 }
0x10c3   :  { %2794 = vrot.lane.b32.xlu1 %v11852_v41, %s11110_s28  ;;  %v10516_v49 = vpop.eup %10515 }
0x10c4   :  { %v10518_v39 = vpop.eup %10517  ;;  %v11898_v50 = vmul.f32 %v10516_v49, %v2393_v30 }
0x10c5   :  { %v11900_v60 = vmul.f32 %v10518_v39, %v2388_v20 }
0x10c7   :  { %2798 = vrot.lane.b32.xlu1 %v11854_v1, %s11110_s28  ;;  %v9832_v0 = vpack.c.bf16 %v11898_v50, %v11900_v60 }
0x1125   :  { %v10249_v22 = vpop.permute.xlu0 %10248 }
0x1126   :  { %v10251_v40 = vunpack.i.h.bf16 %v10249_v22  ;;  %v10250_v2 = vunpack.i.l.bf16 %v10249_v22 }
0x1128   :  { %v9804_v23 = vpack.c.bf16 %v10251_v40, %v10250_v2 }
0x1129   :  { %v10254_v4 = vpop.permute.xlu1 %10253  ;;  %v2793_v43 = vpop.permute.xlu0 %2792 }
0x112a   :  { %v10256_v8 = vunpack.i.h.bf16 %v10254_v4  ;;  %v10255_v38 = vunpack.i.l.bf16 %v10254_v4  ;;  %9806 = vmatprep.subr.msk.bf16.mxu1 %vm11481_vm4, %v9804_v23  ;;  %9136 = vmatprep.mubr.msk.f32.mxu0 %vm682_vm3, %v2793_v43 }
0x112b   :  { %9809 = vmatpush3.bf16.xpose.msk.msra.mxu1 %vm11481_vm4, %v9804_v23 }
0x112c   :  { %v9810_v16 = vpack.c.bf16 %v10256_v8, %v10255_v38 }
0x112d   :  { %v10259_v34 = vpop.permute.xlu1 %10258  ;;  %v2797_v24 = vpop.permute.xlu0 %2796 }
0x112e   :  { %v10261_v3 = vunpack.i.h.bf16 %v10259_v34  ;;  %v10260_v61 = vunpack.i.l.bf16 %v10259_v34  ;;  %9812 = vmatprep.subr.msk.bf16.mxu1 %vm11481_vm4, %v9810_v16 }
0x1130   :  { %v9816_v62 = vpack.c.bf16 %v10261_v3, %v10260_v61 }
0x1131   :  { %v10264_v17 = vpop.permute.xlu1 %10263 }
0x1132   :  { %v10266_v18 = vunpack.i.h.bf16 %v10264_v17  ;;  %v10265_v45 = vunpack.i.l.bf16 %v10264_v17  ;;  %9818 = vmatprep.subr.msk.bf16.mxu0 %vm11481_vm4, %v9816_v62 }
0x1133   :  { %9821 = vmatpush3.bf16.xpose.msk.msra.mxu0 %vm11481_vm4, %v9816_v62  ;;  %9815 = vmatpush3.bf16.xpose.msk.msra.mxu1 %vm11481_vm4, %v9810_v16 }
0x1134   :  { %v9822_v37 = vpack.c.bf16 %v10266_v18, %v10265_v45  ;;  %9829 = vmatprep.subr.bf16.mxu1 %v9828_v54 }
0x1135   :  { %v2795_v25 = vpop.permute.xlu1 %2794 }
0x1136   :  { %9824 = vmatprep.subr.msk.bf16.mxu0 %vm11481_vm4, %v9822_v37 }
0x1139   :  { %v2799_v51 = vpop.permute.xlu1 %2798 }
0x113a   :  { %9123 = vmatmul.mubr.msk.f32.vlgmr.msra.gmra.mrb[28].mxu1 %vm682_vm3, %v11852_v41  ;;  %v2568_v41 = vld [vmem:[#allocation17 + $0x48] sm:$0xff] }
0x113b   :  { %9827 = vmatpush3.bf16.xpose.msk.msra.mxu0 %vm11481_vm4, %v9822_v37  ;;  %9125 = vmatprep.mubr.msk.f32.mxu1 %vm682_vm3, %v11856_v35 }
0x113c   :  { %9831 = vmatpush3.bf16.msra.mxu1 %v9828_v54 }
0x113d   :  { %9833 = vmatprep.subr.bf16.mxu1 %v9832_v0 }
0x113e   :  { %9126 = vmatmul.mubr.msk.f32.gmra.mrb[30].mxu1 %vm682_vm3, %v11854_v1 }
0x1140   :  { %9835 = vmatpush3.bf16.msra.mxu1 %v9832_v0 }
0x1142   :  { %9137 = vmatmul.mubr.msk.f32.vlgmr.msra.gmra.mrb[32].mxu0 %vm682_vm3, %v2795_v25 }
0x1143   :  { %9139 = vmatprep.mubr.msk.f32.mxu0 %vm682_vm3, %v2797_v24 }
0x1146   :  { %9140 = vmatmul.mubr.msk.f32.gmra.mrb[34].mxu0 %vm682_vm3, %v2799_v51 }
0x120d   :  { %v9124_v42 = vpop.f32.mrb[28].mxu1 }
0x120e   :  { %v2671_v15 = vadd.f32 %v9124_v42, %v2568_v41  ;;  %v2665_v35 = vpop.f32.mrb[29].mxu1 }
0x120f   :  { %v2666_v10 = vadd.f32 %v2665_v35, %v2567_v46 }
0x1210   :  { %v8210_v21 = vadd.f32 -0.70710677, %v2671_v15 }
0x1211   :  { %v8209_v14 = vadd.f32 -0.70710677, %v2666_v10  ;;  %v9127_v1 = vpop.f32.mrb[30].mxu1 }
0x1212   :  { %v11915_v47 = vmul.f32 0.7978846, %v8210_v21  ;;  %v2681_v63 = vadd.f32 %v9127_v1, %v2570_v19  ;;  %v2675_v30 = vpop.f32.mrb[31].mxu1 }
0x1213   :  { %v11917_v32 = vmul.f32 0.7978846, %v8209_v14  ;;  %v2676_v20 = vadd.f32 %v2675_v30, %v2569_v9 }
0x1214   :  { %v2701_v44 = vand.u32 2147483647, %v11915_v47  ;;  %v8212_v52 = vadd.f32 -0.70710677, %v2681_v63  ;;  %vm2693_vm14 = vcmp.lt.f32.partialorder %v11915_v47, 0.0 }
0x1215   :  { %v11919_v12 = vpop.f32.mrb[32].mxu0  ;;  %v2700_v56 = vand.u32 2147483647, %v11917_v32  ;;  %v8211_v58 = vadd.f32 -0.70710677, %v2676_v20  ;;  %vm2692_vm15 = vcmp.lt.f32.partialorder %v11917_v32, 0.0 }
0x1216   :  { %v11922_v53 = vpop.f32.mrb[33].mxu0  ;;  %v2705_v5 = vmul.f32 0.3275911, %v2701_v44  ;;  %v11925_v29 = vmul.f32 0.7978846, %v8212_v52  ;;  %v2753_v57 = vsub.f32 0.0, %v2701_v44 }
0x1217   :  { %v2704_v26 = vmul.f32 0.3275911, %v2700_v56  ;;  %v11927_v7 = vmul.f32 0.7978846, %v8211_v58  ;;  %v2752_v16 = vsub.f32 0.0, %v2700_v56 }
0x1218   :  { %v2709_v28 = vadd.f32 1.0, %v2705_v5  ;;  %v2703_v22 = vand.u32 2147483647, %v11925_v29  ;;  %v2757_v34 = vmul.f32 %v2753_v57, %v2701_v44  ;;  %vm2695_vm0 = vcmp.lt.f32.partialorder %v11925_v29, 0.0  ;;  %v11946_v29 = vld [vmem:[%s13027_s14 + $0x8] sm:$0xff] }
0x1219   :  { %v11929_v33 = vpop.f32.mrb[34].mxu0  ;;  %v2708_v2 = vadd.f32 1.0, %v2704_v26  ;;  %v2702_v23 = vand.u32 2147483647, %v11927_v7  ;;  %v2756_v17 = vmul.f32 %v2752_v16, %v2700_v56  ;;  %vm2694_vm1 = vcmp.lt.f32.partialorder %v11927_v7, 0.0 }
0x121a   :  { %v11932_v40 = vpop.f32.mrb[35].mxu0  ;;  %10519 = vrcp.f32 %v2709_v28  ;;  %v2707_v4 = vmul.f32 0.3275911, %v2703_v22  ;;  %v2755_v3 = vsub.f32 0.0, %v2703_v22  ;;  %v2762_v54 = vmul.f32 1.442695, %v2757_v34 }
0x121b   :  { %10521 = vrcp.f32 %v2708_v2  ;;  %v2706_v38 = vmul.f32 0.3275911, %v2702_v23  ;;  %v2754_v49 = vsub.f32 0.0, %v2702_v23  ;;  %v2760_v24 = vmul.f32 1.442695, %v2756_v17 }
0x121c   :  { %v2711_v8 = vadd.f32 1.0, %v2707_v4  ;;  %v2759_v0 = vmul.f32 %v2755_v3, %v2703_v22 }
0x121d   :  { %v2710_v43 = vadd.f32 1.0, %v2706_v38  ;;  %v2758_v35 = vmul.f32 %v2754_v49, %v2702_v23 }
0x121e   :  { %10523 = vrcp.f32 %v2711_v8  ;;  %v2766_v19 = vmul.f32 1.442695, %v2759_v0 }
0x121f   :  { %10525 = vrcp.f32 %v2710_v43  ;;  %v2764_v44 = vmul.f32 1.442695, %v2758_v35  ;;  %v2699_v35 = vsel %vm2695_vm0, -1.0, %v11112_v55 }
0x1220   :  { %10527 = vpow2.f32 %v2762_v54 }
0x1221   :  { %10529 = vpow2.f32 %v2760_v24 }
0x1222   :  { %10531 = vpow2.f32 %v2766_v19 }
0x1223   :  { %10533 = vpow2.f32 %v2764_v44 }
0x1224   :  { %v10520_v31 = vpop.eup %10519 }
0x1225   :  { %v10522_v61 = vpop.eup %10521  ;;  %v2717_v62 = vmul.f32 1.0614054, %v10520_v31 }
0x1226   :  { %v2716_v18 = vmul.f32 1.0614054, %v10522_v61 }
0x1227   :  { %v2721_v45 = vadd.f32 -1.4531521, %v2717_v62 }
0x1228   :  { %v10524_v37 = vpop.eup %10523  ;;  %v2720_v39 = vadd.f32 -1.4531521, %v2716_v18 }
0x1229   :  { %v2725_v25 = vmul.f32 %v10520_v31, %v2721_v45  ;;  %v2719_v51 = vmul.f32 1.0614054, %v10524_v37  ;;  %v10526_v46 = vpop.eup %10525 }
0x122a   :  { %v2724_v41 = vmul.f32 %v10522_v61, %v2720_v39  ;;  %v2718_v21 = vmul.f32 1.0614054, %v10526_v46  ;;  %v10528_v43 = vpop.eup %10527  ;;  %v2697_v39 = vsel %vm2693_vm14, -1.0, %v11112_v55 }
0x122b   :  { %v2729_v42 = vadd.f32 1.4214138, %v2725_v25  ;;  %v2723_v15 = vadd.f32 -1.4531521, %v2719_v51  ;;  %v10530_v34 = vpop.eup %10529 }
0x122c   :  { %v2728_v10 = vadd.f32 1.4214138, %v2724_v41  ;;  %v2722_v63 = vadd.f32 -1.4531521, %v2718_v21  ;;  %v10532_v54 = vpop.eup %10531 }
0x122d   :  { %v2733_v9 = vmul.f32 %v10520_v31, %v2729_v42  ;;  %v2727_v14 = vmul.f32 %v10524_v37, %v2723_v15  ;;  %v10534_v41 = vpop.eup %10533 }
0x122e   :  { %v2732_v1 = vmul.f32 %v10522_v61, %v2728_v10  ;;  %v2726_v56 = vmul.f32 %v10526_v46, %v2722_v63  ;;  %v11952_v63 = vld [vmem:[%s13028_s15 + $0x8] sm:$0xff] }
0x122f   :  { %v2737_v30 = vadd.f32 -0.28449672, %v2733_v9  ;;  %v2731_v20 = vadd.f32 1.4214138, %v2727_v14  ;;  %v2910_v7 = vmul.f32 %v11952_v63, %v11919_v12 }
0x1230   :  { %v2736_v52 = vadd.f32 -0.28449672, %v2732_v1  ;;  %v2730_v28 = vadd.f32 1.4214138, %v2726_v56  ;;  %v2698_v1 = vsel %vm2694_vm1, -1.0, %v11112_v55 }
0x1231   :  { %v2741_v58 = vmul.f32 %v10520_v31, %v2737_v30  ;;  %v2735_v5 = vmul.f32 %v10524_v37, %v2731_v20  ;;  %v11959_v20 = vld [vmem:[%s13027_s14] sm:$0xff] }
0x1232   :  { %v2740_v26 = vmul.f32 %v10522_v61, %v2736_v52  ;;  %v2734_v23 = vmul.f32 %v10526_v46, %v2730_v28  ;;  %v11965_v52 = vld [vmem:[%s13028_s15] sm:$0xff]  ;;  %v11972_v28 = vld [vmem:[%s13027_s14 + $0x18] sm:$0xff] }
0x1233   :  { %v2745_v22 = vadd.f32 0.2548296, %v2741_v58  ;;  %v2739_v2 = vadd.f32 -0.28449672, %v2735_v5  ;;  %v2909_v56 = vmul.f32 %v11965_v52, %v11922_v53 }
0x1234   :  { %v2744_v4 = vadd.f32 0.2548296, %v2740_v26  ;;  %v2738_v16 = vadd.f32 -0.28449672, %v2734_v23 }
0x1235   :  { %v2749_v8 = vmul.f32 %v10520_v31, %v2745_v22  ;;  %v2743_v38 = vmul.f32 %v10524_v37, %v2739_v2  ;;  %v11978_v2 = vld [vmem:[%s13028_s15 + $0x18] sm:$0xff] }
0x1236   :  { %v2748_v57 = vmul.f32 %v10522_v61, %v2744_v4  ;;  %v2742_v18 = vmul.f32 %v10526_v46, %v2738_v16  ;;  %v2696_v61 = vsel %vm2692_vm15, -1.0, %v11112_v55  ;;  %v2912_v4 = vmul.f32 %v11978_v2, %v11929_v33  ;;  %v3035_v16 = vld [vmem:[#allocation14 + $0x80] sm:$0xff] }
0x1237   :  { %v2769_v3 = vmul.f32 %v10528_v43, %v2749_v8  ;;  %v2747_v62 = vadd.f32 0.2548296, %v2743_v38  ;;  %v11987_v8 = vld [vmem:[%s13027_s14 + $0x10] sm:$0xff] }
0x1238   :  { %v2768_v17 = vmul.f32 %v10530_v34, %v2748_v57  ;;  %v2746_v31 = vadd.f32 0.2548296, %v2742_v18  ;;  %v11993_v43 = vld [vmem:[%s13028_s15 + $0x10] sm:$0xff]  ;;  %v3036_v34 = vld [vmem:[#allocation14 + $0x88] sm:$0xff] }
0x1239   :  { %v2773_v45 = vsub.f32 1.0, %v2769_v3  ;;  %v2751_v49 = vmul.f32 %v10524_v37, %v2747_v62  ;;  %v2911_v33 = vmul.f32 %v11993_v43, %v11932_v40  ;;  %v3037_v3 = vld [vmem:[#allocation14 + $0x90] sm:$0xff]  ;;  %v9836_v62 = vpack.c.bf16 %v3036_v34, %v3035_v16 }
0x123a   :  { %v2772_v0 = vsub.f32 1.0, %v2768_v17  ;;  %v2750_v51 = vmul.f32 %v10526_v46, %v2746_v31  ;;  %v3038_v17 = vld [vmem:[#allocation14 + $0x98] sm:$0xff] }
0x123b   :  { %v2777_v25 = vmul.f32 %v2773_v45, %v2697_v39  ;;  %v2771_v24 = vmul.f32 %v10532_v54, %v2751_v49  ;;  %v9840_v18 = vpack.c.bf16 %v3038_v17, %v3037_v3  ;;  %v3039_v45 = vld [vmem:[#allocation14 + $0xa0] sm:$0xff]  ;;  %v3040_v49 = vld [vmem:[#allocation14 + $0xa8] sm:$0xff]  ;;  %9837 = vmatprep.subr.bf16.mxu0 %v9836_v62  ;;  %v3042_v31 = vld [vmem:[#allocation14 + $0xb8] sm:$0xff] }
0x123c   :  { %v2776_v47 = vmul.f32 %v2772_v0, %v2696_v61  ;;  %v2770_v37 = vmul.f32 %v10534_v41, %v2750_v51  ;;  %9839 = vmatpush3.bf16.msra.mxu0 %v9836_v62  ;;  %v9844_v40 = vpack.c.bf16 %v3040_v49, %v3039_v45  ;;  %v3041_v0 = vld [vmem:[#allocation14 + $0xb0] sm:$0xff] }
0x123d   :  { %v2781_v42 = vadd.f32 1.0, %v2777_v25  ;;  %v2775_v32 = vsub.f32 1.0, %v2771_v24  ;;  %9841 = vmatprep.subr.bf16.mxu0 %v9840_v18  ;;  %v9848_v61 = vpack.c.bf16 %v3042_v31, %v3041_v0  ;;  %v3237_v0 = vld [vmem:[#allocation7 + $0x60] sm:$0xff]  ;;  %v3238_v31 = vld [vmem:[#allocation7 + $0x68] sm:$0xff] }
0x123e   :  { %v2780_v15 = vadd.f32 1.0, %v2776_v47  ;;  %v2774_v21 = vsub.f32 1.0, %v2770_v37 }
0x123f   :  { %v2779_v10 = vmul.f32 %v2775_v32, %v2699_v35  ;;  %v2785_v19 = vmul.f32 0.5, %v2781_v42 }
0x1240   :  { %v2784_v9 = vmul.f32 0.5, %v2780_v15  ;;  %v2778_v30 = vmul.f32 %v2774_v21, %v2698_v1  ;;  %9843 = vmatpush3.bf16.msra.mxu0 %v9840_v18 }
0x1241   :  { %v2783_v14 = vadd.f32 1.0, %v2779_v10  ;;  %v2789_v46 = vmul.f32 %v11946_v29, %v2785_v19  ;;  %9845 = vmatprep.subr.bf16.mxu0 %v9844_v40 }
0x1242   :  { %v2788_v44 = vmul.f32 %v11959_v20, %v2784_v9  ;;  %v2782_v26 = vadd.f32 1.0, %v2778_v30 }
0x1243   :  { %v2914_v58 = vadd.f32 %v2910_v7, %v2789_v46  ;;  %v2787_v5 = vmul.f32 0.5, %v2783_v14 }
0x1244   :  { %v2913_v12 = vadd.f32 %v2909_v56, %v2788_v44  ;;  %v2786_v53 = vmul.f32 0.5, %v2782_v26  ;;  %9847 = vmatpush3.bf16.msra.mxu0 %v9844_v40 }
0x1245   :  { %v2791_v22 = vmul.f32 %v11972_v28, %v2787_v5  ;;  %9849 = vmatprep.subr.bf16.mxu0 %v9848_v61 }
0x1246   :  { %9150 = vmatprep.mubr.msk.f32.mxu1 %vm316_vm2, %v2913_v12  ;;  %v2790_v38 = vmul.f32 %v11987_v8, %v2786_v53 }
0x1247   :  { %v2916_v23 = vadd.f32 %v2912_v4, %v2791_v22  ;;  %9151 = vmatmul.mubr.msk.f32.vlgmr.msra.gmra.mrb[32].mxu1 %vm316_vm2, %v2914_v58 }
0x1248   :  { %v2915_v57 = vadd.f32 %v2911_v33, %v2790_v38  ;;  %9851 = vmatpush3.bf16.msra.mxu0 %v9848_v61  ;;  %v3239_v61 = vld [vmem:[#allocation7 + $0x70] sm:$0xff] }
0x124a   :  { %9153 = vmatprep.mubr.msk.f32.mxu1 %vm316_vm2, %v2915_v57 }
0x124b   :  { %9154 = vmatmul.mubr.msk.f32.gmra.mrb[34].mxu1 %vm316_vm2, %v2916_v23 }
0x131a   :  { %v9152_v54 = vpop.f32.mrb[32].mxu1 }
0x131b   :  { %3020 = vrot.lane.b32.xlu1 %v9152_v54, %s11113_s2  ;;  %v2995_v39 = vpop.f32.mrb[33].mxu1 }
0x131c   :  { %3018 = vrot.lane.b32.xlu0 %v2995_v39, %s11113_s2 }
0x131e   :  { %v9155_v25 = vpop.f32.mrb[34].mxu1 }
0x131f   :  { %3024 = vrot.lane.b32.xlu1 %v9155_v25, %s11113_s2  ;;  %v3005_v24 = vpop.f32.mrb[35].mxu1  ;;  %v9852_v25 = vpack.c.bf16 %v3238_v31, %v3237_v0 }
0x1320   :  { %3022 = vrot.lane.b32.xlu0 %v3005_v24, %s11113_s2  ;;  %v3240_v24 = vld [vmem:[#allocation7 + $0x78] sm:$0xff] }
0x1321   :  { %9853 = vmatprep.subr.bf16.mxu1 %v9852_v25 }
0x1322   :  { %9855 = vmatpush3.bf16.msra.mxu1 %v9852_v25 }
0x138d   :  { %v3021_v47 = vpop.permute.xlu1 %3020 }
0x138e   :  { %v3031_v51 = vmul.f32 %v3021_v47, %v11884_v48  ;;  %v3019_v41 = vpop.permute.xlu0 %3018  ;;  %v9856_v47 = vpack.c.bf16 %v3240_v24, %v3239_v61 }
0x138f   :  { %v3030_v42 = vmul.f32 %v3019_v41, %v11886_v13  ;;  %v3372_v41 = vld [vmem:[#allocation10 + $0x68] sm:$0xff] }
0x1390   :  { %3057 = vrot.lane.b32.xlu1 %v3031_v51, %s11113_s2  ;;  %9857 = vmatprep.subr.bf16.mxu1 %v9856_v47  ;;  %v3371_v51 = vld [vmem:[#allocation10 + $0x60] sm:$0xff] }
0x1391   :  { %3055 = vrot.lane.b32.xlu0 %v3030_v42, %s11113_s2  ;;  %v3025_v32 = vpop.permute.xlu1 %3024  ;;  %9859 = vmatpush3.bf16.msra.mxu1 %v9856_v47  ;;  %v9860_v42 = vpack.c.bf16 %v3372_v41, %v3371_v51 }
0x1392   :  { %v3033_v15 = vmul.f32 %v3025_v32, %v11898_v50  ;;  %v3023_v35 = vpop.permute.xlu0 %3022  ;;  %v8225_v50 = vld [vmem:[#allocation16 + $0x2] ss:$0 sm:$0xff] }
0x1393   :  { %v3032_v37 = vmul.f32 %v3023_v35, %v11900_v60  ;;  %9861 = vmatprep.subr.bf16.mxu1 %v9860_v42 }
0x1394   :  { %3061 = vrot.lane.b32.xlu1 %v3033_v15, %s11113_s2 }
0x1395   :  { %3059 = vrot.lane.b32.xlu0 %v3032_v37, %s11113_s2 }
0x1402   :  { %v3058_v19 = vpop.permute.xlu1 %3057 }
0x1403   :  { %v3056_v10 = vpop.permute.xlu0 %3055 }
0x1404   :  { %9172 = vmatprep.mubr.msk.f32.mxu0 %vm1162_vm9, %v3056_v10 }
0x1405   :  { %9173 = vmatmul.mubr.msk.f32.vlgmr.msra.gmra.mrb[36].mxu0 %vm1162_vm9, %v3058_v19 }
0x1406   :  { %v3062_v13 = vpop.permute.xlu1 %3061 }
0x1407   :  { %v3060_v48 = vpop.permute.xlu0 %3059 }
0x1408   :  { %9175 = vmatprep.mubr.msk.f32.mxu0 %vm1162_vm9, %v3060_v48 }
0x1409   :  { %9176 = vmatmul.mubr.msk.f32.gmra.mrb[38].mxu0 %vm1162_vm9, %v3062_v13 }
0x14d8   :  { %v9174_v21 = vpop.f32.mrb[36].mxu0 }
0x14d9   :  { %v3143_v9 = vadd.f32 %v9174_v21, %v8225_v50  ;;  %v3137_v60 = vpop.f32.mrb[37].mxu0 }
0x14da   :  { %v3138_v14 = vadd.f32 %v8225_v50, %v3137_v60 }
0x14db   :  { %v12016_v1 = vadd.f32 %v3143_v9, %v11800_v6 }
0x14dc   :  { %v12019_v46 = vadd.f32 %v3138_v14, %v11803_v59  ;;  %v9177_v30 = vpop.f32.mrb[38].mxu0 }
0x14dd   :  { %v3163_v7 = vsel %vm316_vm2, %v12016_v1, 0.0  ;;  %v3147_v56 = vpop.f32.mrb[39].mxu0  ;;  %v3153_v58 = vadd.f32 %v9177_v30, %v8225_v50 }
0x14de   :  { %3164 = vadd.xlane.f32.xlu1 %v3163_v7  ;;  %v3160_v44 = vsel %vm316_vm2, %v12019_v46, 0.0  ;;  %v3148_v5 = vadd.f32 %v8225_v50, %v3147_v56  ;;  %v8231_v7 = vld [vmem:[%s13055_s9 + $0x3] ss:$0 sm:$0xff] }
0x14df   :  { %3161 = vadd.xlane.f32.xlu0 %v3160_v44  ;;  %v12029_v6 = vadd.f32 %v3153_v58, %v11813_v11 }
0x14e0   :  { %v12026_v26 = vadd.f32 %v3148_v5, %v11810_v27  ;;  %v8233_v5 = vld [vmem:[%s13017_s4 + $0x3] ss:$0 sm:$0xff] }
0x14e1   :  { %v3169_v12 = vsel %vm316_vm2, %v12029_v6, 0.0 }
0x14e2   :  { %v3166_v59 = vsel %vm316_vm2, %v12026_v26, 0.0 }
0x14e3   :  { %3167 = vadd.xlane.f32.xlu0 %v3166_v59 }
0x14e7   :  { %3170 = vadd.xlane.f32.xlu0 %v3169_v12  ;;  %v3373_v12 = vld [vmem:[#allocation10 + $0x70] sm:$0xff] }
0x156b   :  { %v3165_v22 = vpop.xlane.xlu1 %3164 }
0x156c   :  { %v3173_v4 = vmul.f32 0.03125, %v3165_v22  ;;  %v3162_v53 = vpop.xlane.xlu0 %3161  ;;  %v3374_v22 = vld [vmem:[#allocation10 + $0x78] sm:$0xff] }
0x156d   :  { %v3172_v23 = vmul.f32 0.03125, %v3162_v53 }
0x156e   :  { %v3177_v38 = vsub.f32 %v12016_v1, %v3173_v4 }
0x156f   :  { %v3176_v27 = vsub.f32 %v12019_v46, %v3172_v23 }
0x1570   :  { %v3181_v33 = vmul.f32 %v3177_v38, %v3177_v38  ;;  %v3168_v11 = vpop.xlane.xlu0 %3167 }
0x1571   :  { %v3180_v57 = vmul.f32 %v3176_v27, %v3176_v27  ;;  %v3174_v34 = vmul.f32 0.03125, %v3168_v11 }
0x1572   :  { %v3187_v16 = vsel %vm316_vm2, %v3181_v33, 0.0  ;;  %v9864_v33 = vpack.c.bf16 %v3374_v22, %v3373_v12 }
0x1573   :  { %3188 = vadd.xlane.f32.xlu1 %v3187_v16  ;;  %v3184_v3 = vsel %vm316_vm2, %v3180_v57, 0.0  ;;  %v3178_v62 = vsub.f32 %v12026_v26, %v3174_v34 }
0x1574   :  { %3185 = vadd.xlane.f32.xlu0 %v3184_v3  ;;  %v3171_v17 = vpop.xlane.xlu0 %3170 }
0x1575   :  { %v3175_v18 = vmul.f32 0.03125, %v3171_v17  ;;  %v3182_v45 = vmul.f32 %v3178_v62, %v3178_v62 }
0x1577   :  { %v3179_v49 = vsub.f32 %v12029_v6, %v3175_v18  ;;  %v3190_v54 = vsel %vm316_vm2, %v3182_v45, 0.0 }
0x1578   :  { %3191 = vadd.xlane.f32.xlu0 %v3190_v54 }
0x1579   :  { %v3183_v39 = vmul.f32 %v3179_v49, %v3179_v49 }
0x157b   :  { %v3193_v40 = vsel %vm316_vm2, %v3183_v39, 0.0 }
0x157c   :  { %3194 = vadd.xlane.f32.xlu1 %v3193_v40 }
0x1600   :  { %v3189_v32 = vpop.xlane.xlu1 %3188 }
0x1601   :  { %v3197_v15 = vmul.f32 0.03125, %v3189_v32  ;;  %v3186_v35 = vpop.xlane.xlu0 %3185 }
0x1602   :  { %v3196_v37 = vmul.f32 0.03125, %v3186_v35 }
0x1603   :  { %v3201_v10 = vadd.f32 1e-05, %v3197_v15 }
0x1604   :  { %v3200_v19 = vadd.f32 1e-05, %v3196_v37 }
0x1605   :  { %10535 = vrsqrt.f32 %v3201_v10  ;;  %v3192_v48 = vpop.xlane.xlu0 %3191 }
0x1606   :  { %10537 = vrsqrt.f32 %v3200_v19  ;;  %v3198_v13 = vmul.f32 0.03125, %v3192_v48 }
0x1608   :  { %v3202_v50 = vadd.f32 1e-05, %v3198_v13 }
0x1609   :  { %v3195_v21 = vpop.xlane.xlu1 %3194 }
0x160a   :  { %10539 = vrsqrt.f32 %v3202_v50  ;;  %v3199_v9 = vmul.f32 0.03125, %v3195_v21 }
0x160c   :  { %v3203_v60 = vadd.f32 1e-05, %v3199_v9 }
0x160e   :  { %10541 = vrsqrt.f32 %v3203_v60 }
0x160f   :  { %v10536_v14 = vpop.eup %10535 }
0x1610   :  { %v10538_v30 = vpop.eup %10537  ;;  %v3209_v44 = vmul.f32 %v10536_v14, %v3177_v38 }
0x1611   :  { %v3208_v56 = vmul.f32 %v10538_v30, %v3176_v27 }
0x1612   :  { %v3221_v58 = vmul.f32 %v8231_v7, %v3209_v44 }
0x1613   :  { %v3220_v59 = vmul.f32 %v8231_v7, %v3208_v56 }
0x1614   :  { %v10540_v53 = vpop.eup %10539  ;;  %v3233_v23 = vadd.f32 %v8233_v5, %v3221_v58  ;;  %v8246_v58 = vld [vmem:[%s13023_s10 + $0x3] ss:$0 sm:$0xff] }
0x1615   :  { %v3232_v4 = vadd.f32 %v8233_v5, %v3220_v59  ;;  %v3210_v57 = vmul.f32 %v10540_v53, %v3178_v62 }
0x1617   :  { %9186 = vmatprep.mubr.msk.f32.mxu1 %vm316_vm2, %v3232_v4  ;;  %v3222_v38 = vmul.f32 %v8231_v7, %v3210_v57 }
0x1618   :  { %9187 = vmatmul.mubr.msk.f32.vlgmr.msra.gmra.mrb[36].mxu1 %vm316_vm2, %v3233_v23  ;;  %v10542_v27 = vpop.eup %10541 }
0x1619   :  { %9863 = vmatpush3.bf16.msra.mxu1 %v9860_v42  ;;  %v3234_v11 = vadd.f32 %v8233_v5, %v3222_v38  ;;  %v3211_v16 = vmul.f32 %v10542_v27, %v3179_v49  ;;  %v8239_v49 = vld [vmem:[#allocation11 + $0x3] ss:$0 sm:$0xff] }
0x161a   :  { %9865 = vmatprep.subr.bf16.mxu1 %v9864_v33 }
0x161b   :  { %9189 = vmatprep.mubr.msk.f32.mxu1 %vm316_vm2, %v3234_v11  ;;  %v3223_v34 = vmul.f32 %v8231_v7, %v3211_v16  ;;  %v8244_v7 = vld [vmem:[#allocation13 + $0x3] ss:$0 sm:$0xff] }
0x161d   :  { %9867 = vmatpush3.bf16.msra.mxu1 %v9864_v33  ;;  %v3235_v3 = vadd.f32 %v8233_v5, %v3223_v34 }
0x161f   :  { %9190 = vmatmul.mubr.msk.f32.gmra.mrb[38].mxu1 %vm316_vm2, %v3235_v3 }
0x1620   :  { %9200 = vmatprep.mubr.msk.f32.mxu1 %vm316_vm2, %v3232_v4 }
0x1623   :  { %9201 = vmatmul.mubr.msk.f32.vlgmr.msra.gmra.mrb[40].mxu1 %vm316_vm2, %v3233_v23 }
0x1624   :  { %9203 = vmatprep.mubr.msk.f32.mxu1 %vm316_vm2, %v3234_v11 }
0x1627   :  { %9204 = vmatmul.mubr.msk.f32.gmra.mrb[42].mxu1 %vm316_vm2, %v3235_v3  ;;  %v8234_v3 = vld [vmem:[#allocation8 + $0x3] ss:$0 sm:$0xff] }
0x16eb   :  { %v12057_v62 = vpop.f32.mrb[36].mxu1 }
0x16ec   :  { %v12059_v17 = vpop.f32.mrb[37].mxu1 }
0x16f2   :  { %v12061_v18 = vpop.f32.mrb[38].mxu1 }
0x16f3   :  { %v12063_v45 = vpop.f32.mrb[39].mxu1 }
0x16f6   :  { %v9202_v54 = vpop.f32.mrb[40].mxu1 }
0x16f7   :  { %v3455_v39 = vadd.f32 %v9202_v54, %v8239_v49  ;;  %v3449_v40 = vpop.f32.mrb[41].mxu1  ;;  %v3328_v54 = vadd.f32 %v8234_v3, %v12059_v17 }
0x16f8   :  { %v3450_v0 = vadd.f32 %v8239_v49, %v3449_v40 }
0x16f9   :  { %v3469_v31 = vsub.f32 0.0, %v3455_v39  ;;  %v3346_v40 = vsub.f32 0.0, %v3328_v54 }
0x16fa   :  { %v3468_v25 = vsub.f32 0.0, %v3450_v0  ;;  %v9205_v61 = vpop.f32.mrb[42].mxu1 }
0x16fb   :  { %v3474_v24 = vmul.f32 1.442695, %v3469_v31  ;;  %v3465_v47 = vadd.f32 %v9205_v61, %v8239_v49  ;;  %v3459_v51 = vpop.f32.mrb[43].mxu1  ;;  %v3343_v31 = vadd.f32 %v12061_v18, %v8234_v3  ;;  %v3338_v61 = vadd.f32 %v8234_v3, %v12063_v45 }
0x16fc   :  { %v3472_v41 = vmul.f32 1.442695, %v3468_v25  ;;  %v3460_v42 = vadd.f32 %v8239_v49, %v3459_v51  ;;  %v3333_v49 = vadd.f32 %v12057_v62, %v8234_v3  ;;  %v3350_v25 = vmul.f32 1.442695, %v3346_v40  ;;  %v3517_v40 = vld [vmem:[#allocation17 + $0x60] sm:$0xff] }
0x16fd   :  { %v3471_v32 = vsub.f32 0.0, %v3465_v47  ;;  %10543 = vpow2.f32 %v3474_v24  ;;  %v3349_v24 = vsub.f32 0.0, %v3343_v31 }
0x16fe   :  { %v3470_v15 = vsub.f32 0.0, %v3460_v42  ;;  %10545 = vpow2.f32 %v3472_v41 }
0x16ff   :  { %v3478_v35 = vmul.f32 1.442695, %v3471_v32  ;;  %v3356_v51 = vmul.f32 1.442695, %v3349_v24 }
0x1700   :  { %v3476_v37 = vmul.f32 1.442695, %v3470_v15 }
0x1701   :  { %10547 = vpow2.f32 %v3478_v35 }
0x1702   :  { %10549 = vpow2.f32 %v3476_v37 }
0x1707   :  { %v10544_v10 = vpop.eup %10543 }
0x1708   :  { %v10546_v19 = vpop.eup %10545  ;;  %v3481_v48 = vadd.f32 1.0, %v10544_v10 }
0x1709   :  { %v3480_v50 = vadd.f32 1.0, %v10546_v19 }
0x170a   :  { %10551 = vrcp.f32 %v3481_v48 }
0x170b   :  { %v10548_v13 = vpop.eup %10547  ;;  %10553 = vrcp.f32 %v3480_v50 }
0x170c   :  { %v10550_v21 = vpop.eup %10549  ;;  %v3483_v9 = vadd.f32 1.0, %v10548_v13 }
0x170d   :  { %v3482_v60 = vadd.f32 1.0, %v10550_v21 }
0x170e   :  { %10555 = vrcp.f32 %v3483_v9 }
0x170f   :  { %10557 = vrcp.f32 %v3482_v60 }
0x1714   :  { %v10552_v14 = vpop.eup %10551 }
0x1715   :  { %v10554_v30 = vpop.eup %10553  ;;  %v3489_v44 = vmul.f32 %v10552_v14, %v3455_v39  ;;  %v3347_v39 = vsub.f32 0.0, %v3333_v49 }
0x1716   :  { %v3488_v5 = vmul.f32 %v10554_v30, %v3450_v0 }
0x1717   :  { %v3501_v12 = vmul.f32 %v8244_v7, %v3489_v44  ;;  %v3352_v0 = vmul.f32 1.442695, %v3347_v39 }
0x1718   :  { %v10556_v56 = vpop.eup %10555  ;;  %v3500_v4 = vmul.f32 %v8244_v7, %v3488_v5 }
0x1719   :  { %v10558_v59 = vpop.eup %10557  ;;  %v3491_v22 = vmul.f32 %v10556_v56, %v3465_v47  ;;  %v12068_v23 = vadd.f32 %v8246_v58, %v3501_v12  ;;  %10559 = vpow2.f32 %v3352_v0  ;;  %v3348_v47 = vsub.f32 0.0, %v3338_v61 }
0x171a   :  { %v3490_v53 = vmul.f32 %v10558_v59, %v3460_v42  ;;  %v3512_v57 = vadd.f32 %v8246_v58, %v3500_v4  ;;  %10561 = vpow2.f32 %v3350_v25 }
0x171b   :  { %v3503_v33 = vmul.f32 %v8244_v7, %v3491_v22  ;;  %v3354_v41 = vmul.f32 1.442695, %v3348_v47  ;;  %10563 = vpow2.f32 %v3356_v51  ;;  %v3519_v47 = vld [vmem:[#allocation17 + $0x70] sm:$0xff] }
0x171c   :  { %v3502_v38 = vmul.f32 %v8244_v7, %v3490_v53  ;;  %9214 = vmatprep.mubr.msk.f32.mxu0 %vm682_vm3, %v3512_v57  ;;  %v10267_v16 = vpack.i.bf16 %v12068_v23, %v3512_v57 }
0x171d   :  { %v12070_v27 = vadd.f32 %v8246_v58, %v3503_v33  ;;  %10565 = vpow2.f32 %v3354_v41 }
0x171e   :  { %v12072_v11 = vadd.f32 %v8246_v58, %v3502_v38  ;;  %10268 = vrot.lane.b32.xlu0 %v10267_v16, %s11109_s24 }
0x1720   :  { %v10272_v34 = vpack.i.bf16 %v12070_v27, %v12072_v11 }
0x1722   :  { %10273 = vrot.lane.b32.xlu1 %v10272_v34, %s11109_s24  ;;  %3742 = vrot.lane.b32.xlu0 %v3512_v57, %s11110_s28 }
0x1723   :  { %v10560_v42 = vpop.eup %10559 }
0x1724   :  { %v10562_v62 = vpop.eup %10561  ;;  %v3359_v32 = vadd.f32 1.0, %v10560_v42 }
0x1725   :  { %v3358_v17 = vadd.f32 1.0, %v10562_v62  ;;  %v10564_v15 = vpop.eup %10563 }
0x1726   :  { %10278 = vrot.lane.b32.xlu1 %v10267_v16, %s11111_s0  ;;  %3746 = vrot.lane.b32.xlu0 %v12072_v11, %s11110_s28  ;;  %10567 = vrcp.f32 %v3359_v32  ;;  %v3361_v18 = vadd.f32 1.0, %v10564_v15 }
0x1727   :  { %10569 = vrcp.f32 %v3358_v17  ;;  %v10566_v35 = vpop.eup %10565 }
0x1728   :  { %v3360_v37 = vadd.f32 1.0, %v10566_v35  ;;  %10571 = vrcp.f32 %v3361_v18 }
0x172a   :  { %10283 = vrot.lane.b32.xlu1 %v10272_v34, %s11111_s0  ;;  %10573 = vrcp.f32 %v3360_v37 }
0x172e   :  { %3744 = vrot.lane.b32.xlu1 %v12068_v23, %s11110_s28 }
0x1730   :  { %v10568_v60 = vpop.eup %10567 }
0x1731   :  { %v10570_v7 = vpop.eup %10569  ;;  %v12100_v58 = vmul.f32 %v10568_v60, %v3333_v49 }
0x1732   :  { %3748 = vrot.lane.b32.xlu1 %v12070_v27, %s11110_s28  ;;  %v12102_v5 = vmul.f32 %v10570_v7, %v3328_v54  ;;  %v10572_v53 = vpop.eup %10571 }
0x1733   :  { %v12114_v16 = vmul.f32 %v10572_v53, %v3343_v31 }
0x1734   :  { %v9892_v57 = vpack.c.bf16 %v12100_v58, %v12102_v5  ;;  %v10574_v38 = vpop.eup %10573 }
0x1735   :  { %v12116_v34 = vmul.f32 %v10574_v38, %v3338_v61  ;;  %v3520_v61 = vld [vmem:[#allocation17 + $0x78] sm:$0xff] }
0x1737   :  { %v9896_v3 = vpack.c.bf16 %v12114_v16, %v12116_v34 }
0x1790   :  { %v10269_v10 = vpop.permute.xlu0 %10268 }
0x1791   :  { %v10271_v45 = vunpack.i.h.bf16 %v10269_v10  ;;  %v10270_v19 = vunpack.i.l.bf16 %v10269_v10 }
0x1793   :  { %v9868_v13 = vpack.c.bf16 %v10271_v45, %v10270_v19 }
0x1794   :  { %v10274_v48 = vpop.permute.xlu1 %10273  ;;  %v3743_v9 = vpop.permute.xlu0 %3742 }
0x1795   :  { %v10276_v50 = vunpack.i.h.bf16 %v10274_v48  ;;  %v10275_v21 = vunpack.i.l.bf16 %v10274_v48  ;;  %9870 = vmatprep.subr.msk.bf16.mxu0 %vm11481_vm4, %v9868_v13  ;;  %9228 = vmatprep.mubr.msk.f32.mxu1 %vm682_vm3, %v3743_v9 }
0x1796   :  { %9873 = vmatpush3.bf16.xpose.msk.msra.mxu0 %vm11481_vm4, %v9868_v13 }
0x1797   :  { %v9874_v14 = vpack.c.bf16 %v10276_v50, %v10275_v21 }
0x1798   :  { %v10279_v30 = vpop.permute.xlu1 %10278  ;;  %v3747_v54 = vpop.permute.xlu0 %3746 }
0x1799   :  { %v10281_v44 = vunpack.i.h.bf16 %v10279_v30  ;;  %v10280_v56 = vunpack.i.l.bf16 %v10279_v30  ;;  %9876 = vmatprep.subr.msk.bf16.mxu0 %vm11481_vm4, %v9874_v14 }
0x179b   :  { %v9880_v59 = vpack.c.bf16 %v10281_v44, %v10280_v56 }
0x179c   :  { %v10284_v12 = vpop.permute.xlu1 %10283 }
0x179d   :  { %v10286_v22 = vunpack.i.h.bf16 %v10284_v12  ;;  %v10285_v4 = vunpack.i.l.bf16 %v10284_v12  ;;  %9882 = vmatprep.subr.msk.bf16.mxu1 %vm11481_vm4, %v9880_v59 }
0x179e   :  { %9885 = vmatpush3.bf16.xpose.msk.msra.mxu1 %vm11481_vm4, %v9880_v59  ;;  %9879 = vmatpush3.bf16.xpose.msk.msra.mxu0 %vm11481_vm4, %v9874_v14 }
0x179f   :  { %v9886_v33 = vpack.c.bf16 %v10286_v22, %v10285_v4  ;;  %9893 = vmatprep.subr.bf16.mxu0 %v9892_v57 }
0x17a0   :  { %v3745_v49 = vpop.permute.xlu1 %3744 }
0x17a1   :  { %9888 = vmatprep.subr.msk.bf16.mxu1 %vm11481_vm4, %v9886_v33 }
0x17a4   :  { %v3749_v39 = vpop.permute.xlu1 %3748 }
0x17a5   :  { %9215 = vmatmul.mubr.msk.f32.vlgmr.msra.gmra.mrb[40].mxu0 %vm682_vm3, %v12068_v23  ;;  %v3518_v23 = vld [vmem:[#allocation17 + $0x68] sm:$0xff] }
0x17a6   :  { %9891 = vmatpush3.bf16.xpose.msk.msra.mxu1 %vm11481_vm4, %v9886_v33  ;;  %9217 = vmatprep.mubr.msk.f32.mxu0 %vm682_vm3, %v12072_v11 }
0x17a7   :  { %9895 = vmatpush3.bf16.msra.mxu0 %v9892_v57 }
0x17a8   :  { %9897 = vmatprep.subr.bf16.mxu0 %v9896_v3 }
0x17a9   :  { %9218 = vmatmul.mubr.msk.f32.gmra.mrb[42].mxu0 %vm682_vm3, %v12070_v27 }
0x17ab   :  { %9899 = vmatpush3.bf16.msra.mxu0 %v9896_v3 }
0x17ad   :  { %9229 = vmatmul.mubr.msk.f32.vlgmr.msra.gmra.mrb[44].mxu1 %vm682_vm3, %v3745_v49 }
0x17ae   :  { %9231 = vmatprep.mubr.msk.f32.mxu1 %vm682_vm3, %v3747_v54 }
0x17b1   :  { %9232 = vmatmul.mubr.msk.f32.gmra.mrb[46].mxu1 %vm682_vm3, %v3749_v39 }
0x1878   :  { %v9216_v0 = vpop.f32.mrb[40].mxu0 }
0x1879   :  { %v3621_v31 = vadd.f32 %v9216_v0, %v3518_v23  ;;  %v3615_v11 = vpop.f32.mrb[41].mxu0 }
0x187a   :  { %v3616_v25 = vadd.f32 %v3615_v11, %v3517_v40 }
0x187b   :  { %v8256_v24 = vadd.f32 -0.70710677, %v3621_v31 }
0x187c   :  { %v8255_v51 = vadd.f32 -0.70710677, %v3616_v25  ;;  %v9219_v27 = vpop.f32.mrb[42].mxu0 }
0x187d   :  { %v12131_v41 = vmul.f32 0.7978846, %v8256_v24  ;;  %v3631_v42 = vadd.f32 %v9219_v27, %v3520_v61  ;;  %v3625_v62 = vpop.f32.mrb[43].mxu0 }
0x187e   :  { %v12133_v32 = vmul.f32 0.7978846, %v8255_v51  ;;  %v3626_v17 = vadd.f32 %v3625_v62, %v3519_v47 }
0x187f   :  { %v3651_v35 = vand.u32 2147483647, %v12131_v41  ;;  %v8258_v18 = vadd.f32 -0.70710677, %v3631_v42  ;;  %vm3643_vm5 = vcmp.lt.f32.partialorder %v12131_v41, 0.0 }
0x1880   :  { %v12135_v15 = vpop.f32.mrb[44].mxu1  ;;  %v3650_v10 = vand.u32 2147483647, %v12133_v32  ;;  %v8257_v45 = vadd.f32 -0.70710677, %v3626_v17  ;;  %vm3642_vm6 = vcmp.lt.f32.partialorder %v12133_v32, 0.0 }
0x1881   :  { %v12138_v37 = vpop.f32.mrb[45].mxu1  ;;  %v3655_v19 = vmul.f32 0.3275911, %v3651_v35  ;;  %v12141_v48 = vmul.f32 0.7978846, %v8258_v18  ;;  %v3703_v22 = vsub.f32 0.0, %v3651_v35 }
0x1882   :  { %v3654_v13 = vmul.f32 0.3275911, %v3650_v10  ;;  %v12143_v50 = vmul.f32 0.7978846, %v8257_v45  ;;  %v3702_v4 = vsub.f32 0.0, %v3650_v10 }
0x1883   :  { %v3659_v9 = vadd.f32 1.0, %v3655_v19  ;;  %v3653_v60 = vand.u32 2147483647, %v12141_v48  ;;  %v3707_v33 = vmul.f32 %v3703_v22, %v3651_v35  ;;  %vm3645_vm7 = vcmp.lt.f32.partialorder %v12141_v48, 0.0 }
0x1884   :  { %v12145_v21 = vpop.f32.mrb[46].mxu1  ;;  %v3658_v7 = vadd.f32 1.0, %v3654_v13  ;;  %v3652_v44 = vand.u32 2147483647, %v12143_v50  ;;  %v3706_v49 = vmul.f32 %v3702_v4, %v3650_v10  ;;  %vm3644_vm8 = vcmp.lt.f32.partialorder %v12143_v50, 0.0 }
0x1885   :  { %v12148_v14 = vpop.f32.mrb[47].mxu1  ;;  %10575 = vrcp.f32 %v3659_v9  ;;  %v3657_v30 = vmul.f32 0.3275911, %v3653_v60  ;;  %v3705_v57 = vsub.f32 0.0, %v3653_v60  ;;  %v3712_v0 = vmul.f32 1.442695, %v3707_v33 }
0x1886   :  { %10577 = vrcp.f32 %v3658_v7  ;;  %v3656_v59 = vmul.f32 0.3275911, %v3652_v44  ;;  %v3704_v23 = vsub.f32 0.0, %v3652_v44  ;;  %v3710_v61 = vmul.f32 1.442695, %v3706_v49 }
0x1887   :  { %v3661_v56 = vadd.f32 1.0, %v3657_v30  ;;  %v3709_v11 = vmul.f32 %v3705_v57, %v3653_v60 }
0x1888   :  { %v3660_v12 = vadd.f32 1.0, %v3656_v59  ;;  %v3708_v62 = vmul.f32 %v3704_v23, %v3652_v44 }
0x1889   :  { %10579 = vrcp.f32 %v3661_v56  ;;  %v3716_v35 = vmul.f32 1.442695, %v3709_v11 }
0x188a   :  { %10581 = vrcp.f32 %v3660_v12  ;;  %v3714_v60 = vmul.f32 1.442695, %v3708_v62  ;;  %v3647_v62 = vsel %vm3643_vm5, -1.0, %v11112_v55 }
0x188b   :  { %10583 = vpow2.f32 %v3712_v0 }
0x188c   :  { %10585 = vpow2.f32 %v3710_v61 }
0x188d   :  { %10587 = vpow2.f32 %v3716_v35 }
0x188e   :  { %10589 = vpow2.f32 %v3714_v60 }
0x188f   :  { %v10576_v53 = vpop.eup %10575 }
0x1890   :  { %v10578_v38 = vpop.eup %10577  ;;  %v3667_v3 = vmul.f32 1.0614054, %v10576_v53 }
0x1891   :  { %v3666_v54 = vmul.f32 1.0614054, %v10578_v38 }
0x1892   :  { %v3671_v39 = vadd.f32 -1.4531521, %v3667_v3 }
0x1893   :  { %v10580_v40 = vpop.eup %10579  ;;  %v3670_v31 = vadd.f32 -1.4531521, %v3666_v54 }
0x1894   :  { %v3675_v25 = vmul.f32 %v10576_v53, %v3671_v39  ;;  %v3669_v24 = vmul.f32 1.0614054, %v10580_v40  ;;  %v10582_v51 = vpop.eup %10581 }
0x1895   :  { %v3674_v47 = vmul.f32 %v10578_v38, %v3670_v31  ;;  %v3668_v18 = vmul.f32 1.0614054, %v10582_v51  ;;  %v10584_v39 = vpop.eup %10583 }
0x1896   :  { %v3679_v27 = vadd.f32 1.4214138, %v3675_v25  ;;  %v3673_v42 = vadd.f32 -1.4531521, %v3669_v24  ;;  %v10586_v31 = vpop.eup %10585 }
0x1897   :  { %v3678_v17 = vadd.f32 1.4214138, %v3674_v47  ;;  %v3672_v13 = vadd.f32 -1.4531521, %v3668_v18 }
0x1898   :  { %v3683_v10 = vmul.f32 %v10576_v53, %v3679_v27  ;;  %v3677_v45 = vmul.f32 %v10580_v40, %v3673_v42  ;;  %v10588_v42 = vpop.eup %10587 }
0x1899   :  { %v3682_v19 = vmul.f32 %v10578_v38, %v3678_v17  ;;  %v3676_v56 = vmul.f32 %v10582_v51, %v3672_v13 }
0x189a   :  { %v3687_v9 = vadd.f32 -0.28449672, %v3683_v10  ;;  %v3681_v7 = vadd.f32 1.4214138, %v3677_v45  ;;  %v10590_v45 = vpop.eup %10589 }
0x189b   :  { %v3686_v30 = vadd.f32 -0.28449672, %v3682_v19  ;;  %v3680_v4 = vadd.f32 1.4214138, %v3676_v56 }
0x189c   :  { %v3691_v59 = vmul.f32 %v10576_v53, %v3687_v9  ;;  %v3685_v12 = vmul.f32 %v10580_v40, %v3681_v7  ;;  %v3649_v9 = vsel %vm3645_vm7, -1.0, %v11112_v55 }
0x189d   :  { %v3690_v22 = vmul.f32 %v10578_v38, %v3686_v30  ;;  %v3684_v3 = vmul.f32 %v10582_v51, %v3680_v4 }
0x189e   :  { %v3695_v44 = vadd.f32 0.2548296, %v3691_v59  ;;  %v3689_v33 = vadd.f32 -0.28449672, %v3685_v12  ;;  %v3648_v12 = vsel %vm3644_vm8, -1.0, %v11112_v55 }
0x189f   :  { %v3694_v57 = vadd.f32 0.2548296, %v3690_v22  ;;  %v3688_v0 = vadd.f32 -0.28449672, %v3684_v3 }
0x18a0   :  { %v3699_v49 = vmul.f32 %v10576_v53, %v3695_v44  ;;  %v3693_v54 = vmul.f32 %v10580_v40, %v3689_v33  ;;  %v3859_v44 = vmul.f32 %v11965_v52, %v12138_v37  ;;  %v3987_v37 = vld [vmem:[#allocation14 + $0xd0] sm:$0xff] }
0x18a1   :  { %v3698_v23 = vmul.f32 %v10578_v38, %v3694_v57  ;;  %v3692_v24 = vmul.f32 %v10582_v51, %v3688_v0  ;;  %v3646_v38 = vsel %vm3642_vm6, -1.0, %v11112_v55  ;;  %v3989_v0 = vld [vmem:[#allocation14 + $0xe0] sm:$0xff] }
0x18a2   :  { %v3719_v11 = vmul.f32 %v10584_v39, %v3699_v49  ;;  %v3697_v25 = vadd.f32 0.2548296, %v3693_v54  ;;  %v3862_v54 = vmul.f32 %v11978_v2, %v12145_v21  ;;  %v3988_v21 = vld [vmem:[#allocation14 + $0xd8] sm:$0xff] }
0x18a3   :  { %v3718_v61 = vmul.f32 %v10586_v31, %v3698_v23  ;;  %v3696_v53 = vadd.f32 0.2548296, %v3692_v24  ;;  %v9904_v23 = vpack.c.bf16 %v3988_v21, %v3987_v37  ;;  %v3990_v31 = vld [vmem:[#allocation14 + $0xe8] sm:$0xff]  ;;  %v4188_v21 = vld [vmem:[#allocation7 + $0x88] sm:$0xff] }
0x18a4   :  { %v3723_v47 = vsub.f32 1.0, %v3719_v11  ;;  %v3701_v27 = vmul.f32 %v10580_v40, %v3697_v25  ;;  %v3992_v25 = vld [vmem:[#allocation14 + $0xf8] sm:$0xff] }
0x18a5   :  { %v3722_v17 = vsub.f32 1.0, %v3718_v61  ;;  %v3700_v10 = vmul.f32 %v10582_v51, %v3696_v53  ;;  %v3860_v51 = vmul.f32 %v11952_v63, %v12135_v15  ;;  %v3986_v15 = vld [vmem:[#allocation14 + $0xc8] sm:$0xff] }
0x18a6   :  { %v3727_v35 = vmul.f32 %v3723_v47, %v3647_v62  ;;  %v3721_v18 = vmul.f32 %v10588_v42, %v3701_v27 }
0x18a7   :  { %v3726_v41 = vmul.f32 %v3722_v17, %v3646_v38  ;;  %v3720_v40 = vmul.f32 %v10590_v45, %v3700_v10 }
0x18a8   :  { %v3731_v19 = vadd.f32 1.0, %v3727_v35  ;;  %v3725_v32 = vsub.f32 1.0, %v3721_v18 }
0x18a9   :  { %v3730_v13 = vadd.f32 1.0, %v3726_v41  ;;  %v3724_v30 = vsub.f32 1.0, %v3720_v40 }
0x18aa   :  { %v3729_v7 = vmul.f32 %v3725_v32, %v3649_v9  ;;  %v3735_v60 = vmul.f32 0.5, %v3731_v19 }
0x18ab   :  { %v3734_v56 = vmul.f32 0.5, %v3730_v13  ;;  %v3728_v22 = vmul.f32 %v3724_v30, %v3648_v12 }
0x18ac   :  { %v3733_v59 = vadd.f32 1.0, %v3729_v7  ;;  %v3739_v48 = vmul.f32 %v11946_v29, %v3735_v60 }
0x18ad   :  { %v3738_v4 = vmul.f32 %v11959_v20, %v3734_v56  ;;  %v3732_v57 = vadd.f32 1.0, %v3728_v22  ;;  %v3861_v20 = vmul.f32 %v11993_v43, %v12148_v14  ;;  %v9908_v43 = vpack.c.bf16 %v3990_v31, %v3989_v0  ;;  %v3991_v14 = vld [vmem:[#allocation14 + $0xf0] sm:$0xff]  ;;  %v4189_v0 = vld [vmem:[#allocation7 + $0x90] sm:$0xff]  ;;  %v4190_v31 = vld [vmem:[#allocation7 + $0x98] sm:$0xff] }
0x18ae   :  { %v3864_v50 = vadd.f32 %v3860_v51, %v3739_v48  ;;  %v3737_v33 = vmul.f32 0.5, %v3733_v59  ;;  %v9912_v24 = vpack.c.bf16 %v3992_v25, %v3991_v14 }
0x18af   :  { %v3863_v3 = vadd.f32 %v3859_v44, %v3738_v4  ;;  %v3736_v39 = vmul.f32 0.5, %v3732_v57 }
0x18b0   :  { %v3741_v49 = vmul.f32 %v11972_v28, %v3737_v33  ;;  %v3985_v28 = vld [vmem:[#allocation14 + $0xc0] sm:$0xff] }
0x18b1   :  { %9242 = vmatprep.mubr.msk.f32.mxu0 %vm316_vm2, %v3863_v3  ;;  %v3740_v63 = vmul.f32 %v11987_v8, %v3736_v39  ;;  %v9900_v2 = vpack.c.bf16 %v3986_v15, %v3985_v28 }
0x18b2   :  { %v3866_v29 = vadd.f32 %v3862_v54, %v3741_v49  ;;  %9243 = vmatmul.mubr.msk.f32.vlgmr.msra.gmra.mrb[44].mxu0 %vm316_vm2, %v3864_v50 }
0x18b3   :  { %v3865_v52 = vadd.f32 %v3861_v20, %v3740_v63  ;;  %9901 = vmatprep.subr.bf16.mxu1 %v9900_v2 }
0x18b4   :  { %9903 = vmatpush3.bf16.msra.mxu1 %v9900_v2  ;;  %v4187_v2 = vld [vmem:[#allocation7 + $0x80] sm:$0xff] }
0x18b5   :  { %9245 = vmatprep.mubr.msk.f32.mxu0 %vm316_vm2, %v3865_v52  ;;  %9905 = vmatprep.subr.bf16.mxu1 %v9904_v23 }
0x18b6   :  { %9246 = vmatmul.mubr.msk.f32.gmra.mrb[46].mxu0 %vm316_vm2, %v3866_v29 }
0x18b8   :  { %9907 = vmatpush3.bf16.msra.mxu1 %v9904_v23  ;;  %v9916_v23 = vpack.c.bf16 %v4188_v21, %v4187_v2 }
0x18b9   :  { %9909 = vmatprep.subr.bf16.mxu1 %v9908_v43 }
0x18ba   :  { %9917 = vmatprep.subr.bf16.mxu0 %v9916_v23 }
0x18bb   :  { %9919 = vmatpush3.bf16.msra.mxu0 %v9916_v23 }
0x18bc   :  { %9911 = vmatpush3.bf16.msra.mxu1 %v9908_v43  ;;  %v4322_v43 = vld [vmem:[#allocation10 + $0x88] sm:$0xff] }
0x18bd   :  { %9913 = vmatprep.subr.bf16.mxu1 %v9912_v24 }
0x18c0   :  { %9915 = vmatpush3.bf16.msra.mxu1 %v9912_v24 }
0x1985   :  { %v9244_v11 = vpop.f32.mrb[44].mxu0 }
0x1986   :  { %3970 = vrot.lane.b32.xlu1 %v9244_v11, %s11113_s2  ;;  %v3945_v8 = vpop.f32.mrb[45].mxu0  ;;  %v9920_v11 = vpack.c.bf16 %v4190_v31, %v4189_v0 }
0x1987   :  { %3968 = vrot.lane.b32.xlu0 %v3945_v8, %s11113_s2  ;;  %v4321_v8 = vld [vmem:[#allocation10 + $0x80] sm:$0xff] }
0x1988   :  { %9921 = vmatprep.subr.bf16.mxu0 %v9920_v11  ;;  %v9924_v14 = vpack.c.bf16 %v4322_v43, %v4321_v8 }
0x1989   :  { %v9247_v61 = vpop.f32.mrb[46].mxu0  ;;  %9923 = vmatpush3.bf16.msra.mxu0 %v9920_v11 }
0x198a   :  { %3974 = vrot.lane.b32.xlu1 %v9247_v61, %s11113_s2  ;;  %v3955_v47 = vpop.f32.mrb[47].mxu0  ;;  %9925 = vmatprep.subr.bf16.mxu0 %v9924_v14 }
0x198b   :  { %3972 = vrot.lane.b32.xlu0 %v3955_v47, %s11113_s2 }
0x19f8   :  { %v3971_v27 = vpop.permute.xlu1 %3970 }
0x19f9   :  { %v3981_v42 = vmul.f32 %v3971_v27, %v12100_v58  ;;  %v3969_v62 = vpop.permute.xlu0 %3968 }
0x19fa   :  { %v3980_v17 = vmul.f32 %v3969_v62, %v12102_v5 }
0x19fb   :  { %4007 = vrot.lane.b32.xlu1 %v3981_v42, %s11113_s2 }
0x19fc   :  { %4005 = vrot.lane.b32.xlu0 %v3980_v17, %s11113_s2  ;;  %v3975_v53 = vpop.permute.xlu1 %3974 }
0x19fd   :  { %v3983_v35 = vmul.f32 %v3975_v53, %v12114_v16  ;;  %v3973_v38 = vpop.permute.xlu0 %3972  ;;  %v8271_v16 = vld [vmem:[#allocation16 + $0x3] ss:$0 sm:$0xff] }
0x19fe   :  { %v3982_v18 = vmul.f32 %v3973_v38, %v12116_v34 }
0x19ff   :  { %4011 = vrot.lane.b32.xlu1 %v3983_v35, %s11113_s2 }
0x1a00   :  { %4009 = vrot.lane.b32.xlu0 %v3982_v18, %s11113_s2 }
0x1a6d   :  { %v4008_v10 = vpop.permute.xlu1 %4007 }
0x1a6e   :  { %v4006_v41 = vpop.permute.xlu0 %4005 }
0x1a6f   :  { %9264 = vmatprep.mubr.msk.f32.mxu1 %vm1162_vm9, %v4006_v41 }
0x1a70   :  { %9265 = vmatmul.mubr.msk.f32.vlgmr.msra.gmra.mrb[48].mxu1 %vm1162_vm9, %v4008_v10  ;;  %v8277_v10 = vld [vmem:[%s13055_s9 + $0x4] ss:$0 sm:$0xff] }
0x1a71   :  { %v4012_v5 = vpop.permute.xlu1 %4011 }
0x1a72   :  { %v4010_v58 = vpop.permute.xlu0 %4009 }
0x1a73   :  { %9267 = vmatprep.mubr.msk.f32.mxu1 %vm1162_vm9, %v4010_v58 }
0x1a74   :  { %9268 = vmatmul.mubr.msk.f32.gmra.mrb[50].mxu1 %vm1162_vm9, %v4012_v5 }
0x1b43   :  { %v9266_v45 = vpop.f32.mrb[48].mxu1 }
0x1b44   :  { %v4093_v19 = vadd.f32 %v9266_v45, %v8271_v16  ;;  %v4087_v34 = vpop.f32.mrb[49].mxu1 }
0x1b45   :  { %v4088_v32 = vadd.f32 %v8271_v16, %v4087_v34 }
0x1b46   :  { %v12192_v13 = vadd.f32 %v4093_v19, %v12016_v1  ;;  %v8279_v19 = vld [vmem:[%s13017_s4 + $0x4] ss:$0 sm:$0xff] }
0x1b47   :  { %v12195_v9 = vadd.f32 %v4088_v32, %v12019_v46  ;;  %v9269_v7 = vpop.f32.mrb[50].mxu1  ;;  %v4323_v32 = vld [vmem:[#allocation10 + $0x90] sm:$0xff] }
0x1b48   :  { %v4113_v40 = vsel %vm316_vm2, %v12192_v13, 0.0  ;;  %v4097_v30 = vpop.f32.mrb[51].mxu1  ;;  %v4103_v56 = vadd.f32 %v9269_v7, %v8271_v16 }
0x1b49   :  { %4114 = vadd.xlane.f32.xlu1 %v4113_v40  ;;  %v4110_v60 = vsel %vm316_vm2, %v12195_v9, 0.0  ;;  %v4098_v59 = vadd.f32 %v8271_v16, %v4097_v30  ;;  %v4324_v40 = vld [vmem:[#allocation10 + $0x98] sm:$0xff] }
0x1b4a   :  { %4111 = vadd.xlane.f32.xlu0 %v4110_v60  ;;  %v12205_v1 = vadd.f32 %v4103_v56, %v12029_v6  ;;  %v9928_v56 = vpack.c.bf16 %v4324_v40, %v4323_v32 }
0x1b4b   :  { %v12202_v12 = vadd.f32 %v4098_v59, %v12026_v26 }
0x1b4c   :  { %v4119_v48 = vsel %vm316_vm2, %v12205_v1, 0.0 }
0x1b4d   :  { %v4116_v46 = vsel %vm316_vm2, %v12202_v12, 0.0 }
0x1b4e   :  { %4117 = vadd.xlane.f32.xlu0 %v4116_v46 }
0x1b52   :  { %4120 = vadd.xlane.f32.xlu0 %v4119_v48 }
0x1bd6   :  { %v4115_v51 = vpop.xlane.xlu1 %4114 }
0x1bd7   :  { %v4123_v22 = vmul.f32 0.03125, %v4115_v51  ;;  %v4112_v4 = vpop.xlane.xlu0 %4111 }
0x1bd8   :  { %v4122_v44 = vmul.f32 0.03125, %v4112_v4 }
0x1bd9   :  { %v4127_v50 = vsub.f32 %v12192_v13, %v4123_v22 }
0x1bda   :  { %v4126_v26 = vsub.f32 %v12195_v9, %v4122_v44 }
0x1bdb   :  { %v4131_v33 = vmul.f32 %v4127_v50, %v4127_v50  ;;  %v4118_v6 = vpop.xlane.xlu0 %4117 }
0x1bdc   :  { %v4130_v57 = vmul.f32 %v4126_v26, %v4126_v26  ;;  %v4124_v49 = vmul.f32 0.03125, %v4118_v6  ;;  %v8285_v6 = vld [vmem:[#allocation11 + $0x4] ss:$0 sm:$0xff] }
0x1bdd   :  { %v4137_v3 = vsel %vm316_vm2, %v4131_v33, 0.0 }
0x1bde   :  { %4138 = vadd.xlane.f32.xlu1 %v4137_v3  ;;  %v4134_v54 = vsel %vm316_vm2, %v4130_v57, 0.0  ;;  %v4128_v39 = vsub.f32 %v12202_v12, %v4124_v49 }
0x1bdf   :  { %4135 = vadd.xlane.f32.xlu0 %v4134_v54  ;;  %v4121_v29 = vpop.xlane.xlu0 %4120 }
0x1be0   :  { %v4125_v63 = vmul.f32 0.03125, %v4121_v29  ;;  %v4132_v20 = vmul.f32 %v4128_v39, %v4128_v39 }
0x1be2   :  { %v4129_v52 = vsub.f32 %v12205_v1, %v4125_v63  ;;  %v4140_v28 = vsel %vm316_vm2, %v4132_v20, 0.0 }
0x1be3   :  { %4141 = vadd.xlane.f32.xlu0 %v4140_v28 }
0x1be4   :  { %v4133_v15 = vmul.f32 %v4129_v52, %v4129_v52 }
0x1be6   :  { %v4143_v37 = vsel %vm316_vm2, %v4133_v15, 0.0 }
0x1be7   :  { %4144 = vadd.xlane.f32.xlu1 %v4143_v37 }
0x1c6b   :  { %v4139_v25 = vpop.xlane.xlu1 %4138 }
0x1c6c   :  { %v4147_v61 = vmul.f32 0.03125, %v4139_v25  ;;  %v4136_v24 = vpop.xlane.xlu0 %4135 }
0x1c6d   :  { %v4146_v47 = vmul.f32 0.03125, %v4136_v24 }
0x1c6e   :  { %v4151_v27 = vadd.f32 1e-05, %v4147_v61 }
0x1c6f   :  { %v4150_v42 = vadd.f32 1e-05, %v4146_v47 }
0x1c70   :  { %10591 = vrsqrt.f32 %v4151_v27  ;;  %v4142_v62 = vpop.xlane.xlu0 %4141 }
0x1c71   :  { %10593 = vrsqrt.f32 %v4150_v42  ;;  %v4148_v17 = vmul.f32 0.03125, %v4142_v62  ;;  %v8290_v42 = vld [vmem:[#allocation13 + $0x4] ss:$0 sm:$0xff] }
0x1c73   :  { %v4152_v53 = vadd.f32 1e-05, %v4148_v17 }
0x1c74   :  { %v4145_v35 = vpop.xlane.xlu1 %4144 }
0x1c75   :  { %10595 = vrsqrt.f32 %v4152_v53  ;;  %v4149_v38 = vmul.f32 0.03125, %v4145_v35  ;;  %v8292_v35 = vld [vmem:[%s13023_s10 + $0x4] ss:$0 sm:$0xff] }
0x1c77   :  { %v4153_v18 = vadd.f32 1e-05, %v4149_v38 }
0x1c79   :  { %10597 = vrsqrt.f32 %v4153_v18 }
0x1c7a   :  { %v10592_v41 = vpop.eup %10591 }
0x1c7b   :  { %v10594_v58 = vpop.eup %10593  ;;  %v4159_v5 = vmul.f32 %v10592_v41, %v4127_v50 }
0x1c7c   :  { %v4158_v16 = vmul.f32 %v10594_v58, %v4126_v26 }
0x1c7d   :  { %v4171_v45 = vmul.f32 %v8277_v10, %v4159_v5 }
0x1c7e   :  { %v4170_v34 = vmul.f32 %v8277_v10, %v4158_v16 }
0x1c7f   :  { %v10596_v60 = vpop.eup %10595  ;;  %v4183_v30 = vadd.f32 %v8279_v19, %v4171_v45 }
0x1c80   :  { %v4182_v7 = vadd.f32 %v8279_v19, %v4170_v34  ;;  %v4160_v59 = vmul.f32 %v10596_v60, %v4128_v39 }
0x1c82   :  { %9278 = vmatprep.mubr.msk.f32.mxu0 %vm316_vm2, %v4182_v7  ;;  %v4172_v46 = vmul.f32 %v8277_v10, %v4160_v59 }
0x1c83   :  { %9279 = vmatmul.mubr.msk.f32.vlgmr.msra.gmra.mrb[48].mxu0 %vm316_vm2, %v4183_v30  ;;  %v10598_v48 = vpop.eup %10597 }
0x1c84   :  { %9927 = vmatpush3.bf16.msra.mxu0 %v9924_v14  ;;  %v4184_v51 = vadd.f32 %v8279_v19, %v4172_v46  ;;  %v4161_v22 = vmul.f32 %v10598_v48, %v4129_v52 }
0x1c85   :  { %9929 = vmatprep.subr.bf16.mxu0 %v9928_v56 }
0x1c86   :  { %9281 = vmatprep.mubr.msk.f32.mxu0 %vm316_vm2, %v4184_v51  ;;  %v4173_v4 = vmul.f32 %v8277_v10, %v4161_v22 }
0x1c88   :  { %9931 = vmatpush3.bf16.msra.mxu0 %v9928_v56  ;;  %v4185_v44 = vadd.f32 %v8279_v19, %v4173_v4 }
0x1c8a   :  { %9282 = vmatmul.mubr.msk.f32.gmra.mrb[50].mxu0 %vm316_vm2, %v4185_v44 }
0x1c8b   :  { %9292 = vmatprep.mubr.msk.f32.mxu0 %vm316_vm2, %v4182_v7 }
0x1c8e   :  { %9293 = vmatmul.mubr.msk.f32.vlgmr.msra.gmra.mrb[52].mxu0 %vm316_vm2, %v4183_v30  ;;  %v8280_v30 = vld [vmem:[#allocation8 + $0x4] ss:$0 sm:$0xff] }
0x1c8f   :  { %9295 = vmatprep.mubr.msk.f32.mxu0 %vm316_vm2, %v4184_v51 }
0x1c92   :  { %9296 = vmatmul.mubr.msk.f32.gmra.mrb[54].mxu0 %vm316_vm2, %v4185_v44 }
0x1d56   :  { %v12233_v50 = vpop.f32.mrb[48].mxu0 }
0x1d57   :  { %v12235_v26 = vpop.f32.mrb[49].mxu0  ;;  %v4283_v56 = vadd.f32 %v12233_v50, %v8280_v30 }
0x1d58   :  { %v4278_v59 = vadd.f32 %v8280_v30, %v12235_v26 }
0x1d59   :  { %v4297_v46 = vsub.f32 0.0, %v4283_v56 }
0x1d5a   :  { %v4296_v48 = vsub.f32 0.0, %v4278_v59 }
0x1d5b   :  { %v4302_v51 = vmul.f32 1.442695, %v4297_v46 }
0x1d5c   :  { %v4300_v4 = vmul.f32 1.442695, %v4296_v48 }
0x1d5d   :  { %v12237_v33 = vpop.f32.mrb[50].mxu0 }
0x1d5e   :  { %v12239_v57 = vpop.f32.mrb[51].mxu0  ;;  %v4293_v22 = vadd.f32 %v12237_v33, %v8280_v30 }
0x1d5f   :  { %v4288_v44 = vadd.f32 %v8280_v30, %v12239_v57  ;;  %v4470_v30 = vld [vmem:[#allocation17 + $0x98] sm:$0xff] }
0x1d61   :  { %v9294_v3 = vpop.f32.mrb[52].mxu0 }
0x1d62   :  { %v4405_v49 = vadd.f32 %v9294_v3, %v8285_v6  ;;  %v4399_v54 = vpop.f32.mrb[53].mxu0  ;;  %v4298_v3 = vsub.f32 0.0, %v4288_v44 }
0x1d63   :  { %v4400_v39 = vadd.f32 %v8285_v6, %v4399_v54 }
0x1d64   :  { %v4419_v29 = vsub.f32 0.0, %v4405_v49  ;;  %v4304_v54 = vmul.f32 1.442695, %v4298_v3 }
0x1d65   :  { %v4418_v63 = vsub.f32 0.0, %v4400_v39  ;;  %v9297_v20 = vpop.f32.mrb[54].mxu0 }
0x1d66   :  { %v4424_v52 = vmul.f32 1.442695, %v4419_v29  ;;  %v4415_v28 = vadd.f32 %v9297_v20, %v8285_v6  ;;  %v4409_v15 = vpop.f32.mrb[55].mxu0 }
0x1d67   :  { %v4422_v37 = vmul.f32 1.442695, %v4418_v63  ;;  %v4410_v2 = vadd.f32 %v8285_v6, %v4409_v15  ;;  %v4299_v6 = vsub.f32 0.0, %v4293_v22 }
0x1d68   :  { %v4421_v21 = vsub.f32 0.0, %v4415_v28  ;;  %10599 = vpow2.f32 %v4424_v52 }
0x1d69   :  { %v4420_v23 = vsub.f32 0.0, %v4410_v2  ;;  %10601 = vpow2.f32 %v4422_v37 }
0x1d6a   :  { %v4428_v0 = vmul.f32 1.442695, %v4421_v21 }
0x1d6b   :  { %v4426_v31 = vmul.f32 1.442695, %v4420_v23 }
0x1d6c   :  { %10603 = vpow2.f32 %v4428_v0 }
0x1d6d   :  { %10605 = vpow2.f32 %v4426_v31 }
0x1d72   :  { %v10600_v11 = vpop.eup %10599 }
0x1d73   :  { %v10602_v8 = vpop.eup %10601  ;;  %v4431_v43 = vadd.f32 1.0, %v10600_v11 }
0x1d74   :  { %v4430_v25 = vadd.f32 1.0, %v10602_v8 }
0x1d75   :  { %10607 = vrcp.f32 %v4431_v43 }
0x1d76   :  { %v10604_v14 = vpop.eup %10603  ;;  %10609 = vrcp.f32 %v4430_v25 }
0x1d77   :  { %v10606_v61 = vpop.eup %10605  ;;  %v4433_v24 = vadd.f32 1.0, %v10604_v14 }
0x1d78   :  { %v4432_v47 = vadd.f32 1.0, %v10606_v61 }
0x1d79   :  { %10611 = vrcp.f32 %v4433_v24 }
0x1d7a   :  { %10613 = vrcp.f32 %v4432_v47 }
0x1d7b   :  { %10615 = vpow2.f32 %v4302_v51 }
0x1d7c   :  { %10617 = vpow2.f32 %v4300_v4 }
0x1d7f   :  { %v10608_v27 = vpop.eup %10607 }
0x1d80   :  { %v10610_v62 = vpop.eup %10609  ;;  %v4439_v17 = vmul.f32 %v10608_v27, %v4405_v49  ;;  %v4306_v49 = vmul.f32 1.442695, %v4299_v6 }
0x1d81   :  { %v4438_v38 = vmul.f32 %v10610_v62, %v4400_v39 }
0x1d82   :  { %v4451_v41 = vmul.f32 %v8290_v42, %v4439_v17  ;;  %10619 = vpow2.f32 %v4306_v49 }
0x1d83   :  { %v10612_v53 = vpop.eup %10611  ;;  %v4450_v58 = vmul.f32 %v8290_v42, %v4438_v38  ;;  %10621 = vpow2.f32 %v4304_v54 }
0x1d84   :  { %v10614_v18 = vpop.eup %10613  ;;  %v4441_v10 = vmul.f32 %v10612_v53, %v4415_v28  ;;  %v12244_v16 = vadd.f32 %v8292_v35, %v4451_v41 }
0x1d85   :  { %v4440_v5 = vmul.f32 %v10614_v18, %v4410_v2  ;;  %v4462_v19 = vadd.f32 %v8292_v35, %v4450_v58  ;;  %v10616_v39 = vpop.eup %10615 }
0x1d86   :  { %v4453_v45 = vmul.f32 %v8290_v42, %v4441_v10  ;;  %v10618_v50 = vpop.eup %10617  ;;  %v4309_v29 = vadd.f32 1.0, %v10616_v39 }
0x1d87   :  { %v4452_v34 = vmul.f32 %v8290_v42, %v4440_v5  ;;  %9306 = vmatprep.mubr.msk.f32.mxu1 %vm682_vm3, %v4462_v19  ;;  %v10287_v7 = vpack.i.bf16 %v12244_v16, %v4462_v19  ;;  %v4308_v26 = vadd.f32 1.0, %v10618_v50 }
0x1d88   :  { %v12246_v32 = vadd.f32 %v8292_v35, %v4453_v45  ;;  %10623 = vrcp.f32 %v4309_v29 }
0x1d89   :  { %v12248_v40 = vadd.f32 %v8292_v35, %v4452_v34  ;;  %10288 = vrot.lane.b32.xlu0 %v10287_v7, %s11109_s24  ;;  %10625 = vrcp.f32 %v4308_v26 }
0x1d8b   :  { %v10292_v60 = vpack.i.bf16 %v12246_v32, %v12248_v40 }
0x1d8c   :  { %v10620_v63 = vpop.eup %10619 }
0x1d8d   :  { %10293 = vrot.lane.b32.xlu1 %v10292_v60, %s11109_s24  ;;  %4692 = vrot.lane.b32.xlu0 %v4462_v19, %s11110_s28  ;;  %v10622_v20 = vpop.eup %10621  ;;  %v4311_v33 = vadd.f32 1.0, %v10620_v63  ;;  %v4467_v19 = vld [vmem:[#allocation17 + $0x80] sm:$0xff] }
0x1d8e   :  { %v4310_v52 = vadd.f32 1.0, %v10622_v20 }
0x1d8f   :  { %10627 = vrcp.f32 %v4311_v33 }
0x1d90   :  { %10629 = vrcp.f32 %v4310_v52 }
0x1d91   :  { %10298 = vrot.lane.b32.xlu1 %v10287_v7, %s11111_s0  ;;  %4696 = vrot.lane.b32.xlu0 %v12248_v40, %s11110_s28 }
0x1d92   :  { %v10624_v31 = vpop.eup %10623 }
0x1d93   :  { %v10626_v8 = vpop.eup %10625  ;;  %v12276_v61 = vmul.f32 %v10624_v31, %v4283_v56 }
0x1d94   :  { %v12278_v24 = vmul.f32 %v10626_v8, %v4278_v59  ;;  %v4469_v59 = vld [vmem:[#allocation17 + $0x90] sm:$0xff] }
0x1d95   :  { %10303 = vrot.lane.b32.xlu1 %v10292_v60, %s11111_s0 }
0x1d96   :  { %v9956_v35 = vpack.c.bf16 %v12276_v61, %v12278_v24 }
0x1d99   :  { %4694 = vrot.lane.b32.xlu1 %v12244_v16, %s11110_s28  ;;  %v10628_v17 = vpop.eup %10627 }
0x1d9a   :  { %v10630_v38 = vpop.eup %10629  ;;  %v12290_v18 = vmul.f32 %v10628_v17, %v4293_v22 }
0x1d9b   :  { %v12292_v41 = vmul.f32 %v10630_v38, %v4288_v44 }
0x1d9d   :  { %4698 = vrot.lane.b32.xlu1 %v12246_v32, %s11110_s28  ;;  %v9960_v10 = vpack.c.bf16 %v12290_v18, %v12292_v41 }
0x1dfb   :  { %v10289_v28 = vpop.permute.xlu0 %10288 }
0x1dfc   :  { %v10291_v57 = vunpack.i.h.bf16 %v10289_v28  ;;  %v10290_v15 = vunpack.i.l.bf16 %v10289_v28 }
0x1dfe   :  { %v9932_v2 = vpack.c.bf16 %v10291_v57, %v10290_v15 }
0x1dff   :  { %v10294_v37 = vpop.permute.xlu1 %10293  ;;  %v4693_v0 = vpop.permute.xlu0 %4692 }
0x1e00   :  { %v10296_v21 = vunpack.i.h.bf16 %v10294_v37  ;;  %v10295_v23 = vunpack.i.l.bf16 %v10294_v37  ;;  %9934 = vmatprep.subr.msk.bf16.mxu1 %vm11481_vm4, %v9932_v2  ;;  %9320 = vmatprep.mubr.msk.f32.mxu0 %vm682_vm3, %v4693_v0 }
0x1e01   :  { %9937 = vmatpush3.bf16.xpose.msk.msra.mxu1 %vm11481_vm4, %v9932_v2 }
0x1e02   :  { %v9938_v11 = vpack.c.bf16 %v10296_v21, %v10295_v23 }
0x1e03   :  { %v10299_v43 = vpop.permute.xlu1 %10298  ;;  %v4697_v5 = vpop.permute.xlu0 %4696 }
0x1e04   :  { %v10301_v14 = vunpack.i.h.bf16 %v10299_v43  ;;  %v10300_v25 = vunpack.i.l.bf16 %v10299_v43  ;;  %9940 = vmatprep.subr.msk.bf16.mxu1 %vm11481_vm4, %v9938_v11 }
0x1e06   :  { %v9944_v47 = vpack.c.bf16 %v10301_v14, %v10300_v25 }
0x1e07   :  { %v10304_v27 = vpop.permute.xlu1 %10303 }
0x1e08   :  { %v10306_v42 = vunpack.i.h.bf16 %v10304_v27  ;;  %v10305_v62 = vunpack.i.l.bf16 %v10304_v27  ;;  %9946 = vmatprep.subr.msk.bf16.mxu0 %vm11481_vm4, %v9944_v47 }
0x1e09   :  { %9949 = vmatpush3.bf16.xpose.msk.msra.mxu0 %vm11481_vm4, %v9944_v47  ;;  %9943 = vmatpush3.bf16.xpose.msk.msra.mxu1 %vm11481_vm4, %v9938_v11 }
0x1e0a   :  { %v9950_v53 = vpack.c.bf16 %v10306_v42, %v10305_v62  ;;  %9957 = vmatprep.subr.bf16.mxu1 %v9956_v35 }
0x1e0b   :  { %v4695_v58 = vpop.permute.xlu1 %4694 }
0x1e0c   :  { %9952 = vmatprep.subr.msk.bf16.mxu0 %vm11481_vm4, %v9950_v53 }
0x1e0f   :  { %v4699_v45 = vpop.permute.xlu1 %4698 }
0x1e10   :  { %9307 = vmatmul.mubr.msk.f32.vlgmr.msra.gmra.mrb[52].mxu1 %vm682_vm3, %v12244_v16  ;;  %v4468_v16 = vld [vmem:[#allocation17 + $0x88] sm:$0xff] }
0x1e11   :  { %9955 = vmatpush3.bf16.xpose.msk.msra.mxu0 %vm11481_vm4, %v9950_v53  ;;  %9309 = vmatprep.mubr.msk.f32.mxu1 %vm682_vm3, %v12248_v40 }
0x1e12   :  { %9959 = vmatpush3.bf16.msra.mxu1 %v9956_v35 }
0x1e13   :  { %9961 = vmatprep.subr.bf16.mxu1 %v9960_v10 }
0x1e14   :  { %9310 = vmatmul.mubr.msk.f32.gmra.mrb[54].mxu1 %vm682_vm3, %v12246_v32 }
0x1e16   :  { %9963 = vmatpush3.bf16.msra.mxu1 %v9960_v10 }
0x1e18   :  { %9321 = vmatmul.mubr.msk.f32.vlgmr.msra.gmra.mrb[56].mxu0 %vm682_vm3, %v4695_v58 }
0x1e19   :  { %9323 = vmatprep.mubr.msk.f32.mxu0 %vm682_vm3, %v4697_v5 }
0x1e1c   :  { %9324 = vmatmul.mubr.msk.f32.gmra.mrb[58].mxu0 %vm682_vm3, %v4699_v45 }
0x1ee3   :  { %v9308_v34 = vpop.f32.mrb[52].mxu1 }
0x1ee4   :  { %v4571_v7 = vadd.f32 %v9308_v34, %v4468_v16  ;;  %v4565_v40 = vpop.f32.mrb[53].mxu1 }
0x1ee5   :  { %v4566_v60 = vadd.f32 %v4565_v40, %v4467_v19 }
0x1ee6   :  { %v8302_v56 = vadd.f32 -0.70710677, %v4571_v7 }
0x1ee7   :  { %v8301_v46 = vadd.f32 -0.70710677, %v4566_v60  ;;  %v9311_v32 = vpop.f32.mrb[54].mxu1 }
0x1ee8   :  { %v12307_v48 = vmul.f32 0.7978846, %v8302_v56  ;;  %v4581_v51 = vadd.f32 %v9311_v32, %v4470_v30  ;;  %v4575_v22 = vpop.f32.mrb[55].mxu1 }
0x1ee9   :  { %v12309_v4 = vmul.f32 0.7978846, %v8301_v46  ;;  %v4576_v44 = vadd.f32 %v4575_v22, %v4469_v59 }
0x1eea   :  { %v4601_v3 = vand.u32 2147483647, %v12307_v48  ;;  %v8304_v49 = vadd.f32 -0.70710677, %v4581_v51  ;;  %vm4593_vm10 = vcmp.lt.f32.partialorder %v12307_v48, 0.0 }
0x1eeb   :  { %v12311_v6 = vpop.f32.mrb[56].mxu0  ;;  %v4600_v39 = vand.u32 2147483647, %v12309_v4  ;;  %v8303_v50 = vadd.f32 -0.70710677, %v4576_v44  ;;  %vm4592_vm11 = vcmp.lt.f32.partialorder %v12309_v4, 0.0 }
0x1eec   :  { %v12314_v54 = vpop.f32.mrb[57].mxu0  ;;  %v4605_v29 = vmul.f32 0.3275911, %v4601_v3  ;;  %v12317_v26 = vmul.f32 0.7978846, %v8304_v49  ;;  %v4653_v31 = vsub.f32 0.0, %v4601_v3 }
0x1eed   :  { %v4604_v63 = vmul.f32 0.3275911, %v4600_v39  ;;  %v12319_v20 = vmul.f32 0.7978846, %v8303_v50  ;;  %v4652_v11 = vsub.f32 0.0, %v4600_v39 }
0x1eee   :  { %v4609_v52 = vadd.f32 1.0, %v4605_v29  ;;  %v4603_v28 = vand.u32 2147483647, %v12317_v26  ;;  %v4657_v43 = vmul.f32 %v4653_v31, %v4601_v3  ;;  %vm4595_vm12 = vcmp.lt.f32.partialorder %v12317_v26, 0.0  ;;  %v12338_v26 = vld [vmem:[%s13027_s14 + $0x8] sm:$0xff] }
0x1eef   :  { %v12321_v33 = vpop.f32.mrb[58].mxu0  ;;  %v4608_v15 = vadd.f32 1.0, %v4604_v63  ;;  %v4602_v2 = vand.u32 2147483647, %v12319_v20  ;;  %v4656_v27 = vmul.f32 %v4652_v11, %v4600_v39  ;;  %vm4594_vm13 = vcmp.lt.f32.partialorder %v12319_v20, 0.0 }
0x1ef0   :  { %v12324_v57 = vpop.f32.mrb[59].mxu0  ;;  %10631 = vrcp.f32 %v4609_v52  ;;  %v4607_v37 = vmul.f32 0.3275911, %v4603_v28  ;;  %v4655_v14 = vsub.f32 0.0, %v4603_v28  ;;  %v4662_v35 = vmul.f32 1.442695, %v4657_v43 }
0x1ef1   :  { %10633 = vrcp.f32 %v4608_v15  ;;  %v4606_v23 = vmul.f32 0.3275911, %v4602_v2  ;;  %v4654_v17 = vsub.f32 0.0, %v4602_v2  ;;  %v4660_v5 = vmul.f32 1.442695, %v4656_v27 }
0x1ef2   :  { %v4611_v21 = vadd.f32 1.0, %v4607_v37  ;;  %v4659_v10 = vmul.f32 %v4655_v14, %v4603_v28 }
0x1ef3   :  { %v4610_v0 = vadd.f32 1.0, %v4606_v23  ;;  %v4658_v40 = vmul.f32 %v4654_v17, %v4602_v2 }
0x1ef4   :  { %10635 = vrcp.f32 %v4611_v21  ;;  %v4666_v30 = vmul.f32 1.442695, %v4659_v10 }
0x1ef5   :  { %10637 = vrcp.f32 %v4610_v0  ;;  %v4664_v3 = vmul.f32 1.442695, %v4658_v40  ;;  %v4599_v40 = vsel %vm4595_vm12, -1.0, %v11112_v55  ;;  %vm11115_vm12 = vmmov 0  }
0x1ef6   :  { %10639 = vpow2.f32 %v4662_v35 }
0x1ef7   :  { %10641 = vpow2.f32 %v4660_v5 }
0x1ef8   :  { %10643 = vpow2.f32 %v4666_v30 }
0x1ef9   :  { %10645 = vpow2.f32 %v4664_v3 }
0x1efa   :  { %v10632_v8 = vpop.eup %10631 }
0x1efb   :  { %v10634_v25 = vpop.eup %10633  ;;  %v4617_v47 = vmul.f32 1.0614054, %v10632_v8 }
0x1efc   :  { %v4616_v42 = vmul.f32 1.0614054, %v10634_v25 }
0x1efd   :  { %v4621_v62 = vadd.f32 -1.4531521, %v4617_v47 }
0x1efe   :  { %v10636_v53 = vpop.eup %10635  ;;  %v4620_v38 = vadd.f32 -1.4531521, %v4616_v42 }
0x1eff   :  { %v4625_v58 = vmul.f32 %v10632_v8, %v4621_v62  ;;  %v4619_v45 = vmul.f32 1.0614054, %v10636_v53  ;;  %v10638_v19 = vpop.eup %10637 }
0x1f00   :  { %v4624_v16 = vmul.f32 %v10634_v25, %v4620_v38  ;;  %v4618_v56 = vmul.f32 1.0614054, %v10638_v19  ;;  %v10640_v0 = vpop.eup %10639  ;;  %v4597_v38 = vsel %vm4593_vm10, -1.0, %v11112_v55 }
0x1f01   :  { %v4629_v34 = vadd.f32 1.4214138, %v4625_v58  ;;  %v4623_v7 = vadd.f32 -1.4531521, %v4619_v45  ;;  %v10642_v43 = vpop.eup %10641 }
0x1f02   :  { %v4628_v60 = vadd.f32 1.4214138, %v4624_v16  ;;  %v4622_v51 = vadd.f32 -1.4531521, %v4618_v56  ;;  %v10644_v35 = vpop.eup %10643 }
0x1f03   :  { %v4633_v59 = vmul.f32 %v10632_v8, %v4629_v34  ;;  %v4627_v46 = vmul.f32 %v10636_v53, %v4623_v7  ;;  %v10646_v16 = vpop.eup %10645 }
0x1f04   :  { %v4632_v32 = vmul.f32 %v10634_v25, %v4628_v60  ;;  %v4626_v39 = vmul.f32 %v10638_v19, %v4622_v51  ;;  %v12344_v51 = vld [vmem:[%s13028_s15 + $0x8] sm:$0xff] }
0x1f05   :  { %v4637_v22 = vadd.f32 -0.28449672, %v4633_v59  ;;  %v4631_v44 = vadd.f32 1.4214138, %v4627_v46  ;;  %v4810_v20 = vmul.f32 %v12344_v51, %v12311_v6 }
0x1f06   :  { %v4636_v49 = vadd.f32 -0.28449672, %v4632_v32  ;;  %v4630_v52 = vadd.f32 1.4214138, %v4626_v39  ;;  %v4598_v32 = vsel %vm4594_vm13, -1.0, %v11112_v55 }
0x1f07   :  { %v4641_v50 = vmul.f32 %v10632_v8, %v4637_v22  ;;  %v4635_v29 = vmul.f32 %v10636_v53, %v4631_v44  ;;  %v12351_v44 = vld [vmem:[%s13027_s14] sm:$0xff] }
0x1f08   :  { %v4640_v63 = vmul.f32 %v10634_v25, %v4636_v49  ;;  %v4634_v2 = vmul.f32 %v10638_v19, %v4630_v52  ;;  %v12357_v49 = vld [vmem:[%s13028_s15] sm:$0xff]  ;;  %v12364_v52 = vld [vmem:[%s13027_s14 + $0x18] sm:$0xff] }
0x1f09   :  { %v4645_v28 = vadd.f32 0.2548296, %v4641_v50  ;;  %v4639_v15 = vadd.f32 -0.28449672, %v4635_v29  ;;  %v4809_v39 = vmul.f32 %v12357_v49, %v12314_v54 }
0x1f0a   :  { %v4644_v37 = vadd.f32 0.2548296, %v4640_v63  ;;  %v4638_v11 = vadd.f32 -0.28449672, %v4634_v2 }
0x1f0b   :  { %v4649_v21 = vmul.f32 %v10632_v8, %v4645_v28  ;;  %v4643_v23 = vmul.f32 %v10636_v53, %v4639_v15  ;;  %v12370_v15 = vld [vmem:[%s13028_s15 + $0x18] sm:$0xff] }
0x1f0c   :  { %v4648_v31 = vmul.f32 %v10634_v25, %v4644_v37  ;;  %v4642_v42 = vmul.f32 %v10638_v19, %v4638_v11  ;;  %v4596_v25 = vsel %vm4592_vm11, -1.0, %v11112_v55  ;;  %v4812_v37 = vmul.f32 %v12370_v15, %v12321_v33  ;;  %v4935_v11 = vld [vmem:[#allocation14 + $0x100] sm:$0xff] }
0x1f0d   :  { %v4669_v14 = vmul.f32 %v10640_v0, %v4649_v21  ;;  %v4647_v47 = vadd.f32 0.2548296, %v4643_v23  ;;  %v12379_v21 = vld [vmem:[%s13027_s14 + $0x10] sm:$0xff] }
0x1f0e   :  { %v4668_v27 = vmul.f32 %v10642_v43, %v4648_v31  ;;  %v4646_v8 = vadd.f32 0.2548296, %v4642_v42  ;;  %v12385_v0 = vld [vmem:[%s13028_s15 + $0x10] sm:$0xff]  ;;  %v4936_v43 = vld [vmem:[#allocation14 + $0x108] sm:$0xff] }
0x1f0f   :  { %v4673_v62 = vsub.f32 1.0, %v4669_v14  ;;  %v4651_v17 = vmul.f32 %v10636_v53, %v4647_v47  ;;  %v4811_v33 = vmul.f32 %v12385_v0, %v12324_v57  ;;  %v4937_v14 = vld [vmem:[#allocation14 + $0x110] sm:$0xff]  ;;  %v9964_v47 = vpack.c.bf16 %v4936_v43, %v4935_v11 }
0x1f10   :  { %v4672_v10 = vsub.f32 1.0, %v4668_v27  ;;  %v4650_v45 = vmul.f32 %v10638_v19, %v4646_v8  ;;  %v4938_v27 = vld [vmem:[#allocation14 + $0x118] sm:$0xff] }
0x1f11   :  { %v4677_v58 = vmul.f32 %v4673_v62, %v4597_v38  ;;  %v4671_v5 = vmul.f32 %v10644_v35, %v4651_v17  ;;  %v9968_v42 = vpack.c.bf16 %v4938_v27, %v4937_v14  ;;  %v4939_v62 = vld [vmem:[#allocation14 + $0x120] sm:$0xff]  ;;  %v4940_v17 = vld [vmem:[#allocation14 + $0x128] sm:$0xff]  ;;  %9965 = vmatprep.subr.bf16.mxu0 %v9964_v47  ;;  %v4942_v8 = vld [vmem:[#allocation14 + $0x138] sm:$0xff] }
0x1f12   :  { %v4676_v48 = vmul.f32 %v4672_v10, %v4596_v25  ;;  %v4670_v53 = vmul.f32 %v10646_v16, %v4650_v45  ;;  %9967 = vmatpush3.bf16.msra.mxu0 %v9964_v47  ;;  %v9972_v57 = vpack.c.bf16 %v4940_v17, %v4939_v62  ;;  %v4941_v10 = vld [vmem:[#allocation14 + $0x130] sm:$0xff] }
0x1f13   :  { %v4681_v34 = vadd.f32 1.0, %v4677_v58  ;;  %v4675_v4 = vsub.f32 1.0, %v4671_v5  ;;  %9969 = vmatprep.subr.bf16.mxu0 %v9968_v42  ;;  %v9976_v25 = vpack.c.bf16 %v4942_v8, %v4941_v10  ;;  %v5137_v10 = vld [vmem:[#allocation7 + $0xa0] sm:$0xff]  ;;  %v5138_v8 = vld [vmem:[#allocation7 + $0xa8] sm:$0xff] }
0x1f14   :  { %v4680_v7 = vadd.f32 1.0, %v4676_v48  ;;  %v4674_v56 = vsub.f32 1.0, %v4670_v53 }
0x1f15   :  { %v4679_v60 = vmul.f32 %v4675_v4, %v4599_v40  ;;  %v4685_v30 = vmul.f32 0.5, %v4681_v34 }
0x1f16   :  { %v4684_v59 = vmul.f32 0.5, %v4680_v7  ;;  %v4678_v22 = vmul.f32 %v4674_v56, %v4598_v32  ;;  %9971 = vmatpush3.bf16.msra.mxu0 %v9968_v42 }
0x1f17   :  { %v4683_v46 = vadd.f32 1.0, %v4679_v60  ;;  %v4689_v19 = vmul.f32 %v12338_v26, %v4685_v30  ;;  %9973 = vmatprep.subr.bf16.mxu0 %v9972_v57 }
0x1f18   :  { %v4688_v3 = vmul.f32 %v12351_v44, %v4684_v59  ;;  %v4682_v63 = vadd.f32 1.0, %v4678_v22 }
0x1f19   :  { %v4814_v50 = vadd.f32 %v4810_v20, %v4689_v19  ;;  %v4687_v29 = vmul.f32 0.5, %v4683_v46 }
0x1f1a   :  { %v4813_v6 = vadd.f32 %v4809_v39, %v4688_v3  ;;  %v4686_v54 = vmul.f32 0.5, %v4682_v63  ;;  %9975 = vmatpush3.bf16.msra.mxu0 %v9972_v57 }
0x1f1b   :  { %v4691_v28 = vmul.f32 %v12364_v52, %v4687_v29  ;;  %9977 = vmatprep.subr.bf16.mxu0 %v9976_v25 }
0x1f1c   :  { %9334 = vmatprep.mubr.msk.f32.mxu1 %vm316_vm2, %v4813_v6  ;;  %v4690_v23 = vmul.f32 %v12379_v21, %v4686_v54 }
0x1f1d   :  { %v4816_v2 = vadd.f32 %v4812_v37, %v4691_v28  ;;  %9335 = vmatmul.mubr.msk.f32.vlgmr.msra.gmra.mrb[56].mxu1 %vm316_vm2, %v4814_v50 }
0x1f1e   :  { %v4815_v31 = vadd.f32 %v4811_v33, %v4690_v23  ;;  %9979 = vmatpush3.bf16.msra.mxu0 %v9976_v25  ;;  %v5139_v25 = vld [vmem:[#allocation7 + $0xb0] sm:$0xff] }
0x1f20   :  { %9337 = vmatprep.mubr.msk.f32.mxu1 %vm316_vm2, %v4815_v31 }
0x1f21   :  { %9338 = vmatmul.mubr.msk.f32.gmra.mrb[58].mxu1 %vm316_vm2, %v4816_v2 }
0x1ff0   :  { %v9336_v35 = vpop.f32.mrb[56].mxu1 }
0x1ff1   :  { %4920 = vrot.lane.b32.xlu1 %v9336_v35, %s11113_s2  ;;  %v4895_v38 = vpop.f32.mrb[57].mxu1 }
0x1ff2   :  { %4918 = vrot.lane.b32.xlu0 %v4895_v38, %s11113_s2 }
0x1ff4   :  { %v9339_v58 = vpop.f32.mrb[58].mxu1 }
0x1ff5   :  { %4924 = vrot.lane.b32.xlu1 %v9339_v58, %s11113_s2  ;;  %v4905_v5 = vpop.f32.mrb[59].mxu1  ;;  %v9980_v58 = vpack.c.bf16 %v5138_v8, %v5137_v10 }
0x1ff6   :  { %4922 = vrot.lane.b32.xlu0 %v4905_v5, %s11113_s2  ;;  %v5140_v5 = vld [vmem:[#allocation7 + $0xb8] sm:$0xff] }
0x1ff7   :  { %9981 = vmatprep.subr.bf16.mxu1 %v9980_v58 }
0x1ff8   :  { %9983 = vmatpush3.bf16.msra.mxu1 %v9980_v58 }
0x2063   :  { %v4921_v48 = vpop.permute.xlu1 %4920 }
0x2064   :  { %v4931_v45 = vmul.f32 %v4921_v48, %v12276_v61  ;;  %v4919_v16 = vpop.permute.xlu0 %4918  ;;  %v9984_v48 = vpack.c.bf16 %v5140_v5, %v5139_v25 }
0x2065   :  { %v4930_v34 = vmul.f32 %v4919_v16, %v12278_v24  ;;  %v5272_v16 = vld [vmem:[#allocation10 + $0xa8] sm:$0xff] }
0x2066   :  { %4957 = vrot.lane.b32.xlu1 %v4931_v45, %s11113_s2  ;;  %9985 = vmatprep.subr.bf16.mxu1 %v9984_v48  ;;  %v5271_v45 = vld [vmem:[#allocation10 + $0xa0] sm:$0xff] }
0x2067   :  { %4955 = vrot.lane.b32.xlu0 %v4930_v34, %s11113_s2  ;;  %v4925_v4 = vpop.permute.xlu1 %4924  ;;  %9987 = vmatpush3.bf16.msra.mxu1 %v9984_v48  ;;  %v9988_v34 = vpack.c.bf16 %v5272_v16, %v5271_v45 }
0x2068   :  { %v4933_v7 = vmul.f32 %v4925_v4, %v12290_v18  ;;  %v4923_v40 = vpop.permute.xlu0 %4922  ;;  %v8317_v18 = vld [vmem:[#allocation16 + $0x4] ss:$0 sm:$0xff] }
0x2069   :  { %v4932_v53 = vmul.f32 %v4923_v40, %v12292_v41  ;;  %9989 = vmatprep.subr.bf16.mxu1 %v9988_v34 }
0x206a   :  { %4961 = vrot.lane.b32.xlu1 %v4933_v7, %s11113_s2 }
0x206b   :  { %4959 = vrot.lane.b32.xlu0 %v4932_v53, %s11113_s2 }
0x20d8   :  { %v4958_v30 = vpop.permute.xlu1 %4957 }
0x20d9   :  { %v4956_v60 = vpop.permute.xlu0 %4955 }
0x20da   :  { %9356 = vmatprep.mubr.msk.f32.mxu0 %vm1162_vm9, %v4956_v60 }
0x20db   :  { %9357 = vmatmul.mubr.msk.f32.vlgmr.msra.gmra.mrb[60].mxu0 %vm1162_vm9, %v4958_v30 }
0x20dc   :  { %v4962_v24 = vpop.permute.xlu1 %4961 }
0x20dd   :  { %v4960_v61 = vpop.permute.xlu0 %4959 }
0x20de   :  { %9359 = vmatprep.mubr.msk.f32.mxu0 %vm1162_vm9, %v4960_v61 }
0x20df   :  { %9360 = vmatmul.mubr.msk.f32.gmra.mrb[62].mxu0 %vm1162_vm9, %v4962_v24 }
0x21ae   :  { %v9358_v56 = vpop.f32.mrb[60].mxu0 }
0x21af   :  { %v5043_v59 = vadd.f32 %v9358_v56, %v8317_v18  ;;  %v5037_v41 = vpop.f32.mrb[61].mxu0 }
0x21b0   :  { %v5038_v46 = vadd.f32 %v8317_v18, %v5037_v41 }
0x21b1   :  { %v12408_v32 = vadd.f32 %v5043_v59, %v12192_v13 }
0x21b2   :  { %v12411_v19 = vadd.f32 %v5038_v46, %v12195_v9  ;;  %v9361_v22 = vpop.f32.mrb[62].mxu0 }
0x21b3   :  { %v5063_v20 = vsel %vm316_vm2, %v12408_v32, 0.0  ;;  %v5047_v39 = vpop.f32.mrb[63].mxu0  ;;  %v5053_v50 = vadd.f32 %v9361_v22, %v8317_v18 }
0x21b4   :  { %5064 = vadd.xlane.f32.xlu1 %v5063_v20  ;;  %v5060_v3 = vsel %vm316_vm2, %v12411_v19, 0.0  ;;  %v5048_v29 = vadd.f32 %v8317_v18, %v5047_v39  ;;  %v8323_v20 = vld [vmem:[%s13055_s9 + $0x5] ss:$0 sm:$0xff] }
0x21b5   :  { %5061 = vadd.xlane.f32.xlu0 %v5060_v3  ;;  %v12421_v13 = vadd.f32 %v5053_v50, %v12205_v1 }
0x21b6   :  { %v12418_v63 = vadd.f32 %v5048_v29, %v12202_v12  ;;  %v8325_v29 = vld [vmem:[%s13017_s4 + $0x5] ss:$0 sm:$0xff] }
0x21b7   :  { %v5069_v6 = vsel %vm316_vm2, %v12421_v13, 0.0 }
0x21b8   :  { %v5066_v9 = vsel %vm316_vm2, %v12418_v63, 0.0 }
0x21b9   :  { %5067 = vadd.xlane.f32.xlu0 %v5066_v9 }
0x21bd   :  { %5070 = vadd.xlane.f32.xlu0 %v5069_v6  ;;  %v5273_v6 = vld [vmem:[#allocation10 + $0xb0] sm:$0xff] }
0x2241   :  { %v5065_v28 = vpop.xlane.xlu1 %5064 }
0x2242   :  { %v5073_v37 = vmul.f32 0.03125, %v5065_v28  ;;  %v5062_v54 = vpop.xlane.xlu0 %5061  ;;  %v5274_v28 = vld [vmem:[#allocation10 + $0xb8] sm:$0xff] }
0x2243   :  { %v5072_v2 = vmul.f32 0.03125, %v5062_v54 }
0x2244   :  { %v5077_v23 = vsub.f32 %v12408_v32, %v5073_v37 }
0x2245   :  { %v5076_v12 = vsub.f32 %v12411_v19, %v5072_v2 }
0x2246   :  { %v5081_v33 = vmul.f32 %v5077_v23, %v5077_v23  ;;  %v5068_v1 = vpop.xlane.xlu0 %5067 }
0x2247   :  { %v5080_v31 = vmul.f32 %v5076_v12, %v5076_v12  ;;  %v5074_v43 = vmul.f32 0.03125, %v5068_v1 }
0x2248   :  { %v5087_v11 = vsel %vm316_vm2, %v5081_v33, 0.0  ;;  %v9992_v33 = vpack.c.bf16 %v5274_v28, %v5273_v6 }
0x2249   :  { %5088 = vadd.xlane.f32.xlu1 %v5087_v11  ;;  %v5084_v14 = vsel %vm316_vm2, %v5080_v31, 0.0  ;;  %v5078_v47 = vsub.f32 %v12418_v63, %v5074_v43 }
0x224a   :  { %5085 = vadd.xlane.f32.xlu0 %v5084_v14  ;;  %v5071_v27 = vpop.xlane.xlu0 %5070 }
0x224b   :  { %v5075_v42 = vmul.f32 0.03125, %v5071_v27  ;;  %v5082_v62 = vmul.f32 %v5078_v47, %v5078_v47 }
0x224d   :  { %v5079_v17 = vsub.f32 %v12421_v13, %v5075_v42  ;;  %v5090_v35 = vsel %vm316_vm2, %v5082_v62, 0.0 }
0x224e   :  { %5091 = vadd.xlane.f32.xlu0 %v5090_v35 }
0x224f   :  { %v5083_v38 = vmul.f32 %v5079_v17, %v5079_v17 }
0x2251   :  { %v5093_v57 = vsel %vm316_vm2, %v5083_v38, 0.0 }
0x2252   :  { %5094 = vadd.xlane.f32.xlu1 %v5093_v57 }
0x22d6   :  { %v5089_v4 = vpop.xlane.xlu1 %5088 }
0x22d7   :  { %v5097_v7 = vmul.f32 0.03125, %v5089_v4  ;;  %v5086_v40 = vpop.xlane.xlu0 %5085 }
0x22d8   :  { %v5096_v53 = vmul.f32 0.03125, %v5086_v40 }
0x22d9   :  { %v5101_v60 = vadd.f32 1e-05, %v5097_v7 }
0x22da   :  { %v5100_v30 = vadd.f32 1e-05, %v5096_v53 }
0x22db   :  { %10647 = vrsqrt.f32 %v5101_v60  ;;  %v5092_v61 = vpop.xlane.xlu0 %5091 }
0x22dc   :  { %10649 = vrsqrt.f32 %v5100_v30  ;;  %v5098_v24 = vmul.f32 0.03125, %v5092_v61 }
0x22de   :  { %v5102_v18 = vadd.f32 1e-05, %v5098_v24 }
0x22df   :  { %v5095_v56 = vpop.xlane.xlu1 %5094 }
0x22e0   :  { %10651 = vrsqrt.f32 %v5102_v18  ;;  %v5099_v59 = vmul.f32 0.03125, %v5095_v56 }
0x22e2   :  { %v5103_v41 = vadd.f32 1e-05, %v5099_v59 }
0x22e4   :  { %10653 = vrsqrt.f32 %v5103_v41 }
0x22e5   :  { %v10648_v46 = vpop.eup %10647 }
0x22e6   :  { %v10650_v22 = vpop.eup %10649  ;;  %v5109_v3 = vmul.f32 %v10648_v46, %v5077_v23 }
0x22e7   :  { %v5108_v39 = vmul.f32 %v10650_v22, %v5076_v12 }
0x22e8   :  { %v5121_v50 = vmul.f32 %v8323_v20, %v5109_v3 }
0x22e9   :  { %v5120_v9 = vmul.f32 %v8323_v20, %v5108_v39 }
0x22ea   :  { %v10652_v54 = vpop.eup %10651  ;;  %v5133_v2 = vadd.f32 %v8325_v29, %v5121_v50  ;;  %v8338_v50 = vld [vmem:[%s13023_s10 + $0x5] ss:$0 sm:$0xff] }
0x22eb   :  { %v5132_v37 = vadd.f32 %v8325_v29, %v5120_v9  ;;  %v5110_v31 = vmul.f32 %v10652_v54, %v5078_v47 }
0x22ed   :  { %9370 = vmatprep.mubr.msk.f32.mxu1 %vm316_vm2, %v5132_v37  ;;  %v5122_v23 = vmul.f32 %v8323_v20, %v5110_v31 }
0x22ee   :  { %9371 = vmatmul.mubr.msk.f32.vlgmr.msra.gmra.mrb[60].mxu1 %vm316_vm2, %v5133_v2  ;;  %v10654_v12 = vpop.eup %10653 }
0x22ef   :  { %9991 = vmatpush3.bf16.msra.mxu1 %v9988_v34  ;;  %v5134_v1 = vadd.f32 %v8325_v29, %v5122_v23  ;;  %v5111_v11 = vmul.f32 %v10654_v12, %v5079_v17  ;;  %v8331_v17 = vld [vmem:[#allocation11 + $0x5] ss:$0 sm:$0xff] }
0x22f0   :  { %9993 = vmatprep.subr.bf16.mxu1 %v9992_v33 }
0x22f1   :  { %9373 = vmatprep.mubr.msk.f32.mxu1 %vm316_vm2, %v5134_v1  ;;  %v5123_v43 = vmul.f32 %v8323_v20, %v5111_v11  ;;  %v8336_v20 = vld [vmem:[#allocation13 + $0x5] ss:$0 sm:$0xff] }
0x22f3   :  { %9995 = vmatpush3.bf16.msra.mxu1 %v9992_v33  ;;  %v5135_v14 = vadd.f32 %v8325_v29, %v5123_v43 }
0x22f5   :  { %9374 = vmatmul.mubr.msk.f32.gmra.mrb[62].mxu1 %vm316_vm2, %v5135_v14 }
0x22f6   :  { %9384 = vmatprep.mubr.msk.f32.mxu1 %vm316_vm2, %v5132_v37 }
0x22f9   :  { %9385 = vmatmul.mubr.msk.f32.vlgmr.msra.gmra.mrb[64].mxu1 %vm316_vm2, %v5133_v2 }
0x22fa   :  { %9387 = vmatprep.mubr.msk.f32.mxu1 %vm316_vm2, %v5134_v1 }
0x22fd   :  { %9388 = vmatmul.mubr.msk.f32.gmra.mrb[66].mxu1 %vm316_vm2, %v5135_v14  ;;  %v8326_v14 = vld [vmem:[#allocation8 + $0x5] ss:$0 sm:$0xff] }
0x23c1   :  { %v12449_v47 = vpop.f32.mrb[60].mxu1 }
0x23c2   :  { %v12451_v27 = vpop.f32.mrb[61].mxu1 }
0x23c8   :  { %v12453_v42 = vpop.f32.mrb[62].mxu1 }
0x23c9   :  { %v12455_v62 = vpop.f32.mrb[63].mxu1 }
0x23cc   :  { %v9386_v35 = vpop.f32.mrb[64].mxu1 }
0x23cd   :  { %v5355_v38 = vadd.f32 %v9386_v35, %v8331_v17  ;;  %v5349_v57 = vpop.f32.mrb[65].mxu1  ;;  %v5228_v35 = vadd.f32 %v8326_v14, %v12451_v27 }
0x23ce   :  { %v5350_v10 = vadd.f32 %v8331_v17, %v5349_v57 }
0x23cf   :  { %v5369_v8 = vsub.f32 0.0, %v5355_v38  ;;  %v5246_v57 = vsub.f32 0.0, %v5228_v35 }
0x23d0   :  { %v5368_v58 = vsub.f32 0.0, %v5350_v10  ;;  %v9389_v25 = vpop.f32.mrb[66].mxu1 }
0x23d1   :  { %v5374_v5 = vmul.f32 1.442695, %v5369_v8  ;;  %v5365_v48 = vadd.f32 %v9389_v25, %v8331_v17  ;;  %v5359_v45 = vpop.f32.mrb[67].mxu1  ;;  %v5243_v8 = vadd.f32 %v12453_v42, %v8326_v14  ;;  %v5238_v25 = vadd.f32 %v8326_v14, %v12455_v62 }
0x23d2   :  { %v5372_v16 = vmul.f32 1.442695, %v5368_v58  ;;  %v5360_v34 = vadd.f32 %v8331_v17, %v5359_v45  ;;  %v5233_v17 = vadd.f32 %v12449_v47, %v8326_v14  ;;  %v5250_v58 = vmul.f32 1.442695, %v5246_v57  ;;  %v5417_v57 = vld [vmem:[#allocation17 + $0xa0] sm:$0xff] }
0x23d3   :  { %v5371_v4 = vsub.f32 0.0, %v5365_v48  ;;  %10655 = vpow2.f32 %v5374_v5  ;;  %v5249_v5 = vsub.f32 0.0, %v5243_v8 }
0x23d4   :  { %v5370_v7 = vsub.f32 0.0, %v5360_v34  ;;  %10657 = vpow2.f32 %v5372_v16 }
0x23d5   :  { %v5378_v40 = vmul.f32 1.442695, %v5371_v4  ;;  %v5256_v45 = vmul.f32 1.442695, %v5249_v5 }
0x23d6   :  { %v5376_v53 = vmul.f32 1.442695, %v5370_v7 }
0x23d7   :  { %10659 = vpow2.f32 %v5378_v40 }
0x23d8   :  { %10661 = vpow2.f32 %v5376_v53 }
0x23dd   :  { %v10656_v60 = vpop.eup %10655 }
0x23de   :  { %v10658_v30 = vpop.eup %10657  ;;  %v5381_v61 = vadd.f32 1.0, %v10656_v60 }
0x23df   :  { %v5380_v18 = vadd.f32 1.0, %v10658_v30 }
0x23e0   :  { %10663 = vrcp.f32 %v5381_v61 }
0x23e1   :  { %v10660_v24 = vpop.eup %10659  ;;  %10665 = vrcp.f32 %v5380_v18 }
0x23e2   :  { %v10662_v56 = vpop.eup %10661  ;;  %v5383_v59 = vadd.f32 1.0, %v10660_v24 }
0x23e3   :  { %v5382_v41 = vadd.f32 1.0, %v10662_v56 }
0x23e4   :  { %10667 = vrcp.f32 %v5383_v59 }
0x23e5   :  { %10669 = vrcp.f32 %v5382_v41 }
0x23ea   :  { %v10664_v46 = vpop.eup %10663 }
0x23eb   :  { %v10666_v22 = vpop.eup %10665  ;;  %v5389_v3 = vmul.f32 %v10664_v46, %v5355_v38  ;;  %v5247_v38 = vsub.f32 0.0, %v5233_v17 }
0x23ec   :  { %v5388_v29 = vmul.f32 %v10666_v22, %v5350_v10 }
0x23ed   :  { %v5401_v6 = vmul.f32 %v8336_v20, %v5389_v3  ;;  %v5252_v10 = vmul.f32 1.442695, %v5247_v38 }
0x23ee   :  { %v10668_v39 = vpop.eup %10667  ;;  %v5400_v37 = vmul.f32 %v8336_v20, %v5388_v29 }
0x23ef   :  { %v10670_v9 = vpop.eup %10669  ;;  %v5391_v28 = vmul.f32 %v10668_v39, %v5365_v48  ;;  %v12460_v2 = vadd.f32 %v8338_v50, %v5401_v6  ;;  %10671 = vpow2.f32 %v5252_v10  ;;  %v5248_v48 = vsub.f32 0.0, %v5238_v25 }
0x23f0   :  { %v5390_v54 = vmul.f32 %v10670_v9, %v5360_v34  ;;  %v5412_v31 = vadd.f32 %v8338_v50, %v5400_v37  ;;  %10673 = vpow2.f32 %v5250_v58 }
0x23f1   :  { %v5403_v33 = vmul.f32 %v8336_v20, %v5391_v28  ;;  %v5254_v16 = vmul.f32 1.442695, %v5248_v48  ;;  %10675 = vpow2.f32 %v5256_v45  ;;  %v5419_v48 = vld [vmem:[#allocation17 + $0xb0] sm:$0xff] }
0x23f2   :  { %v5402_v23 = vmul.f32 %v8336_v20, %v5390_v54  ;;  %9398 = vmatprep.mubr.msk.f32.mxu0 %vm682_vm3, %v5412_v31  ;;  %v10307_v11 = vpack.i.bf16 %v12460_v2, %v5412_v31 }
0x23f3   :  { %v12462_v12 = vadd.f32 %v8338_v50, %v5403_v33  ;;  %10677 = vpow2.f32 %v5254_v16 }
0x23f4   :  { %v12464_v1 = vadd.f32 %v8338_v50, %v5402_v23  ;;  %10308 = vrot.lane.b32.xlu0 %v10307_v11, %s11109_s24 }
0x23f6   :  { %v10312_v43 = vpack.i.bf16 %v12462_v12, %v12464_v1 }
0x23f8   :  { %10313 = vrot.lane.b32.xlu1 %v10312_v43, %s11109_s24  ;;  %5642 = vrot.lane.b32.xlu0 %v5412_v31, %s11110_s28 }
0x23f9   :  { %v10672_v34 = vpop.eup %10671 }
0x23fa   :  { %v10674_v47 = vpop.eup %10673  ;;  %v5259_v4 = vadd.f32 1.0, %v10672_v34 }
0x23fb   :  { %v5258_v27 = vadd.f32 1.0, %v10674_v47  ;;  %v10676_v7 = vpop.eup %10675 }
0x23fc   :  { %10318 = vrot.lane.b32.xlu1 %v10307_v11, %s11111_s0  ;;  %5646 = vrot.lane.b32.xlu0 %v12464_v1, %s11110_s28  ;;  %10679 = vrcp.f32 %v5259_v4  ;;  %v5261_v42 = vadd.f32 1.0, %v10676_v7 }
0x23fd   :  { %10681 = vrcp.f32 %v5258_v27  ;;  %v10678_v40 = vpop.eup %10677 }
0x23fe   :  { %v5260_v53 = vadd.f32 1.0, %v10678_v40  ;;  %10683 = vrcp.f32 %v5261_v42 }
0x2400   :  { %10323 = vrot.lane.b32.xlu1 %v10312_v43, %s11111_s0  ;;  %10685 = vrcp.f32 %v5260_v53 }
0x2404   :  { %5644 = vrot.lane.b32.xlu1 %v12460_v2, %s11110_s28 }
0x2406   :  { %v10680_v41 = vpop.eup %10679 }
0x2407   :  { %v10682_v20 = vpop.eup %10681  ;;  %v12492_v50 = vmul.f32 %v10680_v41, %v5233_v17 }
0x2408   :  { %5648 = vrot.lane.b32.xlu1 %v12462_v12, %s11110_s28  ;;  %v12494_v29 = vmul.f32 %v10682_v20, %v5228_v35  ;;  %v10684_v54 = vpop.eup %10683 }
0x2409   :  { %v12506_v11 = vmul.f32 %v10684_v54, %v5243_v8 }
0x240a   :  { %v10020_v31 = vpack.c.bf16 %v12492_v50, %v12494_v29  ;;  %v10686_v23 = vpop.eup %10685 }
0x240b   :  { %v12508_v43 = vmul.f32 %v10686_v23, %v5238_v25  ;;  %v5420_v25 = vld [vmem:[#allocation17 + $0xb8] sm:$0xff] }
0x240d   :  { %v10024_v14 = vpack.c.bf16 %v12506_v11, %v12508_v43 }
0x2466   :  { %v10309_v60 = vpop.permute.xlu0 %10308 }
0x2467   :  { %v10311_v62 = vunpack.i.h.bf16 %v10309_v60  ;;  %v10310_v30 = vunpack.i.l.bf16 %v10309_v60 }
0x2469   :  { %v9996_v24 = vpack.c.bf16 %v10311_v62, %v10310_v30 }
0x246a   :  { %v10314_v61 = vpop.permute.xlu1 %10313  ;;  %v5643_v59 = vpop.permute.xlu0 %5642 }
0x246b   :  { %v10316_v18 = vunpack.i.h.bf16 %v10314_v61  ;;  %v10315_v56 = vunpack.i.l.bf16 %v10314_v61  ;;  %9998 = vmatprep.subr.msk.bf16.mxu0 %vm11481_vm4, %v9996_v24  ;;  %9412 = vmatprep.mubr.msk.f32.mxu1 %vm682_vm3, %v5643_v59 }
0x246c   :  { %10001 = vmatpush3.bf16.xpose.msk.msra.mxu0 %vm11481_vm4, %v9996_v24 }
0x246d   :  { %v10002_v46 = vpack.c.bf16 %v10316_v18, %v10315_v56 }
0x246e   :  { %v10319_v22 = vpop.permute.xlu1 %10318  ;;  %v5647_v35 = vpop.permute.xlu0 %5646 }
0x246f   :  { %v10321_v3 = vunpack.i.h.bf16 %v10319_v22  ;;  %v10320_v39 = vunpack.i.l.bf16 %v10319_v22  ;;  %10004 = vmatprep.subr.msk.bf16.mxu0 %vm11481_vm4, %v10002_v46 }
0x2471   :  { %v10008_v9 = vpack.c.bf16 %v10321_v3, %v10320_v39 }
0x2472   :  { %v10324_v6 = vpop.permute.xlu1 %10323 }
0x2473   :  { %v10326_v28 = vunpack.i.h.bf16 %v10324_v6  ;;  %v10325_v37 = vunpack.i.l.bf16 %v10324_v6  ;;  %10010 = vmatprep.subr.msk.bf16.mxu1 %vm11481_vm4, %v10008_v9 }
0x2474   :  { %10013 = vmatpush3.bf16.xpose.msk.msra.mxu1 %vm11481_vm4, %v10008_v9  ;;  %10007 = vmatpush3.bf16.xpose.msk.msra.mxu0 %vm11481_vm4, %v10002_v46 }
0x2475   :  { %v10014_v33 = vpack.c.bf16 %v10326_v28, %v10325_v37  ;;  %10021 = vmatprep.subr.bf16.mxu0 %v10020_v31 }
0x2476   :  { %v5645_v17 = vpop.permute.xlu1 %5644 }
0x2477   :  { %10016 = vmatprep.subr.msk.bf16.mxu1 %vm11481_vm4, %v10014_v33 }
0x247a   :  { %v5649_v38 = vpop.permute.xlu1 %5648 }
0x247b   :  { %9399 = vmatmul.mubr.msk.f32.vlgmr.msra.gmra.mrb[64].mxu0 %vm682_vm3, %v12460_v2  ;;  %v5418_v2 = vld [vmem:[#allocation17 + $0xa8] sm:$0xff] }
0x247c   :  { %10019 = vmatpush3.bf16.xpose.msk.msra.mxu1 %vm11481_vm4, %v10014_v33  ;;  %9401 = vmatprep.mubr.msk.f32.mxu0 %vm682_vm3, %v12464_v1 }
0x247d   :  { %10023 = vmatpush3.bf16.msra.mxu0 %v10020_v31 }
0x247e   :  { %10025 = vmatprep.subr.bf16.mxu0 %v10024_v14 }
0x247f   :  { %9402 = vmatmul.mubr.msk.f32.gmra.mrb[66].mxu0 %vm682_vm3, %v12462_v12 }
0x2481   :  { %10027 = vmatpush3.bf16.msra.mxu0 %v10024_v14 }
0x2483   :  { %9413 = vmatmul.mubr.msk.f32.vlgmr.msra.gmra.mrb[68].mxu1 %vm682_vm3, %v5645_v17 }
0x2484   :  { %9415 = vmatprep.mubr.msk.f32.mxu1 %vm682_vm3, %v5647_v35 }
0x2487   :  { %9416 = vmatmul.mubr.msk.f32.gmra.mrb[70].mxu1 %vm682_vm3, %v5649_v38 }
0x254e   :  { %v9400_v10 = vpop.f32.mrb[64].mxu0 }
0x254f   :  { %v5521_v8 = vadd.f32 %v9400_v10, %v5418_v2  ;;  %v5515_v1 = vpop.f32.mrb[65].mxu0 }
0x2550   :  { %v5516_v58 = vadd.f32 %v5515_v1, %v5417_v57 }
0x2551   :  { %v8348_v5 = vadd.f32 -0.70710677, %v5521_v8 }
0x2552   :  { %v8347_v45 = vadd.f32 -0.70710677, %v5516_v58  ;;  %v9403_v12 = vpop.f32.mrb[66].mxu0 }
0x2553   :  { %v12523_v16 = vmul.f32 0.7978846, %v8348_v5  ;;  %v5531_v34 = vadd.f32 %v9403_v12, %v5420_v25  ;;  %v5525_v47 = vpop.f32.mrb[67].mxu0 }
0x2554   :  { %v12525_v4 = vmul.f32 0.7978846, %v8347_v45  ;;  %v5526_v27 = vadd.f32 %v5525_v47, %v5419_v48 }
0x2555   :  { %v5551_v40 = vand.u32 2147483647, %v12523_v16  ;;  %v8350_v42 = vadd.f32 -0.70710677, %v5531_v34  ;;  %vm5543_vm14 = vcmp.lt.f32.partialorder %v12523_v16, 0.0 }
0x2556   :  { %v12527_v7 = vpop.f32.mrb[68].mxu1  ;;  %v5550_v60 = vand.u32 2147483647, %v12525_v4  ;;  %v8349_v62 = vadd.f32 -0.70710677, %v5526_v27  ;;  %vm5542_vm15 = vcmp.lt.f32.partialorder %v12525_v4, 0.0 }
0x2557   :  { %v12530_v53 = vpop.f32.mrb[69].mxu1  ;;  %v5555_v30 = vmul.f32 0.3275911, %v5551_v40  ;;  %v12533_v61 = vmul.f32 0.7978846, %v8350_v42  ;;  %v5603_v28 = vsub.f32 0.0, %v5551_v40 }
0x2558   :  { %v5554_v24 = vmul.f32 0.3275911, %v5550_v60  ;;  %v12535_v18 = vmul.f32 0.7978846, %v8349_v62  ;;  %v5602_v37 = vsub.f32 0.0, %v5550_v60 }
0x2559   :  { %v5559_v59 = vadd.f32 1.0, %v5555_v30  ;;  %v5553_v41 = vand.u32 2147483647, %v12533_v61  ;;  %v5607_v33 = vmul.f32 %v5603_v28, %v5551_v40  ;;  %vm5545_vm0 = vcmp.lt.f32.partialorder %v12533_v61, 0.0 }
0x255a   :  { %v12537_v56 = vpop.f32.mrb[70].mxu1  ;;  %v5558_v20 = vadd.f32 1.0, %v5554_v24  ;;  %v5552_v3 = vand.u32 2147483647, %v12535_v18  ;;  %v5606_v17 = vmul.f32 %v5602_v37, %v5550_v60  ;;  %vm5544_vm1 = vcmp.lt.f32.partialorder %v12535_v18, 0.0 }
0x255b   :  { %v12540_v46 = vpop.f32.mrb[71].mxu1  ;;  %10687 = vrcp.f32 %v5559_v59  ;;  %v5557_v22 = vmul.f32 0.3275911, %v5553_v41  ;;  %v5605_v31 = vsub.f32 0.0, %v5553_v41  ;;  %v5612_v10 = vmul.f32 1.442695, %v5607_v33 }
0x255c   :  { %10689 = vrcp.f32 %v5558_v20  ;;  %v5556_v9 = vmul.f32 0.3275911, %v5552_v3  ;;  %v5604_v2 = vsub.f32 0.0, %v5552_v3  ;;  %v5610_v25 = vmul.f32 1.442695, %v5606_v17 }
0x255d   :  { %v5561_v39 = vadd.f32 1.0, %v5557_v22  ;;  %v5609_v1 = vmul.f32 %v5605_v31, %v5553_v41 }
0x255e   :  { %v5560_v6 = vadd.f32 1.0, %v5556_v9  ;;  %v5608_v47 = vmul.f32 %v5604_v2, %v5552_v3 }
0x255f   :  { %10691 = vrcp.f32 %v5561_v39  ;;  %v5616_v40 = vmul.f32 1.442695, %v5609_v1 }
0x2560   :  { %10693 = vrcp.f32 %v5560_v6  ;;  %v5614_v41 = vmul.f32 1.442695, %v5608_v47  ;;  %v5547_v47 = vsel %vm5543_vm14, -1.0, %v11112_v55 }
0x2561   :  { %10695 = vpow2.f32 %v5612_v10 }
0x2562   :  { %10697 = vpow2.f32 %v5610_v25 }
0x2563   :  { %10699 = vpow2.f32 %v5616_v40 }
0x2564   :  { %10701 = vpow2.f32 %v5614_v41 }
0x2565   :  { %v10688_v54 = vpop.eup %10687 }
0x2566   :  { %v10690_v23 = vpop.eup %10689  ;;  %v5567_v14 = vmul.f32 1.0614054, %v10688_v54 }
0x2567   :  { %v5566_v35 = vmul.f32 1.0614054, %v10690_v23 }
0x2568   :  { %v5571_v38 = vadd.f32 -1.4531521, %v5567_v14 }
0x2569   :  { %v10692_v57 = vpop.eup %10691  ;;  %v5570_v8 = vadd.f32 -1.4531521, %v5566_v35 }
0x256a   :  { %v5575_v58 = vmul.f32 %v10688_v54, %v5571_v38  ;;  %v5569_v5 = vmul.f32 1.0614054, %v10692_v57  ;;  %v10694_v45 = vpop.eup %10693 }
0x256b   :  { %v5574_v48 = vmul.f32 %v10690_v23, %v5570_v8  ;;  %v5568_v42 = vmul.f32 1.0614054, %v10694_v45  ;;  %v10696_v38 = vpop.eup %10695 }
0x256c   :  { %v5579_v12 = vadd.f32 1.4214138, %v5575_v58  ;;  %v5573_v34 = vadd.f32 -1.4531521, %v5569_v5  ;;  %v10698_v8 = vpop.eup %10697 }
0x256d   :  { %v5578_v27 = vadd.f32 1.4214138, %v5574_v48  ;;  %v5572_v24 = vadd.f32 -1.4531521, %v5568_v42 }
0x256e   :  { %v5583_v60 = vmul.f32 %v10688_v54, %v5579_v12  ;;  %v5577_v62 = vmul.f32 %v10692_v57, %v5573_v34  ;;  %v10700_v34 = vpop.eup %10699 }
0x256f   :  { %v5582_v30 = vmul.f32 %v10690_v23, %v5578_v27  ;;  %v5576_v39 = vmul.f32 %v10694_v45, %v5572_v24 }
0x2570   :  { %v5587_v59 = vadd.f32 -0.28449672, %v5583_v60  ;;  %v5581_v20 = vadd.f32 1.4214138, %v5577_v62  ;;  %v10702_v62 = vpop.eup %10701 }
0x2571   :  { %v5586_v22 = vadd.f32 -0.28449672, %v5582_v30  ;;  %v5580_v37 = vadd.f32 1.4214138, %v5576_v39 }
0x2572   :  { %v5591_v9 = vmul.f32 %v10688_v54, %v5587_v59  ;;  %v5585_v6 = vmul.f32 %v10692_v57, %v5581_v20  ;;  %v5549_v59 = vsel %vm5545_vm0, -1.0, %v11112_v55 }
0x2573   :  { %v5590_v28 = vmul.f32 %v10690_v23, %v5586_v22  ;;  %v5584_v14 = vmul.f32 %v10694_v45, %v5580_v37 }
0x2574   :  { %v5595_v3 = vadd.f32 0.2548296, %v5591_v9  ;;  %v5589_v33 = vadd.f32 -0.28449672, %v5585_v6  ;;  %v5548_v6 = vsel %vm5544_vm1, -1.0, %v11112_v55 }
0x2575   :  { %v5594_v31 = vadd.f32 0.2548296, %v5590_v28  ;;  %v5588_v10 = vadd.f32 -0.28449672, %v5584_v14 }
0x2576   :  { %v5599_v17 = vmul.f32 %v10688_v54, %v5595_v3  ;;  %v5593_v35 = vmul.f32 %v10692_v57, %v5589_v33  ;;  %v5759_v3 = vmul.f32 %v12357_v49, %v12530_v53  ;;  %v5887_v53 = vld [vmem:[#allocation14 + $0x150] sm:$0xff] }
0x2577   :  { %v5598_v2 = vmul.f32 %v10690_v23, %v5594_v31  ;;  %v5592_v5 = vmul.f32 %v10694_v45, %v5588_v10  ;;  %v5546_v23 = vsel %vm5542_vm15, -1.0, %v11112_v55  ;;  %v5889_v10 = vld [vmem:[#allocation14 + $0x160] sm:$0xff] }
0x2578   :  { %v5619_v1 = vmul.f32 %v10696_v38, %v5599_v17  ;;  %v5597_v58 = vadd.f32 0.2548296, %v5593_v35  ;;  %v5762_v35 = vmul.f32 %v12370_v15, %v12537_v56  ;;  %v5888_v56 = vld [vmem:[#allocation14 + $0x158] sm:$0xff] }
0x2579   :  { %v5618_v25 = vmul.f32 %v10698_v8, %v5598_v2  ;;  %v5596_v54 = vadd.f32 0.2548296, %v5592_v5  ;;  %v10032_v2 = vpack.c.bf16 %v5888_v56, %v5887_v53  ;;  %v5890_v8 = vld [vmem:[#allocation14 + $0x168] sm:$0xff]  ;;  %v6088_v56 = vld [vmem:[#allocation7 + $0xc8] sm:$0xff] }
0x257a   :  { %v5623_v48 = vsub.f32 1.0, %v5619_v1  ;;  %v5601_v12 = vmul.f32 %v10692_v57, %v5597_v58  ;;  %v5892_v58 = vld [vmem:[#allocation14 + $0x178] sm:$0xff] }
0x257b   :  { %v5622_v27 = vsub.f32 1.0, %v5618_v25  ;;  %v5600_v60 = vmul.f32 %v10694_v45, %v5596_v54  ;;  %v5760_v45 = vmul.f32 %v12344_v51, %v12527_v7  ;;  %v5886_v7 = vld [vmem:[#allocation14 + $0x148] sm:$0xff] }
0x257c   :  { %v5627_v40 = vmul.f32 %v5623_v48, %v5547_v47  ;;  %v5621_v42 = vmul.f32 %v10700_v34, %v5601_v12 }
0x257d   :  { %v5626_v16 = vmul.f32 %v5622_v27, %v5546_v23  ;;  %v5620_v57 = vmul.f32 %v10702_v62, %v5600_v60 }
0x257e   :  { %v5631_v30 = vadd.f32 1.0, %v5627_v40  ;;  %v5625_v4 = vsub.f32 1.0, %v5621_v42 }
0x257f   :  { %v5630_v24 = vadd.f32 1.0, %v5626_v16  ;;  %v5624_v22 = vsub.f32 1.0, %v5620_v57 }
0x2580   :  { %v5629_v20 = vmul.f32 %v5625_v4, %v5549_v59  ;;  %v5635_v41 = vmul.f32 0.5, %v5631_v30 }
0x2581   :  { %v5634_v39 = vmul.f32 0.5, %v5630_v24  ;;  %v5628_v28 = vmul.f32 %v5624_v22, %v5548_v6 }
0x2582   :  { %v5633_v9 = vadd.f32 1.0, %v5629_v20  ;;  %v5639_v61 = vmul.f32 %v12338_v26, %v5635_v41 }
0x2583   :  { %v5638_v37 = vmul.f32 %v12351_v44, %v5634_v39  ;;  %v5632_v31 = vadd.f32 1.0, %v5628_v28  ;;  %v5761_v44 = vmul.f32 %v12385_v0, %v12540_v46  ;;  %v10036_v0 = vpack.c.bf16 %v5890_v8, %v5889_v10  ;;  %v5891_v46 = vld [vmem:[#allocation14 + $0x170] sm:$0xff]  ;;  %v6089_v10 = vld [vmem:[#allocation7 + $0xd0] sm:$0xff]  ;;  %v6090_v8 = vld [vmem:[#allocation7 + $0xd8] sm:$0xff] }
0x2584   :  { %v5764_v18 = vadd.f32 %v5760_v45, %v5639_v61  ;;  %v5637_v33 = vmul.f32 0.5, %v5633_v9  ;;  %v10040_v5 = vpack.c.bf16 %v5892_v58, %v5891_v46 }
0x2585   :  { %v5763_v14 = vadd.f32 %v5759_v3, %v5638_v37  ;;  %v5636_v38 = vmul.f32 0.5, %v5632_v31 }
0x2586   :  { %v5641_v17 = vmul.f32 %v12364_v52, %v5637_v33  ;;  %v5885_v52 = vld [vmem:[#allocation14 + $0x140] sm:$0xff] }
0x2587   :  { %9426 = vmatprep.mubr.msk.f32.mxu0 %vm316_vm2, %v5763_v14  ;;  %v5640_v51 = vmul.f32 %v12379_v21, %v5636_v38  ;;  %v10028_v15 = vpack.c.bf16 %v5886_v7, %v5885_v52 }
0x2588   :  { %v5766_v26 = vadd.f32 %v5762_v35, %v5641_v17  ;;  %9427 = vmatmul.mubr.msk.f32.vlgmr.msra.gmra.mrb[68].mxu0 %vm316_vm2, %v5764_v18 }
0x2589   :  { %v5765_v49 = vadd.f32 %v5761_v44, %v5640_v51  ;;  %10029 = vmatprep.subr.bf16.mxu1 %v10028_v15 }
0x258a   :  { %10031 = vmatpush3.bf16.msra.mxu1 %v10028_v15  ;;  %v6087_v15 = vld [vmem:[#allocation7 + $0xc0] sm:$0xff] }
0x258b   :  { %9429 = vmatprep.mubr.msk.f32.mxu0 %vm316_vm2, %v5765_v49  ;;  %10033 = vmatprep.subr.bf16.mxu1 %v10032_v2 }
0x258c   :  { %9430 = vmatmul.mubr.msk.f32.gmra.mrb[70].mxu0 %vm316_vm2, %v5766_v26 }
0x258e   :  { %10035 = vmatpush3.bf16.msra.mxu1 %v10032_v2  ;;  %v10044_v2 = vpack.c.bf16 %v6088_v56, %v6087_v15 }
0x258f   :  { %10037 = vmatprep.subr.bf16.mxu1 %v10036_v0 }
0x2590   :  { %10045 = vmatprep.subr.bf16.mxu0 %v10044_v2 }
0x2591   :  { %10047 = vmatpush3.bf16.msra.mxu0 %v10044_v2 }
0x2592   :  { %10039 = vmatpush3.bf16.msra.mxu1 %v10036_v0  ;;  %v6222_v0 = vld [vmem:[#allocation10 + $0xc8] sm:$0xff] }
0x2593   :  { %10041 = vmatprep.subr.bf16.mxu1 %v10040_v5 }
0x2596   :  { %10043 = vmatpush3.bf16.msra.mxu1 %v10040_v5 }
0x265b   :  { %v9428_v1 = vpop.f32.mrb[68].mxu0 }
0x265c   :  { %5870 = vrot.lane.b32.xlu1 %v9428_v1, %s11113_s2  ;;  %v5845_v21 = vpop.f32.mrb[69].mxu0  ;;  %v10048_v1 = vpack.c.bf16 %v6090_v8, %v6089_v10 }
0x265d   :  { %5868 = vrot.lane.b32.xlu0 %v5845_v21, %s11113_s2  ;;  %v6221_v21 = vld [vmem:[#allocation10 + $0xc0] sm:$0xff] }
0x265e   :  { %10049 = vmatprep.subr.bf16.mxu0 %v10048_v1  ;;  %v10052_v46 = vpack.c.bf16 %v6222_v0, %v6221_v21 }
0x265f   :  { %v9431_v25 = vpop.f32.mrb[70].mxu0  ;;  %10051 = vmatpush3.bf16.msra.mxu0 %v10048_v1 }
0x2660   :  { %5874 = vrot.lane.b32.xlu1 %v9431_v25, %s11113_s2  ;;  %v5855_v48 = vpop.f32.mrb[71].mxu0  ;;  %10053 = vmatprep.subr.bf16.mxu0 %v10052_v46 }
0x2661   :  { %5872 = vrot.lane.b32.xlu0 %v5855_v48, %s11113_s2 }
0x26ce   :  { %v5871_v12 = vpop.permute.xlu1 %5870 }
0x26cf   :  { %v5881_v34 = vmul.f32 %v5871_v12, %v12492_v50  ;;  %v5869_v47 = vpop.permute.xlu0 %5868 }
0x26d0   :  { %v5880_v27 = vmul.f32 %v5869_v47, %v12494_v29 }
0x26d1   :  { %5907 = vrot.lane.b32.xlu1 %v5881_v34, %s11113_s2 }
0x26d2   :  { %5905 = vrot.lane.b32.xlu0 %v5880_v27, %s11113_s2  ;;  %v5875_v54 = vpop.permute.xlu1 %5874 }
0x26d3   :  { %v5883_v40 = vmul.f32 %v5875_v54, %v12506_v11  ;;  %v5873_v23 = vpop.permute.xlu0 %5872  ;;  %v8363_v11 = vld [vmem:[#allocation16 + $0x5] ss:$0 sm:$0xff] }
0x26d4   :  { %v5882_v42 = vmul.f32 %v5873_v23, %v12508_v43 }
0x26d5   :  { %5911 = vrot.lane.b32.xlu1 %v5883_v40, %s11113_s2 }
0x26d6   :  { %5909 = vrot.lane.b32.xlu0 %v5882_v42, %s11113_s2 }
0x2743   :  { %v5908_v60 = vpop.permute.xlu1 %5907 }
0x2744   :  { %v5906_v16 = vpop.permute.xlu0 %5905 }
0x2745   :  { %9448 = vmatprep.mubr.msk.f32.mxu1 %vm1162_vm9, %v5906_v16 }
0x2746   :  { %9449 = vmatmul.mubr.msk.f32.vlgmr.msra.gmra.mrb[72].mxu1 %vm1162_vm9, %v5908_v60  ;;  %v8369_v60 = vld [vmem:[%s13055_s9 + $0x6] ss:$0 sm:$0xff] }
0x2747   :  { %v5912_v29 = vpop.permute.xlu1 %5911 }
0x2748   :  { %v5910_v50 = vpop.permute.xlu0 %5909 }
0x2749   :  { %9451 = vmatprep.mubr.msk.f32.mxu1 %vm1162_vm9, %v5910_v50 }
0x274a   :  { %9452 = vmatmul.mubr.msk.f32.gmra.mrb[74].mxu1 %vm1162_vm9, %v5912_v29 }
0x2819   :  { %v9450_v62 = vpop.f32.mrb[72].mxu1 }
0x281a   :  { %v5993_v30 = vadd.f32 %v9450_v62, %v8363_v11  ;;  %v5987_v43 = vpop.f32.mrb[73].mxu1 }
0x281b   :  { %v5988_v4 = vadd.f32 %v8363_v11, %v5987_v43 }
0x281c   :  { %v12584_v24 = vadd.f32 %v5993_v30, %v12408_v32  ;;  %v8371_v30 = vld [vmem:[%s13017_s4 + $0x6] ss:$0 sm:$0xff] }
0x281d   :  { %v12587_v59 = vadd.f32 %v5988_v4, %v12411_v19  ;;  %v9453_v20 = vpop.f32.mrb[74].mxu1  ;;  %v6223_v4 = vld [vmem:[#allocation10 + $0xd0] sm:$0xff] }
0x281e   :  { %v6013_v57 = vsel %vm316_vm2, %v12584_v24, 0.0  ;;  %v5997_v22 = vpop.f32.mrb[75].mxu1  ;;  %v6003_v39 = vadd.f32 %v9453_v20, %v8363_v11 }
0x281f   :  { %6014 = vadd.xlane.f32.xlu1 %v6013_v57  ;;  %v6010_v41 = vsel %vm316_vm2, %v12587_v59, 0.0  ;;  %v5998_v9 = vadd.f32 %v8363_v11, %v5997_v22  ;;  %v6224_v57 = vld [vmem:[#allocation10 + $0xd8] sm:$0xff] }
0x2820   :  { %6011 = vadd.xlane.f32.xlu0 %v6010_v41  ;;  %v12597_v32 = vadd.f32 %v6003_v39, %v12421_v13  ;;  %v10056_v39 = vpack.c.bf16 %v6224_v57, %v6223_v4 }
0x2821   :  { %v12594_v6 = vadd.f32 %v5998_v9, %v12418_v63 }
0x2822   :  { %v6019_v61 = vsel %vm316_vm2, %v12597_v32, 0.0 }
0x2823   :  { %v6016_v19 = vsel %vm316_vm2, %v12594_v6, 0.0 }
0x2824   :  { %6017 = vadd.xlane.f32.xlu0 %v6016_v19 }
0x2828   :  { %6020 = vadd.xlane.f32.xlu0 %v6019_v61 }
0x28ac   :  { %v6015_v45 = vpop.xlane.xlu1 %6014 }
0x28ad   :  { %v6023_v28 = vmul.f32 0.03125, %v6015_v45  ;;  %v6012_v37 = vpop.xlane.xlu0 %6011 }
0x28ae   :  { %v6022_v3 = vmul.f32 0.03125, %v6012_v37 }
0x28af   :  { %v6027_v18 = vsub.f32 %v12584_v24, %v6023_v28 }
0x28b0   :  { %v6026_v63 = vsub.f32 %v12587_v59, %v6022_v3 }
0x28b1   :  { %v6031_v33 = vmul.f32 %v6027_v18, %v6027_v18  ;;  %v6018_v13 = vpop.xlane.xlu0 %6017 }
0x28b2   :  { %v6030_v31 = vmul.f32 %v6026_v63, %v6026_v63  ;;  %v6024_v17 = vmul.f32 0.03125, %v6018_v13  ;;  %v8377_v13 = vld [vmem:[#allocation11 + $0x6] ss:$0 sm:$0xff] }
0x28b3   :  { %v6037_v14 = vsel %vm316_vm2, %v6031_v33, 0.0 }
0x28b4   :  { %6038 = vadd.xlane.f32.xlu1 %v6037_v14  ;;  %v6034_v35 = vsel %vm316_vm2, %v6030_v31, 0.0  ;;  %v6028_v38 = vsub.f32 %v12594_v6, %v6024_v17 }
0x28b5   :  { %6035 = vadd.xlane.f32.xlu0 %v6034_v35  ;;  %v6021_v26 = vpop.xlane.xlu0 %6020 }
0x28b6   :  { %v6025_v51 = vmul.f32 0.03125, %v6021_v26  ;;  %v6032_v44 = vmul.f32 %v6028_v38, %v6028_v38 }
0x28b8   :  { %v6029_v49 = vsub.f32 %v12597_v32, %v6025_v51  ;;  %v6040_v52 = vsel %vm316_vm2, %v6032_v44, 0.0 }
0x28b9   :  { %6041 = vadd.xlane.f32.xlu0 %v6040_v52 }
0x28ba   :  { %v6033_v7 = vmul.f32 %v6029_v49, %v6029_v49 }
0x28bc   :  { %v6043_v53 = vsel %vm316_vm2, %v6033_v7, 0.0 }
0x28bd   :  { %6044 = vadd.xlane.f32.xlu1 %v6043_v53 }
0x2941   :  { %v6039_v58 = vpop.xlane.xlu1 %6038 }
0x2942   :  { %v6047_v25 = vmul.f32 0.03125, %v6039_v58  ;;  %v6036_v5 = vpop.xlane.xlu0 %6035 }
0x2943   :  { %v6046_v48 = vmul.f32 0.03125, %v6036_v5 }
0x2944   :  { %v6051_v12 = vadd.f32 1e-05, %v6047_v25 }
0x2945   :  { %v6050_v34 = vadd.f32 1e-05, %v6046_v48 }
0x2946   :  { %10703 = vrsqrt.f32 %v6051_v12  ;;  %v6042_v47 = vpop.xlane.xlu0 %6041 }
0x2947   :  { %10705 = vrsqrt.f32 %v6050_v34  ;;  %v6048_v27 = vmul.f32 0.03125, %v6042_v47  ;;  %v8382_v34 = vld [vmem:[#allocation13 + $0x6] ss:$0 sm:$0xff] }
0x2949   :  { %v6052_v54 = vadd.f32 1e-05, %v6048_v27 }
0x294a   :  { %v6045_v40 = vpop.xlane.xlu1 %6044 }
0x294b   :  { %10707 = vrsqrt.f32 %v6052_v54  ;;  %v6049_v23 = vmul.f32 0.03125, %v6045_v40  ;;  %v8384_v40 = vld [vmem:[%s13023_s10 + $0x6] ss:$0 sm:$0xff] }
0x294d   :  { %v6053_v42 = vadd.f32 1e-05, %v6049_v23 }
0x294f   :  { %10709 = vrsqrt.f32 %v6053_v42 }
0x2950   :  { %v10704_v16 = vpop.eup %10703 }
0x2951   :  { %v10706_v50 = vpop.eup %10705  ;;  %v6059_v29 = vmul.f32 %v10704_v16, %v6027_v18 }
0x2952   :  { %v6058_v11 = vmul.f32 %v10706_v50, %v6026_v63 }
0x2953   :  { %v6071_v62 = vmul.f32 %v8369_v60, %v6059_v29 }
0x2954   :  { %v6070_v43 = vmul.f32 %v8369_v60, %v6058_v11 }
0x2955   :  { %v10708_v41 = vpop.eup %10707  ;;  %v6083_v22 = vadd.f32 %v8371_v30, %v6071_v62 }
0x2956   :  { %v6082_v20 = vadd.f32 %v8371_v30, %v6070_v43  ;;  %v6060_v9 = vmul.f32 %v10708_v41, %v6028_v38 }
0x2958   :  { %9462 = vmatprep.mubr.msk.f32.mxu0 %vm316_vm2, %v6082_v20  ;;  %v6072_v19 = vmul.f32 %v8369_v60, %v6060_v9 }
0x2959   :  { %9463 = vmatmul.mubr.msk.f32.vlgmr.msra.gmra.mrb[72].mxu0 %vm316_vm2, %v6083_v22  ;;  %v10710_v61 = vpop.eup %10709 }
0x295a   :  { %10055 = vmatpush3.bf16.msra.mxu0 %v10052_v46  ;;  %v6084_v45 = vadd.f32 %v8371_v30, %v6072_v19  ;;  %v6061_v28 = vmul.f32 %v10710_v61, %v6029_v49 }
0x295b   :  { %10057 = vmatprep.subr.bf16.mxu0 %v10056_v39 }
0x295c   :  { %9465 = vmatprep.mubr.msk.f32.mxu0 %vm316_vm2, %v6084_v45  ;;  %v6073_v37 = vmul.f32 %v8369_v60, %v6061_v28 }
0x295e   :  { %10059 = vmatpush3.bf16.msra.mxu0 %v10056_v39  ;;  %v6085_v3 = vadd.f32 %v8371_v30, %v6073_v37 }
0x2960   :  { %9466 = vmatmul.mubr.msk.f32.gmra.mrb[74].mxu0 %vm316_vm2, %v6085_v3 }
0x2961   :  { %9476 = vmatprep.mubr.msk.f32.mxu0 %vm316_vm2, %v6082_v20 }
0x2964   :  { %9477 = vmatmul.mubr.msk.f32.vlgmr.msra.gmra.mrb[76].mxu0 %vm316_vm2, %v6083_v22  ;;  %v8372_v22 = vld [vmem:[#allocation8 + $0x6] ss:$0 sm:$0xff] }
0x2965   :  { %9479 = vmatprep.mubr.msk.f32.mxu0 %vm316_vm2, %v6084_v45 }
0x2968   :  { %9480 = vmatmul.mubr.msk.f32.gmra.mrb[78].mxu0 %vm316_vm2, %v6085_v3 }
0x2a2c   :  { %v12625_v18 = vpop.f32.mrb[72].mxu0 }
0x2a2d   :  { %v12627_v63 = vpop.f32.mrb[73].mxu0  ;;  %v6183_v39 = vadd.f32 %v12625_v18, %v8372_v22 }
0x2a2e   :  { %v6178_v9 = vadd.f32 %v8372_v22, %v12627_v63 }
0x2a2f   :  { %v6197_v19 = vsub.f32 0.0, %v6183_v39 }
0x2a30   :  { %v6196_v61 = vsub.f32 0.0, %v6178_v9 }
0x2a31   :  { %v6202_v45 = vmul.f32 1.442695, %v6197_v19 }
0x2a32   :  { %v6200_v37 = vmul.f32 1.442695, %v6196_v61 }
0x2a33   :  { %v12629_v33 = vpop.f32.mrb[74].mxu0 }
0x2a34   :  { %v12631_v31 = vpop.f32.mrb[75].mxu0  ;;  %v6193_v28 = vadd.f32 %v12629_v33, %v8372_v22 }
0x2a35   :  { %v6188_v3 = vadd.f32 %v8372_v22, %v12631_v31  ;;  %v6370_v22 = vld [vmem:[#allocation17 + $0xd8] sm:$0xff] }
0x2a37   :  { %v9478_v14 = vpop.f32.mrb[76].mxu0 }
0x2a38   :  { %v6305_v17 = vadd.f32 %v9478_v14, %v8377_v13  ;;  %v6299_v35 = vpop.f32.mrb[77].mxu0  ;;  %v6198_v14 = vsub.f32 0.0, %v6188_v3 }
0x2a39   :  { %v6300_v38 = vadd.f32 %v8377_v13, %v6299_v35 }
0x2a3a   :  { %v6319_v26 = vsub.f32 0.0, %v6305_v17  ;;  %v6204_v35 = vmul.f32 1.442695, %v6198_v14 }
0x2a3b   :  { %v6318_v51 = vsub.f32 0.0, %v6300_v38  ;;  %v9481_v44 = vpop.f32.mrb[78].mxu0 }
0x2a3c   :  { %v6324_v49 = vmul.f32 1.442695, %v6319_v26  ;;  %v6315_v52 = vadd.f32 %v9481_v44, %v8377_v13  ;;  %v6309_v7 = vpop.f32.mrb[79].mxu0 }
0x2a3d   :  { %v6322_v53 = vmul.f32 1.442695, %v6318_v51  ;;  %v6310_v15 = vadd.f32 %v8377_v13, %v6309_v7  ;;  %v6199_v13 = vsub.f32 0.0, %v6193_v28 }
0x2a3e   :  { %v6321_v56 = vsub.f32 0.0, %v6315_v52  ;;  %10711 = vpow2.f32 %v6324_v49 }
0x2a3f   :  { %v6320_v2 = vsub.f32 0.0, %v6310_v15  ;;  %10713 = vpow2.f32 %v6322_v53 }
0x2a40   :  { %v6328_v10 = vmul.f32 1.442695, %v6321_v56 }
0x2a41   :  { %v6326_v8 = vmul.f32 1.442695, %v6320_v2 }
0x2a42   :  { %10715 = vpow2.f32 %v6328_v10 }
0x2a43   :  { %10717 = vpow2.f32 %v6326_v8 }
0x2a48   :  { %v10712_v1 = vpop.eup %10711 }
0x2a49   :  { %v10714_v21 = vpop.eup %10713  ;;  %v6331_v0 = vadd.f32 1.0, %v10712_v1 }
0x2a4a   :  { %v6330_v58 = vadd.f32 1.0, %v10714_v21 }
0x2a4b   :  { %10719 = vrcp.f32 %v6331_v0 }
0x2a4c   :  { %v10716_v46 = vpop.eup %10715  ;;  %10721 = vrcp.f32 %v6330_v58 }
0x2a4d   :  { %v10718_v25 = vpop.eup %10717  ;;  %v6333_v5 = vadd.f32 1.0, %v10716_v46 }
0x2a4e   :  { %v6332_v48 = vadd.f32 1.0, %v10718_v25 }
0x2a4f   :  { %10723 = vrcp.f32 %v6333_v5 }
0x2a50   :  { %10725 = vrcp.f32 %v6332_v48 }
0x2a51   :  { %10727 = vpow2.f32 %v6202_v45 }
0x2a52   :  { %10729 = vpow2.f32 %v6200_v37 }
0x2a55   :  { %v10720_v12 = vpop.eup %10719 }
0x2a56   :  { %v10722_v47 = vpop.eup %10721  ;;  %v6339_v27 = vmul.f32 %v10720_v12, %v6305_v17  ;;  %v6206_v17 = vmul.f32 1.442695, %v6199_v13 }
0x2a57   :  { %v6338_v23 = vmul.f32 %v10722_v47, %v6300_v38 }
0x2a58   :  { %v6351_v16 = vmul.f32 %v8382_v34, %v6339_v27  ;;  %10731 = vpow2.f32 %v6206_v17 }
0x2a59   :  { %v10724_v54 = vpop.eup %10723  ;;  %v6350_v50 = vmul.f32 %v8382_v34, %v6338_v23  ;;  %10733 = vpow2.f32 %v6204_v35 }
0x2a5a   :  { %v10726_v42 = vpop.eup %10725  ;;  %v6341_v60 = vmul.f32 %v10724_v54, %v6315_v52  ;;  %v12636_v11 = vadd.f32 %v8384_v40, %v6351_v16 }
0x2a5b   :  { %v6340_v29 = vmul.f32 %v10726_v42, %v6310_v15  ;;  %v6362_v30 = vadd.f32 %v8384_v40, %v6350_v50  ;;  %v10728_v38 = vpop.eup %10727 }
0x2a5c   :  { %v6353_v62 = vmul.f32 %v8382_v34, %v6341_v60  ;;  %v10730_v18 = vpop.eup %10729  ;;  %v6209_v26 = vadd.f32 1.0, %v10728_v38 }
0x2a5d   :  { %v6352_v43 = vmul.f32 %v8382_v34, %v6340_v29  ;;  %9490 = vmatprep.mubr.msk.f32.mxu1 %vm682_vm3, %v6362_v30  ;;  %v10327_v20 = vpack.i.bf16 %v12636_v11, %v6362_v30  ;;  %v6208_v63 = vadd.f32 1.0, %v10730_v18 }
0x2a5e   :  { %v12638_v4 = vadd.f32 %v8384_v40, %v6353_v62  ;;  %10735 = vrcp.f32 %v6209_v26 }
0x2a5f   :  { %v12640_v57 = vadd.f32 %v8384_v40, %v6352_v43  ;;  %10328 = vrot.lane.b32.xlu0 %v10327_v20, %s11109_s24  ;;  %10737 = vrcp.f32 %v6208_v63 }
0x2a61   :  { %v10332_v41 = vpack.i.bf16 %v12638_v4, %v12640_v57 }
0x2a62   :  { %v10732_v51 = vpop.eup %10731 }
0x2a63   :  { %10333 = vrot.lane.b32.xlu1 %v10332_v41, %s11109_s24  ;;  %6592 = vrot.lane.b32.xlu0 %v6362_v30, %s11110_s28  ;;  %v10734_v44 = vpop.eup %10733  ;;  %v6211_v33 = vadd.f32 1.0, %v10732_v51  ;;  %v6367_v30 = vld [vmem:[#allocation17 + $0xc0] sm:$0xff] }
0x2a64   :  { %v6210_v49 = vadd.f32 1.0, %v10734_v44 }
0x2a65   :  { %10739 = vrcp.f32 %v6211_v33 }
0x2a66   :  { %10741 = vrcp.f32 %v6210_v49 }
0x2a67   :  { %10338 = vrot.lane.b32.xlu1 %v10327_v20, %s11111_s0  ;;  %6596 = vrot.lane.b32.xlu0 %v12640_v57, %s11110_s28 }
0x2a68   :  { %v10736_v8 = vpop.eup %10735 }
0x2a69   :  { %v10738_v21 = vpop.eup %10737  ;;  %v12668_v25 = vmul.f32 %v10736_v8, %v6183_v39 }
0x2a6a   :  { %v12670_v5 = vmul.f32 %v10738_v21, %v6178_v9  ;;  %v6369_v9 = vld [vmem:[#allocation17 + $0xd0] sm:$0xff] }
0x2a6b   :  { %10343 = vrot.lane.b32.xlu1 %v10332_v41, %s11111_s0 }
0x2a6c   :  { %v10084_v40 = vpack.c.bf16 %v12668_v25, %v12670_v5 }
0x2a6f   :  { %6594 = vrot.lane.b32.xlu1 %v12636_v11, %s11110_s28  ;;  %v10740_v27 = vpop.eup %10739 }
0x2a70   :  { %v10742_v23 = vpop.eup %10741  ;;  %v12682_v42 = vmul.f32 %v10740_v27, %v6193_v28 }
0x2a71   :  { %v12684_v16 = vmul.f32 %v10742_v23, %v6188_v3 }
0x2a73   :  { %6598 = vrot.lane.b32.xlu1 %v12638_v4, %s11110_s28  ;;  %v10088_v60 = vpack.c.bf16 %v12682_v42, %v12684_v16 }
0x2ad1   :  { %v10329_v52 = vpop.permute.xlu0 %10328 }
0x2ad2   :  { %v10331_v31 = vunpack.i.h.bf16 %v10329_v52  ;;  %v10330_v7 = vunpack.i.l.bf16 %v10329_v52 }
0x2ad4   :  { %v10060_v15 = vpack.c.bf16 %v10331_v31, %v10330_v7 }
0x2ad5   :  { %v10334_v53 = vpop.permute.xlu1 %10333  ;;  %v6593_v10 = vpop.permute.xlu0 %6592 }
0x2ad6   :  { %v10336_v56 = vunpack.i.h.bf16 %v10334_v53  ;;  %v10335_v2 = vunpack.i.l.bf16 %v10334_v53  ;;  %10062 = vmatprep.subr.msk.bf16.mxu1 %vm11481_vm4, %v10060_v15  ;;  %9504 = vmatprep.mubr.msk.f32.mxu0 %vm682_vm3, %v6593_v10 }
0x2ad7   :  { %10065 = vmatpush3.bf16.xpose.msk.msra.mxu1 %vm11481_vm4, %v10060_v15 }
0x2ad8   :  { %v10066_v1 = vpack.c.bf16 %v10336_v56, %v10335_v2 }
0x2ad9   :  { %v10339_v0 = vpop.permute.xlu1 %10338  ;;  %v6597_v29 = vpop.permute.xlu0 %6596 }
0x2ada   :  { %v10341_v46 = vunpack.i.h.bf16 %v10339_v0  ;;  %v10340_v58 = vunpack.i.l.bf16 %v10339_v0  ;;  %10068 = vmatprep.subr.msk.bf16.mxu1 %vm11481_vm4, %v10066_v1 }
0x2adc   :  { %v10072_v48 = vpack.c.bf16 %v10341_v46, %v10340_v58 }
0x2add   :  { %v10344_v12 = vpop.permute.xlu1 %10343 }
0x2ade   :  { %v10346_v34 = vunpack.i.h.bf16 %v10344_v12  ;;  %v10345_v47 = vunpack.i.l.bf16 %v10344_v12  ;;  %10074 = vmatprep.subr.msk.bf16.mxu0 %vm11481_vm4, %v10072_v48 }
0x2adf   :  { %10077 = vmatpush3.bf16.xpose.msk.msra.mxu0 %vm11481_vm4, %v10072_v48  ;;  %10071 = vmatpush3.bf16.xpose.msk.msra.mxu1 %vm11481_vm4, %v10066_v1 }
0x2ae0   :  { %v10078_v54 = vpack.c.bf16 %v10346_v34, %v10345_v47  ;;  %10085 = vmatprep.subr.bf16.mxu1 %v10084_v40 }
0x2ae1   :  { %v6595_v50 = vpop.permute.xlu1 %6594 }
0x2ae2   :  { %10080 = vmatprep.subr.msk.bf16.mxu0 %vm11481_vm4, %v10078_v54 }
0x2ae5   :  { %v6599_v62 = vpop.permute.xlu1 %6598 }
0x2ae6   :  { %9491 = vmatmul.mubr.msk.f32.vlgmr.msra.gmra.mrb[76].mxu1 %vm682_vm3, %v12636_v11  ;;  %v6368_v11 = vld [vmem:[#allocation17 + $0xc8] sm:$0xff] }
0x2ae7   :  { %10083 = vmatpush3.bf16.xpose.msk.msra.mxu0 %vm11481_vm4, %v10078_v54  ;;  %9493 = vmatprep.mubr.msk.f32.mxu1 %vm682_vm3, %v12640_v57 }
0x2ae8   :  { %10087 = vmatpush3.bf16.msra.mxu1 %v10084_v40 }
0x2ae9   :  { %10089 = vmatprep.subr.bf16.mxu1 %v10088_v60 }
0x2aea   :  { %9494 = vmatmul.mubr.msk.f32.gmra.mrb[78].mxu1 %vm682_vm3, %v12638_v4 }
0x2aec   :  { %10091 = vmatpush3.bf16.msra.mxu1 %v10088_v60 }
0x2aee   :  { %9505 = vmatmul.mubr.msk.f32.vlgmr.msra.gmra.mrb[80].mxu0 %vm682_vm3, %v6595_v50 }
0x2aef   :  { %9507 = vmatprep.mubr.msk.f32.mxu0 %vm682_vm3, %v6597_v29 }
0x2af2   :  { %9508 = vmatmul.mubr.msk.f32.gmra.mrb[82].mxu0 %vm682_vm3, %v6599_v62 }
0x2bb9   :  { %v9492_v43 = vpop.f32.mrb[76].mxu1 }
0x2bba   :  { %v6471_v20 = vadd.f32 %v9492_v43, %v6368_v11  ;;  %v6465_v57 = vpop.f32.mrb[77].mxu1 }
0x2bbb   :  { %v6466_v41 = vadd.f32 %v6465_v57, %v6367_v30 }
0x2bbc   :  { %v8394_v39 = vadd.f32 -0.70710677, %v6471_v20 }
0x2bbd   :  { %v8393_v19 = vadd.f32 -0.70710677, %v6466_v41  ;;  %v9495_v4 = vpop.f32.mrb[78].mxu1 }
0x2bbe   :  { %v12699_v61 = vmul.f32 0.7978846, %v8394_v39  ;;  %v6481_v45 = vadd.f32 %v9495_v4, %v6370_v22  ;;  %v6475_v28 = vpop.f32.mrb[79].mxu1 }
0x2bbf   :  { %v12701_v37 = vmul.f32 0.7978846, %v8393_v19  ;;  %v6476_v3 = vadd.f32 %v6475_v28, %v6369_v9 }
0x2bc0   :  { %v6501_v14 = vand.u32 2147483647, %v12699_v61  ;;  %v8396_v17 = vadd.f32 -0.70710677, %v6481_v45  ;;  %vm6493_vm5 = vcmp.lt.f32.partialorder %v12699_v61, 0.0 }
0x2bc1   :  { %v12703_v13 = vpop.f32.mrb[80].mxu0  ;;  %v6500_v38 = vand.u32 2147483647, %v12701_v37  ;;  %v8395_v18 = vadd.f32 -0.70710677, %v6476_v3  ;;  %vm6492_vm6 = vcmp.lt.f32.partialorder %v12701_v37, 0.0 }
0x2bc2   :  { %v12706_v35 = vpop.f32.mrb[81].mxu0  ;;  %v6505_v26 = vmul.f32 0.3275911, %v6501_v14  ;;  %v12709_v63 = vmul.f32 0.7978846, %v8396_v17  ;;  %v6553_v8 = vsub.f32 0.0, %v6501_v14 }
0x2bc3   :  { %v6504_v51 = vmul.f32 0.3275911, %v6500_v38  ;;  %v12711_v44 = vmul.f32 0.7978846, %v8395_v18  ;;  %v6552_v1 = vsub.f32 0.0, %v6500_v38 }
0x2bc4   :  { %v6509_v49 = vadd.f32 1.0, %v6505_v26  ;;  %v6503_v52 = vand.u32 2147483647, %v12709_v63  ;;  %v6557_v0 = vmul.f32 %v6553_v8, %v6501_v14  ;;  %vm6495_vm7 = vcmp.lt.f32.partialorder %v12709_v63, 0.0  ;;  %v12730_v63 = vld [vmem:[%s13027_s14 + $0x8] sm:$0xff] }
0x2bc5   :  { %v12713_v33 = vpop.f32.mrb[82].mxu0  ;;  %v6508_v7 = vadd.f32 1.0, %v6504_v51  ;;  %v6502_v15 = vand.u32 2147483647, %v12711_v44  ;;  %v6556_v12 = vmul.f32 %v6552_v1, %v6500_v38  ;;  %vm6494_vm8 = vcmp.lt.f32.partialorder %v12711_v44, 0.0 }
0x2bc6   :  { %v12716_v31 = vpop.f32.mrb[83].mxu0  ;;  %10743 = vrcp.f32 %v6509_v49  ;;  %v6507_v53 = vmul.f32 0.3275911, %v6503_v52  ;;  %v6555_v46 = vsub.f32 0.0, %v6503_v52  ;;  %v6562_v40 = vmul.f32 1.442695, %v6557_v0 }
0x2bc7   :  { %10745 = vrcp.f32 %v6508_v7  ;;  %v6506_v2 = vmul.f32 0.3275911, %v6502_v15  ;;  %v6554_v27 = vsub.f32 0.0, %v6502_v15  ;;  %v6560_v29 = vmul.f32 1.442695, %v6556_v12 }
0x2bc8   :  { %v6511_v56 = vadd.f32 1.0, %v6507_v53  ;;  %v6559_v60 = vmul.f32 %v6555_v46, %v6503_v52 }
0x2bc9   :  { %v6510_v10 = vadd.f32 1.0, %v6506_v2  ;;  %v6558_v57 = vmul.f32 %v6554_v27, %v6502_v15 }
0x2bca   :  { %10747 = vrcp.f32 %v6511_v56  ;;  %v6566_v22 = vmul.f32 1.442695, %v6559_v60 }
0x2bcb   :  { %10749 = vrcp.f32 %v6510_v10  ;;  %v6564_v14 = vmul.f32 1.442695, %v6558_v57  ;;  %v6499_v57 = vsel %vm6495_vm7, -1.0, %v11112_v55 }
0x2bcc   :  { %10751 = vpow2.f32 %v6562_v40 }
0x2bcd   :  { %10753 = vpow2.f32 %v6560_v29 }
0x2bce   :  { %10755 = vpow2.f32 %v6566_v22 }
0x2bcf   :  { %10757 = vpow2.f32 %v6564_v14 }
0x2bd0   :  { %v10744_v21 = vpop.eup %10743 }
0x2bd1   :  { %v10746_v58 = vpop.eup %10745  ;;  %v6517_v48 = vmul.f32 1.0614054, %v10744_v21 }
0x2bd2   :  { %v6516_v34 = vmul.f32 1.0614054, %v10746_v58 }
0x2bd3   :  { %v6521_v47 = vadd.f32 -1.4531521, %v6517_v48 }
0x2bd4   :  { %v10748_v54 = vpop.eup %10747  ;;  %v6520_v23 = vadd.f32 -1.4531521, %v6516_v34 }
0x2bd5   :  { %v6525_v50 = vmul.f32 %v10744_v21, %v6521_v47  ;;  %v6519_v62 = vmul.f32 1.0614054, %v10748_v54  ;;  %v10750_v30 = vpop.eup %10749 }
0x2bd6   :  { %v6524_v11 = vmul.f32 %v10746_v58, %v6520_v23  ;;  %v6518_v39 = vmul.f32 1.0614054, %v10750_v30  ;;  %v10752_v10 = vpop.eup %10751  ;;  %v6497_v23 = vsel %vm6493_vm5, -1.0, %v11112_v55 }
0x2bd7   :  { %v6529_v43 = vadd.f32 1.4214138, %v6525_v50  ;;  %v6523_v20 = vadd.f32 -1.4531521, %v6519_v62  ;;  %v10754_v0 = vpop.eup %10753 }
0x2bd8   :  { %v6528_v41 = vadd.f32 1.4214138, %v6524_v11  ;;  %v6522_v45 = vadd.f32 -1.4531521, %v6518_v39  ;;  %v10756_v40 = vpop.eup %10755 }
0x2bd9   :  { %v6533_v9 = vmul.f32 %v10744_v21, %v6529_v43  ;;  %v6527_v19 = vmul.f32 %v10748_v54, %v6523_v20  ;;  %v10758_v11 = vpop.eup %10757 }
0x2bda   :  { %v6532_v4 = vmul.f32 %v10746_v58, %v6528_v41  ;;  %v6526_v38 = vmul.f32 %v10750_v30, %v6522_v45  ;;  %v12736_v45 = vld [vmem:[%s13028_s15 + $0x8] sm:$0xff] }
0x2bdb   :  { %v6537_v28 = vadd.f32 -0.28449672, %v6533_v9  ;;  %v6531_v3 = vadd.f32 1.4214138, %v6527_v19  ;;  %v6710_v44 = vmul.f32 %v12736_v45, %v12703_v13 }
0x2bdc   :  { %v6536_v17 = vadd.f32 -0.28449672, %v6532_v4  ;;  %v6530_v49 = vadd.f32 1.4214138, %v6526_v38  ;;  %v6498_v4 = vsel %vm6494_vm8, -1.0, %v11112_v55 }
0x2bdd   :  { %v6541_v18 = vmul.f32 %v10744_v21, %v6537_v28  ;;  %v6535_v26 = vmul.f32 %v10748_v54, %v6531_v3  ;;  %v12743_v3 = vld [vmem:[%s13027_s14] sm:$0xff] }
0x2bde   :  { %v6540_v51 = vmul.f32 %v10746_v58, %v6536_v17  ;;  %v6534_v15 = vmul.f32 %v10750_v30, %v6530_v49  ;;  %v12749_v17 = vld [vmem:[%s13028_s15] sm:$0xff]  ;;  %v12756_v49 = vld [vmem:[%s13027_s14 + $0x18] sm:$0xff] }
0x2bdf   :  { %v6545_v52 = vadd.f32 0.2548296, %v6541_v18  ;;  %v6539_v7 = vadd.f32 -0.28449672, %v6535_v26  ;;  %v6709_v38 = vmul.f32 %v12749_v17, %v12706_v35 }
0x2be0   :  { %v6544_v53 = vadd.f32 0.2548296, %v6540_v51  ;;  %v6538_v1 = vadd.f32 -0.28449672, %v6534_v15 }
0x2be1   :  { %v6549_v56 = vmul.f32 %v10744_v21, %v6545_v52  ;;  %v6543_v2 = vmul.f32 %v10748_v54, %v6539_v7  ;;  %v12762_v7 = vld [vmem:[%s13028_s15 + $0x18] sm:$0xff] }
0x2be2   :  { %v6548_v8 = vmul.f32 %v10746_v58, %v6544_v53  ;;  %v6542_v34 = vmul.f32 %v10750_v30, %v6538_v1  ;;  %v6496_v58 = vsel %vm6492_vm6, -1.0, %v11112_v55  ;;  %v6712_v53 = vmul.f32 %v12762_v7, %v12713_v33  ;;  %v6835_v1 = vld [vmem:[#allocation14 + $0x180] sm:$0xff] }
0x2be3   :  { %v6569_v46 = vmul.f32 %v10752_v10, %v6549_v56  ;;  %v6547_v48 = vadd.f32 0.2548296, %v6543_v2  ;;  %v12771_v56 = vld [vmem:[%s13027_s14 + $0x10] sm:$0xff] }
0x2be4   :  { %v6568_v12 = vmul.f32 %v10754_v0, %v6548_v8  ;;  %v6546_v21 = vadd.f32 0.2548296, %v6542_v34  ;;  %v12777_v10 = vld [vmem:[%s13028_s15 + $0x10] sm:$0xff]  ;;  %v6836_v0 = vld [vmem:[#allocation14 + $0x188] sm:$0xff] }
0x2be5   :  { %v6573_v47 = vsub.f32 1.0, %v6569_v46  ;;  %v6551_v27 = vmul.f32 %v10748_v54, %v6547_v48  ;;  %v6711_v33 = vmul.f32 %v12777_v10, %v12716_v31  ;;  %v6837_v46 = vld [vmem:[#allocation14 + $0x190] sm:$0xff]  ;;  %v10092_v48 = vpack.c.bf16 %v6836_v0, %v6835_v1 }
0x2be6   :  { %v6572_v60 = vsub.f32 1.0, %v6568_v12  ;;  %v6550_v62 = vmul.f32 %v10750_v30, %v6546_v21  ;;  %v6838_v12 = vld [vmem:[#allocation14 + $0x198] sm:$0xff] }
0x2be7   :  { %v6577_v50 = vmul.f32 %v6573_v47, %v6497_v23  ;;  %v6571_v29 = vmul.f32 %v10756_v40, %v6551_v27  ;;  %v10096_v34 = vpack.c.bf16 %v6838_v12, %v6837_v46  ;;  %v6839_v47 = vld [vmem:[#allocation14 + $0x1a0] sm:$0xff]  ;;  %v6840_v27 = vld [vmem:[#allocation14 + $0x1a8] sm:$0xff]  ;;  %10093 = vmatprep.subr.bf16.mxu0 %v10092_v48  ;;  %v6842_v21 = vld [vmem:[#allocation14 + $0x1b8] sm:$0xff] }
0x2be8   :  { %v6576_v61 = vmul.f32 %v6572_v60, %v6496_v58  ;;  %v6570_v54 = vmul.f32 %v10758_v11, %v6550_v62  ;;  %10095 = vmatpush3.bf16.msra.mxu0 %v10092_v48  ;;  %v10100_v31 = vpack.c.bf16 %v6840_v27, %v6839_v47  ;;  %v6841_v60 = vld [vmem:[#allocation14 + $0x1b0] sm:$0xff] }
0x2be9   :  { %v6581_v43 = vadd.f32 1.0, %v6577_v50  ;;  %v6575_v37 = vsub.f32 1.0, %v6571_v29  ;;  %10097 = vmatprep.subr.bf16.mxu0 %v10096_v34  ;;  %v10104_v58 = vpack.c.bf16 %v6842_v21, %v6841_v60  ;;  %v7037_v60 = vld [vmem:[#allocation7 + $0xe0] sm:$0xff]  ;;  %v7038_v21 = vld [vmem:[#allocation7 + $0xe8] sm:$0xff] }
0x2bea   :  { %v6580_v20 = vadd.f32 1.0, %v6576_v61  ;;  %v6574_v39 = vsub.f32 1.0, %v6570_v54 }
0x2beb   :  { %v6579_v41 = vmul.f32 %v6575_v37, %v6499_v57  ;;  %v6585_v22 = vmul.f32 0.5, %v6581_v43 }
0x2bec   :  { %v6584_v9 = vmul.f32 0.5, %v6580_v20  ;;  %v6578_v28 = vmul.f32 %v6574_v39, %v6498_v4  ;;  %10099 = vmatpush3.bf16.msra.mxu0 %v10096_v34 }
0x2bed   :  { %v6583_v19 = vadd.f32 1.0, %v6579_v41  ;;  %v6589_v30 = vmul.f32 %v12730_v63, %v6585_v22  ;;  %10101 = vmatprep.subr.bf16.mxu0 %v10100_v31 }
0x2bee   :  { %v6588_v14 = vmul.f32 %v12743_v3, %v6584_v9  ;;  %v6582_v51 = vadd.f32 1.0, %v6578_v28 }
0x2bef   :  { %v6714_v18 = vadd.f32 %v6710_v44, %v6589_v30  ;;  %v6587_v26 = vmul.f32 0.5, %v6583_v19 }
0x2bf0   :  { %v6713_v13 = vadd.f32 %v6709_v38, %v6588_v14  ;;  %v6586_v35 = vmul.f32 0.5, %v6582_v51  ;;  %10103 = vmatpush3.bf16.msra.mxu0 %v10100_v31 }
0x2bf1   :  { %v6591_v52 = vmul.f32 %v12756_v49, %v6587_v26  ;;  %10105 = vmatprep.subr.bf16.mxu0 %v10104_v58 }
0x2bf2   :  { %9518 = vmatprep.mubr.msk.f32.mxu1 %vm316_vm2, %v6713_v13  ;;  %v6590_v2 = vmul.f32 %v12771_v56, %v6586_v35 }
0x2bf3   :  { %v6716_v15 = vadd.f32 %v6712_v53, %v6591_v52  ;;  %9519 = vmatmul.mubr.msk.f32.vlgmr.msra.gmra.mrb[80].mxu1 %vm316_vm2, %v6714_v18 }
0x2bf4   :  { %v6715_v8 = vadd.f32 %v6711_v33, %v6590_v2  ;;  %10107 = vmatpush3.bf16.msra.mxu0 %v10104_v58  ;;  %v7039_v58 = vld [vmem:[#allocation7 + $0xf0] sm:$0xff] }
0x2bf6   :  { %9521 = vmatprep.mubr.msk.f32.mxu1 %vm316_vm2, %v6715_v8 }
0x2bf7   :  { %9522 = vmatmul.mubr.msk.f32.gmra.mrb[82].mxu1 %vm316_vm2, %v6716_v15 }
0x2cc6   :  { %v9520_v40 = vpop.f32.mrb[80].mxu1 }
0x2cc7   :  { %6820 = vrot.lane.b32.xlu1 %v9520_v40, %s11113_s2  ;;  %v6795_v23 = vpop.f32.mrb[81].mxu1 }
0x2cc8   :  { %6818 = vrot.lane.b32.xlu0 %v6795_v23, %s11113_s2 }
0x2cca   :  { %v9523_v50 = vpop.f32.mrb[82].mxu1 }
0x2ccb   :  { %6824 = vrot.lane.b32.xlu1 %v9523_v50, %s11113_s2  ;;  %v6805_v29 = vpop.f32.mrb[83].mxu1  ;;  %v10108_v50 = vpack.c.bf16 %v7038_v21, %v7037_v60 }
0x2ccc   :  { %6822 = vrot.lane.b32.xlu0 %v6805_v29, %s11113_s2  ;;  %v7040_v29 = vld [vmem:[#allocation7 + $0xf8] sm:$0xff] }
0x2ccd   :  { %10109 = vmatprep.subr.bf16.mxu1 %v10108_v50 }
0x2cce   :  { %10111 = vmatpush3.bf16.msra.mxu1 %v10108_v50 }
0x2d39   :  { %v6821_v61 = vpop.permute.xlu1 %6820 }
0x2d3a   :  { %v6831_v62 = vmul.f32 %v6821_v61, %v12668_v25  ;;  %v6819_v11 = vpop.permute.xlu0 %6818  ;;  %v10112_v61 = vpack.c.bf16 %v7040_v29, %v7039_v58 }
0x2d3b   :  { %v6830_v43 = vmul.f32 %v6819_v11, %v12670_v5  ;;  %v7172_v11 = vld [vmem:[#allocation10 + $0xe8] sm:$0xff] }
0x2d3c   :  { %6857 = vrot.lane.b32.xlu1 %v6831_v62, %s11113_s2  ;;  %10113 = vmatprep.subr.bf16.mxu1 %v10112_v61  ;;  %v7171_v62 = vld [vmem:[#allocation10 + $0xe0] sm:$0xff] }
0x2d3d   :  { %6855 = vrot.lane.b32.xlu0 %v6830_v43, %s11113_s2  ;;  %v6825_v37 = vpop.permute.xlu1 %6824  ;;  %10115 = vmatpush3.bf16.msra.mxu1 %v10112_v61  ;;  %v10116_v43 = vpack.c.bf16 %v7172_v11, %v7171_v62 }
0x2d3e   :  { %v6833_v20 = vmul.f32 %v6825_v37, %v12682_v42  ;;  %v6823_v57 = vpop.permute.xlu0 %6822  ;;  %v8409_v42 = vld [vmem:[#allocation16 + $0x6] ss:$0 sm:$0xff] }
0x2d3f   :  { %v6832_v54 = vmul.f32 %v6823_v57, %v12684_v16  ;;  %10117 = vmatprep.subr.bf16.mxu1 %v10116_v43 }
0x2d40   :  { %6861 = vrot.lane.b32.xlu1 %v6833_v20, %s11113_s2 }
0x2d41   :  { %6859 = vrot.lane.b32.xlu0 %v6832_v54, %s11113_s2 }
0x2dae   :  { %v6858_v22 = vpop.permute.xlu1 %6857 }
0x2daf   :  { %v6856_v41 = vpop.permute.xlu0 %6855 }
0x2db0   :  { %9540 = vmatprep.mubr.msk.f32.mxu0 %vm1162_vm9, %v6856_v41 }
0x2db1   :  { %9541 = vmatmul.mubr.msk.f32.vlgmr.msra.gmra.mrb[84].mxu0 %vm1162_vm9, %v6858_v22 }
0x2db2   :  { %v6862_v5 = vpop.permute.xlu1 %6861 }
0x2db3   :  { %v6860_v25 = vpop.permute.xlu0 %6859 }
0x2db4   :  { %9543 = vmatprep.mubr.msk.f32.mxu0 %vm1162_vm9, %v6860_v25 }
0x2db5   :  { %9544 = vmatmul.mubr.msk.f32.gmra.mrb[86].mxu0 %vm1162_vm9, %v6862_v5 }
0x2e84   :  { %v9542_v39 = vpop.f32.mrb[84].mxu0 }
0x2e85   :  { %v6943_v9 = vadd.f32 %v9542_v39, %v8409_v42  ;;  %v6937_v16 = vpop.f32.mrb[85].mxu0 }
0x2e86   :  { %v6938_v19 = vadd.f32 %v8409_v42, %v6937_v16 }
0x2e87   :  { %v12800_v4 = vadd.f32 %v6943_v9, %v12584_v24 }
0x2e88   :  { %v12803_v30 = vadd.f32 %v6938_v19, %v12587_v59  ;;  %v9545_v28 = vpop.f32.mrb[86].mxu0 }
0x2e89   :  { %v6963_v44 = vsel %vm316_vm2, %v12800_v4, 0.0  ;;  %v6947_v38 = vpop.f32.mrb[87].mxu0  ;;  %v6953_v18 = vadd.f32 %v9545_v28, %v8409_v42 }
0x2e8a   :  { %6964 = vadd.xlane.f32.xlu1 %v6963_v44  ;;  %v6960_v14 = vsel %vm316_vm2, %v12803_v30, 0.0  ;;  %v6948_v26 = vadd.f32 %v8409_v42, %v6947_v38  ;;  %v8415_v44 = vld [vmem:[%s13055_s9 + $0x7] ss:$0 sm:$0xff] }
0x2e8b   :  { %6961 = vadd.xlane.f32.xlu0 %v6960_v14  ;;  %v12813_v24 = vadd.f32 %v6953_v18, %v12597_v32 }
0x2e8c   :  { %v12810_v51 = vadd.f32 %v6948_v26, %v12594_v6  ;;  %v8417_v26 = vld [vmem:[%s13017_s4 + $0x7] ss:$0 sm:$0xff] }
0x2e8d   :  { %v6969_v13 = vsel %vm316_vm2, %v12813_v24, 0.0 }
0x2e8e   :  { %v6966_v59 = vsel %vm316_vm2, %v12810_v51, 0.0 }
0x2e8f   :  { %6967 = vadd.xlane.f32.xlu0 %v6966_v59 }
0x2e93   :  { %6970 = vadd.xlane.f32.xlu0 %v6969_v13  ;;  %v7173_v13 = vld [vmem:[#allocation10 + $0xf0] sm:$0xff] }
0x2f17   :  { %v6965_v52 = vpop.xlane.xlu1 %6964 }
0x2f18   :  { %v6973_v53 = vmul.f32 0.03125, %v6965_v52  ;;  %v6962_v35 = vpop.xlane.xlu0 %6961  ;;  %v7174_v52 = vld [vmem:[#allocation10 + $0xf8] sm:$0xff] }
0x2f19   :  { %v6972_v15 = vmul.f32 0.03125, %v6962_v35 }
0x2f1a   :  { %v6977_v2 = vsub.f32 %v12800_v4, %v6973_v53 }
0x2f1b   :  { %v6976_v6 = vsub.f32 %v12803_v30, %v6972_v15 }
0x2f1c   :  { %v6981_v33 = vmul.f32 %v6977_v2, %v6977_v2  ;;  %v6968_v32 = vpop.xlane.xlu0 %6967 }
0x2f1d   :  { %v6980_v8 = vmul.f32 %v6976_v6, %v6976_v6  ;;  %v6974_v0 = vmul.f32 0.03125, %v6968_v32 }
0x2f1e   :  { %v6987_v1 = vsel %vm316_vm2, %v6981_v33, 0.0  ;;  %v10120_v33 = vpack.c.bf16 %v7174_v52, %v7173_v13 }
0x2f1f   :  { %6988 = vadd.xlane.f32.xlu1 %v6987_v1  ;;  %v6984_v46 = vsel %vm316_vm2, %v6980_v8, 0.0  ;;  %v6978_v48 = vsub.f32 %v12810_v51, %v6974_v0 }
0x2f20   :  { %6985 = vadd.xlane.f32.xlu0 %v6984_v46  ;;  %v6971_v12 = vpop.xlane.xlu0 %6970 }
0x2f21   :  { %v6975_v34 = vmul.f32 0.03125, %v6971_v12  ;;  %v6982_v47 = vmul.f32 %v6978_v48, %v6978_v48 }
0x2f23   :  { %v6979_v27 = vsub.f32 %v12813_v24, %v6975_v34  ;;  %v6990_v40 = vsel %vm316_vm2, %v6982_v47, 0.0 }
0x2f24   :  { %6991 = vadd.xlane.f32.xlu0 %v6990_v40 }
0x2f25   :  { %v6983_v23 = vmul.f32 %v6979_v27, %v6979_v27 }
0x2f27   :  { %v6993_v31 = vsel %vm316_vm2, %v6983_v23, 0.0 }
0x2f28   :  { %6994 = vadd.xlane.f32.xlu1 %v6993_v31 }
0x2fac   :  { %v6989_v37 = vpop.xlane.xlu1 %6988 }
0x2fad   :  { %v6997_v20 = vmul.f32 0.03125, %v6989_v37  ;;  %v6986_v57 = vpop.xlane.xlu0 %6985 }
0x2fae   :  { %v6996_v54 = vmul.f32 0.03125, %v6986_v57 }
0x2faf   :  { %v7001_v41 = vadd.f32 1e-05, %v6997_v20 }
0x2fb0   :  { %v7000_v22 = vadd.f32 1e-05, %v6996_v54 }
0x2fb1   :  { %10759 = vrsqrt.f32 %v7001_v41  ;;  %v6992_v25 = vpop.xlane.xlu0 %6991 }
0x2fb2   :  { %10761 = vrsqrt.f32 %v7000_v22  ;;  %v6998_v5 = vmul.f32 0.03125, %v6992_v25 }
0x2fb4   :  { %v7002_v42 = vadd.f32 1e-05, %v6998_v5 }
0x2fb5   :  { %v6995_v39 = vpop.xlane.xlu1 %6994 }
0x2fb6   :  { %10763 = vrsqrt.f32 %v7002_v42  ;;  %v6999_v9 = vmul.f32 0.03125, %v6995_v39 }
0x2fb8   :  { %v7003_v16 = vadd.f32 1e-05, %v6999_v9 }
0x2fba   :  { %10765 = vrsqrt.f32 %v7003_v16 }
0x2fbb   :  { %v10760_v19 = vpop.eup %10759 }
0x2fbc   :  { %v10762_v28 = vpop.eup %10761  ;;  %v7009_v14 = vmul.f32 %v10760_v19, %v6977_v2 }
0x2fbd   :  { %v7008_v38 = vmul.f32 %v10762_v28, %v6976_v6 }
0x2fbe   :  { %v7021_v18 = vmul.f32 %v8415_v44, %v7009_v14 }
0x2fbf   :  { %v7020_v59 = vmul.f32 %v8415_v44, %v7008_v38 }
0x2fc0   :  { %v10764_v35 = vpop.eup %10763  ;;  %v7033_v15 = vadd.f32 %v8417_v26, %v7021_v18  ;;  %v8430_v18 = vld [vmem:[%s13023_s10 + $0x7] ss:$0 sm:$0xff] }
0x2fc1   :  { %v7032_v53 = vadd.f32 %v8417_v26, %v7020_v59  ;;  %v7010_v8 = vmul.f32 %v10764_v35, %v6978_v48 }
0x2fc3   :  { %9554 = vmatprep.mubr.msk.f32.mxu1 %vm316_vm2, %v7032_v53  ;;  %v7022_v2 = vmul.f32 %v8415_v44, %v7010_v8 }
0x2fc4   :  { %9555 = vmatmul.mubr.msk.f32.vlgmr.msra.gmra.mrb[84].mxu1 %vm316_vm2, %v7033_v15  ;;  %v10766_v6 = vpop.eup %10765 }
0x2fc5   :  { %10119 = vmatpush3.bf16.msra.mxu1 %v10116_v43  ;;  %v7034_v32 = vadd.f32 %v8417_v26, %v7022_v2  ;;  %v7011_v1 = vmul.f32 %v10766_v6, %v6979_v27  ;;  %v8423_v27 = vld [vmem:[#allocation11 + $0x7] ss:$0 sm:$0xff] }
0x2fc6   :  { %10121 = vmatprep.subr.bf16.mxu1 %v10120_v33 }
0x2fc7   :  { %9557 = vmatprep.mubr.msk.f32.mxu1 %vm316_vm2, %v7034_v32  ;;  %v7023_v0 = vmul.f32 %v8415_v44, %v7011_v1  ;;  %v8428_v44 = vld [vmem:[#allocation13 + $0x7] ss:$0 sm:$0xff] }
0x2fc9   :  { %10123 = vmatpush3.bf16.msra.mxu1 %v10120_v33  ;;  %v7035_v46 = vadd.f32 %v8417_v26, %v7023_v0 }
0x2fcb   :  { %9558 = vmatmul.mubr.msk.f32.gmra.mrb[86].mxu1 %vm316_vm2, %v7035_v46 }
0x2fcc   :  { %9568 = vmatprep.mubr.msk.f32.mxu1 %vm316_vm2, %v7032_v53 }
0x2fcf   :  { %9569 = vmatmul.mubr.msk.f32.vlgmr.msra.gmra.mrb[88].mxu1 %vm316_vm2, %v7033_v15 }
0x2fd0   :  { %9571 = vmatprep.mubr.msk.f32.mxu1 %vm316_vm2, %v7034_v32 }
0x2fd3   :  { %9572 = vmatmul.mubr.msk.f32.gmra.mrb[90].mxu1 %vm316_vm2, %v7035_v46  ;;  %v8418_v46 = vld [vmem:[#allocation8 + $0x7] ss:$0 sm:$0xff] }
0x3097   :  { %v12841_v48 = vpop.f32.mrb[84].mxu1 }
0x3098   :  { %v12843_v12 = vpop.f32.mrb[85].mxu1 }
0x309e   :  { %v12845_v34 = vpop.f32.mrb[86].mxu1 }
0x309f   :  { %v12847_v47 = vpop.f32.mrb[87].mxu1 }
0x30a2   :  { %v9570_v40 = vpop.f32.mrb[88].mxu1 }
0x30a3   :  { %v7255_v23 = vadd.f32 %v9570_v40, %v8423_v27  ;;  %v7249_v31 = vpop.f32.mrb[89].mxu1  ;;  %v7128_v40 = vadd.f32 %v8418_v46, %v12843_v12 }
0x30a4   :  { %v7250_v60 = vadd.f32 %v8423_v27, %v7249_v31 }
0x30a5   :  { %v7269_v21 = vsub.f32 0.0, %v7255_v23  ;;  %v7146_v31 = vsub.f32 0.0, %v7128_v40 }
0x30a6   :  { %v7268_v50 = vsub.f32 0.0, %v7250_v60  ;;  %v9573_v58 = vpop.f32.mrb[90].mxu1 }
0x30a7   :  { %v7274_v29 = vmul.f32 1.442695, %v7269_v21  ;;  %v7265_v61 = vadd.f32 %v9573_v58, %v8423_v27  ;;  %v7259_v62 = vpop.f32.mrb[91].mxu1  ;;  %v7143_v21 = vadd.f32 %v12845_v34, %v8418_v46  ;;  %v7138_v58 = vadd.f32 %v8418_v46, %v12847_v47 }
0x30a8   :  { %v7272_v11 = vmul.f32 1.442695, %v7268_v50  ;;  %v7260_v43 = vadd.f32 %v8423_v27, %v7259_v62  ;;  %v7133_v27 = vadd.f32 %v12841_v48, %v8418_v46  ;;  %v7150_v50 = vmul.f32 1.442695, %v7146_v31 }
0x30a9   :  { %v7271_v37 = vsub.f32 0.0, %v7265_v61  ;;  %10767 = vpow2.f32 %v7274_v29  ;;  %v7149_v29 = vsub.f32 0.0, %v7143_v21 }
0x30aa   :  { %v7270_v20 = vsub.f32 0.0, %v7260_v43  ;;  %10769 = vpow2.f32 %v7272_v11 }
0x30ab   :  { %v7278_v57 = vmul.f32 1.442695, %v7271_v37  ;;  %v7156_v62 = vmul.f32 1.442695, %v7149_v29  ;;  %v7319_v29 = vld [vmem:[#allocation17 + $0xf0] sm:$0xff] }
0x30ac   :  { %v7276_v54 = vmul.f32 1.442695, %v7270_v20 }
0x30ad   :  { %10771 = vpow2.f32 %v7278_v57 }
0x30ae   :  { %10773 = vpow2.f32 %v7276_v54 }
0x30b3   :  { %v10768_v41 = vpop.eup %10767 }
0x30b4   :  { %v10770_v22 = vpop.eup %10769  ;;  %v7281_v25 = vadd.f32 1.0, %v10768_v41 }
0x30b5   :  { %v7280_v42 = vadd.f32 1.0, %v10770_v22 }
0x30b6   :  { %10775 = vrcp.f32 %v7281_v25 }
0x30b7   :  { %v10772_v5 = vpop.eup %10771  ;;  %10777 = vrcp.f32 %v7280_v42 }
0x30b8   :  { %v10774_v39 = vpop.eup %10773  ;;  %v7283_v9 = vadd.f32 1.0, %v10772_v5 }
0x30b9   :  { %v7282_v16 = vadd.f32 1.0, %v10774_v39 }
0x30ba   :  { %10779 = vrcp.f32 %v7283_v9 }
0x30bb   :  { %10781 = vrcp.f32 %v7282_v16 }
0x30c0   :  { %v10776_v19 = vpop.eup %10775 }
0x30c1   :  { %v10778_v28 = vpop.eup %10777  ;;  %v7289_v14 = vmul.f32 %v10776_v19, %v7255_v23  ;;  %v7147_v23 = vsub.f32 0.0, %v7133_v27 }
0x30c2   :  { %v7288_v26 = vmul.f32 %v10778_v28, %v7250_v60 }
0x30c3   :  { %v7301_v13 = vmul.f32 %v8428_v44, %v7289_v14  ;;  %v7152_v60 = vmul.f32 1.442695, %v7147_v23  ;;  %v7317_v23 = vld [vmem:[#allocation17 + $0xe0] sm:$0xff] }
0x30c4   :  { %v10780_v38 = vpop.eup %10779  ;;  %v7300_v53 = vmul.f32 %v8428_v44, %v7288_v26 }
0x30c5   :  { %v10782_v59 = vpop.eup %10781  ;;  %v7291_v52 = vmul.f32 %v10780_v38, %v7265_v61  ;;  %v12852_v15 = vadd.f32 %v8430_v18, %v7301_v13  ;;  %10783 = vpow2.f32 %v7152_v60  ;;  %v7148_v61 = vsub.f32 0.0, %v7138_v58 }
0x30c6   :  { %v7290_v35 = vmul.f32 %v10782_v59, %v7260_v43  ;;  %v7312_v8 = vadd.f32 %v8430_v18, %v7300_v53  ;;  %10785 = vpow2.f32 %v7150_v50  ;;  %v7320_v50 = vld [vmem:[#allocation17 + $0xf8] sm:$0xff] }
0x30c7   :  { %v7303_v33 = vmul.f32 %v8428_v44, %v7291_v52  ;;  %v7154_v11 = vmul.f32 1.442695, %v7148_v61  ;;  %10787 = vpow2.f32 %v7156_v62 }
0x30c8   :  { %v7302_v2 = vmul.f32 %v8428_v44, %v7290_v35  ;;  %9582 = vmatprep.mubr.msk.f32.mxu0 %vm682_vm3, %v7312_v8  ;;  %v10347_v1 = vpack.i.bf16 %v12852_v15, %v7312_v8 }
0x30c9   :  { %v12854_v6 = vadd.f32 %v8430_v18, %v7303_v33  ;;  %10789 = vpow2.f32 %v7154_v11 }
0x30ca   :  { %v12856_v32 = vadd.f32 %v8430_v18, %v7302_v2  ;;  %10348 = vrot.lane.b32.xlu0 %v10347_v1, %s11109_s24 }
0x30cc   :  { %v10352_v0 = vpack.i.bf16 %v12854_v6, %v12856_v32 }
0x30ce   :  { %10353 = vrot.lane.b32.xlu1 %v10352_v0, %s11109_s24  ;;  %7542 = vrot.lane.b32.xlu0 %v7312_v8, %s11110_s28 }
0x30cf   :  { %v10784_v43 = vpop.eup %10783 }
0x30d0   :  { %v10786_v48 = vpop.eup %10785  ;;  %v7159_v37 = vadd.f32 1.0, %v10784_v43 }
0x30d1   :  { %v7158_v12 = vadd.f32 1.0, %v10786_v48  ;;  %v10788_v20 = vpop.eup %10787 }
0x30d2   :  { %10358 = vrot.lane.b32.xlu1 %v10347_v1, %s11111_s0  ;;  %7546 = vrot.lane.b32.xlu0 %v12856_v32, %s11110_s28  ;;  %10791 = vrcp.f32 %v7159_v37  ;;  %v7161_v34 = vadd.f32 1.0, %v10788_v20 }
0x30d3   :  { %10793 = vrcp.f32 %v7158_v12  ;;  %v10790_v57 = vpop.eup %10789 }
0x30d4   :  { %v7160_v54 = vadd.f32 1.0, %v10790_v57  ;;  %10795 = vrcp.f32 %v7161_v34 }
0x30d6   :  { %10363 = vrot.lane.b32.xlu1 %v10352_v0, %s11111_s0  ;;  %10797 = vrcp.f32 %v7160_v54 }
0x30da   :  { %7544 = vrot.lane.b32.xlu1 %v12852_v15, %s11110_s28 }
0x30dc   :  { %v10792_v16 = vpop.eup %10791 }
0x30dd   :  { %v10794_v44 = vpop.eup %10793  ;;  %v12884_v18 = vmul.f32 %v10792_v16, %v7133_v27 }
0x30de   :  { %7548 = vrot.lane.b32.xlu1 %v12854_v6, %s11110_s28  ;;  %v12886_v26 = vmul.f32 %v10794_v44, %v7128_v40  ;;  %v10796_v35 = vpop.eup %10795 }
0x30df   :  { %v12898_v1 = vmul.f32 %v10796_v35, %v7143_v21 }
0x30e0   :  { %v10148_v8 = vpack.c.bf16 %v12884_v18, %v12886_v26  ;;  %v10798_v2 = vpop.eup %10797 }
0x30e1   :  { %v12900_v0 = vmul.f32 %v10798_v2, %v7138_v58 }
0x30e3   :  { %v10152_v46 = vpack.c.bf16 %v12898_v1, %v12900_v0 }
0x313c   :  { %v10349_v41 = vpop.permute.xlu0 %10348 }
0x313d   :  { %v10351_v47 = vunpack.i.h.bf16 %v10349_v41  ;;  %v10350_v22 = vunpack.i.l.bf16 %v10349_v41 }
0x313f   :  { %v10124_v5 = vpack.c.bf16 %v10351_v47, %v10350_v22 }
0x3140   :  { %v10354_v25 = vpop.permute.xlu1 %10353  ;;  %v7543_v9 = vpop.permute.xlu0 %7542 }
0x3141   :  { %v10356_v42 = vunpack.i.h.bf16 %v10354_v25  ;;  %v10355_v39 = vunpack.i.l.bf16 %v10354_v25  ;;  %10126 = vmatprep.subr.msk.bf16.mxu0 %vm11481_vm4, %v10124_v5  ;;  %9596 = vmatprep.mubr.msk.f32.mxu1 %vm682_vm3, %v7543_v9 }
0x3142   :  { %10129 = vmatpush3.bf16.xpose.msk.msra.mxu0 %vm11481_vm4, %v10124_v5 }
0x3143   :  { %v10130_v19 = vpack.c.bf16 %v10356_v42, %v10355_v39 }
0x3144   :  { %v10359_v28 = vpop.permute.xlu1 %10358  ;;  %v7547_v40 = vpop.permute.xlu0 %7546 }
0x3145   :  { %v10361_v14 = vunpack.i.h.bf16 %v10359_v28  ;;  %v10360_v38 = vunpack.i.l.bf16 %v10359_v28  ;;  %10132 = vmatprep.subr.msk.bf16.mxu0 %vm11481_vm4, %v10130_v19 }
0x3147   :  { %v10136_v59 = vpack.c.bf16 %v10361_v14, %v10360_v38 }
0x3148   :  { %v10364_v13 = vpop.permute.xlu1 %10363 }
0x3149   :  { %v10366_v52 = vunpack.i.h.bf16 %v10364_v13  ;;  %v10365_v53 = vunpack.i.l.bf16 %v10364_v13  ;;  %10138 = vmatprep.subr.msk.bf16.mxu1 %vm11481_vm4, %v10136_v59 }
0x314a   :  { %10141 = vmatpush3.bf16.xpose.msk.msra.mxu1 %vm11481_vm4, %v10136_v59  ;;  %10135 = vmatpush3.bf16.xpose.msk.msra.mxu0 %vm11481_vm4, %v10130_v19 }
0x314b   :  { %v10142_v33 = vpack.c.bf16 %v10366_v52, %v10365_v53  ;;  %10149 = vmatprep.subr.bf16.mxu0 %v10148_v8 }
0x314c   :  { %v7545_v27 = vpop.permute.xlu1 %7544 }
0x314d   :  { %10144 = vmatprep.subr.msk.bf16.mxu1 %vm11481_vm4, %v10142_v33 }
0x3150   :  { %v7549_v36 = vpop.permute.xlu1 %7548 }
0x3151   :  { %9583 = vmatmul.mubr.msk.f32.vlgmr.msra.gmra.mrb[88].mxu0 %vm682_vm3, %v12852_v15  ;;  %v7318_v15 = vld [vmem:[#allocation17 + $0xe8] sm:$0xff] }
0x3152   :  { %10147 = vmatpush3.bf16.xpose.msk.msra.mxu1 %vm11481_vm4, %v10142_v33  ;;  %9585 = vmatprep.mubr.msk.f32.mxu0 %vm682_vm3, %v12856_v32 }
0x3153   :  { %10151 = vmatpush3.bf16.msra.mxu0 %v10148_v8 }
0x3154   :  { %10153 = vmatprep.subr.bf16.mxu0 %v10152_v46 }
0x3155   :  { %9586 = vmatmul.mubr.msk.f32.gmra.mrb[90].mxu0 %vm682_vm3, %v12854_v6 }
0x3157   :  { %10155 = vmatpush3.bf16.msra.mxu0 %v10152_v46 }
0x3159   :  { %9597 = vmatmul.mubr.msk.f32.vlgmr.msra.gmra.mrb[92].mxu1 %vm682_vm3, %v7545_v27 }
0x315a   :  { %9599 = vmatprep.mubr.msk.f32.mxu1 %vm682_vm3, %v7547_v40 }
0x315d   :  { %9600 = vmatmul.mubr.msk.f32.gmra.mrb[94].mxu1 %vm682_vm3, %v7549_v36 }
0x3224   :  { %v9584_v31 = vpop.f32.mrb[88].mxu0 }
0x3225   :  { %v7421_v60 = vadd.f32 %v9584_v31, %v7318_v15  ;;  %v7415_v32 = vpop.f32.mrb[89].mxu0 }
0x3226   :  { %v7416_v21 = vadd.f32 %v7415_v32, %v7317_v23 }
0x3227   :  { %v8440_v58 = vadd.f32 -0.70710677, %v7421_v60 }
0x3228   :  { %v8439_v61 = vadd.f32 -0.70710677, %v7416_v21  ;;  %v9587_v6 = vpop.f32.mrb[90].mxu0 }
0x3229   :  { %v12915_v62 = vmul.f32 0.7978846, %v8440_v58  ;;  %v7431_v11 = vadd.f32 %v9587_v6, %v7320_v50  ;;  %v7425_v43 = vpop.f32.mrb[91].mxu0 }
0x322a   :  { %v12917_v48 = vmul.f32 0.7978846, %v8439_v61  ;;  %v7426_v37 = vadd.f32 %v7425_v43, %v7319_v29 }
0x322b   :  { %v7451_v20 = vand.u32 2147483647, %v12915_v62  ;;  %v8442_v57 = vadd.f32 -0.70710677, %v7431_v11  ;;  %vm7443_vm3 = vcmp.lt.f32.partialorder %v12915_v62, 0.0 }
0x322c   :  { %v12919_v12 = vpop.f32.mrb[92].mxu1  ;;  %v7450_v54 = vand.u32 2147483647, %v12917_v48  ;;  %v8441_v41 = vadd.f32 -0.70710677, %v7426_v37  ;;  %vm7442_vm4 = vcmp.lt.f32.partialorder %v12917_v48, 0.0 }
0x322d   :  { %v12922_v34 = vpop.f32.mrb[93].mxu1  ;;  %v7455_v47 = vmul.f32 0.3275911, %v7451_v20  ;;  %v12925_v22 = vmul.f32 0.7978846, %v8442_v57  ;;  %v7503_v13 = vsub.f32 0.0, %v7451_v20 }
0x322e   :  { %v7454_v25 = vmul.f32 0.3275911, %v7450_v54  ;;  %v12927_v5 = vmul.f32 0.7978846, %v8441_v41  ;;  %v7502_v52 = vsub.f32 0.0, %v7450_v54 }
0x322f   :  { %v7459_v39 = vadd.f32 1.0, %v7455_v47  ;;  %v7453_v9 = vand.u32 2147483647, %v12925_v22  ;;  %v7507_v35 = vmul.f32 %v7503_v13, %v7451_v20  ;;  %vm7445_vm10 = vcmp.lt.f32.partialorder %v12925_v22, 0.0 }
0x3230   :  { %v12929_v42 = vpop.f32.mrb[94].mxu1  ;;  %v7458_v19 = vadd.f32 1.0, %v7454_v25  ;;  %v7452_v28 = vand.u32 2147483647, %v12927_v5  ;;  %v7506_v46 = vmul.f32 %v7502_v52, %v7450_v54  ;;  %vm7444_vm11 = vcmp.lt.f32.partialorder %v12927_v5, 0.0 }
0x3231   :  { %v12932_v16 = vpop.f32.mrb[95].mxu1  ;;  %10799 = vrcp.f32 %v7459_v39  ;;  %v7457_v44 = vmul.f32 0.3275911, %v7453_v9  ;;  %v7505_v33 = vsub.f32 0.0, %v7453_v9  ;;  %v7512_v23 = vmul.f32 1.442695, %v7507_v35 }
0x3232   :  { %10801 = vrcp.f32 %v7458_v19  ;;  %v7456_v38 = vmul.f32 0.3275911, %v7452_v28  ;;  %v7504_v36 = vsub.f32 0.0, %v7452_v28  ;;  %v7510_v21 = vmul.f32 1.442695, %v7506_v46 }
0x3233   :  { %v7461_v14 = vadd.f32 1.0, %v7457_v44  ;;  %v7509_v60 = vmul.f32 %v7505_v33, %v7453_v9 }
0x3234   :  { %v7460_v59 = vadd.f32 1.0, %v7456_v38  ;;  %v7508_v11 = vmul.f32 %v7504_v36, %v7452_v28 }
0x3235   :  { %10803 = vrcp.f32 %v7461_v14  ;;  %v7516_v37 = vmul.f32 1.442695, %v7509_v60 }
0x3236   :  { %10805 = vrcp.f32 %v7460_v59  ;;  %v7514_v9 = vmul.f32 1.442695, %v7508_v11 }
0x3237   :  { %10807 = vpow2.f32 %v7512_v23 }
0x3238   :  { %10809 = vpow2.f32 %v7510_v21 }
0x3239   :  { %10811 = vpow2.f32 %v7516_v37 }
0x323a   :  { %10813 = vpow2.f32 %v7514_v9 }
0x323b   :  { %v10800_v53 = vpop.eup %10799 }
0x323c   :  { %v10802_v8 = vpop.eup %10801  ;;  %v7467_v2 = vmul.f32 1.0614054, %v10800_v53 }
0x323d   :  { %v7466_v27 = vmul.f32 1.0614054, %v10802_v8 }
0x323e   :  { %v7471_v40 = vadd.f32 -1.4531521, %v7467_v2 }
0x323f   :  { %v10804_v15 = vpop.eup %10803  ;;  %v7470_v31 = vadd.f32 -1.4531521, %v7466_v27 }
0x3240   :  { %v7475_v32 = vmul.f32 %v10800_v53, %v7471_v40  ;;  %v7469_v50 = vmul.f32 1.0614054, %v10804_v15  ;;  %v10806_v29 = vpop.eup %10805 }
0x3241   :  { %v7474_v58 = vmul.f32 %v10802_v8, %v7470_v31  ;;  %v7468_v20 = vmul.f32 1.0614054, %v10806_v29  ;;  %v10808_v27 = vpop.eup %10807 }
0x3242   :  { %v7479_v61 = vadd.f32 1.4214138, %v7475_v32  ;;  %v7473_v6 = vadd.f32 -1.4531521, %v7469_v50  ;;  %v10810_v23 = vpop.eup %10809 }
0x3243   :  { %v7478_v43 = vadd.f32 1.4214138, %v7474_v58  ;;  %v7472_v47 = vadd.f32 -1.4531521, %v7468_v20 }
0x3244   :  { %v7483_v57 = vmul.f32 %v10800_v53, %v7479_v61  ;;  %v7477_v54 = vmul.f32 %v10804_v15, %v7473_v6  ;;  %v10812_v61 = vpop.eup %10811  ;;  %v7447_v6 = vsel %vm7443_vm3, -1.0, %v11112_v55 }
0x3245   :  { %v7482_v41 = vmul.f32 %v10802_v8, %v7478_v43  ;;  %v7476_v44 = vmul.f32 %v10806_v29, %v7472_v47  ;;  %v7449_v47 = vsel %vm7445_vm10, -1.0, %v11112_v55 }
0x3246   :  { %v7487_v25 = vadd.f32 -0.28449672, %v7483_v57  ;;  %v7481_v39 = vadd.f32 1.4214138, %v7477_v54  ;;  %v10814_v57 = vpop.eup %10813 }
0x3247   :  { %v7486_v19 = vadd.f32 -0.28449672, %v7482_v41  ;;  %v7480_v13 = vadd.f32 1.4214138, %v7476_v44 }
0x3248   :  { %v7491_v14 = vmul.f32 %v10800_v53, %v7487_v25  ;;  %v7485_v38 = vmul.f32 %v10804_v15, %v7481_v39 }
0x3249   :  { %v7490_v59 = vmul.f32 %v10802_v8, %v7486_v19  ;;  %v7484_v33 = vmul.f32 %v10806_v29, %v7480_v13  ;;  %v7659_v13 = vmul.f32 %v12749_v17, %v12922_v34  ;;  %v7787_v34 = vld [vmem:[#allocation14 + $0x1d0] sm:$0xff] }
0x324a   :  { %v7495_v28 = vadd.f32 0.2548296, %v7491_v14  ;;  %v7489_v52 = vadd.f32 -0.28449672, %v7485_v38  ;;  %v7448_v14 = vsel %vm7444_vm11, -1.0, %v11112_v55 }
0x324b   :  { %v7494_v35 = vadd.f32 0.2548296, %v7490_v59  ;;  %v7488_v36 = vadd.f32 -0.28449672, %v7484_v33 }
0x324c   :  { %v7499_v2 = vmul.f32 %v10800_v53, %v7495_v28  ;;  %v7493_v46 = vmul.f32 %v10804_v15, %v7489_v52 }
0x324d   :  { %v7498_v40 = vmul.f32 %v10802_v8, %v7494_v35  ;;  %v7492_v21 = vmul.f32 %v10806_v29, %v7488_v36  ;;  %v7446_v8 = vsel %vm7442_vm4, -1.0, %v11112_v55  ;;  %v7662_v55 = vmul.f32 %v12762_v7, %v12929_v42  ;;  %v7788_v42 = vld [vmem:[#allocation14 + $0x1d8] sm:$0xff] }
0x324e   :  { %v7519_v31 = vmul.f32 %v10808_v27, %v7499_v2  ;;  %v7497_v60 = vadd.f32 0.2548296, %v7493_v46  ;;  %v10160_v46 = vpack.c.bf16 %v7788_v42, %v7787_v34  ;;  %v7789_v27 = vld [vmem:[#allocation14 + $0x1e0] sm:$0xff] }
0x324f   :  { %v7518_v32 = vmul.f32 %v10810_v23, %v7498_v40  ;;  %v7496_v53 = vadd.f32 0.2548296, %v7492_v21  ;;  %v7790_v40 = vld [vmem:[#allocation14 + $0x1e8] sm:$0xff]  ;;  %v7792_v23 = vld [vmem:[#allocation14 + $0x1f8] sm:$0xff] }
0x3250   :  { %v7523_v50 = vsub.f32 1.0, %v7519_v31  ;;  %v7501_v58 = vmul.f32 %v10804_v15, %v7497_v60 }
0x3251   :  { %v7522_v11 = vsub.f32 1.0, %v7518_v32  ;;  %v7500_v20 = vmul.f32 %v10806_v29, %v7496_v53  ;;  %v7660_v29 = vmul.f32 %v12736_v45, %v12919_v12  ;;  %v7786_v12 = vld [vmem:[#allocation14 + $0x1c8] sm:$0xff] }
0x3252   :  { %v7527_v43 = vmul.f32 %v7523_v50, %v7447_v6  ;;  %v7521_v37 = vmul.f32 %v10812_v61, %v7501_v58 }
0x3253   :  { %v7526_v62 = vmul.f32 %v7522_v11, %v7446_v8  ;;  %v7520_v15 = vmul.f32 %v10814_v57, %v7500_v20 }
0x3254   :  { %v7531_v54 = vadd.f32 1.0, %v7527_v43  ;;  %v7525_v48 = vsub.f32 1.0, %v7521_v37 }
0x3255   :  { %v7530_v41 = vadd.f32 1.0, %v7526_v62  ;;  %v7524_v9 = vsub.f32 1.0, %v7520_v15  ;;  %v8455_v62 = vld [vmem:[#allocation16 + $0x7] ss:$0 sm:$0xff] }
0x3256   :  { %v7529_v25 = vmul.f32 %v7525_v48, %v7449_v47  ;;  %v7535_v39 = vmul.f32 0.5, %v7531_v54 }
0x3257   :  { %v7534_v19 = vmul.f32 0.5, %v7530_v41  ;;  %v7528_v38 = vmul.f32 %v7524_v9, %v7448_v14 }
0x3258   :  { %v7533_v44 = vadd.f32 1.0, %v7529_v25  ;;  %v7539_v22 = vmul.f32 %v12730_v63, %v7535_v39 }
0x3259   :  { %v7538_v59 = vmul.f32 %v12743_v3, %v7534_v19  ;;  %v7532_v52 = vadd.f32 1.0, %v7528_v38  ;;  %v7661_v3 = vmul.f32 %v12777_v10, %v12932_v16  ;;  %v10164_v10 = vpack.c.bf16 %v7790_v40, %v7789_v27  ;;  %v7791_v16 = vld [vmem:[#allocation14 + $0x1f0] sm:$0xff] }
0x325a   :  { %v7664_v5 = vadd.f32 %v7660_v29, %v7539_v22  ;;  %v7537_v28 = vmul.f32 0.5, %v7533_v44  ;;  %v10168_v60 = vpack.c.bf16 %v7792_v23, %v7791_v16  ;;  %v7984_v22 = vld [vmem:[%s13030_s17] sm:$0xff] }
0x325b   :  { %v7663_v35 = vadd.f32 %v7659_v13, %v7538_v59  ;;  %v7536_v2 = vmul.f32 0.5, %v7532_v52  ;;  %v7910_v29 = vld [vmem:[%s13029_s16] sm:$0x3] }
0x325c   :  { %v7541_v33 = vmul.f32 %v12756_v49, %v7537_v28  ;;  %v7785_v49 = vld [vmem:[#allocation14 + $0x1c0] sm:$0xff] }
0x325d   :  { %9610 = vmatprep.mubr.msk.f32.mxu0 %vm316_vm2, %v7663_v35  ;;  %v7540_v45 = vmul.f32 %v12771_v56, %v7536_v2  ;;  %v10156_v7 = vpack.c.bf16 %v7786_v12, %v7785_v49  ;;  %v8461_v28 = vld [vmem:[%s13031_s18] ss:$0 sm:$0xff] }
0x325e   :  { %v7666_v63 = vadd.f32 %v7662_v55, %v7541_v33  ;;  %9611 = vmatmul.mubr.msk.f32.vlgmr.msra.gmra.mrb[92].mxu0 %vm316_vm2, %v7664_v5 }
0x325f   :  { %v7665_v17 = vadd.f32 %v7661_v3, %v7540_v45  ;;  %10157 = vmatprep.subr.bf16.mxu1 %v10156_v7 }
0x3260   :  { %10159 = vmatpush3.bf16.msra.mxu1 %v10156_v7 }
0x3261   :  { %9613 = vmatprep.mubr.msk.f32.mxu0 %vm316_vm2, %v7665_v17  ;;  %10161 = vmatprep.subr.bf16.mxu1 %v10160_v46 }
0x3262   :  { %9614 = vmatmul.mubr.msk.f32.gmra.mrb[94].mxu0 %vm316_vm2, %v7666_v63 }
0x3264   :  { %10163 = vmatpush3.bf16.msra.mxu1 %v10160_v46 }
0x3265   :  { %10165 = vmatprep.subr.bf16.mxu1 %v10164_v10 }
0x3268   :  { %10167 = vmatpush3.bf16.msra.mxu1 %v10164_v10 }
0x3269   :  { %10169 = vmatprep.subr.bf16.mxu1 %v10168_v60 }
0x326c   :  { %10171 = vmatpush3.bf16.msra.mxu1 %v10168_v60 }
0x3331   :  { %v9612_v36 = vpop.f32.mrb[92].mxu0 }
0x3332   :  { %7770 = vrot.lane.b32.xlu1 %v9612_v36, %s11113_s2  ;;  %v7745_v56 = vpop.f32.mrb[93].mxu0 }
0x3333   :  { %7768 = vrot.lane.b32.xlu0 %v7745_v56, %s11113_s2 }
0x3335   :  { %v9615_v31 = vpop.f32.mrb[94].mxu0 }
0x3336   :  { %7774 = vrot.lane.b32.xlu1 %v9615_v31, %s11113_s2  ;;  %v7755_v32 = vpop.f32.mrb[95].mxu0 }
0x3337   :  { %7772 = vrot.lane.b32.xlu0 %v7755_v32, %s11113_s2 }
0x33a4   :  { %v7771_v21 = vpop.permute.xlu1 %7770 }
0x33a5   :  { %v7781_v50 = vmul.f32 %v7771_v21, %v12884_v18  ;;  %v7769_v58 = vpop.permute.xlu0 %7768 }
0x33a6   :  { %v7780_v61 = vmul.f32 %v7769_v58, %v12886_v26 }
0x33a7   :  { %7807 = vrot.lane.b32.xlu1 %v7781_v50, %s11113_s2 }
0x33a8   :  { %7805 = vrot.lane.b32.xlu0 %v7780_v61, %s11113_s2  ;;  %v7775_v6 = vpop.permute.xlu1 %7774 }
0x33a9   :  { %v7783_v11 = vmul.f32 %v7775_v6, %v12898_v1  ;;  %v7773_v53 = vpop.permute.xlu0 %7772  ;;  %v11114_v1 = vmov 0.0|0.0  }
0x33aa   :  { %v7782_v43 = vmul.f32 %v7773_v53, %v12900_v0  ;;  %10172 = vmatprep.subr.bf16.mxu0 %v11114_v1  ;;  %v11116_v0 = vmov 0.0  }
0x33ab   :  { %7811 = vrot.lane.b32.xlu1 %v7783_v11, %s11113_s2  ;;  %9646 = vmatprep.mubr.msk.f32.mxu0 %vm11115_vm12, %v11116_v0 }
0x33ac   :  { %7809 = vrot.lane.b32.xlu0 %v7782_v43, %s11113_s2 }
0x3419   :  { %v7808_v37 = vpop.permute.xlu1 %7807 }
0x341a   :  { %v7806_v8 = vpop.permute.xlu0 %7805 }
0x341b   :  { %9632 = vmatprep.mubr.msk.f32.mxu1 %vm1162_vm9, %v7806_v8 }
0x341c   :  { %9633 = vmatmul.mubr.msk.f32.vlgmr.msra.gmra.mrb[96].mxu1 %vm1162_vm9, %v7808_v37 }
0x341d   :  { %v7812_v26 = vpop.permute.xlu1 %7811 }
0x341e   :  { %v7810_v18 = vpop.permute.xlu0 %7809 }
0x341f   :  { %9635 = vmatprep.mubr.msk.f32.mxu1 %vm1162_vm9, %v7810_v18 }
0x3420   :  { %9636 = vmatmul.mubr.msk.f32.gmra.mrb[98].mxu1 %vm1162_vm9, %v7812_v26  ;;  %vm8068_vm9 = vcmask 9216  }
0x34ef   :  { %v9634_v20 = vpop.f32.mrb[96].mxu1 }
0x34f0   :  { %v7893_v57 = vadd.f32 %v9634_v20, %v8455_v62  ;;  %v7887_v54 = vpop.f32.mrb[97].mxu1 }
0x34f1   :  { %v7888_v48 = vadd.f32 %v8455_v62, %v7887_v54 }
0x34f2   :  { %v7907_v41 = vadd.f32 %v7893_v57, %v12800_v4  ;;  %v7985_v4 = vld [vmem:[%s13030_s17 + $0x8] sm:$0xff] }
0x34f3   :  { %v7906_v47 = vadd.f32 %v7888_v48, %v12803_v30  ;;  %v9637_v25 = vpop.f32.mrb[98].mxu1  ;;  %v10179_v38 = vpack.c.bf16 %v7985_v4, %v7984_v22 }
0x34f4   :  { %v7903_v39 = vadd.f32 %v9637_v25, %v8455_v62  ;;  %v7897_v9 = vpop.f32.mrb[99].mxu1 }
0x34f5   :  { %v10173_v15 = vpack.c.bf16 %v7907_v41, %v7906_v47  ;;  %v7898_v19 = vadd.f32 %v8455_v62, %v7897_v9 }
0x34f6   :  { %v7909_v44 = vadd.f32 %v7903_v39, %v12813_v24  ;;  %v7987_v24 = vld [vmem:[%s13030_s17 + $0x18] sm:$0xff] }
0x34f7   :  { %10174 = vmatpush3.bf16.msra.mxu0 %v10173_v15  ;;  %v7908_v14 = vadd.f32 %v7898_v19, %v12810_v51  ;;  %v7986_v51 = vld [vmem:[%s13030_s17 + $0x10] sm:$0xff]  ;;  %s11059_s17 = scalar_lea.vmem %s8077_s23, 32 }
0x34f8   :  { %10175 = vmatprep.subr.bf16.mxu0 %v11114_v1  ;;  %v10182_v59 = vpack.c.bf16 %v7987_v24, %v7986_v51  ;;  %p11060_p10 = scmp.ne.s32.totalorder %s8077_s23, %s11059_s17  ;;  %p11065_p12 = scmp.lt.s32.totalorder %s11059_s17, %s11059_s17 }
0x34f9   :  { %v10176_v30 = vpack.c.bf16 %v7909_v44, %v7908_v14 }
0x34fa   :  { %p11066_p13 = por %p11065_p12, %p11064_p11 }
0x34fb   :  { %10177 = vmatpush3.bf16.msra.mxu0 %v10176_v30 }
0x34fc   :  { %10178 = vmatprep.subr.bf16.mxu0 %v11114_v1  ;;  %p11067_p0 = pnand %p11066_p13, %p11060_p10 }
0x34fe   :  { %9647 = vmatmul.mubr.msk.f32.vlgmr.msra.gmra.mrb[96].mxu0 %vm316_vm2, %v7910_v29 }
0x34ff   :  { %10180 = vmatpush3.bf16.msra.mxu0 %v10179_v38  ;;  %9657 = vmatprep.mubr.msk.f32.mxu0 %vm11115_vm12, %v11116_v0 }
0x3500   :  { %10181 = vmatprep.subr.bf16.mxu0 %v11114_v1 }
0x3503   :  { %10183 = vmatpush3.bf16.msra.mxu0 %v10182_v59 }
0x35d1   :  { %v7980_v13 = vpop.f32.mrb[96].mxu0 }
0x35d2   :  { %v9648_v5 = vpop.f32.mrb[97].mxu0  ;;  %9658 = vmatmul.mubr.msk.f32.vlgmr.msra.gmra.mrb[98].mxu0 %vm316_vm2, %v7980_v13 }
0x36a5   :  { %v8064_v52 = vpop.f32.mrb[98].mxu0 }
0x36a6   :  { %v8065_v35 = vadd.f32 %v8461_v28, %v8064_v52  ;;  %v9659_v33 = vpop.f32.mrb[99].mxu0 }
0x36a8   :  { %8069 = vst.msk [vmem:[#allocation19] sm:$0x3] %vm8068_vm9, %v8065_v35 }
0x36a9   :  { %11070 = shalt.err (!%p11067_p0)
}
0x36aa   :  { %s13058_s3 = sld [smem:[#allocation31_spill]] }
0x36b0   :  { %s11071_s6 = scalar_lea.hbm %s13058_s3, 32 }
0x36b1   :  { %p11072_p1 = scmp.ne.s32.totalorder %s13058_s3, %s11071_s6  ;;  %p11075_p2 = scmp.lt.u32.totalorder %s11071_s6, %s13058_s3 }
0x36b3   :  { %p11077_p3 = pnand %p11075_p2, %p11072_p1 }
0x36b5   :  { %11080 = shalt.err (!%p11077_p3)
}
0x36b6   :  { %8079 = dma.vmem_to_hbm [thread:$0]  %s8077_s23, 32, %s13058_s3, [#allocation4]  }
0x36b7   :  { %11093 = dma.done.wait [#allocation4], 32  }
0x36b8   :  { %11094 = vsyncadd [#allocation4], 4294967264 }
0x36b9   :  { %8083 = vsyncpa [#allocation3], 1 }
0x36ba   :  { %8084 = vsyncpa [#allocation6], 1 }
0x36bb   :  { %8085 = vsyncpa [#allocation9], 1 }
0x36bc   :  { %8086 = vsyncpa [#allocation12], 1 }
0x36bd   :  { %8087 = vsyncpa [#allocation15], 1 }
0x36be   :  { %8088 = vsyncpa [#allocation18], 1 }
0x36bf   :  { %8089 = vsyncpa [#allocation4], 1 }

</bundles_post_ra>
